<compile_context>
chip_gen: v5e
topology: v5e:2x2
jax: 0.10.0
libtpu: 0.0.40
codegen_flags: <defaults>
</compile_context>

<pallas_src>
import functools

import jax
import jax.numpy as jnp
from jax.experimental import pallas as pl
from jax.experimental.pallas import tpu as pltpu

# NOTE: v7x has 64 MiB VMEM (vs 128 on v5e/v6e); tiles here are sized to fit
# comfortably under this limit with double-buffering on all three generations.
_VMEM_LIMIT = 64 * 1024 * 1024


# ---------------------------------------------------------------------------
# Linear (matmul + bias), tiled over rows.  bf16 MXU operands, f32 accumulation.
# ---------------------------------------------------------------------------
def _linear_kernel(x_ref, w_ref, b_ref, o_ref):
    acc = jnp.dot(x_ref[...], w_ref[...], preferred_element_type=jnp.float32)
    o_ref[...] = (acc + b_ref[...]).astype(o_ref.dtype)


def linear(x2d, w, b, *, out_dtype=jnp.float32, block_m=512):
    M, K = x2d.shape
    Kw, Nout = w.shape
    assert K == Kw
    tm = M if M <= block_m else block_m          # partial tail block is masked by Pallas
    grid_m = pl.cdiv(M, tm)
    return pl.pallas_call(
        _linear_kernel,
        out_shape=jax.ShapeDtypeStruct((M, Nout), out_dtype),
        grid=(grid_m,),
        in_specs=[
            pl.BlockSpec((tm, K), lambda i: (i, 0)),
            pl.BlockSpec((K, Nout), lambda i: (0, 0)),
            pl.BlockSpec((1, Nout), lambda i: (0, 0)),
        ],
        out_specs=pl.BlockSpec((tm, Nout), lambda i: (i, 0)),
        compiler_params=pltpu.CompilerParams(
            dimension_semantics=("parallel",),
            vmem_limit_bytes=_VMEM_LIMIT),
    )(x2d.astype(jnp.bfloat16), w.astype(jnp.bfloat16),
      b.reshape(1, Nout).astype(jnp.float32))


# ---------------------------------------------------------------------------
# Output projection fused with the `attn_out + lepe` residual add.
# ---------------------------------------------------------------------------
def _linear_add_kernel(x_ref, y_ref, w_ref, b_ref, o_ref):
    s = x_ref[...].astype(jnp.float32) + y_ref[...].astype(jnp.float32)
    acc = jnp.dot(s.astype(jnp.bfloat16), w_ref[...],
                  preferred_element_type=jnp.float32)
    o_ref[...] = (acc + b_ref[...]).astype(o_ref.dtype)


def linear_add(x2d, y2d, w, b, *, out_dtype=jnp.float32, block_m=512):
    M, K = x2d.shape
    Kw, Nout = w.shape
    assert K == Kw and y2d.shape == (M, K)
    tm = M if M <= block_m else block_m
    grid_m = pl.cdiv(M, tm)
    return pl.pallas_call(
        _linear_add_kernel,
        out_shape=jax.ShapeDtypeStruct((M, Nout), out_dtype),
        grid=(grid_m,),
        in_specs=[
            pl.BlockSpec((tm, K), lambda i: (i, 0)),
            pl.BlockSpec((tm, K), lambda i: (i, 0)),
            pl.BlockSpec((K, Nout), lambda i: (0, 0)),
            pl.BlockSpec((1, Nout), lambda i: (0, 0)),
        ],
        out_specs=pl.BlockSpec((tm, Nout), lambda i: (i, 0)),
        compiler_params=pltpu.CompilerParams(
            dimension_semantics=("parallel",),
            vmem_limit_bytes=_VMEM_LIMIT),
    )(x2d.astype(jnp.bfloat16), y2d.astype(jnp.bfloat16),
      w.astype(jnp.bfloat16), b.reshape(1, Nout).astype(jnp.float32))


# ---------------------------------------------------------------------------
# LEPE: 3x3 depthwise conv kernel (NHWC, groups == channels).
# ---------------------------------------------------------------------------
def _lepe_kernel(H, W, x_ref, w_ref, b_ref, o_ref):
    # Accumulator initialized from the first tap (saves one zero-init + add).
    acc = x_ref[0, 0:H, 0:W, :] * w_ref[0, 0:1, :]
    for dy in range(3):
        for dx in range(3):
            if dy == 0 and dx == 0:
                continue
            acc = acc + x_ref[0, dy:dy + H, dx:dx + W, :] * w_ref[dy, dx:dx + 1, :]
    o_ref[0] = (acc + b_ref[...]).astype(o_ref.dtype)


def depthwise_conv3x3(x_nhwc, w, b, *, out_dtype=jnp.bfloat16):
    # TODO(synk): for large H*W*C, tile H with a 2-row halo and mask the border
    # in-kernel instead of jnp.pad (saves one padded HBM copy of v).
    N, H, W, C = x_nhwc.shape
    xp = jnp.pad(x_nhwc, ((0, 0), (1, 1), (1, 1), (0, 0)))
    Hp, Wp = H + 2, W + 2
    kernel = functools.partial(_lepe_kernel, H, W)
    return pl.pallas_call(
        kernel,
        out_shape=jax.ShapeDtypeStruct((N, H, W, C), out_dtype),
        grid=(N,),
        in_specs=[
            pl.BlockSpec((1, Hp, Wp, C), lambda n: (n, 0, 0, 0)),
            pl.BlockSpec((3, 3, C), lambda n: (0, 0, 0)),
            pl.BlockSpec((1, C), lambda n: (0, 0)),
        ],
        out_specs=pl.BlockSpec((1, H, W, C), lambda n: (n, 0, 0, 0)),
        compiler_params=pltpu.CompilerParams(
            dimension_semantics=("parallel",),
            vmem_limit_bytes=_VMEM_LIMIT),
    )(xp, w.astype(jnp.float32), b.reshape(1, C).astype(jnp.float32))


# ---------------------------------------------------------------------------
# Routed (gathered top-k) regional attention — flash-style accumulation.
# ---------------------------------------------------------------------------
def _attn_kernel(scale, topk, ridx_ref, q_ref, k_ref, v_ref, o_ref,
                 m_ref, l_ref, acc_ref):
    t = pl.program_id(2)

    @pl.when(t == 0)
    def _init():
        m_ref[...] = jnp.full(m_ref.shape, -jnp.inf, m_ref.dtype)
        l_ref[...] = jnp.zeros(l_ref.shape, l_ref.dtype)
        acc_ref[...] = jnp.zeros(acc_ref.shape, acc_ref.dtype)

    q = q_ref[0, 0]     # (nhead, w2, hd)  bf16
    k = k_ref[0, 0]     # routed region t, gathered by the kv index_map
    v = v_ref[0, 0]

    # Per-head Q K^T: batched over heads, contraction on head_dim (no explicit .T).
    s = jax.lax.dot_general(q, k, (((2,), (2,)), ((0,), (0,))),
                            preferred_element_type=jnp.float32) * scale  # (h, w2, w2)

    m_prev = m_ref[...]                                   # (h, w2, 1)
    m_new = jnp.maximum(m_prev, jnp.max(s, axis=-1, keepdims=True))
    alpha = jnp.exp(m_prev - m_new)
    p = jnp.exp(s - m_new)
    l_ref[...] = alpha * l_ref[...] + jnp.sum(p, axis=-1, keepdims=True)
    pv = jax.lax.dot_general(p.astype(jnp.bfloat16), v,
                             (((2,), (1,)), ((0,), (0,))),
                             preferred_element_type=jnp.float32)          # (h, w2, hd)
    acc_ref[...] = alpha * acc_ref[...] + pv
    m_ref[...] = m_new

    @pl.when(t == topk - 1)
    def _finalize():
        inv_l = pl.reciprocal(l_ref[...], approx=True)    # EUP, ~free vs a divide
        o_ref[0, 0] = (acc_ref[...] * inv_l).astype(o_ref.dtype)


def routed_attention(q5, k5, v5, r_idx, *, scale, topk):
    # q5/k5/v5: (N, p2, nhead, w2, hd) bf16; r_idx: (N, p2, topk) int32
    N, p2, nhead, w2, hd = q5.shape
    r_flat = r_idx.reshape(-1).astype(jnp.int32)          # (N*p2*topk,)

    def q_map(n, j, t, ridx):
        return (n, j, 0, 0, 0)

    def kv_map(n, j, t, ridx):
        # Scalar-prefetched routing index drives which KV region gets DMA'd.
        return (n, ridx[(n * p2 + j) * topk + t], 0, 0, 0)

    blk = (1, 1, nhead, w2, hd)
    kernel = functools.partial(_attn_kernel, scale, topk)
    return pl.pallas_call(
        kernel,
        out_shape=jax.ShapeDtypeStruct((N, p2, nhead, w2, hd), jnp.bfloat16),
        grid_spec=pltpu.PrefetchScalarGridSpec(
            num_scalar_prefetch=1,
            grid=(N, p2, topk),
            in_specs=[pl.BlockSpec(blk, q_map),
                      pl.BlockSpec(blk, kv_map),
                      pl.BlockSpec(blk, kv_map)],
            out_specs=pl.BlockSpec(blk, q_map),
            scratch_shapes=[pltpu.VMEM((nhead, w2, 1), jnp.float32),
                            pltpu.VMEM((nhead, w2, 1), jnp.float32),
                            pltpu.VMEM((nhead, w2, hd), jnp.float32)]),
        compiler_params=pltpu.CompilerParams(
            dimension_semantics=("parallel", "parallel", "arbitrary"),
            vmem_limit_bytes=_VMEM_LIMIT),
    )(r_flat, q5, k5, v5)


# ---------------------------------------------------------------------------
# Full BiLevelRoutingAttention_nchw forward.
# ---------------------------------------------------------------------------
def bilevel_routing_attention_nchw(x_nchw, params, *, num_heads, n_win, topk,
                                   qk_scale=None):
    N, C, H, W = x_nchw.shape
    dim = C
    assert dim % num_heads == 0
    hd = dim // num_heads
    scale = qk_scale if qk_scale is not None else dim ** (-0.5)

    rs_h, rs_w = H // n_win, W // n_win
    # TODO(synk): implement the auto_pad branch of regional_routing_attention_torch
    # for H/W not divisible by the region size; here we require even divisibility.
    assert rs_h > 0 and rs_w > 0 and H % rs_h == 0 and W % rs_w == 0
    nrh, nrw = H // rs_h, W // rs_w
    p2 = nrh * nrw
    w2 = rs_h * rs_w
    assert topk <= p2

    x = jnp.transpose(x_nchw, (0, 2, 3, 1))               # NHWC (channels on lanes)

    # --- QKV 1x1-conv projection (Pallas tiled matmul, bf16 activations) -------
    qkv = linear(x.reshape(-1, dim), params["w_qkv"], params["b_qkv"],
                 out_dtype=jnp.bfloat16).reshape(N, H, W, 3 * dim)
    q = qkv[..., :dim]
    k = qkv[..., dim:2 * dim]
    v = qkv[..., 2 * dim:]

    # --- region-level routing (tiny p2 x p2 problem -> plain JAX) --------------
    def region_mean(t):
        t = t.astype(jnp.float32).reshape(N, nrh, rs_h, nrw, rs_w, dim)
        return t.mean(axis=(2, 4)).reshape(N, p2, dim)

    a_r = jnp.einsum("npc,nqc->npq", region_mean(q), region_mean(k))
    _, r_idx = jax.lax.top_k(a_r, topk)                   # (N, p2, topk)

    # --- rearrange to per-region / per-head sequences (wrapper-side plumbing) ---
    def to_regions(t):
        t = t.reshape(N, nrh, rs_h, nrw, rs_w, num_heads, hd)
        t = t.transpose(0, 1, 3, 5, 2, 4, 6)
        return t.reshape(N, p2, num_heads, w2, hd)

    q_r5, k_r5, v_r5 = to_regions(q), to_regions(k), to_regions(v)

    out5 = routed_attention(q_r5, k_r5, v_r5, r_idx, scale=scale, topk=topk)

    # back to NHWC: (N, p2, m, w2, hd) -> (N, H, W, dim)
    out = out5.reshape(N, nrh, nrw, num_heads, rs_h, rs_w, hd)
    out = out.transpose(0, 1, 4, 2, 5, 3, 6).reshape(N, H, W, dim)

    # --- LEPE: depthwise 3x3 conv on v (Pallas) ---------------------------------
    lepe = depthwise_conv3x3(v, params["w_lepe"], params["b_lepe"])

    # --- fused (attn_out + lepe) @ W_o + b_o (Pallas) ---------------------------
    y = linear_add(out.reshape(-1, dim), lepe.reshape(-1, dim),
                   params["w_o"], params["b_o"], out_dtype=jnp.float32)
    y = y.reshape(N, H, W, dim)
    return jnp.transpose(y, (0, 3, 1, 2))                 # back to NCHW


# ---------------------------------------------------------------------------
if __name__ == "__main__":
    # Small shapes consistent with the module.
    N, dim, H, W = 2, 32, 16, 16
    n_win, num_heads, topk = 2, 4, 2

    key = jax.random.PRNGKey(0)
    keys = jax.random.split(key, 7)
    params = {
        # qkv_linear: Conv2d(dim, 3*dim, 1) as (in, out) matmul weight
        "w_qkv": 0.1 * jax.random.normal(keys[0], (dim, 3 * dim), jnp.float32),
        "b_qkv": 0.1 * jax.random.normal(keys[1], (3 * dim,), jnp.float32),
        # output_linear: Conv2d(dim, dim, 1)
        "w_o": 0.1 * jax.random.normal(keys[2], (dim, dim), jnp.float32),
        "b_o": 0.1 * jax.random.normal(keys[3], (dim,), jnp.float32),
        # lepe: depthwise Conv2d(dim, dim, 3, padding=1, groups=dim), stored HWC
        "w_lepe": 0.1 * jax.random.normal(keys[4], (3, 3, dim), jnp.float32),
        "b_lepe": 0.1 * jax.random.normal(keys[5], (dim,), jnp.float32),
    }
    x = jax.random.normal(keys[6], (N, dim, H, W), jnp.float32)

    fwd = jax.jit(functools.partial(bilevel_routing_attention_nchw,
                                    num_heads=num_heads, n_win=n_win, topk=topk))
    out = jax.block_until_ready(fwd(x, params))
    assert out.shape == (N, dim, H, W), out.shape
    print("KERNEL_OK")
</pallas_src>

<mosaic_0001>
module attributes {stable_mosaic.version = 11 : i64} {
  func.func @_linear_kernel(%arg0: i32, %arg1: memref<512x32xbf16, #tpu.memory_space<vmem>>, %arg2: memref<32x96xbf16, #tpu.memory_space<vmem>>, %arg3: memref<1x96xf32, #tpu.memory_space<vmem>>, %arg4: memref<512x96xbf16, #tpu.memory_space<vmem>>) attributes {dimension_semantics = [#tpu.dimension_semantics<parallel>], iteration_bounds = array<i64: 1>, scalar_prefetch = 0 : i64, scratch_operands = 0 : i64, tpu.core_type = #tpu.core_type<tc>, window_params = [{transform_indices = @transform_0, window_bounds = array<i64: 512, 32>}, {pipeline_mode = #tpu.pipeline_mode<synchronous>, transform_indices = @transform_1, window_bounds = array<i64: 32, 96>}, {pipeline_mode = #tpu.pipeline_mode<synchronous>, transform_indices = @transform_2, window_bounds = array<i64: 1, 96>}, {transform_indices = @transform_3, window_bounds = array<i64: 512, 96>}]} {
    %c0 = arith.constant 0 : index
    %c0_0 = arith.constant 0 : index
    %0 = vector.load %arg1[%c0, %c0_0] : memref<512x32xbf16, #tpu.memory_space<vmem>>, vector<512x32xbf16>
    %c0_1 = arith.constant 0 : index
    %c0_2 = arith.constant 0 : index
    %1 = vector.load %arg2[%c0_1, %c0_2] : memref<32x96xbf16, #tpu.memory_space<vmem>>, vector<32x96xbf16>
    %cst = arith.constant dense<0.000000e+00> : vector<512x96xf32>
    %2 = tpu.matmul %0, %1, %cst {dimension_numbers = #tpu.dot_dimension_numbers<[1], [0], [0], [1], [0, 0, 1, 1], [], []>} : vector<512x32xbf16>, vector<32x96xbf16>, vector<512x96xf32> -> vector<512x96xf32>
    %c0_3 = arith.constant 0 : index
    %c0_4 = arith.constant 0 : index
    %3 = vector.load %arg3[%c0_3, %c0_4] : memref<1x96xf32, #tpu.memory_space<vmem>>, vector<1x96xf32>
    %4 = vector.broadcast %3 : vector<1x96xf32> to vector<512x96xf32>
    %5 = arith.addf %2, %4 : vector<512x96xf32>
    %6 = arith.truncf %5 : vector<512x96xf32> to vector<512x96xbf16>
    %c0_5 = arith.constant 0 : index
    %c0_6 = arith.constant 0 : index
    %7 = vector.load %arg4[%c0_5, %c0_6] : memref<512x96xbf16, #tpu.memory_space<vmem>>, vector<512x96xbf16>
    tpu.vector_store %arg4[%c0_5, %c0_6], %6 {strides = array<i32>} : memref<512x96xbf16, #tpu.memory_space<vmem>>, vector<512x96xbf16>,
    return
  }
  func.func @transform_0(%arg0: i32) -> (i32, i32) {
    %c0_i32 = arith.constant 0 : i32
    %c0_i32_0 = arith.constant 0 : i32
    return %arg0, %c0_i32 : i32, i32
  }
  func.func @transform_1(%arg0: i32) -> (i32, i32) {
    %c0_i32 = arith.constant 0 : i32
    %c0_i32_0 = arith.constant 0 : i32
    %c0_i32_1 = arith.constant 0 : i32
    return %c0_i32, %c0_i32_0 : i32, i32
  }
  func.func @transform_2(%arg0: i32) -> (i32, i32) {
    %c0_i32 = arith.constant 0 : i32
    %c0_i32_0 = arith.constant 0 : i32
    %c0_i32_1 = arith.constant 0 : i32
    return %c0_i32, %c0_i32_0 : i32, i32
  }
  func.func @transform_3(%arg0: i32) -> (i32, i32) {
    %c0_i32 = arith.constant 0 : i32
    %c0_i32_0 = arith.constant 0 : i32
    return %arg0, %c0_i32 : i32, i32
  }
}

module attributes {stable_mosaic.version = 11 : i64} {
  func.func @_attn_kernel(%arg0: i32, %arg1: i32, %arg2: i32, %arg3: memref<16xi32, #tpu.memory_space<smem>>, %arg4: memref<1x1x4x64x8xbf16, #tpu.memory_space<vmem>>, %arg5: memref<1x1x4x64x8xbf16, #tpu.memory_space<vmem>>, %arg6: memref<1x1x4x64x8xbf16, #tpu.memory_space<vmem>>, %arg7: memref<1x1x4x64x8xbf16, #tpu.memory_space<vmem>>, %arg8: memref<4x64x1xf32, #tpu.memory_space<vmem>>, %arg9: memref<4x64x1xf32, #tpu.memory_space<vmem>>, %arg10: memref<4x64x8xf32, #tpu.memory_space<vmem>>) attributes {dimension_semantics = [#tpu.dimension_semantics<parallel>, #tpu.dimension_semantics<parallel>, #tpu.dimension_semantics<arbitrary>], iteration_bounds = array<i64: 2, 4, 2>, scalar_prefetch = 1 : i64, scratch_operands = 3 : i64, tpu.core_type = #tpu.core_type<tc>, window_params = [{transform_indices = @transform_0, window_bounds = array<i64: 1, 1, 4, 64, 8>}, {transform_indices = @transform_1, window_bounds = array<i64: 1, 1, 4, 64, 8>}, {transform_indices = @transform_2, window_bounds = array<i64: 1, 1, 4, 64, 8>}, {transform_indices = @transform_3, window_bounds = array<i64: 1, 1, 4, 64, 8>}]} {
    %c0_i32 = arith.constant 0 : i32
    %0 = arith.cmpi eq, %arg2, %c0_i32 : i32
    %1 = arith.extui %0 : i1 to i32
    %c0_i32_0 = arith.constant 0 : i32
    %2 = arith.cmpi ne, %1, %c0_i32_0 : i32
    scf.if %2 {
      %cst_38 = arith.constant 0xFF800000 : f32
      %38 = vector.broadcast %cst_38 : f32 to vector<4x64x1xf32>
      %c0_39 = arith.constant 0 : index
      %c0_40 = arith.constant 0 : index
      %c0_41 = arith.constant 0 : index
      %39 = vector.load %arg8[%c0_39, %c0_40, %c0_41] : memref<4x64x1xf32, #tpu.memory_space<vmem>>, vector<4x64x1xf32>
      tpu.vector_store %arg8[%c0_39, %c0_40, %c0_41], %38 {strides = array<i32>} : memref<4x64x1xf32, #tpu.memory_space<vmem>>, vector<4x64x1xf32>,
      %cst_42 = arith.constant 0.000000e+00 : f32
      %40 = vector.broadcast %cst_42 : f32 to vector<4x64x1xf32>
      %c0_43 = arith.constant 0 : index
      %c0_44 = arith.constant 0 : index
      %c0_45 = arith.constant 0 : index
      %41 = vector.load %arg9[%c0_43, %c0_44, %c0_45] : memref<4x64x1xf32, #tpu.memory_space<vmem>>, vector<4x64x1xf32>
      tpu.vector_store %arg9[%c0_43, %c0_44, %c0_45], %40 {strides = array<i32>} : memref<4x64x1xf32, #tpu.memory_space<vmem>>, vector<4x64x1xf32>,
      %cst_46 = arith.constant 0.000000e+00 : f32
      %42 = vector.broadcast %cst_46 : f32 to vector<4x64x8xf32>
      %c0_47 = arith.constant 0 : index
      %c0_48 = arith.constant 0 : index
      %c0_49 = arith.constant 0 : index
      %43 = vector.load %arg10[%c0_47, %c0_48, %c0_49] : memref<4x64x8xf32, #tpu.memory_space<vmem>>, vector<4x64x8xf32>
      tpu.vector_store %arg10[%c0_47, %c0_48, %c0_49], %42 {strides = array<i32>} : memref<4x64x8xf32, #tpu.memory_space<vmem>>, vector<4x64x8xf32>,
    } else {
    }
    %c0 = arith.constant 0 : index
    %c0_1 = arith.constant 0 : index
    %c0_2 = arith.constant 0 : index
    %c0_3 = arith.constant 0 : index
    %c0_4 = arith.constant 0 : index
    %3 = vector.load %arg4[%c0, %c0_1, %c0_2, %c0_3, %c0_4] : memref<1x1x4x64x8xbf16, #tpu.memory_space<vmem>>, vector<1x1x4x64x8xbf16>
    %4 = vector.shape_cast %3 : vector<1x1x4x64x8xbf16> to vector<4x64x8xbf16>
    %c0_5 = arith.constant 0 : index
    %c0_6 = arith.constant 0 : index
    %c0_7 = arith.constant 0 : index
    %c0_8 = arith.constant 0 : index
    %c0_9 = arith.constant 0 : index
    %5 = vector.load %arg5[%c0_5, %c0_6, %c0_7, %c0_8, %c0_9] : memref<1x1x4x64x8xbf16, #tpu.memory_space<vmem>>, vector<1x1x4x64x8xbf16>
    %6 = vector.shape_cast %5 : vector<1x1x4x64x8xbf16> to vector<4x64x8xbf16>
    %c0_10 = arith.constant 0 : index
    %c0_11 = arith.constant 0 : index
    %c0_12 = arith.constant 0 : index
    %c0_13 = arith.constant 0 : index
    %c0_14 = arith.constant 0 : index
    %7 = vector.load %arg6[%c0_10, %c0_11, %c0_12, %c0_13, %c0_14] : memref<1x1x4x64x8xbf16, #tpu.memory_space<vmem>>, vector<1x1x4x64x8xbf16>
    %8 = vector.shape_cast %7 : vector<1x1x4x64x8xbf16> to vector<4x64x8xbf16>
    %cst = arith.constant dense<0.000000e+00> : vector<4x64x64xf32>
    %9 = tpu.matmul %4, %6, %cst {dimension_numbers = #tpu.dot_dimension_numbers<[2], [2], [1], [1], [0, 0, 0, 1, 1, 1], [0], [0]>} : vector<4x64x8xbf16>, vector<4x64x8xbf16>, vector<4x64x64xf32> -> vector<4x64x64xf32>
    %cst_15 = arith.constant 0.176776692 : f32
    %10 = vector.broadcast %cst_15 : f32 to vector<4x64x64xf32>
    %11 = arith.mulf %9, %10 : vector<4x64x64xf32>
    %c0_16 = arith.constant 0 : index
    %c0_17 = arith.constant 0 : index
    %c0_18 = arith.constant 0 : index
    %12 = vector.load %arg8[%c0_16, %c0_17, %c0_18] : memref<4x64x1xf32, #tpu.memory_space<vmem>>, vector<4x64x1xf32>
    %cst_19 = arith.constant dense<0xFF800000> : vector<4x64xf32>
    %13 = vector.multi_reduction <maximumf>, %11, %cst_19 [2] : vector<4x64x64xf32> to vector<4x64xf32>
    %14 = vector.shape_cast %13 : vector<4x64xf32> to vector<4x64x1xf32>
    %15 = arith.maximumf %12, %14 : vector<4x64x1xf32>
    %16 = arith.subf %12, %15 : vector<4x64x1xf32>
    %17 = math.exp %16 : vector<4x64x1xf32>
    %18 = vector.broadcast %15 : vector<4x64x1xf32> to vector<4x64x64xf32>
    %19 = arith.subf %11, %18 : vector<4x64x64xf32>
    %20 = math.exp %19 : vector<4x64x64xf32>
    %c0_20 = arith.constant 0 : index
    %c0_21 = arith.constant 0 : index
    %c0_22 = arith.constant 0 : index
    %21 = vector.load %arg9[%c0_20, %c0_21, %c0_22] : memref<4x64x1xf32, #tpu.memory_space<vmem>>, vector<4x64x1xf32>
    %22 = arith.mulf %17, %21 : vector<4x64x1xf32>
    %cst_23 = arith.constant dense<0.000000e+00> : vector<4x64xf32>
    %23 = vector.multi_reduction <add>, %20, %cst_23 [2] : vector<4x64x64xf32> to vector<4x64xf32>
    %24 = vector.shape_cast %23 : vector<4x64xf32> to vector<4x64x1xf32>
    %25 = arith.addf %22, %24 : vector<4x64x1xf32>
    %c0_24 = arith.constant 0 : index
    %c0_25 = arith.constant 0 : index
    %c0_26 = arith.constant 0 : index
    %26 = vector.load %arg9[%c0_24, %c0_25, %c0_26] : memref<4x64x1xf32, #tpu.memory_space<vmem>>, vector<4x64x1xf32>
    tpu.vector_store %arg9[%c0_24, %c0_25, %c0_26], %25 {strides = array<i32>} : memref<4x64x1xf32, #tpu.memory_space<vmem>>, vector<4x64x1xf32>,
    %27 = arith.truncf %20 : vector<4x64x64xf32> to vector<4x64x64xbf16>
    %cst_27 = arith.constant dense<0.000000e+00> : vector<4x64x8xf32>
    %28 = tpu.matmul %27, %8, %cst_27 {dimension_numbers = #tpu.dot_dimension_numbers<[2], [1], [1], [2], [0, 0, 0, 1, 1, 2], [0], [0]>} : vector<4x64x64xbf16>, vector<4x64x8xbf16>, vector<4x64x8xf32> -> vector<4x64x8xf32>
    %c0_28 = arith.constant 0 : index
    %c0_29 = arith.constant 0 : index
    %c0_30 = arith.constant 0 : index
    %29 = vector.load %arg10[%c0_28, %c0_29, %c0_30] : memref<4x64x8xf32, #tpu.memory_space<vmem>>, vector<4x64x8xf32>
    %30 = vector.broadcast %17 : vector<4x64x1xf32> to vector<4x64x8xf32>
    %31 = arith.mulf %30, %29 : vector<4x64x8xf32>
    %32 = arith.addf %31, %28 : vector<4x64x8xf32>
    %c0_31 = arith.constant 0 : index
    %c0_32 = arith.constant 0 : index
    %c0_33 = arith.constant 0 : index
    %33 = vector.load %arg10[%c0_31, %c0_32, %c0_33] : memref<4x64x8xf32, #tpu.memory_space<vmem>>, vector<4x64x8xf32>
    tpu.vector_store %arg10[%c0_31, %c0_32, %c0_33], %32 {strides = array<i32>} : memref<4x64x8xf32, #tpu.memory_space<vmem>>, vector<4x64x8xf32>,
    %c0_34 = arith.constant 0 : index
    %c0_35 = arith.constant 0 : index
    %c0_36 = arith.constant 0 : index
    %34 = vector.load %arg8[%c0_34, %c0_35, %c0_36] : memref<4x64x1xf32, #tpu.memory_space<vmem>>, vector<4x64x1xf32>
    tpu.vector_store %arg8[%c0_34, %c0_35, %c0_36], %15 {strides = array<i32>} : memref<4x64x1xf32, #tpu.memory_space<vmem>>, vector<4x64x1xf32>,
    %c1_i32 = arith.constant 1 : i32
    %35 = arith.cmpi eq, %arg2, %c1_i32 : i32
    %36 = arith.extui %35 : i1 to i32
    %c0_i32_37 = arith.constant 0 : i32
    %37 = arith.cmpi ne, %36, %c0_i32_37 : i32
    scf.if %37 {
      %c0_38 = arith.constant 0 : index
      %c0_39 = arith.constant 0 : index
      %c0_40 = arith.constant 0 : index
      %38 = vector.load %arg9[%c0_38, %c0_39, %c0_40] : memref<4x64x1xf32, #tpu.memory_space<vmem>>, vector<4x64x1xf32>
      %39 = tpu.reciprocal %38 {approx = true} : vector<4x64x1xf32> -> vector<4x64x1xf32>
      %c0_41 = arith.constant 0 : index
      %c0_42 = arith.constant 0 : index
      %c0_43 = arith.constant 0 : index
      %40 = vector.load %arg10[%c0_41, %c0_42, %c0_43] : memref<4x64x8xf32, #tpu.memory_space<vmem>>, vector<4x64x8xf32>
      %41 = vector.broadcast %39 : vector<4x64x1xf32> to vector<4x64x8xf32>
      %42 = arith.mulf %40, %41 : vector<4x64x8xf32>
      %43 = arith.truncf %42 : vector<4x64x8xf32> to vector<4x64x8xbf16>
      %c0_44 = arith.constant 0 : index
      %c0_45 = arith.constant 0 : index
      %c0_46 = arith.constant 0 : index
      %c0_47 = arith.constant 0 : index
      %c0_48 = arith.constant 0 : index
      %44 = vector.load %arg7[%c0_44, %c0_45, %c0_46, %c0_47, %c0_48] : memref<1x1x4x64x8xbf16, #tpu.memory_space<vmem>>, vector<1x1x4x64x8xbf16>
      %45 = vector.shape_cast %44 : vector<1x1x4x64x8xbf16> to vector<4x64x8xbf16>
      %46 = vector.shape_cast %43 : vector<4x64x8xbf16> to vector<1x1x4x64x8xbf16>
      tpu.vector_store %arg7[%c0_44, %c0_45, %c0_46, %c0_47, %c0_48], %46 {strides = array<i32>} : memref<1x1x4x64x8xbf16, #tpu.memory_space<vmem>>, vector<1x1x4x64x8xbf16>,
    } else {
    }
    return
  }
  func.func @transform_0(%arg0: i32, %arg1: i32, %arg2: i32, %arg3: memref<16xi32, #tpu.memory_space<smem>>) -> (i32, i32, i32, i32, i32) {
    %c0_i32 = arith.constant 0 : i32
    %c0_i32_0 = arith.constant 0 : i32
    %c0_i32_1 = arith.constant 0 : i32
    %c0_i32_2 = arith.constant 0 : i32
    return %arg0, %arg1, %c0_i32, %c0_i32_0, %c0_i32_1 : i32, i32, i32, i32, i32
  }
  func.func @transform_1(%arg0: i32, %arg1: i32, %arg2: i32, %arg3: memref<16xi32, #tpu.memory_space<smem>>) -> (i32, i32, i32, i32, i32) {
    %c4_i32 = arith.constant 4 : i32
    %0 = arith.muli %arg0, %c4_i32 : i32
    %1 = arith.addi %0, %arg1 : i32
    %c2_i32 = arith.constant 2 : i32
    %2 = arith.muli %1, %c2_i32 : i32
    %3 = arith.addi %2, %arg2 : i32
    %4 = arith.index_cast %3 : i32 to index
    %5 = memref.load %arg3[%4] : memref<16xi32, #tpu.memory_space<smem>>
    %c0_i32 = arith.constant 0 : i32
    %c0_i32_0 = arith.constant 0 : i32
    %c0_i32_1 = arith.constant 0 : i32
    %c0_i32_2 = arith.constant 0 : i32
    return %arg0, %5, %c0_i32, %c0_i32_0, %c0_i32_1 : i32, i32, i32, i32, i32
  }
  func.func @transform_2(%arg0: i32, %arg1: i32, %arg2: i32, %arg3: memref<16xi32, #tpu.memory_space<smem>>) -> (i32, i32, i32, i32, i32) {
    %c4_i32 = arith.constant 4 : i32
    %0 = arith.muli %arg0, %c4_i32 : i32
    %1 = arith.addi %0, %arg1 : i32
    %c2_i32 = arith.constant 2 : i32
    %2 = arith.muli %1, %c2_i32 : i32
    %3 = arith.addi %2, %arg2 : i32
    %4 = arith.index_cast %3 : i32 to index
    %5 = memref.load %arg3[%4] : memref<16xi32, #tpu.memory_space<smem>>
    %c0_i32 = arith.constant 0 : i32
    %c0_i32_0 = arith.constant 0 : i32
    %c0_i32_1 = arith.constant 0 : i32
    %c0_i32_2 = arith.constant 0 : i32
    return %arg0, %5, %c0_i32, %c0_i32_0, %c0_i32_1 : i32, i32, i32, i32, i32
  }
  func.func @transform_3(%arg0: i32, %arg1: i32, %arg2: i32, %arg3: memref<16xi32, #tpu.memory_space<smem>>) -> (i32, i32, i32, i32, i32) {
    %c0_i32 = arith.constant 0 : i32
    %c0_i32_0 = arith.constant 0 : i32
    %c0_i32_1 = arith.constant 0 : i32
    %c0_i32_2 = arith.constant 0 : i32
    return %arg0, %arg1, %c0_i32, %c0_i32_0, %c0_i32_1 : i32, i32, i32, i32, i32
  }
}

module attributes {stable_mosaic.version = 11 : i64} {
  func.func @_lepe_kernel(%arg0: i32, %arg1: memref<1x18x18x32xbf16, #tpu.memory_space<vmem>>, %arg2: memref<3x3x32xf32, #tpu.memory_space<vmem>>, %arg3: memref<1x32xf32, #tpu.memory_space<vmem>>, %arg4: memref<1x16x16x32xbf16, #tpu.memory_space<vmem>>) attributes {dimension_semantics = [#tpu.dimension_semantics<parallel>], iteration_bounds = array<i64: 2>, scalar_prefetch = 0 : i64, scratch_operands = 0 : i64, tpu.core_type = #tpu.core_type<tc>, window_params = [{transform_indices = @transform_0, window_bounds = array<i64: 1, 18, 18, 32>}, {pipeline_mode = #tpu.pipeline_mode<synchronous>, transform_indices = @transform_1, window_bounds = array<i64: 3, 3, 32>}, {pipeline_mode = #tpu.pipeline_mode<synchronous>, transform_indices = @transform_2, window_bounds = array<i64: 1, 32>}, {transform_indices = @transform_3, window_bounds = array<i64: 1, 16, 16, 32>}]} {
    %c0 = arith.constant 0 : index
    %c0_0 = arith.constant 0 : index
    %c0_1 = arith.constant 0 : index
    %c0_2 = arith.constant 0 : index
    %0 = vector.load %arg1[%c0, %c0_0, %c0_1, %c0_2] : memref<1x18x18x32xbf16, #tpu.memory_space<vmem>>, vector<1x16x16x32xbf16>
    %1 = vector.shape_cast %0 : vector<1x16x16x32xbf16> to vector<16x16x32xbf16>
    %c0_3 = arith.constant 0 : index
    %c0_4 = arith.constant 0 : index
    %c0_5 = arith.constant 0 : index
    %2 = vector.load %arg2[%c0_3, %c0_4, %c0_5] : memref<3x3x32xf32, #tpu.memory_space<vmem>>, vector<1x1x32xf32>
    %3 = vector.shape_cast %2 : vector<1x1x32xf32> to vector<1x32xf32>
    %4 = arith.extf %1 : vector<16x16x32xbf16> to vector<16x16x32xf32>
    %5 = vector.shape_cast %3 : vector<1x32xf32> to vector<1x1x32xf32>
    %6 = vector.broadcast %5 : vector<1x1x32xf32> to vector<16x16x32xf32>
    %7 = arith.mulf %4, %6 : vector<16x16x32xf32>
    %c0_6 = arith.constant 0 : index
    %c0_7 = arith.constant 0 : index
    %c1 = arith.constant 1 : index
    %c0_8 = arith.constant 0 : index
    %8 = vector.load %arg1[%c0_6, %c0_7, %c1, %c0_8] : memref<1x18x18x32xbf16, #tpu.memory_space<vmem>>, vector<1x16x16x32xbf16>
    %9 = vector.shape_cast %8 : vector<1x16x16x32xbf16> to vector<16x16x32xbf16>
    %c0_9 = arith.constant 0 : index
    %c1_10 = arith.constant 1 : index
    %c0_11 = arith.constant 0 : index
    %10 = vector.load %arg2[%c0_9, %c1_10, %c0_11] : memref<3x3x32xf32, #tpu.memory_space<vmem>>, vector<1x1x32xf32>
    %11 = vector.shape_cast %10 : vector<1x1x32xf32> to vector<1x32xf32>
    %12 = arith.extf %9 : vector<16x16x32xbf16> to vector<16x16x32xf32>
    %13 = vector.shape_cast %11 : vector<1x32xf32> to vector<1x1x32xf32>
    %14 = vector.broadcast %13 : vector<1x1x32xf32> to vector<16x16x32xf32>
    %15 = arith.mulf %12, %14 : vector<16x16x32xf32>
    %16 = arith.addf %7, %15 : vector<16x16x32xf32>
    %c0_12 = arith.constant 0 : index
    %c0_13 = arith.constant 0 : index
    %c2 = arith.constant 2 : index
    %c0_14 = arith.constant 0 : index
    %17 = vector.load %arg1[%c0_12, %c0_13, %c2, %c0_14] : memref<1x18x18x32xbf16, #tpu.memory_space<vmem>>, vector<1x16x16x32xbf16>
    %18 = vector.shape_cast %17 : vector<1x16x16x32xbf16> to vector<16x16x32xbf16>
    %c0_15 = arith.constant 0 : index
    %c2_16 = arith.constant 2 : index
    %c0_17 = arith.constant 0 : index
    %19 = vector.load %arg2[%c0_15, %c2_16, %c0_17] : memref<3x3x32xf32, #tpu.memory_space<vmem>>, vector<1x1x32xf32>
    %20 = vector.shape_cast %19 : vector<1x1x32xf32> to vector<1x32xf32>
    %21 = arith.extf %18 : vector<16x16x32xbf16> to vector<16x16x32xf32>
    %22 = vector.shape_cast %20 : vector<1x32xf32> to vector<1x1x32xf32>
    %23 = vector.broadcast %22 : vector<1x1x32xf32> to vector<16x16x32xf32>
    %24 = arith.mulf %21, %23 : vector<16x16x32xf32>
    %25 = arith.addf %16, %24 : vector<16x16x32xf32>
    %c0_18 = arith.constant 0 : index
    %c1_19 = arith.constant 1 : index
    %c0_20 = arith.constant 0 : index
    %c0_21 = arith.constant 0 : index
    %26 = vector.load %arg1[%c0_18, %c1_19, %c0_20, %c0_21] : memref<1x18x18x32xbf16, #tpu.memory_space<vmem>>, vector<1x16x16x32xbf16>
    %27 = vector.shape_cast %26 : vector<1x16x16x32xbf16> to vector<16x16x32xbf16>
    %c1_22 = arith.constant 1 : index
    %c0_23 = arith.constant 0 : index
    %c0_24 = arith.constant 0 : index
    %28 = vector.load %arg2[%c1_22, %c0_23, %c0_24] : memref<3x3x32xf32, #tpu.memory_space<vmem>>, vector<1x1x32xf32>
    %29 = vector.shape_cast %28 : vector<1x1x32xf32> to vector<1x32xf32>
    %30 = arith.extf %27 : vector<16x16x32xbf16> to vector<16x16x32xf32>
    %31 = vector.shape_cast %29 : vector<1x32xf32> to vector<1x1x32xf32>
    %32 = vector.broadcast %31 : vector<1x1x32xf32> to vector<16x16x32xf32>
    %33 = arith.mulf %30, %32 : vector<16x16x32xf32>
    %34 = arith.addf %25, %33 : vector<16x16x32xf32>
    %c0_25 = arith.constant 0 : index
    %c1_26 = arith.constant 1 : index
    %c1_27 = arith.constant 1 : index
    %c0_28 = arith.constant 0 : index
    %35 = vector.load %arg1[%c0_25, %c1_26, %c1_27, %c0_28] : memref<1x18x18x32xbf16, #tpu.memory_space<vmem>>, vector<1x16x16x32xbf16>
    %36 = vector.shape_cast %35 : vector<1x16x16x32xbf16> to vector<16x16x32xbf16>
    %c1_29 = arith.constant 1 : index
    %c1_30 = arith.constant 1 : index
    %c0_31 = arith.constant 0 : index
    %37 = vector.load %arg2[%c1_29, %c1_30, %c0_31] : memref<3x3x32xf32, #tpu.memory_space<vmem>>, vector<1x1x32xf32>
    %38 = vector.shape_cast %37 : vector<1x1x32xf32> to vector<1x32xf32>
    %39 = arith.extf %36 : vector<16x16x32xbf16> to vector<16x16x32xf32>
    %40 = vector.shape_cast %38 : vector<1x32xf32> to vector<1x1x32xf32>
    %41 = vector.broadcast %40 : vector<1x1x32xf32> to vector<16x16x32xf32>
    %42 = arith.mulf %39, %41 : vector<16x16x32xf32>
    %43 = arith.addf %34, %42 : vector<16x16x32xf32>
    %c0_32 = arith.constant 0 : index
    %c1_33 = arith.constant 1 : index
    %c2_34 = arith.constant 2 : index
    %c0_35 = arith.constant 0 : index
    %44 = vector.load %arg1[%c0_32, %c1_33, %c2_34, %c0_35] : memref<1x18x18x32xbf16, #tpu.memory_space<vmem>>, vector<1x16x16x32xbf16>
    %45 = vector.shape_cast %44 : vector<1x16x16x32xbf16> to vector<16x16x32xbf16>
    %c1_36 = arith.constant 1 : index
    %c2_37 = arith.constant 2 : index
    %c0_38 = arith.constant 0 : index
    %46 = vector.load %arg2[%c1_36, %c2_37, %c0_38] : memref<3x3x32xf32, #tpu.memory_space<vmem>>, vector<1x1x32xf32>
    %47 = vector.shape_cast %46 : vector<1x1x32xf32> to vector<1x32xf32>
    %48 = arith.extf %45 : vector<16x16x32xbf16> to vector<16x16x32xf32>
    %49 = vector.shape_cast %47 : vector<1x32xf32> to vector<1x1x32xf32>
    %50 = vector.broadcast %49 : vector<1x1x32xf32> to vector<16x16x32xf32>
    %51 = arith.mulf %48, %50 : vector<16x16x32xf32>
    %52 = arith.addf %43, %51 : vector<16x16x32xf32>
    %c0_39 = arith.constant 0 : index
    %c2_40 = arith.constant 2 : index
    %c0_41 = arith.constant 0 : index
    %c0_42 = arith.constant 0 : index
    %53 = vector.load %arg1[%c0_39, %c2_40, %c0_41, %c0_42] : memref<1x18x18x32xbf16, #tpu.memory_space<vmem>>, vector<1x16x16x32xbf16>
    %54 = vector.shape_cast %53 : vector<1x16x16x32xbf16> to vector<16x16x32xbf16>
    %c2_43 = arith.constant 2 : index
    %c0_44 = arith.constant 0 : index
    %c0_45 = arith.constant 0 : index
    %55 = vector.load %arg2[%c2_43, %c0_44, %c0_45] : memref<3x3x32xf32, #tpu.memory_space<vmem>>, vector<1x1x32xf32>
    %56 = vector.shape_cast %55 : vector<1x1x32xf32> to vector<1x32xf32>
    %57 = arith.extf %54 : vector<16x16x32xbf16> to vector<16x16x32xf32>
    %58 = vector.shape_cast %56 : vector<1x32xf32> to vector<1x1x32xf32>
    %59 = vector.broadcast %58 : vector<1x1x32xf32> to vector<16x16x32xf32>
    %60 = arith.mulf %57, %59 : vector<16x16x32xf32>
    %61 = arith.addf %52, %60 : vector<16x16x32xf32>
    %c0_46 = arith.constant 0 : index
    %c2_47 = arith.constant 2 : index
    %c1_48 = arith.constant 1 : index
    %c0_49 = arith.constant 0 : index
    %62 = vector.load %arg1[%c0_46, %c2_47, %c1_48, %c0_49] : memref<1x18x18x32xbf16, #tpu.memory_space<vmem>>, vector<1x16x16x32xbf16>
    %63 = vector.shape_cast %62 : vector<1x16x16x32xbf16> to vector<16x16x32xbf16>
    %c2_50 = arith.constant 2 : index
    %c1_51 = arith.constant 1 : index
    %c0_52 = arith.constant 0 : index
    %64 = vector.load %arg2[%c2_50, %c1_51, %c0_52] : memref<3x3x32xf32, #tpu.memory_space<vmem>>, vector<1x1x32xf32>
    %65 = vector.shape_cast %64 : vector<1x1x32xf32> to vector<1x32xf32>
    %66 = arith.extf %63 : vector<16x16x32xbf16> to vector<16x16x32xf32>
    %67 = vector.shape_cast %65 : vector<1x32xf32> to vector<1x1x32xf32>
    %68 = vector.broadcast %67 : vector<1x1x32xf32> to vector<16x16x32xf32>
    %69 = arith.mulf %66, %68 : vector<16x16x32xf32>
    %70 = arith.addf %61, %69 : vector<16x16x32xf32>
    %c0_53 = arith.constant 0 : index
    %c2_54 = arith.constant 2 : index
    %c2_55 = arith.constant 2 : index
    %c0_56 = arith.constant 0 : index
    %71 = vector.load %arg1[%c0_53, %c2_54, %c2_55, %c0_56] : memref<1x18x18x32xbf16, #tpu.memory_space<vmem>>, vector<1x16x16x32xbf16>
    %72 = vector.shape_cast %71 : vector<1x16x16x32xbf16> to vector<16x16x32xbf16>
    %c2_57 = arith.constant 2 : index
    %c2_58 = arith.constant 2 : index
    %c0_59 = arith.constant 0 : index
    %73 = vector.load %arg2[%c2_57, %c2_58, %c0_59] : memref<3x3x32xf32, #tpu.memory_space<vmem>>, vector<1x1x32xf32>
    %74 = vector.shape_cast %73 : vector<1x1x32xf32> to vector<1x32xf32>
    %75 = arith.extf %72 : vector<16x16x32xbf16> to vector<16x16x32xf32>
    %76 = vector.shape_cast %74 : vector<1x32xf32> to vector<1x1x32xf32>
    %77 = vector.broadcast %76 : vector<1x1x32xf32> to vector<16x16x32xf32>
    %78 = arith.mulf %75, %77 : vector<16x16x32xf32>
    %79 = arith.addf %70, %78 : vector<16x16x32xf32>
    %c0_60 = arith.constant 0 : index
    %c0_61 = arith.constant 0 : index
    %80 = vector.load %arg3[%c0_60, %c0_61] : memref<1x32xf32, #tpu.memory_space<vmem>>, vector<1x32xf32>
    %81 = vector.shape_cast %80 : vector<1x32xf32> to vector<1x1x32xf32>
    %82 = vector.broadcast %81 : vector<1x1x32xf32> to vector<16x16x32xf32>
    %83 = arith.addf %79, %82 : vector<16x16x32xf32>
    %84 = arith.truncf %83 : vector<16x16x32xf32> to vector<16x16x32xbf16>
    %c0_62 = arith.constant 0 : index
    %c0_63 = arith.constant 0 : index
    %c0_64 = arith.constant 0 : index
    %c0_65 = arith.constant 0 : index
    %85 = vector.load %arg4[%c0_62, %c0_63, %c0_64, %c0_65] : memref<1x16x16x32xbf16, #tpu.memory_space<vmem>>, vector<1x16x16x32xbf16>
    %86 = vector.shape_cast %85 : vector<1x16x16x32xbf16> to vector<16x16x32xbf16>
    %87 = vector.shape_cast %84 : vector<16x16x32xbf16> to vector<1x16x16x32xbf16>
    tpu.vector_store %arg4[%c0_62, %c0_63, %c0_64, %c0_65], %87 {strides = array<i32>} : memref<1x16x16x32xbf16, #tpu.memory_space<vmem>>, vector<1x16x16x32xbf16>,
    return
  }
  func.func @transform_0(%arg0: i32) -> (i32, i32, i32, i32) {
    %c0_i32 = arith.constant 0 : i32
    %c0_i32_0 = arith.constant 0 : i32
    %c0_i32_1 = arith.constant 0 : i32
    %c0_i32_2 = arith.constant 0 : i32
    return %arg0, %c0_i32, %c0_i32_0, %c0_i32_1 : i32, i32, i32, i32
  }
  func.func @transform_1(%arg0: i32) -> (i32, i32, i32) {
    %c0_i32 = arith.constant 0 : i32
    %c0_i32_0 = arith.constant 0 : i32
    %c0_i32_1 = arith.constant 0 : i32
    %c0_i32_2 = arith.constant 0 : i32
    return %c0_i32, %c0_i32_0, %c0_i32_1 : i32, i32, i32
  }
  func.func @transform_2(%arg0: i32) -> (i32, i32) {
    %c0_i32 = arith.constant 0 : i32
    %c0_i32_0 = arith.constant 0 : i32
    %c0_i32_1 = arith.constant 0 : i32
    return %c0_i32, %c0_i32_0 : i32, i32
  }
  func.func @transform_3(%arg0: i32) -> (i32, i32, i32, i32) {
    %c0_i32 = arith.constant 0 : i32
    %c0_i32_0 = arith.constant 0 : i32
    %c0_i32_1 = arith.constant 0 : i32
    %c0_i32_2 = arith.constant 0 : i32
    return %arg0, %c0_i32, %c0_i32_0, %c0_i32_1 : i32, i32, i32, i32
  }
}

module attributes {stable_mosaic.version = 11 : i64} {
  func.func @_linear_add_kernel(%arg0: i32, %arg1: memref<512x32xbf16, #tpu.memory_space<vmem>>, %arg2: memref<512x32xbf16, #tpu.memory_space<vmem>>, %arg3: memref<32x32xbf16, #tpu.memory_space<vmem>>, %arg4: memref<1x32xf32, #tpu.memory_space<vmem>>, %arg5: memref<512x32xf32, #tpu.memory_space<vmem>>) attributes {dimension_semantics = [#tpu.dimension_semantics<parallel>], iteration_bounds = array<i64: 1>, scalar_prefetch = 0 : i64, scratch_operands = 0 : i64, tpu.core_type = #tpu.core_type<tc>, window_params = [{transform_indices = @transform_0, window_bounds = array<i64: 512, 32>}, {transform_indices = @transform_1, window_bounds = array<i64: 512, 32>}, {pipeline_mode = #tpu.pipeline_mode<synchronous>, transform_indices = @transform_2, window_bounds = array<i64: 32, 32>}, {pipeline_mode = #tpu.pipeline_mode<synchronous>, transform_indices = @transform_3, window_bounds = array<i64: 1, 32>}, {transform_indices = @transform_4, window_bounds = array<i64: 512, 32>}]} {
    %c0 = arith.constant 0 : index
    %c0_0 = arith.constant 0 : index
    %0 = vector.load %arg1[%c0, %c0_0] : memref<512x32xbf16, #tpu.memory_space<vmem>>, vector<512x32xbf16>
    %1 = arith.extf %0 : vector<512x32xbf16> to vector<512x32xf32>
    %c0_1 = arith.constant 0 : index
    %c0_2 = arith.constant 0 : index
    %2 = vector.load %arg2[%c0_1, %c0_2] : memref<512x32xbf16, #tpu.memory_space<vmem>>, vector<512x32xbf16>
    %3 = arith.extf %2 : vector<512x32xbf16> to vector<512x32xf32>
    %4 = arith.addf %1, %3 : vector<512x32xf32>
    %5 = arith.truncf %4 : vector<512x32xf32> to vector<512x32xbf16>
    %c0_3 = arith.constant 0 : index
    %c0_4 = arith.constant 0 : index
    %6 = vector.load %arg3[%c0_3, %c0_4] : memref<32x32xbf16, #tpu.memory_space<vmem>>, vector<32x32xbf16>
    %cst = arith.constant dense<0.000000e+00> : vector<512x32xf32>
    %7 = tpu.matmul %5, %6, %cst {dimension_numbers = #tpu.dot_dimension_numbers<[1], [0], [0], [1], [0, 0, 1, 1], [], []>} : vector<512x32xbf16>, vector<32x32xbf16>, vector<512x32xf32> -> vector<512x32xf32>
    %c0_5 = arith.constant 0 : index
    %c0_6 = arith.constant 0 : index
    %8 = vector.load %arg4[%c0_5, %c0_6] : memref<1x32xf32, #tpu.memory_space<vmem>>, vector<1x32xf32>
    %9 = vector.broadcast %8 : vector<1x32xf32> to vector<512x32xf32>
    %10 = arith.addf %7, %9 : vector<512x32xf32>
    %c0_7 = arith.constant 0 : index
    %c0_8 = arith.constant 0 : index
    %11 = vector.load %arg5[%c0_7, %c0_8] : memref<512x32xf32, #tpu.memory_space<vmem>>, vector<512x32xf32>
    tpu.vector_store %arg5[%c0_7, %c0_8], %10 {strides = array<i32>} : memref<512x32xf32, #tpu.memory_space<vmem>>, vector<512x32xf32>,
    return
  }
  func.func @transform_0(%arg0: i32) -> (i32, i32) {
    %c0_i32 = arith.constant 0 : i32
    %c0_i32_0 = arith.constant 0 : i32
    return %arg0, %c0_i32 : i32, i32
  }
  func.func @transform_1(%arg0: i32) -> (i32, i32) {
    %c0_i32 = arith.constant 0 : i32
    %c0_i32_0 = arith.constant 0 : i32
    return %arg0, %c0_i32 : i32, i32
  }
  func.func @transform_2(%arg0: i32) -> (i32, i32) {
    %c0_i32 = arith.constant 0 : i32
    %c0_i32_0 = arith.constant 0 : i32
    %c0_i32_1 = arith.constant 0 : i32
    return %c0_i32, %c0_i32_0 : i32, i32
  }
  func.func @transform_3(%arg0: i32) -> (i32, i32) {
    %c0_i32 = arith.constant 0 : i32
    %c0_i32_0 = arith.constant 0 : i32
    %c0_i32_1 = arith.constant 0 : i32
    return %c0_i32, %c0_i32_0 : i32, i32
  }
  func.func @transform_4(%arg0: i32) -> (i32, i32) {
    %c0_i32 = arith.constant 0 : i32
    %c0_i32_0 = arith.constant 0 : i32
    return %arg0, %c0_i32 : i32, i32
  }
}

</mosaic_0001>

<bundles_post_ra>
// kernel: bilevel_routing_attention_nchw.4
= control target key start
LH: loop header
LB: loop body
LE: loop exit
PB: predicated region body
PF: predicated region fallthrough
CT: control target
= control target key end

     0   :  { %vm259_vm0 = vcmask 261120   ;;  %vm589_vm1 = vcmask 781312   ;;  %s1346_s1 = inlined_call_operand.vmem [shape: bf16[32,96], index: 1, kind: input, shape index: {}]   ;;  %s1347_s0 = inlined_call_operand.vmem [shape: bf16[512,32], index: 0, kind: input, shape index: {}]   ;;  %s1348_s2 = inlined_call_operand.vmem [shape: f32[1,96], index: 2, kind: input, shape index: {}]   ;;  %s1349_s3 = inlined_call_operand.vmem [shape: bf16[512,96], index: 3, kind: output, shape index: {}]  }
   0x1   :  { %v859_v0 = vld [vmem:[%s1346_s1 + $0x8] sm:$0xff]  ;;  %v858_v1 = vld [vmem:[%s1346_s1] sm:$0xff]  ;;  %v828_v10 = vld [vmem:[%s1347_s0 + $0x10] sm:$0xff] }
   0x2   :  { %362 = vmatpush.bf16.msra.mxu0 %v859_v0  ;;  %860 = vmatpush.bf16.msra.mxu1 %v859_v0  ;;  %v826_v2 = vld [vmem:[%s1347_s0] sm:$0xff]  ;;  %v827_v6 = vld [vmem:[%s1347_s0 + $0x8] sm:$0xff]  ;;  %v836_v11 = vld [vmem:[%s1347_s0 + $0x50] sm:$0xff] }
   0x3   :  { %861 = vmatpush.bf16.msra.mxu2 %v859_v0  ;;  %862 = vmatpush.bf16.msra.mxu3 %v859_v0  ;;  %v834_v3 = vld [vmem:[%s1347_s0 + $0x40] sm:$0xff]  ;;  %v835_v7 = vld [vmem:[%s1347_s0 + $0x48] sm:$0xff]  ;;  %v844_v12 = vld [vmem:[%s1347_s0 + $0x90] sm:$0xff] }
   0x4   :  { %v842_v4 = vld [vmem:[%s1347_s0 + $0x80] sm:$0xff]  ;;  %v843_v8 = vld [vmem:[%s1347_s0 + $0x88] sm:$0xff]  ;;  %v852_v13 = vld [vmem:[%s1347_s0 + $0xd0] sm:$0xff] }
   0x5   :  { %v850_v5 = vld [vmem:[%s1347_s0 + $0xc0] sm:$0xff]  ;;  %v851_v9 = vld [vmem:[%s1347_s0 + $0xc8] sm:$0xff]  ;;  %v829_v14 = vld [vmem:[%s1347_s0 + $0x18] sm:$0xff] }
   0x6   :  { %363 = vmatpush.bf16.msra.mxu0 %v858_v1  ;;  %863 = vmatpush.bf16.msra.mxu1 %v858_v1  ;;  %v837_v15 = vld [vmem:[%s1347_s0 + $0x58] sm:$0xff]  ;;  %v830_v18 = vld [vmem:[%s1347_s0 + $0x20] sm:$0xff]  ;;  %v831_v22 = vld [vmem:[%s1347_s0 + $0x28] sm:$0xff] }
   0x7   :  { %864 = vmatpush.bf16.msra.mxu2 %v858_v1  ;;  %865 = vmatpush.bf16.msra.mxu3 %v858_v1  ;;  %v845_v16 = vld [vmem:[%s1347_s0 + $0x98] sm:$0xff]  ;;  %v838_v19 = vld [vmem:[%s1347_s0 + $0x60] sm:$0xff]  ;;  %v839_v23 = vld [vmem:[%s1347_s0 + $0x68] sm:$0xff] }
   0x8   :  { %v853_v17 = vld [vmem:[%s1347_s0 + $0xd8] sm:$0xff]  ;;  %v846_v20 = vld [vmem:[%s1347_s0 + $0xa0] sm:$0xff]  ;;  %v847_v24 = vld [vmem:[%s1347_s0 + $0xa8] sm:$0xff] }
   0x9   :  { %794 = vmatmul.msk.bf16.vlgmr.msra.gmra.mxu0 %vm259_vm0, %v826_v2  ;;  %802 = vmatmul.msk.bf16.vlgmr.msra.gmra.mxu1 %vm259_vm0, %v834_v3  ;;  %v854_v21 = vld [vmem:[%s1347_s0 + $0xe0] sm:$0xff]  ;;  %v855_v25 = vld [vmem:[%s1347_s0 + $0xe8] sm:$0xff]  ;;  %v832_v26 = vld [vmem:[%s1347_s0 + $0x30] sm:$0xff] }
   0xa   :  { %810 = vmatmul.msk.bf16.vlgmr.msra.gmra.mxu2 %vm259_vm0, %v842_v4  ;;  %818 = vmatmul.msk.bf16.vlgmr.msra.gmra.mxu3 %vm259_vm0, %v850_v5  ;;  %v840_v27 = vld [vmem:[%s1347_s0 + $0x70] sm:$0xff]  ;;  %v833_v30 = vld [vmem:[%s1347_s0 + $0x38] sm:$0xff]  ;;  %v1024_v34 = vld [vmem:[%s1348_s2] ss:$0 sm:$0xff] }
   0xb   :  { %v848_v28 = vld [vmem:[%s1347_s0 + $0xb0] sm:$0xff]  ;;  %v841_v31 = vld [vmem:[%s1347_s0 + $0x78] sm:$0xff] }
   0xc   :  { %v856_v29 = vld [vmem:[%s1347_s0 + $0xf0] sm:$0xff]  ;;  %v849_v32 = vld [vmem:[%s1347_s0 + $0xb8] sm:$0xff] }
   0xd   :  { %v857_v33 = vld [vmem:[%s1347_s0 + $0xf8] sm:$0xff] }
  0x19   :  { %795 = vmatmul.msk.bf16.gmra.mxu0 %vm259_vm0, %v827_v6  ;;  %803 = vmatmul.msk.bf16.gmra.mxu1 %vm259_vm0, %v835_v7 }
  0x1a   :  { %811 = vmatmul.msk.bf16.gmra.mxu2 %vm259_vm0, %v843_v8  ;;  %819 = vmatmul.msk.bf16.gmra.mxu3 %vm259_vm0, %v851_v9 }
  0x29   :  { %796 = vmatmul.msk.bf16.gmra.mxu0 %vm259_vm0, %v828_v10  ;;  %804 = vmatmul.msk.bf16.gmra.mxu1 %vm259_vm0, %v836_v11 }
  0x2a   :  { %812 = vmatmul.msk.bf16.gmra.mxu2 %vm259_vm0, %v844_v12  ;;  %820 = vmatmul.msk.bf16.gmra.mxu3 %vm259_vm0, %v852_v13 }
  0x39   :  { %797 = vmatmul.msk.bf16.gmra.mxu0 %vm259_vm0, %v829_v14  ;;  %805 = vmatmul.msk.bf16.gmra.mxu1 %vm259_vm0, %v837_v15 }
  0x3a   :  { %813 = vmatmul.msk.bf16.gmra.mxu2 %vm259_vm0, %v845_v16  ;;  %821 = vmatmul.msk.bf16.gmra.mxu3 %vm259_vm0, %v853_v17 }
  0x49   :  { %798 = vmatmul.msk.bf16.gmra.mxu0 %vm259_vm0, %v830_v18  ;;  %806 = vmatmul.msk.bf16.gmra.mxu1 %vm259_vm0, %v838_v19 }
  0x4a   :  { %814 = vmatmul.msk.bf16.gmra.mxu2 %vm259_vm0, %v846_v20  ;;  %822 = vmatmul.msk.bf16.gmra.mxu3 %vm259_vm0, %v854_v21 }
  0x59   :  { %799 = vmatmul.msk.bf16.gmra.mxu0 %vm259_vm0, %v831_v22  ;;  %807 = vmatmul.msk.bf16.gmra.mxu1 %vm259_vm0, %v839_v23 }
  0x5a   :  { %815 = vmatmul.msk.bf16.gmra.mxu2 %vm259_vm0, %v847_v24  ;;  %823 = vmatmul.msk.bf16.gmra.mxu3 %vm259_vm0, %v855_v25 }
  0x69   :  { %800 = vmatmul.msk.bf16.gmra.mxu0 %vm259_vm0, %v832_v26  ;;  %808 = vmatmul.msk.bf16.gmra.mxu1 %vm259_vm0, %v840_v27 }
  0x6a   :  { %816 = vmatmul.msk.bf16.gmra.mxu2 %vm259_vm0, %v848_v28  ;;  %824 = vmatmul.msk.bf16.gmra.mxu3 %vm259_vm0, %v856_v29 }
  0x79   :  { %801 = vmatmul.msk.bf16.gmra.mxu0 %vm259_vm0, %v833_v30  ;;  %809 = vmatmul.msk.bf16.gmra.mxu1 %vm259_vm0, %v841_v31 }
  0x7a   :  { %817 = vmatmul.msk.bf16.gmra.mxu2 %vm259_vm0, %v849_v32  ;;  %825 = vmatmul.msk.bf16.gmra.mxu3 %vm259_vm0, %v857_v33 }
  0x86   :  { %v365_v35 = vpop.f32.mrf.mxu0  ;;  %v405_v36 = vpop.f32.mrf.mxu1 }
  0x87   :  { %v366_v37 = vadd.f32 %v1024_v34, %v365_v35  ;;  %v406_v38 = vadd.f32 %v1024_v34, %v405_v36 }
  0x89   :  { %v525_v39 = vpack.c.bf16 %v366_v37, %v366_v37  ;;  %v541_v40 = vpack.c.bf16 %v406_v38, %v406_v38 }
  0x8b   :  { %590 = vst.msk [vmem:[%s1349_s3] sm:$0xf] %vm589_vm1, %v525_v39 }
  0x8c   :  { %606 = vst.msk [vmem:[%s1349_s3 + $0x40] sm:$0xf] %vm589_vm1, %v541_v40 }
  0x8d   :  { %v445_v41 = vpop.f32.mrf.mxu2  ;;  %v485_v42 = vpop.f32.mrf.mxu3 }
  0x8e   :  { %v446_v43 = vadd.f32 %v1024_v34, %v445_v41  ;;  %v486_v44 = vadd.f32 %v1024_v34, %v485_v42  ;;  %v367_v45 = vpop.f32.mrf.mxu0  ;;  %v407_v46 = vpop.f32.mrf.mxu1 }
  0x8f   :  { %v368_v47 = vadd.f32 %v1024_v34, %v367_v45  ;;  %v408_v48 = vadd.f32 %v1024_v34, %v407_v46 }
  0x90   :  { %v557_v49 = vpack.c.bf16 %v446_v43, %v446_v43  ;;  %v573_v50 = vpack.c.bf16 %v486_v44, %v486_v44 }
  0x91   :  { %v526_v51 = vpack.c.bf16 %v368_v47, %v368_v47  ;;  %v542_v52 = vpack.c.bf16 %v408_v48, %v408_v48 }
  0x92   :  { %622 = vst.msk [vmem:[%s1349_s3 + $0x80] sm:$0xf] %vm589_vm1, %v557_v49 }
  0x93   :  { %638 = vst.msk [vmem:[%s1349_s3 + $0xc0] sm:$0xf] %vm589_vm1, %v573_v50 }
  0x94   :  { %591 = vst.msk [vmem:[%s1349_s3 + $0x4] sm:$0xf] %vm589_vm1, %v526_v51 }
  0x95   :  { %607 = vst.msk [vmem:[%s1349_s3 + $0x44] sm:$0xf] %vm589_vm1, %v542_v52  ;;  %v447_v53 = vpop.f32.mrf.mxu2  ;;  %v487_v54 = vpop.f32.mrf.mxu3 }
  0x96   :  { %v448_v55 = vadd.f32 %v1024_v34, %v447_v53  ;;  %v488_v56 = vadd.f32 %v1024_v34, %v487_v54  ;;  %v370_v57 = vpop.f32.mrf.mxu0  ;;  %v410_v58 = vpop.f32.mrf.mxu1 }
  0x97   :  { %v371_v59 = vadd.f32 %v1024_v34, %v370_v57  ;;  %v411_v60 = vadd.f32 %v1024_v34, %v410_v58 }
  0x98   :  { %v558_v61 = vpack.c.bf16 %v448_v55, %v448_v55  ;;  %v574_v62 = vpack.c.bf16 %v488_v56, %v488_v56 }
  0x99   :  { %v527_v63 = vpack.c.bf16 %v371_v59, %v371_v59  ;;  %v543_v0 = vpack.c.bf16 %v411_v60, %v411_v60 }
  0x9a   :  { %623 = vst.msk [vmem:[%s1349_s3 + $0x84] sm:$0xf] %vm589_vm1, %v558_v61 }
  0x9b   :  { %639 = vst.msk [vmem:[%s1349_s3 + $0xc4] sm:$0xf] %vm589_vm1, %v574_v62 }
  0x9c   :  { %592 = vst.msk [vmem:[%s1349_s3 + $0x8] sm:$0xf] %vm589_vm1, %v527_v63 }
  0x9d   :  { %608 = vst.msk [vmem:[%s1349_s3 + $0x48] sm:$0xf] %vm589_vm1, %v543_v0  ;;  %v450_v1 = vpop.f32.mrf.mxu2  ;;  %v490_v2 = vpop.f32.mrf.mxu3 }
  0x9e   :  { %v451_v3 = vadd.f32 %v1024_v34, %v450_v1  ;;  %v491_v4 = vadd.f32 %v1024_v34, %v490_v2  ;;  %v372_v5 = vpop.f32.mrf.mxu0  ;;  %v412_v6 = vpop.f32.mrf.mxu1 }
  0x9f   :  { %v373_v7 = vadd.f32 %v1024_v34, %v372_v5  ;;  %v413_v8 = vadd.f32 %v1024_v34, %v412_v6 }
  0xa0   :  { %v559_v9 = vpack.c.bf16 %v451_v3, %v451_v3  ;;  %v575_v10 = vpack.c.bf16 %v491_v4, %v491_v4 }
  0xa1   :  { %v528_v11 = vpack.c.bf16 %v373_v7, %v373_v7  ;;  %v544_v12 = vpack.c.bf16 %v413_v8, %v413_v8 }
  0xa2   :  { %624 = vst.msk [vmem:[%s1349_s3 + $0x88] sm:$0xf] %vm589_vm1, %v559_v9 }
  0xa3   :  { %640 = vst.msk [vmem:[%s1349_s3 + $0xc8] sm:$0xf] %vm589_vm1, %v575_v10 }
  0xa4   :  { %593 = vst.msk [vmem:[%s1349_s3 + $0xc] sm:$0xf] %vm589_vm1, %v528_v11 }
  0xa5   :  { %609 = vst.msk [vmem:[%s1349_s3 + $0x4c] sm:$0xf] %vm589_vm1, %v544_v12  ;;  %v452_v13 = vpop.f32.mrf.mxu2  ;;  %v492_v14 = vpop.f32.mrf.mxu3 }
  0xa6   :  { %v453_v15 = vadd.f32 %v1024_v34, %v452_v13  ;;  %v493_v16 = vadd.f32 %v1024_v34, %v492_v14  ;;  %v375_v17 = vpop.f32.mrf.mxu0  ;;  %v415_v18 = vpop.f32.mrf.mxu1 }
  0xa7   :  { %v376_v19 = vadd.f32 %v1024_v34, %v375_v17  ;;  %v416_v20 = vadd.f32 %v1024_v34, %v415_v18 }
  0xa8   :  { %v560_v21 = vpack.c.bf16 %v453_v15, %v453_v15  ;;  %v576_v22 = vpack.c.bf16 %v493_v16, %v493_v16 }
  0xa9   :  { %v529_v23 = vpack.c.bf16 %v376_v19, %v376_v19  ;;  %v545_v24 = vpack.c.bf16 %v416_v20, %v416_v20 }
  0xaa   :  { %625 = vst.msk [vmem:[%s1349_s3 + $0x8c] sm:$0xf] %vm589_vm1, %v560_v21 }
  0xab   :  { %641 = vst.msk [vmem:[%s1349_s3 + $0xcc] sm:$0xf] %vm589_vm1, %v576_v22 }
  0xac   :  { %594 = vst.msk [vmem:[%s1349_s3 + $0x10] sm:$0xf] %vm589_vm1, %v529_v23 }
  0xad   :  { %610 = vst.msk [vmem:[%s1349_s3 + $0x50] sm:$0xf] %vm589_vm1, %v545_v24  ;;  %v455_v25 = vpop.f32.mrf.mxu2  ;;  %v495_v26 = vpop.f32.mrf.mxu3 }
  0xae   :  { %v456_v27 = vadd.f32 %v1024_v34, %v455_v25  ;;  %v496_v28 = vadd.f32 %v1024_v34, %v495_v26  ;;  %v377_v29 = vpop.f32.mrf.mxu0  ;;  %v417_v30 = vpop.f32.mrf.mxu1 }
  0xaf   :  { %v378_v31 = vadd.f32 %v1024_v34, %v377_v29  ;;  %v418_v32 = vadd.f32 %v1024_v34, %v417_v30 }
  0xb0   :  { %v561_v33 = vpack.c.bf16 %v456_v27, %v456_v27  ;;  %v577_v35 = vpack.c.bf16 %v496_v28, %v496_v28 }
  0xb1   :  { %v530_v36 = vpack.c.bf16 %v378_v31, %v378_v31  ;;  %v546_v37 = vpack.c.bf16 %v418_v32, %v418_v32 }
  0xb2   :  { %626 = vst.msk [vmem:[%s1349_s3 + $0x90] sm:$0xf] %vm589_vm1, %v561_v33 }
  0xb3   :  { %642 = vst.msk [vmem:[%s1349_s3 + $0xd0] sm:$0xf] %vm589_vm1, %v577_v35 }
  0xb4   :  { %595 = vst.msk [vmem:[%s1349_s3 + $0x14] sm:$0xf] %vm589_vm1, %v530_v36 }
  0xb5   :  { %611 = vst.msk [vmem:[%s1349_s3 + $0x54] sm:$0xf] %vm589_vm1, %v546_v37  ;;  %v457_v38 = vpop.f32.mrf.mxu2  ;;  %v497_v39 = vpop.f32.mrf.mxu3 }
  0xb6   :  { %v458_v40 = vadd.f32 %v1024_v34, %v457_v38  ;;  %v498_v41 = vadd.f32 %v1024_v34, %v497_v39  ;;  %v380_v42 = vpop.f32.mrf.mxu0  ;;  %v420_v43 = vpop.f32.mrf.mxu1 }
  0xb7   :  { %v381_v44 = vadd.f32 %v1024_v34, %v380_v42  ;;  %v421_v45 = vadd.f32 %v1024_v34, %v420_v43 }
  0xb8   :  { %v562_v46 = vpack.c.bf16 %v458_v40, %v458_v40  ;;  %v578_v47 = vpack.c.bf16 %v498_v41, %v498_v41 }
  0xb9   :  { %v531_v48 = vpack.c.bf16 %v381_v44, %v381_v44  ;;  %v547_v49 = vpack.c.bf16 %v421_v45, %v421_v45 }
  0xba   :  { %627 = vst.msk [vmem:[%s1349_s3 + $0x94] sm:$0xf] %vm589_vm1, %v562_v46 }
  0xbb   :  { %643 = vst.msk [vmem:[%s1349_s3 + $0xd4] sm:$0xf] %vm589_vm1, %v578_v47 }
  0xbc   :  { %596 = vst.msk [vmem:[%s1349_s3 + $0x18] sm:$0xf] %vm589_vm1, %v531_v48 }
  0xbd   :  { %612 = vst.msk [vmem:[%s1349_s3 + $0x58] sm:$0xf] %vm589_vm1, %v547_v49  ;;  %v460_v50 = vpop.f32.mrf.mxu2  ;;  %v500_v51 = vpop.f32.mrf.mxu3 }
  0xbe   :  { %v461_v52 = vadd.f32 %v1024_v34, %v460_v50  ;;  %v501_v53 = vadd.f32 %v1024_v34, %v500_v51  ;;  %v382_v54 = vpop.f32.mrf.mxu0  ;;  %v422_v55 = vpop.f32.mrf.mxu1 }
  0xbf   :  { %v383_v56 = vadd.f32 %v1024_v34, %v382_v54  ;;  %v423_v57 = vadd.f32 %v1024_v34, %v422_v55 }
  0xc0   :  { %v563_v58 = vpack.c.bf16 %v461_v52, %v461_v52  ;;  %v579_v59 = vpack.c.bf16 %v501_v53, %v501_v53 }
  0xc1   :  { %v532_v60 = vpack.c.bf16 %v383_v56, %v383_v56  ;;  %v548_v61 = vpack.c.bf16 %v423_v57, %v423_v57 }
  0xc2   :  { %628 = vst.msk [vmem:[%s1349_s3 + $0x98] sm:$0xf] %vm589_vm1, %v563_v58 }
  0xc3   :  { %644 = vst.msk [vmem:[%s1349_s3 + $0xd8] sm:$0xf] %vm589_vm1, %v579_v59 }
  0xc4   :  { %597 = vst.msk [vmem:[%s1349_s3 + $0x1c] sm:$0xf] %vm589_vm1, %v532_v60 }
  0xc5   :  { %613 = vst.msk [vmem:[%s1349_s3 + $0x5c] sm:$0xf] %vm589_vm1, %v548_v61  ;;  %v462_v62 = vpop.f32.mrf.mxu2  ;;  %v502_v63 = vpop.f32.mrf.mxu3 }
  0xc6   :  { %v463_v0 = vadd.f32 %v1024_v34, %v462_v62  ;;  %v503_v1 = vadd.f32 %v1024_v34, %v502_v63  ;;  %v385_v2 = vpop.f32.mrf.mxu0  ;;  %v425_v3 = vpop.f32.mrf.mxu1 }
  0xc7   :  { %v386_v4 = vadd.f32 %v1024_v34, %v385_v2  ;;  %v426_v5 = vadd.f32 %v1024_v34, %v425_v3 }
  0xc8   :  { %v564_v6 = vpack.c.bf16 %v463_v0, %v463_v0  ;;  %v580_v7 = vpack.c.bf16 %v503_v1, %v503_v1 }
  0xc9   :  { %v533_v8 = vpack.c.bf16 %v386_v4, %v386_v4  ;;  %v549_v9 = vpack.c.bf16 %v426_v5, %v426_v5 }
  0xca   :  { %629 = vst.msk [vmem:[%s1349_s3 + $0x9c] sm:$0xf] %vm589_vm1, %v564_v6 }
  0xcb   :  { %645 = vst.msk [vmem:[%s1349_s3 + $0xdc] sm:$0xf] %vm589_vm1, %v580_v7 }
  0xcc   :  { %598 = vst.msk [vmem:[%s1349_s3 + $0x20] sm:$0xf] %vm589_vm1, %v533_v8 }
  0xcd   :  { %614 = vst.msk [vmem:[%s1349_s3 + $0x60] sm:$0xf] %vm589_vm1, %v549_v9  ;;  %v465_v10 = vpop.f32.mrf.mxu2  ;;  %v505_v11 = vpop.f32.mrf.mxu3 }
  0xce   :  { %v466_v12 = vadd.f32 %v1024_v34, %v465_v10  ;;  %v506_v13 = vadd.f32 %v1024_v34, %v505_v11  ;;  %v387_v14 = vpop.f32.mrf.mxu0  ;;  %v427_v15 = vpop.f32.mrf.mxu1 }
  0xcf   :  { %v388_v16 = vadd.f32 %v1024_v34, %v387_v14  ;;  %v428_v17 = vadd.f32 %v1024_v34, %v427_v15 }
  0xd0   :  { %v565_v18 = vpack.c.bf16 %v466_v12, %v466_v12  ;;  %v581_v19 = vpack.c.bf16 %v506_v13, %v506_v13 }
  0xd1   :  { %v534_v20 = vpack.c.bf16 %v388_v16, %v388_v16  ;;  %v550_v21 = vpack.c.bf16 %v428_v17, %v428_v17 }
  0xd2   :  { %630 = vst.msk [vmem:[%s1349_s3 + $0xa0] sm:$0xf] %vm589_vm1, %v565_v18 }
  0xd3   :  { %646 = vst.msk [vmem:[%s1349_s3 + $0xe0] sm:$0xf] %vm589_vm1, %v581_v19 }
  0xd4   :  { %599 = vst.msk [vmem:[%s1349_s3 + $0x24] sm:$0xf] %vm589_vm1, %v534_v20 }
  0xd5   :  { %615 = vst.msk [vmem:[%s1349_s3 + $0x64] sm:$0xf] %vm589_vm1, %v550_v21  ;;  %v467_v22 = vpop.f32.mrf.mxu2  ;;  %v507_v23 = vpop.f32.mrf.mxu3 }
  0xd6   :  { %v468_v24 = vadd.f32 %v1024_v34, %v467_v22  ;;  %v508_v25 = vadd.f32 %v1024_v34, %v507_v23  ;;  %v390_v26 = vpop.f32.mrf.mxu0  ;;  %v430_v27 = vpop.f32.mrf.mxu1 }
  0xd7   :  { %v391_v28 = vadd.f32 %v1024_v34, %v390_v26  ;;  %v431_v29 = vadd.f32 %v1024_v34, %v430_v27 }
  0xd8   :  { %v566_v30 = vpack.c.bf16 %v468_v24, %v468_v24  ;;  %v582_v31 = vpack.c.bf16 %v508_v25, %v508_v25 }
  0xd9   :  { %v535_v32 = vpack.c.bf16 %v391_v28, %v391_v28  ;;  %v551_v33 = vpack.c.bf16 %v431_v29, %v431_v29 }
  0xda   :  { %631 = vst.msk [vmem:[%s1349_s3 + $0xa4] sm:$0xf] %vm589_vm1, %v566_v30 }
  0xdb   :  { %647 = vst.msk [vmem:[%s1349_s3 + $0xe4] sm:$0xf] %vm589_vm1, %v582_v31 }
  0xdc   :  { %600 = vst.msk [vmem:[%s1349_s3 + $0x28] sm:$0xf] %vm589_vm1, %v535_v32 }
  0xdd   :  { %616 = vst.msk [vmem:[%s1349_s3 + $0x68] sm:$0xf] %vm589_vm1, %v551_v33  ;;  %v470_v35 = vpop.f32.mrf.mxu2  ;;  %v510_v36 = vpop.f32.mrf.mxu3 }
  0xde   :  { %v471_v37 = vadd.f32 %v1024_v34, %v470_v35  ;;  %v511_v38 = vadd.f32 %v1024_v34, %v510_v36  ;;  %v392_v39 = vpop.f32.mrf.mxu0  ;;  %v432_v40 = vpop.f32.mrf.mxu1 }
  0xdf   :  { %v393_v41 = vadd.f32 %v1024_v34, %v392_v39  ;;  %v433_v42 = vadd.f32 %v1024_v34, %v432_v40 }
  0xe0   :  { %v567_v43 = vpack.c.bf16 %v471_v37, %v471_v37  ;;  %v583_v44 = vpack.c.bf16 %v511_v38, %v511_v38 }
  0xe1   :  { %v536_v45 = vpack.c.bf16 %v393_v41, %v393_v41  ;;  %v552_v46 = vpack.c.bf16 %v433_v42, %v433_v42 }
  0xe2   :  { %632 = vst.msk [vmem:[%s1349_s3 + $0xa8] sm:$0xf] %vm589_vm1, %v567_v43 }
  0xe3   :  { %648 = vst.msk [vmem:[%s1349_s3 + $0xe8] sm:$0xf] %vm589_vm1, %v583_v44 }
  0xe4   :  { %601 = vst.msk [vmem:[%s1349_s3 + $0x2c] sm:$0xf] %vm589_vm1, %v536_v45 }
  0xe5   :  { %617 = vst.msk [vmem:[%s1349_s3 + $0x6c] sm:$0xf] %vm589_vm1, %v552_v46  ;;  %v472_v47 = vpop.f32.mrf.mxu2  ;;  %v512_v48 = vpop.f32.mrf.mxu3 }
  0xe6   :  { %v473_v49 = vadd.f32 %v1024_v34, %v472_v47  ;;  %v513_v50 = vadd.f32 %v1024_v34, %v512_v48  ;;  %v395_v51 = vpop.f32.mrf.mxu0  ;;  %v435_v52 = vpop.f32.mrf.mxu1 }
  0xe7   :  { %v396_v53 = vadd.f32 %v1024_v34, %v395_v51  ;;  %v436_v54 = vadd.f32 %v1024_v34, %v435_v52 }
  0xe8   :  { %v568_v55 = vpack.c.bf16 %v473_v49, %v473_v49  ;;  %v584_v56 = vpack.c.bf16 %v513_v50, %v513_v50 }
  0xe9   :  { %v537_v57 = vpack.c.bf16 %v396_v53, %v396_v53  ;;  %v553_v58 = vpack.c.bf16 %v436_v54, %v436_v54 }
  0xea   :  { %633 = vst.msk [vmem:[%s1349_s3 + $0xac] sm:$0xf] %vm589_vm1, %v568_v55 }
  0xeb   :  { %649 = vst.msk [vmem:[%s1349_s3 + $0xec] sm:$0xf] %vm589_vm1, %v584_v56 }
  0xec   :  { %602 = vst.msk [vmem:[%s1349_s3 + $0x30] sm:$0xf] %vm589_vm1, %v537_v57 }
  0xed   :  { %618 = vst.msk [vmem:[%s1349_s3 + $0x70] sm:$0xf] %vm589_vm1, %v553_v58  ;;  %v475_v59 = vpop.f32.mrf.mxu2  ;;  %v515_v60 = vpop.f32.mrf.mxu3 }
  0xee   :  { %v476_v61 = vadd.f32 %v1024_v34, %v475_v59  ;;  %v516_v62 = vadd.f32 %v1024_v34, %v515_v60  ;;  %v397_v63 = vpop.f32.mrf.mxu0  ;;  %v437_v0 = vpop.f32.mrf.mxu1 }
  0xef   :  { %v398_v1 = vadd.f32 %v1024_v34, %v397_v63  ;;  %v438_v2 = vadd.f32 %v1024_v34, %v437_v0 }
  0xf0   :  { %v569_v3 = vpack.c.bf16 %v476_v61, %v476_v61  ;;  %v585_v4 = vpack.c.bf16 %v516_v62, %v516_v62 }
  0xf1   :  { %v538_v5 = vpack.c.bf16 %v398_v1, %v398_v1  ;;  %v554_v6 = vpack.c.bf16 %v438_v2, %v438_v2 }
  0xf2   :  { %634 = vst.msk [vmem:[%s1349_s3 + $0xb0] sm:$0xf] %vm589_vm1, %v569_v3 }
  0xf3   :  { %650 = vst.msk [vmem:[%s1349_s3 + $0xf0] sm:$0xf] %vm589_vm1, %v585_v4 }
  0xf4   :  { %603 = vst.msk [vmem:[%s1349_s3 + $0x34] sm:$0xf] %vm589_vm1, %v538_v5 }
  0xf5   :  { %619 = vst.msk [vmem:[%s1349_s3 + $0x74] sm:$0xf] %vm589_vm1, %v554_v6  ;;  %v477_v7 = vpop.f32.mrf.mxu2  ;;  %v517_v8 = vpop.f32.mrf.mxu3 }
  0xf6   :  { %v478_v9 = vadd.f32 %v1024_v34, %v477_v7  ;;  %v518_v10 = vadd.f32 %v1024_v34, %v517_v8  ;;  %v400_v11 = vpop.f32.mrf.mxu0  ;;  %v440_v12 = vpop.f32.mrf.mxu1 }
  0xf7   :  { %v401_v13 = vadd.f32 %v1024_v34, %v400_v11  ;;  %v441_v14 = vadd.f32 %v1024_v34, %v440_v12 }
  0xf8   :  { %v570_v15 = vpack.c.bf16 %v478_v9, %v478_v9  ;;  %v586_v16 = vpack.c.bf16 %v518_v10, %v518_v10 }
  0xf9   :  { %v539_v17 = vpack.c.bf16 %v401_v13, %v401_v13  ;;  %v555_v18 = vpack.c.bf16 %v441_v14, %v441_v14 }
  0xfa   :  { %635 = vst.msk [vmem:[%s1349_s3 + $0xb4] sm:$0xf] %vm589_vm1, %v570_v15 }
  0xfb   :  { %651 = vst.msk [vmem:[%s1349_s3 + $0xf4] sm:$0xf] %vm589_vm1, %v586_v16 }
  0xfc   :  { %604 = vst.msk [vmem:[%s1349_s3 + $0x38] sm:$0xf] %vm589_vm1, %v539_v17 }
  0xfd   :  { %620 = vst.msk [vmem:[%s1349_s3 + $0x78] sm:$0xf] %vm589_vm1, %v555_v18  ;;  %v480_v19 = vpop.f32.mrf.mxu2  ;;  %v520_v20 = vpop.f32.mrf.mxu3 }
  0xfe   :  { %v481_v21 = vadd.f32 %v1024_v34, %v480_v19  ;;  %v521_v22 = vadd.f32 %v1024_v34, %v520_v20  ;;  %v402_v23 = vpop.f32.mrf.mxu0  ;;  %v442_v24 = vpop.f32.mrf.mxu1 }
  0xff   :  { %v403_v25 = vadd.f32 %v1024_v34, %v402_v23  ;;  %v443_v26 = vadd.f32 %v1024_v34, %v442_v24 }
 0x100   :  { %v571_v27 = vpack.c.bf16 %v481_v21, %v481_v21  ;;  %v587_v28 = vpack.c.bf16 %v521_v22, %v521_v22 }
 0x101   :  { %v540_v29 = vpack.c.bf16 %v403_v25, %v403_v25  ;;  %v556_v30 = vpack.c.bf16 %v443_v26, %v443_v26 }
 0x102   :  { %636 = vst.msk [vmem:[%s1349_s3 + $0xb8] sm:$0xf] %vm589_vm1, %v571_v27 }
 0x103   :  { %652 = vst.msk [vmem:[%s1349_s3 + $0xf8] sm:$0xf] %vm589_vm1, %v587_v28 }
 0x104   :  { %605 = vst.msk [vmem:[%s1349_s3 + $0x3c] sm:$0xf] %vm589_vm1, %v540_v29 }
 0x105   :  { %621 = vst.msk [vmem:[%s1349_s3 + $0x7c] sm:$0xf] %vm589_vm1, %v556_v30  ;;  %v482_v31 = vpop.f32.mrf.mxu2  ;;  %v522_v32 = vpop.f32.mrf.mxu3 }
 0x106   :  { %v483_v33 = vadd.f32 %v1024_v34, %v482_v31  ;;  %v523_v35 = vadd.f32 %v1024_v34, %v522_v32 }
 0x108   :  { %v572_v36 = vpack.c.bf16 %v483_v33, %v483_v33  ;;  %v588_v37 = vpack.c.bf16 %v523_v35, %v523_v35 }
 0x10a   :  { %637 = vst.msk [vmem:[%s1349_s3 + $0xbc] sm:$0xf] %vm589_vm1, %v572_v36 }
 0x10b   :  { %653 = vst.msk [vmem:[%s1349_s3 + $0xfc] sm:$0xf] %vm589_vm1, %v588_v37 }

// kernel: bilevel_routing_attention_nchw.5
= control target key start
LH: loop header
LB: loop body
LE: loop exit
PB: predicated region body
PF: predicated region fallthrough
CT: control target
= control target key end

     0   :  { %s3529_s18 = smov [#allocation6]   ;;  %s4882_s0 = inlined_call_operand.vmem [shape: s32[16], index: 0, kind: input, shape index: {}]   ;;  %s4883_s1 = inlined_call_operand.vmem [shape: bf16[2,4,4,64,8], index: 1, kind: input, shape index: {}]   ;;  %s4884_s2 = inlined_call_operand.vmem [shape: bf16[2,4,4,64,8], index: 2, kind: input, shape index: {}]   ;;  %s4885_s3 = inlined_call_operand.vmem [shape: bf16[2,4,4,64,8], index: 3, kind: input, shape index: {}]   ;;  %s4886_s4 = inlined_call_operand.vmem [shape: bf16[2,4,4,64,8], index: 4, kind: output, shape index: {}]  }
   0x1   :  { %s10_s17 = sshll.u32 %s4882_s0, 4  ;;  %s11_s17 = int_to_ptr.vmem [resolvable:$true] %s10_s17 }
   0x2   :  { %13 = dma.vmem_to_smem %s11_s17, 16, %s3529_s18, [#allocation5] }
   0x3   :  { %3499 = dma.done.wait [#allocation5], 16 }
   0x4   :  { %3500 = vsyncadd [#allocation5], 4294967280 }
   0x5   :  { %16 = sfence }
   0x6   :  { %s3562_s19 = smov 0   ;;  %s3564_s20 = smov 0  }
   0x7   :  { %s3566_s21 = smov 0   ;;  %s3568_s22 = smov 0  }
   0x8   :  { %s3570_s23 = smov 0   ;;  %s3572_s24 = smov 0  }
   0x9   :  { %s3574_s25 = smov 0  }
   0xa LB: > { %s34_s0 = sadd.s32 1, %s3515_s22  ;;  %s37_s26 = sadd.s32 1, %s3519_s23  ;;  %s3527_s25 = sphi %s3574_s25, %s22_s25   ;;  %s3523_s24 = sphi %s3572_s24, %s4998_s24   ;;  %s3519_s23 = sphi %s3570_s23, %s4997_s23   ;;  %s3515_s22 = sphi %s3568_s22, %s4996_s22   ;;  %s3511_s21 = sphi %s3566_s21, %s4995_s21   ;;  %s3507_s20 = sphi %s3564_s20, %s4994_s20   ;;  %s3503_s19 = sphi %s3562_s19, %s4993_s19  }
   0xb   : > { %p35_p0 = scmp.ge.s32.totalorder %s34_s0, 2  ;;  %p2907_p1 = scmp.ge.s32.totalorder %s3527_s25, 1 }
   0xc   : > { %p245_p2 = scmp.lt.s32.totalorder %s3527_s25, 17  ;;  %s41_s27 = sadd.s32 1, %s3523_s24 }
   0xd   : > { %s5000_s0 = smov (%p35_p0, %s34_s0), 0  ;;  %s5002_s26 = smov (!%p35_p0, %s37_s26), %s3519_s23 }
   0xe   : > { %p246_p3 = pnand %p2907_p1, %p245_p2  ;;  %p39_p4 = scmp.ge.s32.totalorder %s5002_s26, 4 }
  0x10   : > { %s5004_s26 = smov (%p39_p4, %s5002_s26), 0  ;;  %s5006_s27 = smov (!%p39_p4, %s41_s27), %s3523_s24 }
  0x11   : > { %p43_p5 = scmp.ge.s32.totalorder %s5006_s27, 2  ;;  %249 = sbr.rel (%p246_p3) target bundleno = 1061 (0x425), region = 32 }
  0x13   : > { %s5008_s27 = smov (%p43_p5, %s5006_s27), 0 }
  0x16   : > { %p305_p6 = scmp.lt.s32.totalorder %s3511_s21, 1  ;;  %p307_p7 = scmp.lt.s32.totalorder %s3507_s20, 3 }
  0x17   : > { %s2911_s28 = sshll.u32 %s3511_s21, 2  ;;  %p2924_p10 = scmp.ne.s32.totalorder %s3503_s19, 0 }
  0x18   : > { %s5010_s21 = smov (!%p305_p6, %s3511_s21), 1  ;;  %s315_s5 = sadd.s32 %s3507_s20, %s2911_s28 }
  0x19   : > { %s308_s29 = scalar_select %p307_p7, %s3507_s20, 3 }
  0x1a   : > { %s2909_s30 = sshll.u32 %s5010_s21, 7  ;;  %s2912_s7 = sshll.u32 %s315_s5, 1 }
  0x1b   : > { %s2908_s6 = sshll.u32 %s308_s29, 5  ;;  %s317_s9 = sadd.s32 %s3503_s19, %s2912_s7 }
  0x1c   : > { %s311_s8 = sadd.s32 %s2909_s30, %s2908_s6  ;;  %s318_s11 = sld [smem:[#allocation6 + %s317_s9]] }
  0x1d   : > { %s2910_s10 = sshll.u32 %s311_s8, 2  ;;  %s337_s15 = sld [smem:[#allocation6 + %s317_s9]] }
  0x1e   : > { %s3610_s14 = scalar_lea.vmem %s4883_s1, %s2910_s10  ;;  %s3615_s18 = scalar_lea.vmem %s4886_s4, %s2910_s10 }
  0x22   : > { %p321_p8 = scmp.lt.s32.totalorder %s318_s11, 3 }
  0x23   : > { %p340_p9 = scmp.lt.s32.totalorder %s337_s15, 3 }
  0x24   : > { %s5012_s11 = smov (!%p321_p8, %s318_s11), 3 }
  0x25   : > { %s5014_s15 = smov (!%p340_p9, %s337_s15), 3  ;;  %s2913_s20 = sshll.u32 %s5012_s11, 5 }
  0x26   : > { %s325_s21 = sadd.s32 %s2913_s20, %s2909_s30  ;;  %s2918_s28 = sshll.u32 %s5014_s15, 5 }
  0x27   : > { %s2915_s29 = sshll.u32 %s325_s21, 2  ;;  %s344_s5 = sadd.s32 %s2918_s28, %s2909_s30 }
  0x28   : > { %s3620_s8 = scalar_lea.vmem %s4884_s2, %s2915_s29  ;;  %s2920_s9 = sshll.u32 %s344_s5, 2 }
  0x29   : > { %s3625_s10 = scalar_lea.vmem %s4885_s3, %s2920_s9  ;;  %365 = sbr.rel (%p2924_p10) target bundleno = 143 (0x8f), region = 36 }
  0x2e   : > { %vm366_vm0 = vcmask 7168   ;;  %v3530_v0 = vmov -inf   ;;  %v3531_v1 = vmov 0.0   ;;  %vm431_vm1 = vcmask 64512  }
  0x2f   : > { %367 = vst.msk [vmem:[#allocation2] sm:$0xff] %vm366_vm0, %v3530_v0 }
  0x30   : > { %368 = vst.msk [vmem:[#allocation2 + $0x8] sm:$0xff] %vm366_vm0, %v3530_v0 }
  0x31   : > { %369 = vst.msk [vmem:[#allocation2 + $0x10] sm:$0xff] %vm366_vm0, %v3530_v0 }
  0x32   : > { %370 = vst.msk [vmem:[#allocation2 + $0x18] sm:$0xff] %vm366_vm0, %v3530_v0 }
  0x33   : > { %371 = vst.msk [vmem:[#allocation2 + $0x20] sm:$0xff] %vm366_vm0, %v3530_v0 }
  0x34   : > { %372 = vst.msk [vmem:[#allocation2 + $0x28] sm:$0xff] %vm366_vm0, %v3530_v0 }
  0x35   : > { %373 = vst.msk [vmem:[#allocation2 + $0x30] sm:$0xff] %vm366_vm0, %v3530_v0 }
  0x36   : > { %374 = vst.msk [vmem:[#allocation2 + $0x38] sm:$0xff] %vm366_vm0, %v3530_v0 }
  0x37   : > { %375 = vst.msk [vmem:[#allocation2 + $0x40] sm:$0xff] %vm366_vm0, %v3530_v0 }
  0x38   : > { %376 = vst.msk [vmem:[#allocation2 + $0x48] sm:$0xff] %vm366_vm0, %v3530_v0 }
  0x39   : > { %377 = vst.msk [vmem:[#allocation2 + $0x50] sm:$0xff] %vm366_vm0, %v3530_v0 }
  0x3a   : > { %378 = vst.msk [vmem:[#allocation2 + $0x58] sm:$0xff] %vm366_vm0, %v3530_v0 }
  0x3b   : > { %379 = vst.msk [vmem:[#allocation2 + $0x60] sm:$0xff] %vm366_vm0, %v3530_v0 }
  0x3c   : > { %380 = vst.msk [vmem:[#allocation2 + $0x68] sm:$0xff] %vm366_vm0, %v3530_v0 }
  0x3d   : > { %381 = vst.msk [vmem:[#allocation2 + $0x70] sm:$0xff] %vm366_vm0, %v3530_v0 }
  0x3e   : > { %382 = vst.msk [vmem:[#allocation2 + $0x78] sm:$0xff] %vm366_vm0, %v3530_v0 }
  0x3f   : > { %383 = vst.msk [vmem:[#allocation2 + $0x80] sm:$0xff] %vm366_vm0, %v3530_v0 }
  0x40   : > { %384 = vst.msk [vmem:[#allocation2 + $0x88] sm:$0xff] %vm366_vm0, %v3530_v0 }
  0x41   : > { %385 = vst.msk [vmem:[#allocation2 + $0x90] sm:$0xff] %vm366_vm0, %v3530_v0 }
  0x42   : > { %386 = vst.msk [vmem:[#allocation2 + $0x98] sm:$0xff] %vm366_vm0, %v3530_v0 }
  0x43   : > { %387 = vst.msk [vmem:[#allocation2 + $0xa0] sm:$0xff] %vm366_vm0, %v3530_v0 }
  0x44   : > { %388 = vst.msk [vmem:[#allocation2 + $0xa8] sm:$0xff] %vm366_vm0, %v3530_v0 }
  0x45   : > { %389 = vst.msk [vmem:[#allocation2 + $0xb0] sm:$0xff] %vm366_vm0, %v3530_v0 }
  0x46   : > { %390 = vst.msk [vmem:[#allocation2 + $0xb8] sm:$0xff] %vm366_vm0, %v3530_v0 }
  0x47   : > { %391 = vst.msk [vmem:[#allocation2 + $0xc0] sm:$0xff] %vm366_vm0, %v3530_v0 }
  0x48   : > { %392 = vst.msk [vmem:[#allocation2 + $0xc8] sm:$0xff] %vm366_vm0, %v3530_v0 }
  0x49   : > { %393 = vst.msk [vmem:[#allocation2 + $0xd0] sm:$0xff] %vm366_vm0, %v3530_v0 }
  0x4a   : > { %394 = vst.msk [vmem:[#allocation2 + $0xd8] sm:$0xff] %vm366_vm0, %v3530_v0 }
  0x4b   : > { %395 = vst.msk [vmem:[#allocation2 + $0xe0] sm:$0xff] %vm366_vm0, %v3530_v0 }
  0x4c   : > { %396 = vst.msk [vmem:[#allocation2 + $0xe8] sm:$0xff] %vm366_vm0, %v3530_v0 }
  0x4d   : > { %397 = vst.msk [vmem:[#allocation2 + $0xf0] sm:$0xff] %vm366_vm0, %v3530_v0 }
  0x4e   : > { %398 = vst.msk [vmem:[#allocation2 + $0xf8] sm:$0xff] %vm366_vm0, %v3530_v0 }
  0x4f   : > { %399 = vst.msk [vmem:[#allocation3] sm:$0xff] %vm366_vm0, %v3531_v1 }
  0x50   : > { %400 = vst.msk [vmem:[#allocation3 + $0x8] sm:$0xff] %vm366_vm0, %v3531_v1 }
  0x51   : > { %401 = vst.msk [vmem:[#allocation3 + $0x10] sm:$0xff] %vm366_vm0, %v3531_v1 }
  0x52   : > { %402 = vst.msk [vmem:[#allocation3 + $0x18] sm:$0xff] %vm366_vm0, %v3531_v1 }
  0x53   : > { %403 = vst.msk [vmem:[#allocation3 + $0x20] sm:$0xff] %vm366_vm0, %v3531_v1 }
  0x54   : > { %404 = vst.msk [vmem:[#allocation3 + $0x28] sm:$0xff] %vm366_vm0, %v3531_v1 }
  0x55   : > { %405 = vst.msk [vmem:[#allocation3 + $0x30] sm:$0xff] %vm366_vm0, %v3531_v1 }
  0x56   : > { %406 = vst.msk [vmem:[#allocation3 + $0x38] sm:$0xff] %vm366_vm0, %v3531_v1 }
  0x57   : > { %407 = vst.msk [vmem:[#allocation3 + $0x40] sm:$0xff] %vm366_vm0, %v3531_v1 }
  0x58   : > { %408 = vst.msk [vmem:[#allocation3 + $0x48] sm:$0xff] %vm366_vm0, %v3531_v1 }
  0x59   : > { %409 = vst.msk [vmem:[#allocation3 + $0x50] sm:$0xff] %vm366_vm0, %v3531_v1 }
  0x5a   : > { %410 = vst.msk [vmem:[#allocation3 + $0x58] sm:$0xff] %vm366_vm0, %v3531_v1 }
  0x5b   : > { %411 = vst.msk [vmem:[#allocation3 + $0x60] sm:$0xff] %vm366_vm0, %v3531_v1 }
  0x5c   : > { %412 = vst.msk [vmem:[#allocation3 + $0x68] sm:$0xff] %vm366_vm0, %v3531_v1 }
  0x5d   : > { %413 = vst.msk [vmem:[#allocation3 + $0x70] sm:$0xff] %vm366_vm0, %v3531_v1 }
  0x5e   : > { %414 = vst.msk [vmem:[#allocation3 + $0x78] sm:$0xff] %vm366_vm0, %v3531_v1 }
  0x5f   : > { %415 = vst.msk [vmem:[#allocation3 + $0x80] sm:$0xff] %vm366_vm0, %v3531_v1 }
  0x60   : > { %416 = vst.msk [vmem:[#allocation3 + $0x88] sm:$0xff] %vm366_vm0, %v3531_v1 }
  0x61   : > { %417 = vst.msk [vmem:[#allocation3 + $0x90] sm:$0xff] %vm366_vm0, %v3531_v1 }
  0x62   : > { %418 = vst.msk [vmem:[#allocation3 + $0x98] sm:$0xff] %vm366_vm0, %v3531_v1 }
  0x63   : > { %419 = vst.msk [vmem:[#allocation3 + $0xa0] sm:$0xff] %vm366_vm0, %v3531_v1 }
  0x64   : > { %420 = vst.msk [vmem:[#allocation3 + $0xa8] sm:$0xff] %vm366_vm0, %v3531_v1 }
  0x65   : > { %421 = vst.msk [vmem:[#allocation3 + $0xb0] sm:$0xff] %vm366_vm0, %v3531_v1 }
  0x66   : > { %422 = vst.msk [vmem:[#allocation3 + $0xb8] sm:$0xff] %vm366_vm0, %v3531_v1 }
  0x67   : > { %423 = vst.msk [vmem:[#allocation3 + $0xc0] sm:$0xff] %vm366_vm0, %v3531_v1 }
  0x68   : > { %424 = vst.msk [vmem:[#allocation3 + $0xc8] sm:$0xff] %vm366_vm0, %v3531_v1 }
  0x69   : > { %425 = vst.msk [vmem:[#allocation3 + $0xd0] sm:$0xff] %vm366_vm0, %v3531_v1 }
  0x6a   : > { %426 = vst.msk [vmem:[#allocation3 + $0xd8] sm:$0xff] %vm366_vm0, %v3531_v1 }
  0x6b   : > { %427 = vst.msk [vmem:[#allocation3 + $0xe0] sm:$0xff] %vm366_vm0, %v3531_v1 }
  0x6c   : > { %428 = vst.msk [vmem:[#allocation3 + $0xe8] sm:$0xff] %vm366_vm0, %v3531_v1 }
  0x6d   : > { %429 = vst.msk [vmem:[#allocation3 + $0xf0] sm:$0xff] %vm366_vm0, %v3531_v1 }
  0x6e   : > { %430 = vst.msk [vmem:[#allocation3 + $0xf8] sm:$0xff] %vm366_vm0, %v3531_v1 }
  0x6f   : > { %432 = vst.msk [vmem:[#allocation4] sm:$0xff] %vm431_vm1, %v3531_v1 }
  0x70   : > { %433 = vst.msk [vmem:[#allocation4 + $0x8] sm:$0xff] %vm431_vm1, %v3531_v1 }
  0x71   : > { %434 = vst.msk [vmem:[#allocation4 + $0x10] sm:$0xff] %vm431_vm1, %v3531_v1 }
  0x72   : > { %435 = vst.msk [vmem:[#allocation4 + $0x18] sm:$0xff] %vm431_vm1, %v3531_v1 }
  0x73   : > { %436 = vst.msk [vmem:[#allocation4 + $0x20] sm:$0xff] %vm431_vm1, %v3531_v1 }
  0x74   : > { %437 = vst.msk [vmem:[#allocation4 + $0x28] sm:$0xff] %vm431_vm1, %v3531_v1 }
  0x75   : > { %438 = vst.msk [vmem:[#allocation4 + $0x30] sm:$0xff] %vm431_vm1, %v3531_v1 }
  0x76   : > { %439 = vst.msk [vmem:[#allocation4 + $0x38] sm:$0xff] %vm431_vm1, %v3531_v1 }
  0x77   : > { %440 = vst.msk [vmem:[#allocation4 + $0x40] sm:$0xff] %vm431_vm1, %v3531_v1 }
  0x78   : > { %441 = vst.msk [vmem:[#allocation4 + $0x48] sm:$0xff] %vm431_vm1, %v3531_v1 }
  0x79   : > { %442 = vst.msk [vmem:[#allocation4 + $0x50] sm:$0xff] %vm431_vm1, %v3531_v1 }
  0x7a   : > { %443 = vst.msk [vmem:[#allocation4 + $0x58] sm:$0xff] %vm431_vm1, %v3531_v1 }
  0x7b   : > { %444 = vst.msk [vmem:[#allocation4 + $0x60] sm:$0xff] %vm431_vm1, %v3531_v1 }
  0x7c   : > { %445 = vst.msk [vmem:[#allocation4 + $0x68] sm:$0xff] %vm431_vm1, %v3531_v1 }
  0x7d   : > { %446 = vst.msk [vmem:[#allocation4 + $0x70] sm:$0xff] %vm431_vm1, %v3531_v1 }
  0x7e   : > { %447 = vst.msk [vmem:[#allocation4 + $0x78] sm:$0xff] %vm431_vm1, %v3531_v1 }
  0x7f   : > { %448 = vst.msk [vmem:[#allocation4 + $0x80] sm:$0xff] %vm431_vm1, %v3531_v1 }
  0x80   : > { %449 = vst.msk [vmem:[#allocation4 + $0x88] sm:$0xff] %vm431_vm1, %v3531_v1 }
  0x81   : > { %450 = vst.msk [vmem:[#allocation4 + $0x90] sm:$0xff] %vm431_vm1, %v3531_v1 }
  0x82   : > { %451 = vst.msk [vmem:[#allocation4 + $0x98] sm:$0xff] %vm431_vm1, %v3531_v1 }
  0x83   : > { %452 = vst.msk [vmem:[#allocation4 + $0xa0] sm:$0xff] %vm431_vm1, %v3531_v1 }
  0x84   : > { %453 = vst.msk [vmem:[#allocation4 + $0xa8] sm:$0xff] %vm431_vm1, %v3531_v1 }
  0x85   : > { %454 = vst.msk [vmem:[#allocation4 + $0xb0] sm:$0xff] %vm431_vm1, %v3531_v1 }
  0x86   : > { %455 = vst.msk [vmem:[#allocation4 + $0xb8] sm:$0xff] %vm431_vm1, %v3531_v1 }
  0x87   : > { %456 = vst.msk [vmem:[#allocation4 + $0xc0] sm:$0xff] %vm431_vm1, %v3531_v1 }
  0x88   : > { %457 = vst.msk [vmem:[#allocation4 + $0xc8] sm:$0xff] %vm431_vm1, %v3531_v1 }
  0x89   : > { %458 = vst.msk [vmem:[#allocation4 + $0xd0] sm:$0xff] %vm431_vm1, %v3531_v1 }
  0x8a   : > { %459 = vst.msk [vmem:[#allocation4 + $0xd8] sm:$0xff] %vm431_vm1, %v3531_v1 }
  0x8b   : > { %460 = vst.msk [vmem:[#allocation4 + $0xe0] sm:$0xff] %vm431_vm1, %v3531_v1 }
  0x8c   : > { %461 = vst.msk [vmem:[#allocation4 + $0xe8] sm:$0xff] %vm431_vm1, %v3531_v1 }
  0x8d   : > { %462 = vst.msk [vmem:[#allocation4 + $0xf0] sm:$0xff] %vm431_vm1, %v3531_v1 }
  0x8e   : > { %463 = vst.msk [vmem:[#allocation4 + $0xf8] sm:$0xff] %vm431_vm1, %v3531_v1 }
  0x8f PF: > { %v3171_v2 = vld [vmem:[%s3620_s8 + $0x18] sm:$0xff]  ;;  %vm600_vm2 = vcmask 64512   ;;  %v3170_v10 = vld [vmem:[%s3620_s8 + $0x10] sm:$0xff]  ;;  %v3169_v18 = vld [vmem:[%s3620_s8 + $0x8] sm:$0xff]  ;;  %vm997_vm3 = vcmask 523264   ;;  %vm1670_vm4 = vcmask 7168  }
  0x90   : > { %v3175_v3 = vld [vmem:[%s3620_s8 + $0x38] sm:$0xff]  ;;  %v623_v6 = vsel %vm600_vm2, %v3171_v2, 0  ;;  %v3174_v11 = vld [vmem:[%s3620_s8 + $0x30] sm:$0xff]  ;;  %v620_v14 = vsel %vm600_vm2, %v3170_v10, 0  ;;  %v3173_v19 = vld [vmem:[%s3620_s8 + $0x28] sm:$0xff]  ;;  %v617_v22 = vsel %vm600_vm2, %v3169_v18, 0 }
  0x91   : > { %v3179_v4 = vld [vmem:[%s3620_s8 + $0x58] sm:$0xff]  ;;  %v716_v7 = vsel %vm600_vm2, %v3175_v3, 0  ;;  %629 = vmatpush.bf16.xpose.msra.mxu0 %v623_v6  ;;  %v3178_v12 = vld [vmem:[%s3620_s8 + $0x50] sm:$0xff]  ;;  %v713_v15 = vsel %vm600_vm2, %v3174_v11, 0  ;;  %v3177_v20 = vld [vmem:[%s3620_s8 + $0x48] sm:$0xff]  ;;  %v710_v23 = vsel %vm600_vm2, %v3173_v19, 0 }
  0x92   : > { %v3183_v5 = vld [vmem:[%s3620_s8 + $0x78] sm:$0xff]  ;;  %v809_v8 = vsel %vm600_vm2, %v3179_v4, 0  ;;  %722 = vmatpush.bf16.xpose.msra.mxu1 %v716_v7  ;;  %v3182_v13 = vld [vmem:[%s3620_s8 + $0x70] sm:$0xff]  ;;  %v806_v16 = vsel %vm600_vm2, %v3178_v12, 0  ;;  %v3181_v21 = vld [vmem:[%s3620_s8 + $0x68] sm:$0xff]  ;;  %v803_v24 = vsel %vm600_vm2, %v3177_v20, 0 }
  0x93   : > { %v902_v9 = vsel %vm600_vm2, %v3183_v5, 0  ;;  %815 = vmatpush.bf16.xpose.msra.mxu2 %v809_v8  ;;  %v899_v17 = vsel %vm600_vm2, %v3182_v13, 0  ;;  %v896_v25 = vsel %vm600_vm2, %v3181_v21, 0  ;;  %v3168_v26 = vld [vmem:[%s3620_s8] sm:$0xff]  ;;  %v3153_v38 = vld [vmem:[%s3610_s14 + $0x8] sm:$0xff]  ;;  %v3154_v42 = vld [vmem:[%s3610_s14 + $0x10] sm:$0xff] }
  0x94   : > { %908 = vmatpush.bf16.xpose.msra.mxu3 %v902_v9  ;;  %v3172_v27 = vld [vmem:[%s3620_s8 + $0x20] sm:$0xff]  ;;  %v614_v30 = vsel %vm600_vm2, %v3168_v26, 0  ;;  %v3157_v39 = vld [vmem:[%s3610_s14 + $0x28] sm:$0xff]  ;;  %v3158_v43 = vld [vmem:[%s3610_s14 + $0x30] sm:$0xff]  ;;  %p3149_p11 = scmp.ne.s32.totalorder %s3503_s19, 1 }
  0x95   : > { %v3176_v28 = vld [vmem:[%s3620_s8 + $0x40] sm:$0xff]  ;;  %v707_v31 = vsel %vm600_vm2, %v3172_v27, 0  ;;  %v3165_v40 = vld [vmem:[%s3610_s14 + $0x68] sm:$0xff]  ;;  %v3162_v44 = vld [vmem:[%s3610_s14 + $0x50] sm:$0xff] }
  0x96   : > { %v3180_v29 = vld [vmem:[%s3620_s8 + $0x60] sm:$0xff]  ;;  %v800_v32 = vsel %vm600_vm2, %v3176_v28, 0  ;;  %v3161_v41 = vld [vmem:[%s3610_s14 + $0x48] sm:$0xff]  ;;  %v3166_v45 = vld [vmem:[%s3610_s14 + $0x70] sm:$0xff] }
  0x97   : > { %v893_v33 = vsel %vm600_vm2, %v3180_v29, 0  ;;  %v3152_v34 = vld [vmem:[%s3610_s14] sm:$0xff]  ;;  %v3155_v46 = vld [vmem:[%s3610_s14 + $0x18] sm:$0xff] }
  0x98   : > { %v3156_v35 = vld [vmem:[%s3610_s14 + $0x20] sm:$0xff]  ;;  %v3159_v47 = vld [vmem:[%s3610_s14 + $0x38] sm:$0xff] }
  0x99   : > { %630 = vmatpush.bf16.xpose.msra.mxu0 %v620_v14  ;;  %v3160_v36 = vld [vmem:[%s3610_s14 + $0x40] sm:$0xff]  ;;  %v3163_v48 = vld [vmem:[%s3610_s14 + $0x58] sm:$0xff] }
  0x9a   : > { %723 = vmatpush.bf16.xpose.msra.mxu1 %v713_v15  ;;  %v3164_v37 = vld [vmem:[%s3610_s14 + $0x60] sm:$0xff]  ;;  %v3167_v49 = vld [vmem:[%s3610_s14 + $0x78] sm:$0xff] }
  0x9b   : > { %816 = vmatpush.bf16.xpose.msra.mxu2 %v806_v16 }
  0x9c   : > { %909 = vmatpush.bf16.xpose.msra.mxu3 %v899_v17 }
  0xa1   : > { %631 = vmatpush.bf16.xpose.msra.mxu0 %v617_v22 }
  0xa2   : > { %724 = vmatpush.bf16.xpose.msra.mxu1 %v710_v23 }
  0xa3   : > { %817 = vmatpush.bf16.xpose.msra.mxu2 %v803_v24 }
  0xa4   : > { %910 = vmatpush.bf16.xpose.msra.mxu3 %v896_v25 }
  0xa9   : > { %632 = vmatpush.bf16.xpose.msra.mxu0 %v614_v30 }
  0xaa   : > { %725 = vmatpush.bf16.xpose.msra.mxu1 %v707_v31 }
  0xab   : > { %818 = vmatpush.bf16.xpose.msra.mxu2 %v800_v32 }
  0xac   : > { %911 = vmatpush.bf16.xpose.msra.mxu3 %v893_v33 }
  0xb0   : > { %2957 = vmatmul.msk.bf16.vlgmr.msra.gmra.mxu0 %vm600_vm2, %v3152_v34 }
  0xb1   : > { %2993 = vmatmul.msk.bf16.vlgmr.msra.gmra.mxu1 %vm600_vm2, %v3156_v35 }
  0xb2   : > { %3029 = vmatmul.msk.bf16.vlgmr.msra.gmra.mxu2 %vm600_vm2, %v3160_v36 }
  0xb3   : > { %3065 = vmatmul.msk.bf16.vlgmr.msra.gmra.mxu3 %vm600_vm2, %v3164_v37 }
  0xc0   : > { %2958 = vmatmul.msk.bf16.gmra.mxu0 %vm600_vm2, %v3153_v38 }
  0xc1   : > { %2994 = vmatmul.msk.bf16.gmra.mxu1 %vm600_vm2, %v3157_v39 }
  0xc2   : > { %3030 = vmatmul.msk.bf16.gmra.mxu2 %vm600_vm2, %v3161_v41 }
  0xc3   : > { %3066 = vmatmul.msk.bf16.gmra.mxu3 %vm600_vm2, %v3165_v40 }
  0xd0   : > { %2959 = vmatmul.msk.bf16.gmra.mxu0 %vm600_vm2, %v3154_v42 }
  0xd1   : > { %2995 = vmatmul.msk.bf16.gmra.mxu1 %vm600_vm2, %v3158_v43 }
  0xd2   : > { %3031 = vmatmul.msk.bf16.gmra.mxu2 %vm600_vm2, %v3162_v44 }
  0xd3   : > { %3067 = vmatmul.msk.bf16.gmra.mxu3 %vm600_vm2, %v3166_v45 }
  0xe0   : > { %2960 = vmatmul.msk.bf16.gmra.mxu0 %vm600_vm2, %v3155_v46 }
  0xe1   : > { %2996 = vmatmul.msk.bf16.gmra.mxu1 %vm600_vm2, %v3159_v47 }
  0xe2   : > { %3032 = vmatmul.msk.bf16.gmra.mxu2 %vm600_vm2, %v3163_v48 }
  0xe3   : > { %3068 = vmatmul.msk.bf16.gmra.mxu3 %vm600_vm2, %v3167_v49 }
 0x12d   : > { %v634_v50 = vpop.f32.mrf.mxu0 }
 0x12e   : > { %v727_v51 = vpop.f32.mrf.mxu1  ;;  %v3852_v52 = vmul.f32 0.17677669, %v634_v50 }
 0x12f   : > { %v3854_v53 = vmul.f32 0.17677669, %v727_v51 }
 0x130   : > { %v998_v55 = vsel %vm997_vm3, %v3852_v52, -inf }
 0x131   : > { %v1022_v54 = vsel %vm997_vm3, %v3854_v53, -inf  ;;  %999 = vmax.xlane.f32.xlu0 %v998_v55 }
 0x132   : > { %1023 = vmax.xlane.f32.xlu2 %v1022_v54 }
 0x135   : > { %v820_v56 = vpop.f32.mrf.mxu2  ;;  %v636_v60 = vpop.f32.mrf.mxu0 }
 0x136   : > { %v913_v57 = vpop.f32.mrf.mxu3  ;;  %v3860_v58 = vmul.f32 0.17677669, %v820_v56  ;;  %v729_v61 = vpop.f32.mrf.mxu1  ;;  %v3868_v0 = vmul.f32 0.17677669, %v636_v60 }
 0x137   : > { %v3862_v59 = vmul.f32 0.17677669, %v913_v57  ;;  %v3882_v11 = vmul.f32 0.17677669, %v729_v61 }
 0x138   : > { %v1046_v62 = vsel %vm997_vm3, %v3860_v58, -inf  ;;  %v1001_v9 = vsel %vm997_vm3, %v3868_v0, -inf }
 0x139   : > { %v1070_v63 = vsel %vm997_vm3, %v3862_v59, -inf  ;;  %1047 = vmax.xlane.f32.xlu1 %v1046_v62  ;;  %v1025_v19 = vsel %vm997_vm3, %v3882_v11, -inf }
 0x13a   : > { %1071 = vmax.xlane.f32.xlu0 %v1070_v63 }
 0x13d   : > { %v822_v1 = vpop.f32.mrf.mxu2  ;;  %v639_v5 = vpop.f32.mrf.mxu0 }
 0x13e   : > { %v915_v2 = vpop.f32.mrf.mxu3  ;;  %v3870_v3 = vmul.f32 0.17677669, %v822_v1  ;;  %v732_v6 = vpop.f32.mrf.mxu1  ;;  %v3880_v10 = vmul.f32 0.17677669, %v639_v5 }
 0x13f   : > { %v3872_v4 = vmul.f32 0.17677669, %v915_v2  ;;  %v3892_v20 = vmul.f32 0.17677669, %v732_v6 }
 0x140   : > { %v1049_v8 = vsel %vm997_vm3, %v3870_v3, -inf  ;;  %v1004_v14 = vsel %vm997_vm3, %v3880_v10, -inf }
 0x141   : > { %v1073_v7 = vsel %vm997_vm3, %v3872_v4, -inf  ;;  %1050 = vmax.xlane.f32.xlu2 %v1049_v8  ;;  %v1028_v24 = vsel %vm997_vm3, %v3892_v20, -inf }
 0x142   : > { %1074 = vmax.xlane.f32.xlu1 %v1073_v7  ;;  %1002 = vmax.xlane.f32.xlu0 %v1001_v9 }
 0x145   : > { %v825_v13 = vpop.f32.mrf.mxu2  ;;  %v641_v16 = vpop.f32.mrf.mxu0 }
 0x146   : > { %v918_v12 = vpop.f32.mrf.mxu3  ;;  %v734_v17 = vpop.f32.mrf.mxu1  ;;  %v3896_v22 = vmul.f32 0.17677669, %v825_v13  ;;  %v3908_v31 = vmul.f32 0.17677669, %v641_v16 }
 0x147   : > { %v3886_v15 = vmul.f32 0.17677669, %v918_v12  ;;  %v3894_v21 = vmul.f32 0.17677669, %v734_v17 }
 0x148   : > { %v1052_v27 = vsel %vm997_vm3, %v3896_v22, -inf  ;;  %v1007_v35 = vsel %vm997_vm3, %v3908_v31, -inf }
 0x149   : > { %v1076_v18 = vsel %vm997_vm3, %v3886_v15, -inf  ;;  %v1031_v25 = vsel %vm997_vm3, %v3894_v21, -inf }
 0x14a   : > { %1005 = vmax.xlane.f32.xlu1 %v1004_v14  ;;  %1077 = vmax.xlane.f32.xlu2 %v1076_v18 }
 0x14b   : > { %1026 = vmax.xlane.f32.xlu0 %v1025_v19 }
 0x14d   : > { %v827_v23 = vpop.f32.mrf.mxu2  ;;  %v644_v26 = vpop.f32.mrf.mxu0 }
 0x14e   : > { %v920_v28 = vpop.f32.mrf.mxu3  ;;  %v3904_v29 = vmul.f32 0.17677669, %v644_v26  ;;  %v737_v36 = vpop.f32.mrf.mxu1  ;;  %v3916_v37 = vmul.f32 0.17677669, %v827_v23 }
 0x14f   : > { %v3906_v30 = vmul.f32 0.17677669, %v920_v28  ;;  %v3920_v39 = vmul.f32 0.17677669, %v737_v36  ;;  %v965_v36 = vld [vmem:[#allocation2] sm:$0xff] }
 0x150   : > { %v1010_v32 = vsel %vm997_vm3, %v3904_v29, -inf  ;;  %v1055_v41 = vsel %vm997_vm3, %v3916_v37, -inf }
 0x151   : > { %v1079_v34 = vsel %vm997_vm3, %v3906_v30, -inf  ;;  %v1034_v44 = vsel %vm997_vm3, %v3920_v39, -inf }
 0x152   : > { %1029 = vmax.xlane.f32.xlu1 %v1028_v24  ;;  %1032 = vmax.xlane.f32.xlu2 %v1031_v25 }
 0x153   : > { %1053 = vmax.xlane.f32.xlu0 %v1052_v27 }
 0x155   : > { %v830_v33 = vpop.f32.mrf.mxu2  ;;  %v646_v43 = vpop.f32.mrf.mxu0 }
 0x156   : > { %v3918_v38 = vmul.f32 0.17677669, %v830_v33  ;;  %v923_v40 = vpop.f32.mrf.mxu3  ;;  %v3928_v46 = vmul.f32 0.17677669, %v646_v43  ;;  %v739_v49 = vpop.f32.mrf.mxu1 }
 0x157   : > { %v3930_v47 = vmul.f32 0.17677669, %v923_v40  ;;  %v3940_v56 = vmul.f32 0.17677669, %v739_v49  ;;  %v981_v49 = vld [vmem:[#allocation2 + $0x80] sm:$0xff] }
 0x158   : > { %v1058_v42 = vsel %vm997_vm3, %v3918_v38, -inf  ;;  %v1013_v51 = vsel %vm997_vm3, %v3928_v46, -inf }
 0x159   : > { %v1082_v50 = vsel %vm997_vm3, %v3930_v47, -inf  ;;  %4919 = vst [vmem:[#allocation8_spill] sm:$0xff] %v3940_v56  ;;  %v1037_v63 = vsel %vm997_vm3, %v3940_v56, -inf }
 0x15a   : > { %1008 = vmax.xlane.f32.xlu1 %v1007_v35  ;;  %1011 = vmax.xlane.f32.xlu2 %v1010_v32  ;;  %v973_v35 = vld [vmem:[#allocation2 + $0x40] sm:$0xff] }
 0x15b   : > { %1080 = vmax.xlane.f32.xlu0 %v1079_v34  ;;  %v3532_v34 = vmov 0  }
 0x15c   : > { %3262 = vset.pattern.permute.xlu0 %v3532_v34  ;;  %3261 = vset.pattern.permute.xlu2 %v3532_v34 }
 0x15d   : > { %v832_v45 = vpop.f32.mrf.mxu2  ;;  %v649_v60 = vpop.f32.mrf.mxu0  ;;  %3263 = vset.pattern.permute.xlu1 %v3532_v34 }
 0x15e   : > { %v3932_v48 = vmul.f32 0.17677669, %v832_v45  ;;  %v925_v54 = vpop.f32.mrf.mxu3  ;;  %v3944_v61 = vmul.f32 0.17677669, %v649_v60  ;;  %v742_v2 = vpop.f32.mrf.mxu1 }
 0x15f   : > { %v3942_v57 = vmul.f32 0.17677669, %v925_v54  ;;  %v3952_v6 = vmul.f32 0.17677669, %v742_v2 }
 0x160   : > { %v1061_v55 = vsel %vm997_vm3, %v3932_v48, -inf  ;;  %4921 = vst [vmem:[#allocation10_spill] sm:$0xff] %v3944_v61  ;;  %v1016_v5 = vsel %vm997_vm3, %v3944_v61, -inf }
 0x161   : > { %4920 = vst [vmem:[#allocation9_spill] sm:$0xff] %v3942_v57  ;;  %v1085_v1 = vsel %vm997_vm3, %v3942_v57, -inf  ;;  %v1040_v13 = vsel %vm997_vm3, %v3952_v6, -inf }
 0x162   : > { %1056 = vmax.xlane.f32.xlu1 %v1055_v41  ;;  %1059 = vmax.xlane.f32.xlu2 %v1058_v42  ;;  %4922 = vst [vmem:[#allocation11_spill] sm:$0xff] %v3952_v6 }
 0x163   : > { %1035 = vmax.xlane.f32.xlu0 %v1034_v44 }
 0x165   : > { %v835_v62 = vpop.f32.mrf.mxu2  ;;  %v651_v14 = vpop.f32.mrf.mxu0 }
 0x166   : > { %v3954_v7 = vmul.f32 0.17677669, %v835_v62  ;;  %v928_v8 = vpop.f32.mrf.mxu3  ;;  %v744_v18 = vpop.f32.mrf.mxu1  ;;  %v3964_v19 = vmul.f32 0.17677669, %v651_v14  ;;  %v3991_v62 = vld [vmem:[#allocation2 + $0xc8] sm:$0xff] }
 0x167   : > { %v3956_v9 = vmul.f32 0.17677669, %v928_v8  ;;  %v3968_v24 = vmul.f32 0.17677669, %v744_v18 }
 0x168   : > { %4923 = vst [vmem:[#allocation12_spill] sm:$0xff] %v3954_v7  ;;  %v1064_v12 = vsel %vm997_vm3, %v3954_v7, -inf  ;;  %v1019_v26 = vsel %vm997_vm3, %v3964_v19, -inf }
 0x169   : > { %4924 = vst [vmem:[#allocation13_spill] sm:$0xff] %v3956_v9  ;;  %v1088_v17 = vsel %vm997_vm3, %v3956_v9, -inf  ;;  %v1043_v28 = vsel %vm997_vm3, %v3968_v24, -inf }
 0x16a   : > { %1083 = vmax.xlane.f32.xlu1 %v1082_v50  ;;  %1014 = vmax.xlane.f32.xlu2 %v1013_v51  ;;  %4925 = vst [vmem:[#allocation14_spill] sm:$0xff] %v3964_v19  ;;  %v3982_v50 = vld [vmem:[#allocation2 + $0xc0] sm:$0xff] }
 0x16b   : > { %1062 = vmax.xlane.f32.xlu0 %v1061_v55  ;;  %4927 = vst [vmem:[#allocation16_spill] sm:$0xff] %v3968_v24 }
 0x16d   : > { %v837_v16 = vpop.f32.mrf.mxu2 }
 0x16e   : > { %v3966_v23 = vmul.f32 0.17677669, %v837_v16  ;;  %v930_v27 = vpop.f32.mrf.mxu3 }
 0x16f   : > { %v3976_v32 = vmul.f32 0.17677669, %v930_v27 }
 0x170   : > { %4926 = vst [vmem:[#allocation15_spill] sm:$0xff] %v3966_v23  ;;  %v1067_v25 = vsel %vm997_vm3, %v3966_v23, -inf }
 0x171   : > { %4928 = vst [vmem:[#allocation17_spill] sm:$0xff] %v3976_v32  ;;  %v1091_v33 = vsel %vm997_vm3, %v3976_v32, -inf }
 0x172   : > { %1038 = vmax.xlane.f32.xlu1 %v1037_v63  ;;  %1086 = vmax.xlane.f32.xlu2 %v1085_v1  ;;  %v3993_v63 = vld [vmem:[#allocation2 + $0x88] sm:$0xff] }
 0x173   : > { %1017 = vmax.xlane.f32.xlu0 %v1016_v5  ;;  %v966_v1 = vld [vmem:[#allocation2 + $0x8] sm:$0xff] }
 0x17a   : > { %1065 = vmax.xlane.f32.xlu1 %v1064_v12  ;;  %1041 = vmax.xlane.f32.xlu2 %v1040_v13 }
 0x17b   : > { %1089 = vmax.xlane.f32.xlu0 %v1088_v17 }
 0x182   : > { %1068 = vmax.xlane.f32.xlu2 %v1067_v25  ;;  %1020 = vmax.xlane.f32.xlu1 %v1019_v26  ;;  %v4009_v25 = vld [vmem:[#allocation2 + $0x10] sm:$0xff]  ;;  %v4011_v26 = vld [vmem:[#allocation2 + $0x48] sm:$0xff] }
 0x183   : > { %1044 = vmax.xlane.f32.xlu0 %v1043_v28 }
 0x18a   : > { %1092 = vmax.xlane.f32.xlu1 %v1091_v33  ;;  %v4013_v33 = vld [vmem:[#allocation2 + $0xd0] sm:$0xff] }
 0x1a4   : > { %v1000_v41 = vpop.xlane.xlu0 %999 }
 0x1a5   : > { %v1024_v40 = vpop.xlane.xlu2 %1023  ;;  %v1094_v43 = vmax.f32 %v965_v36, %v1000_v41 }
 0x1a6   : > { %v1102_v42 = vmax.f32 %v973_v35, %v1024_v40 }
 0x1a7   : > { %v1126_v44 = vsub.f32 %v965_v36, %v1094_v43  ;;  %1224 = vperm.xlu2 %3261, %v1094_v43   ;;  %2363 = vst.msk [vmem:[#allocation2] sm:$0xff] %vm1670_vm4, %v1094_v43 }
 0x1a8   : > { %2371 = vst.msk [vmem:[#allocation2 + $0x40] sm:$0xff] %vm1670_vm4, %v1102_v42  ;;  %1264 = vperm.xlu0 %3262, %v1102_v42   ;;  %v1134_v17 = vsub.f32 %v973_v35, %v1102_v42 }
 0x1a9   : > { %v1158_v45 = vmul.f32 1.442695, %v1126_v44  ;;  %v4029_v44 = vld [vmem:[#allocation2 + $0x50] sm:$0xff] }
 0x1aa   : > { %v1174_v27 = vmul.f32 1.442695, %v1134_v17 }
 0x1ab   : > { %3264 = vpow2.f32 %v1158_v45  ;;  %v4031_v45 = vld [vmem:[#allocation2 + $0x58] sm:$0xff] }
 0x1ac   : > { %v1048_v51 = vpop.xlane.xlu1 %1047  ;;  %3266 = vpow2.f32 %v1174_v27  ;;  %v4059_v27 = vld [vmem:[#allocation2 + $0x18] sm:$0xff] }
 0x1ad   : > { %v1110_v54 = vmax.f32 %v981_v49, %v1048_v51  ;;  %v1072_v55 = vpop.xlane.xlu0 %1071 }
 0x1ae   : > { %v3985_v60 = vmax.f32 %v3982_v50, %v1072_v55 }
 0x1af   : > { %2379 = vst.msk [vmem:[#allocation2 + $0x80] sm:$0xff] %vm1670_vm4, %v1110_v54  ;;  %1304 = vperm.xlu1 %3263, %v1110_v54   ;;  %v1142_v18 = vsub.f32 %v981_v49, %v1110_v54  ;;  %v4033_v54 = vld [vmem:[#allocation2 + $0x90] sm:$0xff] }
 0x1b0   : > { %2387 = vst.msk [vmem:[#allocation2 + $0xc0] sm:$0xff] %vm1670_vm4, %v3985_v60  ;;  %1344 = vperm.xlu2 %3261, %v3985_v60  }
 0x1b1   : > { %v3995_v2 = vpop.eup %3264  ;;  %v1190_v36 = vmul.f32 1.442695, %v1142_v18  ;;  %v1150_v18 = vsub.f32 %v3982_v50, %v3985_v60 }
 0x1b2   : > { %4929 = vst [vmem:[#allocation18_spill] sm:$0xff] %v3995_v2 }
 0x1b3   : > { %3268 = vpow2.f32 %v1190_v36  ;;  %v1206_v36 = vmul.f32 1.442695, %v1150_v18 }
 0x1b4   : > { %v1051_v8 = vpop.xlane.xlu2 %1050 }
 0x1b5   : > { %v1075_v5 = vpop.xlane.xlu1 %1074  ;;  %v4001_v13 = vmax.f32 %v3993_v63, %v1051_v8  ;;  %v1003_v14 = vpop.xlane.xlu0 %1002 }
 0x1b6   : > { %v3998_v12 = vmax.f32 %v3991_v62, %v1075_v5  ;;  %v1095_v16 = vmax.f32 %v966_v1, %v1003_v14 }
 0x1b7   : > { %2109 = vperm.xlu1 %3263, %v3995_v2   ;;  %2380 = vst.msk [vmem:[#allocation2 + $0x88] sm:$0xff] %vm1670_vm4, %v4001_v13 }
 0x1b8   : > { %2388 = vst.msk [vmem:[#allocation2 + $0xc8] sm:$0xff] %vm1670_vm4, %v3998_v12  ;;  %1229 = vperm.xlu0 %3262, %v1095_v16   ;;  %v1127_v43 = vsub.f32 %v966_v1, %v1095_v16  ;;  %v4041_v1 = vpop.eup %3266 }
 0x1b9   : > { %2364 = vst.msk [vmem:[#allocation2 + $0x8] sm:$0xff] %vm1670_vm4, %v1095_v16  ;;  %v4043_v16 = vpop.eup %3268 }
 0x1ba   : > { %v1160_v55 = vmul.f32 1.442695, %v1127_v43  ;;  %4930 = vst [vmem:[#allocation19_spill] sm:$0xff] %v4041_v1 }
 0x1bb   : > { %4931 = vst [vmem:[#allocation20_spill] sm:$0xff] %v4043_v16 }
 0x1bc   : > { %3270 = vpow2.f32 %v1160_v55 }
 0x1bd   : > { %v1006_v28 = vpop.xlane.xlu1 %1005  ;;  %v1078_v34 = vpop.xlane.xlu2 %1077  ;;  %3272 = vpow2.f32 %v1206_v36  ;;  %v4092_v36 = vld [vmem:[#allocation2 + $0xa0] sm:$0xff] }
 0x1be   : > { %v4016_v40 = vmax.f32 %v4009_v25, %v1006_v28  ;;  %v1027_v35 = vpop.xlane.xlu0 %1026  ;;  %v4023_v42 = vmax.f32 %v4013_v33, %v1078_v34  ;;  %v4061_v28 = vld [vmem:[#allocation2 + $0x20] sm:$0xff]  ;;  %v4063_v34 = vld [vmem:[#allocation2 + $0xd8] sm:$0xff] }
 0x1bf   : > { %v1103_v41 = vmax.f32 %v4011_v26, %v1027_v35  ;;  %1349 = vperm.xlu1 %3263, %v3998_v12  }
 0x1c0   : > { %2365 = vst.msk [vmem:[#allocation2 + $0x10] sm:$0xff] %vm1670_vm4, %v4016_v40  ;;  %1309 = vperm.xlu0 %3262, %v4001_v13  }
 0x1c1   : > { %2372 = vst.msk [vmem:[#allocation2 + $0x48] sm:$0xff] %vm1670_vm4, %v1103_v41  ;;  %1269 = vperm.xlu2 %3261, %v1103_v41  }
 0x1c2   : > { %2389 = vst.msk [vmem:[#allocation2 + $0xd0] sm:$0xff] %vm1670_vm4, %v4023_v42  ;;  %v4074_v55 = vpop.eup %3270 }
 0x1c3   : > { %4932 = vst [vmem:[#allocation21_spill] sm:$0xff] %v4074_v55 }
 0x1c5   : > { %v1030_v49 = vpop.xlane.xlu1 %1029  ;;  %v1033_v51 = vpop.xlane.xlu2 %1032 }
 0x1c6   : > { %v4036_v5 = vmax.f32 %v4029_v44, %v1030_v49  ;;  %v4039_v8 = vmax.f32 %v4031_v45, %v1033_v51  ;;  %v1054_v14 = vpop.xlane.xlu0 %1053 }
 0x1c7   : > { %1234 = vperm.xlu1 %3263, %v4016_v40   ;;  %v4049_v17 = vmax.f32 %v4033_v54, %v1054_v14  ;;  %v1135_v14 = vsub.f32 %v4011_v26, %v1103_v41  ;;  %v4094_v26 = vld [vmem:[#allocation2 + $0x60] sm:$0xff] }
 0x1c8   : > { %2373 = vst.msk [vmem:[#allocation2 + $0x50] sm:$0xff] %vm1670_vm4, %v4036_v5  ;;  %2189 = vperm.xlu0 %3262, %v4043_v16  }
 0x1c9   : > { %2374 = vst.msk [vmem:[#allocation2 + $0x58] sm:$0xff] %vm1670_vm4, %v4039_v8  ;;  %2149 = vperm.xlu2 %3261, %v4041_v1   ;;  %v1176_v41 = vmul.f32 1.442695, %v1135_v14 }
 0x1ca   : > { %2381 = vst.msk [vmem:[#allocation2 + $0x90] sm:$0xff] %vm1670_vm4, %v4049_v17 }
 0x1cb   : > { %3274 = vpow2.f32 %v1176_v41 }
 0x1cd   : > { %v1009_v35 = vpop.xlane.xlu1 %1008  ;;  %v1012_v50 = vpop.xlane.xlu2 %1011 }
 0x1ce   : > { %v4066_v60 = vmax.f32 %v4059_v27, %v1009_v35  ;;  %v4069_v43 = vmax.f32 %v4061_v28, %v1012_v50  ;;  %v1081_v49 = vpop.xlane.xlu0 %1080  ;;  %v1151_v35 = vsub.f32 %v3991_v62, %v3998_v12  ;;  %v4090_v50 = vld [vmem:[#allocation2 + $0x98] sm:$0xff]  ;;  %v4102_v12 = vpop.eup %3272 }
 0x1cf   : > { %v4072_v51 = vmax.f32 %v4063_v34, %v1081_v49  ;;  %1274 = vperm.xlu1 %3263, %v4036_v5   ;;  %4933 = vst [vmem:[#allocation22_spill] sm:$0xff] %v4102_v12 }
 0x1d0   : > { %2366 = vst.msk [vmem:[#allocation2 + $0x18] sm:$0xff] %vm1670_vm4, %v4066_v60  ;;  %1354 = vperm.xlu0 %3262, %v4023_v42   ;;  %v1208_v1 = vmul.f32 1.442695, %v1151_v35  ;;  %v1143_v35 = vsub.f32 %v3993_v63, %v4001_v13  ;;  %v4126_v63 = vld [vmem:[#allocation2 + $0xa8] sm:$0xff] }
 0x1d1   : > { %2367 = vst.msk [vmem:[#allocation2 + $0x20] sm:$0xff] %vm1670_vm4, %v4069_v43  ;;  %2114 = vperm.xlu2 %3261, %v4074_v55  }
 0x1d2   : > { %2390 = vst.msk [vmem:[#allocation2 + $0xd8] sm:$0xff] %vm1670_vm4, %v4072_v51  ;;  %3276 = vpow2.f32 %v1208_v1  ;;  %v1192_v13 = vmul.f32 1.442695, %v1143_v35 }
 0x1d4   : > { %3278 = vpow2.f32 %v1192_v13  ;;  %v4160_v13 = vld [vmem:[#allocation2 + $0x68] sm:$0xff] }
 0x1d5   : > { %v1057_v49 = vpop.xlane.xlu1 %1056  ;;  %v1060_v55 = vpop.xlane.xlu2 %1059 }
 0x1d6   : > { %v4097_v16 = vmax.f32 %v4090_v50, %v1057_v49  ;;  %v4100_v18 = vmax.f32 %v4092_v36, %v1060_v55  ;;  %v1036_v62 = vpop.xlane.xlu0 %1035  ;;  %v1128_v55 = vsub.f32 %v4009_v25, %v4016_v40  ;;  %v4122_v49 = vld [vmem:[#allocation2 + $0xe0] sm:$0xff]  ;;  %v4134_v40 = vpop.eup %3274 }
 0x1d7   : > { %v4105_v2 = vmax.f32 %v4094_v26, %v1036_v62  ;;  %2229 = vperm.xlu1 %3263, %v4102_v12   ;;  %v4124_v62 = vld [vmem:[#allocation2 + $0x28] sm:$0xff]  ;;  %4934 = vst [vmem:[#allocation23_spill] sm:$0xff] %v4134_v40 }
 0x1d8   : > { %2382 = vst.msk [vmem:[#allocation2 + $0x98] sm:$0xff] %vm1670_vm4, %v4097_v16  ;;  %1279 = vperm.xlu0 %3262, %v4039_v8   ;;  %v1162_v12 = vmul.f32 1.442695, %v1128_v55  ;;  %v4139_v23 = vpop.eup %3276  ;;  %v1144_v55 = vsub.f32 %v4033_v54, %v4049_v17  ;;  %v4162_v54 = vld [vmem:[#allocation2 + $0xe8] sm:$0xff] }
 0x1d9   : > { %2383 = vst.msk [vmem:[#allocation2 + $0xa0] sm:$0xff] %vm1670_vm4, %v4100_v18  ;;  %1314 = vperm.xlu2 %3261, %v4049_v17   ;;  %v4164_v17 = vld [vmem:[#allocation2 + $0x30] sm:$0xff] }
 0x1da   : > { %2375 = vst.msk [vmem:[#allocation2 + $0x60] sm:$0xff] %vm1670_vm4, %v4105_v2  ;;  %3280 = vpow2.f32 %v1162_v12 }
 0x1db   : > { %4935 = vst [vmem:[#allocation24_spill] sm:$0xff] %v4139_v23 }
 0x1dc   : > { %4936 = vst [vmem:[#allocation25_spill] sm:$0xff] %v4162_v54 }
 0x1dd   : > { %v1084_v41 = vpop.xlane.xlu1 %1083  ;;  %v1015_v14 = vpop.xlane.xlu2 %1014 }
 0x1de   : > { %v4129_v32 = vmax.f32 %v4122_v49, %v1084_v41  ;;  %v4132_v1 = vmax.f32 %v4124_v62, %v1015_v14  ;;  %v1063_v25 = vpop.xlane.xlu0 %1062  ;;  %v1194_v14 = vmul.f32 1.442695, %v1144_v55 }
 0x1df   : > { %v4137_v9 = vmax.f32 %v4126_v63, %v1063_v25  ;;  %2154 = vperm.xlu1 %3263, %v4134_v40   ;;  %v1136_v25 = vsub.f32 %v4029_v44, %v4036_v5  ;;  %v4172_v5 = vpop.eup %3278 }
 0x1e0   : > { %2391 = vst.msk [vmem:[#allocation2 + $0xe0] sm:$0xff] %vm1670_vm4, %v4129_v32  ;;  %2234 = vperm.xlu0 %3262, %v4139_v23   ;;  %v4177_v19 = vpop.eup %3280  ;;  %3282 = vpow2.f32 %v1194_v14 }
 0x1e1   : > { %1239 = vperm.xlu2 %3261, %v4066_v60   ;;  %2368 = vst.msk [vmem:[#allocation2 + $0x28] sm:$0xff] %vm1670_vm4, %v4132_v1  ;;  %v1178_v23 = vmul.f32 1.442695, %v1136_v25  ;;  %v4194_v25 = vld [vmem:[#allocation2 + $0xb0] sm:$0xff] }
 0x1e2   : > { %2384 = vst.msk [vmem:[#allocation2 + $0xa8] sm:$0xff] %vm1670_vm4, %v4137_v9 }
 0x1e3   : > { %4937 = vst [vmem:[#allocation26_spill] sm:$0xff] %v4172_v5  ;;  %3284 = vpow2.f32 %v1178_v23 }
 0x1e4   : > { %4938 = vst [vmem:[#allocation27_spill] sm:$0xff] %v4177_v19 }
 0x1e5   : > { %v1039_v35 = vpop.xlane.xlu1 %1038  ;;  %v1087_v40 = vpop.xlane.xlu2 %1086 }
 0x1e6   : > { %v4167_v24 = vmax.f32 %v4160_v13, %v1039_v35  ;;  %v4170_v12 = vmax.f32 %v4162_v54, %v1087_v40  ;;  %v1018_v44 = vpop.xlane.xlu0 %1017  ;;  %v1129_v40 = vsub.f32 %v4059_v27, %v4066_v60  ;;  %v4198_v27 = vld [vmem:[#allocation2 + $0xf0] sm:$0xff]  ;;  %v4206_v23 = vpop.eup %3282 }
 0x1e7   : > { %v4175_v41 = vmax.f32 %v4164_v17, %v1018_v44  ;;  %1319 = vperm.xlu1 %3263, %v4097_v16   ;;  %v4196_v44 = vld [vmem:[#allocation2 + $0x70] sm:$0xff]  ;;  %4939 = vst [vmem:[#allocation28_spill] sm:$0xff] %v4198_v27 }
 0x1e8   : > { %2376 = vst.msk [vmem:[#allocation2 + $0x68] sm:$0xff] %vm1670_vm4, %v4167_v24  ;;  %2119 = vperm.xlu0 %3262, %v4177_v19   ;;  %v1164_v60 = vmul.f32 1.442695, %v1129_v40 }
 0x1e9   : > { %2194 = vperm.xlu2 %3261, %v4172_v5   ;;  %2392 = vst.msk [vmem:[#allocation2 + $0xe8] sm:$0xff] %vm1670_vm4, %v4170_v12  ;;  %v4211_v7 = vpop.eup %3284 }
 0x1ea   : > { %2369 = vst.msk [vmem:[#allocation2 + $0x30] sm:$0xff] %vm1670_vm4, %v4175_v41  ;;  %3286 = vpow2.f32 %v1164_v60 }
 0x1eb   : > { %4940 = vst [vmem:[#allocation29_spill] sm:$0xff] %v4206_v23 }
 0x1ec   : > { %4941 = vst [vmem:[#allocation30_spill] sm:$0xff] %v4211_v7 }
 0x1ed   : > { %v1066_v14 = vpop.xlane.xlu1 %1065  ;;  %v1042_v35 = vpop.xlane.xlu2 %1041 }
 0x1ee   : > { %v4201_v5 = vmax.f32 %v4194_v25, %v1066_v14  ;;  %v4204_v19 = vmax.f32 %v4196_v44, %v1042_v35  ;;  %v1090_v55 = vpop.xlane.xlu0 %1089  ;;  %v1145_v35 = vsub.f32 %v4090_v50, %v4097_v16  ;;  %v4228_v14 = vld [vmem:[#allocation2 + $0x38] sm:$0xff] }
 0x1ef   : > { %v4209_v54 = vmax.f32 %v4198_v27, %v1090_v55  ;;  %2199 = vperm.xlu1 %3263, %v4206_v23   ;;  %v4226_v55 = vld [vmem:[#allocation2 + $0xb8] sm:$0xff] }
 0x1f0   : > { %2385 = vst.msk [vmem:[#allocation2 + $0xb0] sm:$0xff] %vm1670_vm4, %v4201_v5  ;;  %2159 = vperm.xlu0 %3262, %v4211_v7   ;;  %v4230_v23 = vld [vmem:[#allocation2 + $0x78] sm:$0xff]  ;;  %v1196_v27 = vmul.f32 1.442695, %v1145_v35  ;;  %v4238_v16 = vpop.eup %3286  ;;  %v1152_v35 = vsub.f32 %v4013_v33, %v4023_v42 }
 0x1f1   : > { %1359 = vperm.xlu2 %3261, %v4072_v51   ;;  %2377 = vst.msk [vmem:[#allocation2 + $0x70] sm:$0xff] %vm1670_vm4, %v4204_v19 }
 0x1f2   : > { %2393 = vst.msk [vmem:[#allocation2 + $0xf0] sm:$0xff] %vm1670_vm4, %v4209_v54  ;;  %3288 = vpow2.f32 %v1196_v27 }
 0x1f3   : > { %4942 = vst [vmem:[#allocation31_spill] sm:$0xff] %v4238_v16 }
 0x1f5   : > { %v1069_v60 = vpop.xlane.xlu2 %1068  ;;  %v1021_v40 = vpop.xlane.xlu1 %1020 }
 0x1f6   : > { %v4233_v6 = vmax.f32 %v4226_v55, %v1069_v60  ;;  %v4236_v7 = vmax.f32 %v4228_v14, %v1021_v40  ;;  %v1045_v61 = vpop.xlane.xlu0 %1044  ;;  %v4258_v40 = vld [vmem:[#allocation2 + $0xf8] sm:$0xff]  ;;  %v1210_v60 = vmul.f32 1.442695, %v1152_v35  ;;  %v3189_v35 = vld [vmem:[%s3625_s10 + $0x28] sm:$0xff] }
 0x1f7   : > { %v4241_v50 = vmax.f32 %v4230_v23, %v1045_v61  ;;  %2124 = vperm.xlu1 %3263, %v4238_v16   ;;  %v1130_v61 = vsub.f32 %v4061_v28, %v4069_v43  ;;  %v3191_v16 = vld [vmem:[%s3625_s10 + $0x38] sm:$0xff] }
 0x1f8   : > { %2386 = vst.msk [vmem:[#allocation2 + $0xb8] sm:$0xff] %vm1670_vm4, %v4233_v6  ;;  %1324 = vperm.xlu0 %3262, %v4100_v18   ;;  %v4264_v56 = vpop.eup %3288  ;;  %1880 = vmatpush.bf16.msrb.mxu1 %v3191_v16  ;;  %3290 = vpow2.f32 %v1210_v60  ;;  %v1138_v16 = vsub.f32 %v4094_v26, %v4105_v2  ;;  %v3186_v26 = vld [vmem:[%s3625_s10 + $0x10] sm:$0xff] }
 0x1f9   : > { %1244 = vperm.xlu2 %3261, %v4069_v43   ;;  %2370 = vst.msk [vmem:[#allocation2 + $0x38] sm:$0xff] %vm1670_vm4, %v4236_v7  ;;  %v1166_v33 = vmul.f32 1.442695, %v1130_v61  ;;  %v3190_v43 = vld [vmem:[%s3625_s10 + $0x30] sm:$0xff] }
 0x1fa   : > { %2378 = vst.msk [vmem:[#allocation2 + $0x78] sm:$0xff] %vm1670_vm4, %v4241_v50 }
 0x1fb   : > { %3292 = vpow2.f32 %v1166_v33  ;;  %v3187_v33 = vld [vmem:[%s3625_s10 + $0x18] sm:$0xff] }
 0x1fc   : > { %1881 = vmatpush.bf16.msrb.mxu1 %v3190_v43  ;;  %1795 = vmatpush.bf16.msrb.mxu0 %v3187_v33 }
 0x1fd   : > { %v1093_v57 = vpop.xlane.xlu1 %1092 }
 0x1fe   : > { %v4261_v42 = vmax.f32 %v4258_v40, %v1093_v57  ;;  %v1137_v57 = vsub.f32 %v4031_v45, %v4039_v8  ;;  %v4277_v61 = vpop.eup %3290  ;;  %v3188_v45 = vld [vmem:[%s3625_s10 + $0x20] sm:$0xff]  ;;  %v1182_v8 = vmul.f32 1.442695, %v1138_v16  ;;  %v3185_v16 = vld [vmem:[%s3625_s10 + $0x8] sm:$0xff] }
 0x1ff   : > { %1364 = vperm.xlu1 %3263, %v4129_v32   ;;  %4943 = vst [vmem:[#allocation32_spill] sm:$0xff] %v4277_v61 }
 0x200   : > { %2394 = vst.msk [vmem:[#allocation2 + $0xf8] sm:$0xff] %vm1670_vm4, %v4261_v42  ;;  %2204 = vperm.xlu0 %3262, %v4264_v56   ;;  %v1180_v27 = vmul.f32 1.442695, %v1137_v57  ;;  %1882 = vmatpush.bf16.msrb.mxu1 %v3189_v35 }
 0x201   : > { %1284 = vperm.xlu2 %3261, %v4105_v2   ;;  %v4279_v28 = vpop.eup %3292  ;;  %v4284_v60 = vpop.permute.xlu2 %1224  ;;  %v1139_v2 = vsub.f32 %v4160_v13, %v4167_v24  ;;  %1796 = vmatpush.bf16.msrb.mxu0 %v3186_v26  ;;  %v3194_v13 = vld [vmem:[%s3625_s10 + $0x50] sm:$0xff] }
 0x202   : > { %4944 = vst [vmem:[#allocation33_spill] sm:$0xff] %v4279_v28  ;;  %3294 = vpow2.f32 %v1180_v27  ;;  %v3199_v27 = vld [vmem:[%s3625_s10 + $0x78] sm:$0xff] }
 0x203   : > { %3296 = vpow2.f32 %v1182_v8  ;;  %v1184_v35 = vmul.f32 1.442695, %v1139_v2  ;;  %2050 = vmatpush.bf16.msrb.mxu3 %v3199_v27  ;;  %v3198_v8 = vld [vmem:[%s3625_s10 + $0x70] sm:$0xff] }
 0x204   : > { %1883 = vmatpush.bf16.msrb.mxu1 %v3188_v45  ;;  %v3195_v45 = vld [vmem:[%s3625_s10 + $0x58] sm:$0xff] }
 0x205   : > { %1797 = vmatpush.bf16.msrb.mxu0 %v3185_v16  ;;  %3298 = vpow2.f32 %v1184_v35  ;;  %1965 = vmatpush.bf16.msrb.mxu2 %v3195_v45  ;;  %v3197_v16 = vld [vmem:[%s3625_s10 + $0x68] sm:$0xff] }
 0x206   : > { %v3193_v45 = vld [vmem:[%s3625_s10 + $0x48] sm:$0xff] }
 0x207   : > { %1249 = vperm.xlu1 %3263, %v4132_v1   ;;  %2051 = vmatpush.bf16.msrb.mxu3 %v3198_v8 }
 0x208   : > { %2129 = vperm.xlu0 %3262, %v4279_v28   ;;  %v4290_v57 = vpop.eup %3294 }
 0x209   : > { %2239 = vperm.xlu2 %3261, %v4277_v61   ;;  %4945 = vst [vmem:[#allocation34_spill] sm:$0xff] %v4290_v57  ;;  %v4303_v33 = vpop.eup %3296  ;;  %1966 = vmatpush.bf16.msrb.mxu2 %v3194_v13 }
 0x20a   : > { %v4298_v43 = vpop.permute.xlu2 %1344  ;;  %4946 = vst [vmem:[#allocation35_spill] sm:$0xff] %v4303_v33 }
 0x20b   : > { %2052 = vmatpush.bf16.msrb.mxu3 %v3197_v16  ;;  %v4318_v8 = vpop.eup %3298  ;;  %v1406_v16 = vsub.f32 %v3862_v59, %v4298_v43 }
 0x20d   : > { %1967 = vmatpush.bf16.msrb.mxu2 %v3193_v45  ;;  %v1462_v43 = vmul.f32 1.442695, %v1406_v16 }
 0x20f   : > { %1289 = vperm.xlu1 %3263, %v4167_v24   ;;  %v3184_v24 = vld [vmem:[%s3625_s10] sm:$0xff] }
 0x210   : > { %1369 = vperm.xlu0 %3262, %v4170_v12   ;;  %1798 = vmatpush.bf16.msrb.mxu0 %v3184_v24  ;;  %v4949_v24 = vsub.f32 %v4126_v63, %v4137_v9 }
 0x211   : > { %2164 = vperm.xlu2 %3261, %v4290_v57  }
 0x212   : > { %v1200_v13 = vmul.f32 1.442695, %v4949_v24 }
 0x217   : > { %2169 = vperm.xlu1 %3263, %v4303_v33   ;;  %v4947_v33 = vsub.f32 %v4092_v36, %v4100_v18  ;;  %v3192_v18 = vld [vmem:[%s3625_s10 + $0x40] sm:$0xff] }
 0x218   : > { %1294 = vperm.xlu0 %3262, %v4204_v19   ;;  %1968 = vmatpush.bf16.msrb.mxu2 %v3192_v18 }
 0x219   : > { %1329 = vperm.xlu2 %3261, %v4137_v9   ;;  %v1198_v28 = vmul.f32 1.442695, %v4947_v33 }
 0x21a   : > { %v1265_v26 = vpop.permute.xlu0 %1264 }
 0x21b   : > { %v1270_v2 = vpop.permute.xlu2 %1269  ;;  %v1390_v57 = vsub.f32 %v3854_v53, %v1265_v26 }
 0x21c   : > { %v1391_v27 = vsub.f32 %v3882_v11, %v1270_v2  ;;  %v3196_v11 = vld [vmem:[%s3625_s10 + $0x60] sm:$0xff] }
 0x21d   : > { %v1430_v35 = vmul.f32 1.442695, %v1390_v57  ;;  %2053 = vmatpush.bf16.msrb.mxu3 %v3196_v11  ;;  %v4948_v57 = vsub.f32 %v4122_v49, %v4129_v32 }
 0x21e   : > { %v1432_v61 = vmul.f32 1.442695, %v1391_v27 }
 0x21f   : > { %1334 = vperm.xlu1 %3263, %v4201_v5   ;;  %v1214_v33 = vmul.f32 1.442695, %v4948_v57  ;;  %v4951_v57 = vsub.f32 %v4164_v17, %v4175_v41 }
 0x220   : > { %3300 = vpow2.f32 %v1432_v61  ;;  %2174 = vperm.xlu0 %3262, %v4318_v8   ;;  %v1382_v61 = vsub.f32 %v3852_v52, %v4284_v60 }
 0x221   : > { %3302 = vpow2.f32 %v1430_v35  ;;  %1254 = vperm.xlu2 %3261, %v4175_v41   ;;  %v1305_v53 = vpop.permute.xlu1 %1304  ;;  %v1133_v41 = vsub.f32 %v4228_v14, %v4236_v7 }
 0x222   : > { %3304 = vpow2.f32 %v1198_v28  ;;  %v4950_v28 = vsub.f32 %v4124_v62, %v4132_v1  ;;  %v1414_v52 = vmul.f32 1.442695, %v1382_v61  ;;  %v1148_v62 = vsub.f32 %v4194_v25, %v4201_v5 }
 0x223   : > { %v4325_v36 = vpop.permute.xlu2 %2149  ;;  %3306 = vpow2.f32 %v1214_v33  ;;  %v1170_v33 = vmul.f32 1.442695, %v4951_v57  ;;  %v1398_v61 = vsub.f32 %v3860_v58, %v1305_v53 }
 0x224   : > { %v1168_v26 = vmul.f32 1.442695, %v4950_v28  ;;  %3308 = vpow2.f32 %v1200_v13  ;;  %v1202_v25 = vmul.f32 1.442695, %v1148_v62  ;;  %v1172_v62 = vmul.f32 1.442695, %v1133_v41 }
 0x225   : > { %v4953_v41 = vsub.f32 %v4063_v34, %v4072_v51 }
 0x226   : > { %v4335_v2 = vpop.eup %3300  ;;  %3310 = vpow2.f32 %v1168_v26 }
 0x227   : > { %v4340_v27 = vpop.eup %3302  ;;  %v1712_v32 = vpack.c.bf16 %v4335_v2, %v4335_v2  ;;  %1259 = vperm.xlu1 %3263, %v4236_v7   ;;  %3312 = vpow2.f32 %v1414_v52 }
 0x228   : > { %v4344_v49 = vpop.eup %3304  ;;  %v1711_v9 = vpack.c.bf16 %v4340_v27, %v4340_v27  ;;  %1339 = vperm.xlu0 %3262, %v4233_v6  }
 0x229   : > { %v1829_v63 = vunpack.c.l.b16 %v1712_v32  ;;  %2209 = vperm.xlu2 %3261, %v4344_v49   ;;  %v4353_v60 = vpop.permute.xlu1 %2109  ;;  %v4364_v5 = vpop.eup %3306 }
 0x22a   : > { %v1828_v1 = vunpack.c.l.b16 %v1711_v9  ;;  %v1230_v45 = vpop.permute.xlu0 %1229  ;;  %v4367_v59 = vpop.eup %3308 }
 0x22b   : > { %v4357_v35 = vpop.permute.xlu2 %2114  ;;  %v1383_v11 = vsub.f32 %v3868_v0, %v1230_v45  ;;  %v1446_v0 = vmul.f32 1.442695, %v1398_v61 }
 0x22c   : > { %v1836_v18 = vpack.c.b16 %v1829_v63, %v1828_v1  ;;  %v4369_v13 = vpop.eup %3310 }
 0x22d   : > { %v1416_v24 = vmul.f32 1.442695, %v1383_v11  ;;  %v4374_v58 = vpop.eup %3312 }
 0x22e   : > { %3105 = vmatmul.msk.bf16.vlgmr.msrb.gmra.mxu1 %vm997_vm3, %v1836_v18  ;;  %v1703_v52 = vpack.c.bf16 %v4374_v58, %v4374_v58 }
 0x22f   : > { %3314 = vpow2.f32 %v1416_v24  ;;  %2214 = vperm.xlu1 %3263, %v4367_v59  }
 0x230   : > { %3316 = vpow2.f32 %v1170_v33  ;;  %2249 = vperm.xlu0 %3262, %v4364_v5   ;;  %v1743_v14 = vunpack.c.l.b16 %v1703_v52 }
 0x231   : > { %2134 = vperm.xlu2 %3261, %v4369_v13   ;;  %3318 = vpow2.f32 %v1202_v25  ;;  %v1350_v17 = vpop.permute.xlu1 %1349 }
 0x232   : > { %3320 = vpow2.f32 %v1462_v43  ;;  %v1407_v53 = vsub.f32 %v3872_v4, %v1350_v17  ;;  %v1310_v26 = vpop.permute.xlu0 %1309  ;;  %v1212_v17 = vmul.f32 1.442695, %v4953_v41  ;;  %v4955_v41 = vsub.f32 %v4226_v55, %v4233_v6 }
 0x233   : > { %v4379_v28 = vpop.permute.xlu2 %1314  ;;  %v1399_v32 = vsub.f32 %v3870_v3, %v1310_v26  ;;  %3322 = vpow2.f32 %v1446_v0 }
 0x234   : > { %v1464_v9 = vmul.f32 1.442695, %v1407_v53 }
 0x235   : > { %v4384_v63 = vpop.eup %3314  ;;  %v1448_v1 = vmul.f32 1.442695, %v1399_v32 }
 0x236   : > { %v4386_v16 = vpop.eup %3316  ;;  %v1704_v7 = vpack.c.bf16 %v4384_v63, %v4384_v63  ;;  %3324 = vpow2.f32 %v1464_v9 }
 0x237   : > { %4952 = vst [vmem:[#allocation36_spill] sm:$0xff] %v4386_v16  ;;  %v4390_v4 = vpop.eup %3318  ;;  %2139 = vperm.xlu1 %3263, %v4386_v16   ;;  %3326 = vpow2.f32 %v1448_v1 }
 0x238   : > { %v4393_v3 = vpop.eup %3320  ;;  %v1744_v45 = vunpack.c.l.b16 %v1704_v7  ;;  %2219 = vperm.xlu0 %3262, %v4390_v4   ;;  %3328 = vpow2.f32 %v1172_v62 }
 0x239   : > { %1374 = vperm.xlu2 %3261, %v4209_v54   ;;  %v1235_v11 = vpop.permute.xlu1 %1234  ;;  %v4397_v18 = vpop.eup %3322  ;;  %v1727_v24 = vpack.c.bf16 %v4393_v3, %v4393_v3 }
 0x23a   : > { %v1384_v57 = vsub.f32 %v3880_v10, %v1235_v11  ;;  %v4400_v61 = vpop.permute.xlu0 %2189  ;;  %v1751_v25 = vpack.c.b16 %v1744_v45, %v1743_v14  ;;  %v4954_v10 = vsub.f32 %v4196_v44, %v4204_v19  ;;  %v1719_v32 = vpack.c.bf16 %v4397_v18, %v4397_v18 }
 0x23b   : > { %v1240_v33 = vpop.permute.xlu2 %1239  ;;  %v1998_v34 = vunpack.c.l.b16 %v1727_v24  ;;  %v1141_v19 = vsub.f32 %v4230_v23, %v4241_v50 }
 0x23c   : > { %v1385_v43 = vsub.f32 %v3908_v31, %v1240_v33  ;;  %v4405_v0 = vpop.eup %3324  ;;  %v1418_v53 = vmul.f32 1.442695, %v1384_v57  ;;  %3085 = vmatmul.msk.bf16.vlgmr.msrb.gmra.mxu0 %vm997_vm3, %v1751_v25  ;;  %v1186_v26 = vmul.f32 1.442695, %v4954_v10  ;;  %v1913_v44 = vunpack.c.l.b16 %v1719_v32 }
 0x23d   : > { %v1728_v52 = vpack.c.bf16 %v4405_v0, %v4405_v0  ;;  %v4418_v9 = vpop.eup %3326  ;;  %v1188_v23 = vmul.f32 1.442695, %v1141_v19 }
 0x23e   : > { %v1420_v31 = vmul.f32 1.442695, %v1385_v43  ;;  %3330 = vpow2.f32 %v1418_v53  ;;  %v4420_v62 = vpop.eup %3328  ;;  %v1720_v1 = vpack.c.bf16 %v4418_v9, %v4418_v9 }
 0x23f   : > { %v1999_v51 = vunpack.c.l.b16 %v1728_v52  ;;  %1379 = vperm.xlu1 %3263, %v4261_v42  }
 0x240   : > { %3332 = vpow2.f32 %v1420_v31  ;;  %2144 = vperm.xlu0 %3262, %v4420_v62   ;;  %v1914_v7 = vunpack.c.l.b16 %v1720_v1 }
 0x241   : > { %3334 = vpow2.f32 %v1212_v17  ;;  %1299 = vperm.xlu2 %3261, %v4241_v50   ;;  %v1275_v14 = vpop.permute.xlu1 %1274  ;;  %v2006_v45 = vpack.c.b16 %v1999_v51, %v1998_v34  ;;  %v1204_v17 = vmul.f32 1.442695, %v4955_v41 }
 0x242   : > { %3336 = vpow2.f32 %v1186_v26  ;;  %v1355_v57 = vpop.permute.xlu0 %1354  ;;  %v1921_v25 = vpack.c.b16 %v1914_v7, %v1913_v44  ;;  %v1392_v50 = vsub.f32 %v3892_v20, %v1275_v14 }
 0x243   : > { %v4429_v11 = vpop.permute.xlu2 %2194  ;;  %v1408_v33 = vsub.f32 %v3886_v15, %v1355_v57  ;;  %3145 = vmatmul.msk.bf16.vlgmr.msrb.gmra.mxu3 %vm997_vm3, %v2006_v45  ;;  %3338 = vpow2.f32 %v1188_v23 }
 0x244   : > { %v4433_v24 = vpop.eup %3330  ;;  %3125 = vmatmul.msk.bf16.vlgmr.msrb.gmra.mxu2 %vm997_vm3, %v1921_v25  ;;  %v1434_v20 = vmul.f32 1.442695, %v1392_v50  ;;  %3340 = vpow2.f32 %v1204_v17 }
 0x245   : > { %v1705_v53 = vpack.c.bf16 %v4433_v24, %v4433_v24  ;;  %v1466_v32 = vmul.f32 1.442695, %v1408_v33  ;;  %v1400_v33 = vsub.f32 %v3896_v22, %v4379_v28 }
 0x246   : > { %v4436_v43 = vpop.eup %3332 }
 0x247   : > { %v4444_v15 = vpop.eup %3334  ;;  %v1706_v10 = vpack.c.bf16 %v4436_v43, %v4436_v43  ;;  %v1745_v6 = vunpack.c.l.b16 %v1705_v53  ;;  %3342 = vpow2.f32 %v1466_v32 }
 0x248   : > { %v4448_v26 = vpop.eup %3336  ;;  %2244 = vperm.xlu1 %3263, %v4444_v15   ;;  %3344 = vpow2.f32 %v1434_v20 }
 0x249   : > { %4956 = vst [vmem:[#allocation37_spill] sm:$0xff] %v4448_v26  ;;  %2179 = vperm.xlu2 %3261, %v4448_v26   ;;  %v1746_v55 = vunpack.c.l.b16 %v1706_v10  ;;  %v4452_v52 = vpop.permute.xlu1 %2229  ;;  %v4457_v14 = vpop.eup %3338  ;;  %v1450_v10 = vmul.f32 1.442695, %v1400_v33 }
 0x24a   : > { %v1280_v34 = vpop.permute.xlu0 %1279  ;;  %4957 = vst [vmem:[#allocation38_spill] sm:$0xff] %v4457_v14  ;;  %v4459_v45 = vpop.eup %3340 }
 0x24b   : > { %v1360_v31 = vpop.permute.xlu2 %1359  ;;  %v1752_v51 = vpack.c.b16 %v1746_v55, %v1745_v6  ;;  %v1393_v19 = vsub.f32 %v3894_v21, %v1280_v34  ;;  %4958 = vst [vmem:[#allocation39_spill] sm:$0xff] %v4459_v45 }
 0x24c   : > { %v1409_v1 = vsub.f32 %v3906_v30, %v1360_v31 }
 0x24d   : > { %3086 = vmatmul.msk.bf16.gmra.mxu0 %vm997_vm3, %v1752_v51  ;;  %v1436_v7 = vmul.f32 1.442695, %v1393_v19  ;;  %v4463_v57 = vpop.eup %3342 }
 0x24e   : > { %v1468_v44 = vmul.f32 1.442695, %v1409_v1  ;;  %v4467_v21 = vpop.eup %3344  ;;  %v1729_v50 = vpack.c.bf16 %v4463_v57, %v4463_v57 }
 0x24f   : > { %v1713_v17 = vpack.c.bf16 %v4467_v21, %v4467_v21 }
 0x250   : > { %3346 = vpow2.f32 %v1468_v44  ;;  %2184 = vperm.xlu1 %3263, %v4457_v14   ;;  %v2000_v28 = vunpack.c.l.b16 %v1729_v50 }
 0x251   : > { %3348 = vpow2.f32 %v1436_v7  ;;  %2224 = vperm.xlu2 %3261, %v4459_v45   ;;  %v4465_v30 = vpop.permute.xlu1 %2154  ;;  %v1830_v55 = vunpack.c.l.b16 %v1713_v17 }
 0x252   : > { %v4471_v23 = vpop.permute.xlu0 %2234  ;;  %3350 = vpow2.f32 %v1450_v10 }
 0x253   : > { %v1245_v25 = vpop.permute.xlu2 %1244 }
 0x256   : > { %v4475_v41 = vpop.eup %3346 }
 0x257   : > { %v4479_v53 = vpop.eup %3348  ;;  %v1730_v32 = vpack.c.bf16 %v4475_v41, %v4475_v41 }
 0x258   : > { %v1714_v22 = vpack.c.bf16 %v4479_v53, %v4479_v53  ;;  %v4490_v33 = vpop.eup %3350 }
 0x259   : > { %v2001_v20 = vunpack.c.l.b16 %v1730_v32  ;;  %v1320_v6 = vpop.permute.xlu1 %1319 }
 0x25a   : > { %v1831_v31 = vunpack.c.l.b16 %v1714_v22  ;;  %v1401_v34 = vsub.f32 %v3916_v37, %v1320_v6  ;;  %v4486_v1 = vpop.permute.xlu0 %2119  ;;  %v1721_v37 = vpack.c.bf16 %v4490_v33, %v4490_v33 }
 0x25b   : > { %v1285_v51 = vpop.permute.xlu2 %1284  ;;  %v2007_v19 = vpack.c.b16 %v2001_v20, %v2000_v28 }
 0x25c   : > { %v1837_v44 = vpack.c.b16 %v1831_v31, %v1830_v55  ;;  %v1452_v7 = vmul.f32 1.442695, %v1401_v34  ;;  %v1915_v28 = vunpack.c.l.b16 %v1721_v37  ;;  %v1542_v55 = vsel %vm997_vm3, %v4374_v58, 0.0 }
 0x25d   : > { %3146 = vmatmul.msk.bf16.gmra.mxu3 %vm997_vm3, %v2007_v19  ;;  %v1590_v37 = vsel %vm997_vm3, %v4397_v18, 0.0  ;;  %v1617_v18 = vsel %vm997_vm3, %v4405_v0, 0.0 }
 0x25e   : > { %3106 = vmatmul.msk.bf16.gmra.mxu1 %vm997_vm3, %v1837_v44  ;;  %3352 = vpow2.f32 %v1452_v7 }
 0x261   : > { %v4492_v50 = vpop.permute.xlu1 %2199 }
 0x262   : > { %v4496_v10 = vpop.permute.xlu0 %2159 }
 0x263   : > { %v4494_v17 = vpop.permute.xlu2 %2239 }
 0x264   : > { %v4500_v32 = vpop.eup %3352 }
 0x265   : > { %v1722_v22 = vpack.c.bf16 %v4500_v32, %v4500_v32 }
 0x267   : > { %v1916_v20 = vunpack.c.l.b16 %v1722_v22  ;;  %v1386_v22 = vsub.f32 %v3904_v29, %v1245_v25 }
 0x269   : > { %v4504_v6 = vpop.permute.xlu1 %2124  ;;  %v1922_v31 = vpack.c.b16 %v1916_v20, %v1915_v28  ;;  %v1422_v20 = vmul.f32 1.442695, %v1386_v22  ;;  %v1545_v22 = vsel %vm997_vm3, %v4384_v63, 0.0 }
 0x26a   : > { %v1325_v19 = vpop.permute.xlu0 %1324  ;;  %1543 = vadd.xlane.f32.xlu0 %v1542_v55  ;;  %v1614_v55 = vsel %vm997_vm3, %v4393_v3, 0.0 }
 0x26b   : > { %v4508_v34 = vpop.permute.xlu2 %2164  ;;  %v1402_v44 = vsub.f32 %v3918_v38, %v1325_v19  ;;  %3126 = vmatmul.msk.bf16.gmra.mxu2 %vm997_vm3, %v1922_v31  ;;  %v1566_v38 = vsel %vm997_vm3, %v4340_v27, 0.0 }
 0x26d   : > { %v1454_v7 = vmul.f32 1.442695, %v1402_v44 }
 0x26f   : > { %3354 = vpow2.f32 %v1454_v7 }
 0x271   : > { %v1365_v14 = vpop.permute.xlu1 %1364 }
 0x272   : > { %v4515_v16 = vpop.permute.xlu0 %2204  ;;  %1591 = vadd.xlane.f32.xlu0 %v1590_v37  ;;  %v1410_v27 = vsub.f32 %v3930_v47, %v1365_v14 }
 0x273   : > { %v1330_v45 = vpop.permute.xlu2 %1329 }
 0x274   : > { %v1403_v58 = vsub.f32 %v3932_v48, %v1330_v45  ;;  %v1394_v48 = vsub.f32 %v3920_v39, %v1285_v51  ;;  %v1470_v0 = vmul.f32 1.442695, %v1410_v27  ;;  %v1593_v51 = vsel %vm997_vm3, %v4418_v9, 0.0  ;;  %v4960_v9 = vld [vmem:[#allocation9_spill] sm:$0xff] }
 0x275   : > { %v4522_v31 = vpop.eup %3354 }
 0x276   : > { %v1456_v28 = vmul.f32 1.442695, %v1403_v58  ;;  %v1723_v44 = vpack.c.bf16 %v4522_v31, %v4522_v31  ;;  %v1438_v37 = vmul.f32 1.442695, %v1394_v48 }
 0x278   : > { %3356 = vpow2.f32 %v1456_v28  ;;  %v1917_v47 = vunpack.c.l.b16 %v1723_v44  ;;  %v1572_v28 = vsel %vm997_vm3, %v4467_v21, 0.0 }
 0x279   : > { %v1250_v29 = vpop.permute.xlu1 %1249  ;;  %3358 = vpow2.f32 %v1422_v20  ;;  %v4959_v20 = vld [vmem:[#allocation8_spill] sm:$0xff] }
 0x27a   : > { %1567 = vadd.xlane.f32.xlu1 %v1566_v38  ;;  %1615 = vadd.xlane.f32.xlu2 %v1614_v55  ;;  %v1387_v45 = vsub.f32 %v3928_v46, %v1250_v29  ;;  %v4530_v19 = vpop.permute.xlu0 %2129 }
 0x27b   : > { %v4528_v25 = vpop.permute.xlu2 %1254  ;;  %1618 = vadd.xlane.f32.xlu0 %v1617_v18 }
 0x27c   : > { %v1424_v3 = vmul.f32 1.442695, %v1387_v45 }
 0x27e   : > { %v4535_v7 = vpop.eup %3356  ;;  %3360 = vpow2.f32 %v1424_v3 }
 0x27f   : > { %v1724_v39 = vpack.c.bf16 %v4535_v7, %v4535_v7  ;;  %v3359_v46 = vpop.eup %3358  ;;  %3362 = vpow2.f32 %v1438_v37 }
 0x280   : > { %3364 = vpow2.f32 %v1470_v0  ;;  %v1707_v63 = vpack.c.bf16 %v3359_v46, %v3359_v46  ;;  %v1548_v0 = vsel %vm997_vm3, %v4433_v24, 0.0 }
 0x281   : > { %v1918_v14 = vunpack.c.l.b16 %v1724_v39  ;;  %v1290_v58 = vpop.permute.xlu1 %1289 }
 0x282   : > { %1594 = vadd.xlane.f32.xlu1 %v1593_v51  ;;  %1546 = vadd.xlane.f32.xlu2 %v1545_v22  ;;  %v1395_v38 = vsub.f32 %v4959_v20, %v1290_v58  ;;  %v1370_v29 = vpop.permute.xlu0 %1369  ;;  %v1747_v44 = vunpack.c.l.b16 %v1707_v63  ;;  %v1569_v51 = vsel %vm997_vm3, %v4335_v2, 0.0  ;;  %v1620_v63 = vsel %vm997_vm3, %v4463_v57, 0.0 }
 0x283   : > { %v4546_v55 = vpop.permute.xlu2 %2209  ;;  %1573 = vadd.xlane.f32.xlu0 %v1572_v28  ;;  %v1923_v18 = vpack.c.b16 %v1918_v14, %v1917_v47  ;;  %v1411_v48 = vsub.f32 %v4960_v9, %v1370_v29  ;;  %v1599_v14 = vsel %vm997_vm3, %v4500_v32, 0.0 }
 0x284   : > { %v4549_v45 = vpop.eup %3360  ;;  %v1440_v27 = vmul.f32 1.442695, %v1395_v38 }
 0x285   : > { %3127 = vmatmul.msk.bf16.gmra.mxu2 %vm997_vm3, %v1923_v18  ;;  %v1472_v3 = vmul.f32 1.442695, %v1411_v48  ;;  %v1708_v21 = vpack.c.bf16 %v4549_v45, %v4549_v45  ;;  %v4554_v39 = vpop.eup %3362 }
 0x286   : > { %3366 = vpow2.f32 %v1440_v27  ;;  %v3365_v22 = vpop.eup %3364  ;;  %v1715_v24 = vpack.c.bf16 %v4554_v39, %v4554_v39  ;;  %v1596_v27 = vsel %vm997_vm3, %v4490_v33, 0.0  ;;  %v4963_v33 = vld [vmem:[#allocation12_spill] sm:$0xff] }
 0x287   : > { %3368 = vpow2.f32 %v1472_v3  ;;  %v1748_v37 = vunpack.c.l.b16 %v1708_v21  ;;  %v1731_v2 = vpack.c.bf16 %v3365_v22, %v3365_v22 }
 0x288   : > { %v1832_v48 = vunpack.c.l.b16 %v1715_v24 }
 0x289   : > { %v4560_v47 = vpop.permute.xlu1 %2169  ;;  %v1753_v58 = vpack.c.b16 %v1748_v37, %v1747_v44  ;;  %v2002_v3 = vunpack.c.l.b16 %v1731_v2  ;;  %v1554_v37 = vsel %vm997_vm3, %v3359_v46, 0.0 }
 0x28a   : > { %1549 = vadd.xlane.f32.xlu1 %v1548_v0  ;;  %1570 = vadd.xlane.f32.xlu2 %v1569_v51  ;;  %v1295_v20 = vpop.permute.xlu0 %1294  ;;  %v4961_v51 = vld [vmem:[#allocation10_spill] sm:$0xff] }
 0x28b   : > { %v4564_v28 = vpop.permute.xlu2 %2134  ;;  %1600 = vadd.xlane.f32.xlu0 %v1599_v14  ;;  %3087 = vmatmul.msk.bf16.gmra.mxu0 %vm997_vm3, %v1753_v58  ;;  %v1388_v14 = vsub.f32 %v4961_v51, %v4528_v25  ;;  %v1575_v25 = vsel %vm997_vm3, %v4479_v53, 0.0 }
 0x28c   : > { %v3367_v38 = vpop.eup %3366 }
 0x28d   : > { %v4569_v29 = vpop.eup %3368  ;;  %v1716_v18 = vpack.c.bf16 %v3367_v38, %v3367_v38 }
 0x28e   : > { %v1732_v9 = vpack.c.bf16 %v4569_v29, %v4569_v29 }
 0x28f   : > { %v1833_v32 = vunpack.c.l.b16 %v1716_v18  ;;  %v4962_v18 = vld [vmem:[#allocation11_spill] sm:$0xff] }
 0x290   : > { %v2003_v21 = vunpack.c.l.b16 %v1732_v9  ;;  %v1396_v26 = vsub.f32 %v4962_v18, %v1295_v20  ;;  %v1426_v9 = vmul.f32 1.442695, %v1388_v14  ;;  %v1626_v20 = vsel %vm997_vm3, %v3365_v22, 0.0 }
 0x291   : > { %v1335_v44 = vpop.permute.xlu1 %1334  ;;  %v1838_v0 = vpack.c.b16 %v1833_v32, %v1832_v48  ;;  %v1551_v32 = vsel %vm997_vm3, %v4436_v43, 0.0  ;;  %v1602_v22 = vsel %vm997_vm3, %v4522_v31, 0.0  ;;  %v1623_v18 = vsel %vm997_vm3, %v4475_v41, 0.0 }
 0x292   : > { %1621 = vadd.xlane.f32.xlu1 %v1620_v63  ;;  %1597 = vadd.xlane.f32.xlu2 %v1596_v27  ;;  %v4582_v24 = vpop.permute.xlu0 %2174  ;;  %v2008_v57 = vpack.c.b16 %v2003_v21, %v2002_v3  ;;  %v1404_v2 = vsub.f32 %v4963_v33, %v1335_v44  ;;  %v1442_v46 = vmul.f32 1.442695, %v1396_v26  ;;  %3370 = vpow2.f32 %v1426_v9  ;;  %v4964_v27 = vld [vmem:[#allocation14_spill] sm:$0xff]  ;;  %v4965_v26 = vld [vmem:[#allocation16_spill] sm:$0xff] }
 0x293   : > { %v4580_v58 = vpop.permute.xlu2 %1374  ;;  %1555 = vadd.xlane.f32.xlu0 %v1554_v37  ;;  %3107 = vmatmul.msk.bf16.gmra.mxu1 %vm997_vm3, %v1838_v0  ;;  %v4966_v0 = vld [vmem:[#allocation15_spill] sm:$0xff]  ;;  %v1581_v9 = vsel %vm997_vm3, %v3367_v38, 0.0 }
 0x294   : > { %3147 = vmatmul.msk.bf16.gmra.mxu3 %vm997_vm3, %v2008_v57  ;;  %v1458_v48 = vmul.f32 1.442695, %v1404_v2  ;;  %3372 = vpow2.f32 %v1442_v46 }
 0x296   : > { %3374 = vpow2.f32 %v1458_v48 }
 0x298   : > { %v4596_v57 = vpop.eup %3370 }
 0x299   : > { %v1260_v63 = vpop.permute.xlu1 %1259  ;;  %v1709_v48 = vpack.c.bf16 %v4596_v57, %v4596_v57 }
 0x29a   : > { %1576 = vadd.xlane.f32.xlu1 %v1575_v25  ;;  %1552 = vadd.xlane.f32.xlu2 %v1551_v32  ;;  %v1389_v3 = vsub.f32 %v4964_v27, %v1260_v63  ;;  %v1340_v44 = vpop.permute.xlu0 %1339  ;;  %v3373_v33 = vpop.eup %3372  ;;  %v2083_v32 = vld [vmem:[#allocation4 + $0x40] sm:$0xff] }
 0x29b   : > { %v1300_v21 = vpop.permute.xlu2 %1299  ;;  %1627 = vadd.xlane.f32.xlu0 %v1626_v20  ;;  %v1405_v51 = vsub.f32 %v4966_v0, %v1340_v44  ;;  %v1717_v63 = vpack.c.bf16 %v3373_v33, %v3373_v33  ;;  %v1749_v38 = vunpack.c.l.b16 %v1709_v48  ;;  %v1578_v0 = vsel %vm997_vm3, %v4554_v39, 0.0 }
 0x29c   : > { %v1397_v37 = vsub.f32 %v4965_v26, %v1300_v21  ;;  %v1428_v53 = vmul.f32 1.442695, %v1389_v3  ;;  %v3375_v46 = vpop.eup %3374  ;;  %v2275_v21 = vmul.f32 %v4325_v36, %v2083_v32 }
 0x29d   : > { %v1460_v43 = vmul.f32 1.442695, %v1405_v51  ;;  %v1725_v27 = vpack.c.bf16 %v3375_v46, %v3375_v46  ;;  %v1834_v51 = vunpack.c.l.b16 %v1717_v63 }
 0x29e   : > { %v1444_v14 = vmul.f32 1.442695, %v1397_v37  ;;  %3376 = vpow2.f32 %v1428_v53  ;;  %v1557_v37 = vsel %vm997_vm3, %v4549_v45, 0.0 }
 0x2a0   : > { %3378 = vpow2.f32 %v1444_v14 }
 0x2a1   : > { %3380 = vpow2.f32 %v1460_v43  ;;  %v4602_v2 = vpop.permute.xlu1 %2214  ;;  %v1608_v43 = vsel %vm997_vm3, %v3375_v46, 0.0  ;;  %v2084_v46 = vld [vmem:[#allocation4 + $0x48] sm:$0xff] }
 0x2a2   : > { %1603 = vadd.xlane.f32.xlu1 %v1602_v22  ;;  %1624 = vadd.xlane.f32.xlu2 %v1623_v18  ;;  %v1919_v22 = vunpack.c.l.b16 %v1725_v27  ;;  %v1629_v27 = vsel %vm997_vm3, %v4569_v29, 0.0 }
 0x2a3   : > { %1582 = vadd.xlane.f32.xlu0 %v1581_v9  ;;  %v4967_v9 = vld [vmem:[#allocation13_spill] sm:$0xff] }
 0x2a4   : > { %v3377_v25 = vpop.eup %3376  ;;  %v1412_v48 = vsub.f32 %v4967_v9, %v4580_v58  ;;  %v1605_v58 = vsel %vm997_vm3, %v4535_v7, 0.0  ;;  %v2076_v9 = vld [vmem:[#allocation4 + $0x8] sm:$0xff] }
 0x2a5   : > { %v1710_v31 = vpack.c.bf16 %v3377_v25, %v3377_v25 }
 0x2a6   : > { %v4607_v20 = vpop.eup %3378  ;;  %v1474_v63 = vmul.f32 1.442695, %v1412_v48 }
 0x2a7   : > { %v4609_v41 = vpop.eup %3380  ;;  %v1718_v3 = vpack.c.bf16 %v4607_v20, %v4607_v20  ;;  %v1750_v44 = vunpack.c.l.b16 %v1710_v31 }
 0x2a8   : > { %v1726_v26 = vpack.c.bf16 %v4609_v41, %v4609_v41  ;;  %3382 = vpow2.f32 %v1474_v63 }
 0x2a9   : > { %v1835_v53 = vunpack.c.l.b16 %v1718_v3  ;;  %v4620_v14 = vpop.permute.xlu1 %2139  ;;  %v1754_v36 = vpack.c.b16 %v1750_v44, %v1749_v38  ;;  %v2276_v3 = vmul.f32 %v4465_v30, %v2084_v46  ;;  %v1563_v38 = vsel %vm997_vm3, %v3377_v25, 0.0  ;;  %v4968_v44 = vld [vmem:[#allocation17_spill] sm:$0xff] }
 0x2aa   : > { %1558 = vadd.xlane.f32.xlu1 %v1557_v37  ;;  %1579 = vadd.xlane.f32.xlu2 %v1578_v0  ;;  %v1920_v18 = vunpack.c.l.b16 %v1726_v26  ;;  %v1584_v30 = vsel %vm997_vm3, %v3373_v33, 0.0  ;;  %v2268_v33 = vmul.f32 %v4357_v35, %v2076_v9 }
 0x2ab   : > { %v1885_v32 = vpop.f32.mrf.mxu1  ;;  %1609 = vadd.xlane.f32.xlu0 %v1608_v43  ;;  %v1839_v45 = vpack.c.b16 %v1835_v53, %v1834_v51  ;;  %3088 = vmatmul.msk.bf16.gmra.mxu0 %vm997_vm3, %v1754_v36  ;;  %v2075_v53 = vld [vmem:[#allocation4] sm:$0xff]  ;;  %v1560_v43 = vsel %vm997_vm3, %v4596_v57, 0.0  ;;  %v1611_v57 = vsel %vm997_vm3, %v4609_v41, 0.0  ;;  %v4969_v41 = vsub.f32 %v4258_v40, %v4261_v42 }
 0x2ac   : > { %v2307_v31 = vadd.f32 %v2275_v21, %v1885_v32  ;;  %v1924_v39 = vpack.c.b16 %v1920_v18, %v1919_v22  ;;  %v2267_v7 = vmul.f32 %v4353_v60, %v2075_v53  ;;  %v1587_v53 = vsel %vm997_vm3, %v4607_v20, 0.0  ;;  %v2078_v20 = vld [vmem:[#allocation4 + $0x18] sm:$0xff] }
 0x2ad   : > { %3108 = vmatmul.msk.bf16.gmra.mxu1 %vm997_vm3, %v1839_v45  ;;  %v2270_v9 = vmul.f32 %v4504_v6, %v2078_v20 }
 0x2ae   : > { %2339 = vst.msk [vmem:[#allocation4 + $0x40] sm:$0xff] %vm600_vm2, %v2307_v31  ;;  %3128 = vmatmul.msk.bf16.gmra.mxu2 %vm997_vm3, %v1924_v39  ;;  %v3383_v29 = vpop.eup %3382  ;;  %v4647_v39 = vpop.permute.xlu0 %2249 }
 0x2af   : > { %v1733_v22 = vpack.c.bf16 %v3383_v29, %v3383_v29  ;;  %v1632_v31 = vsel %vm997_vm3, %v3383_v29, 0.0 }
 0x2b1   : > { %v1380_v21 = vpop.permute.xlu1 %1379  ;;  %v2004_v45 = vunpack.c.l.b16 %v1733_v22 }
 0x2b2   : > { %1630 = vadd.xlane.f32.xlu1 %v1629_v27  ;;  %1606 = vadd.xlane.f32.xlu2 %v1605_v58  ;;  %v1413_v26 = vsub.f32 %v4968_v44, %v1380_v21  ;;  %v2099_v27 = vld [vmem:[#allocation4 + $0xc0] sm:$0xff]  ;;  %v2077_v21 = vld [vmem:[#allocation4 + $0x10] sm:$0xff]  ;;  %v1220_v44 = vmul.f32 1.442695, %v4969_v41 }
 0x2b3   : > { %v1887_v37 = vpop.f32.mrf.mxu1  ;;  %1564 = vadd.xlane.f32.xlu0 %v1563_v38  ;;  %v2291_v35 = vmul.f32 %v4452_v52, %v2099_v27  ;;  %v1478_v27 = vld [vmem:[#allocation3] sm:$0xff] }
 0x2b4   : > { %v2308_v0 = vadd.f32 %v2276_v3, %v1887_v37  ;;  %v1476_v51 = vmul.f32 1.442695, %v1413_v26  ;;  %v2091_v3 = vld [vmem:[#allocation4 + $0x80] sm:$0xff] }
 0x2b5   : > { %v2283_v26 = vmul.f32 %v4400_v61, %v2091_v3  ;;  %v2092_v61 = vld [vmem:[#allocation4 + $0x88] sm:$0xff] }
 0x2b6   : > { %2340 = vst.msk [vmem:[#allocation4 + $0x48] sm:$0xff] %vm600_vm2, %v2308_v0  ;;  %3384 = vpow2.f32 %v1476_v51  ;;  %v2269_v0 = vmul.f32 %v4486_v1, %v2077_v21  ;;  %v4662_v42 = vpop.permute.xlu0 %2219  ;;  %v2284_v22 = vmul.f32 %v4429_v11, %v2092_v61  ;;  %v4971_v11 = vld [vmem:[#allocation25_spill] sm:$0xff] }
 0x2b7   : > { %3386 = vpow2.f32 %v1220_v44  ;;  %v4972_v6 = vsub.f32 %v4971_v11, %v4170_v12 }
 0x2b9   : > { %v1800_v25 = vpop.f32.mrf.mxu0 }
 0x2ba   : > { %1585 = vadd.xlane.f32.xlu1 %v1584_v30  ;;  %1561 = vadd.xlane.f32.xlu2 %v1560_v43  ;;  %v2299_v36 = vadd.f32 %v2267_v7, %v1800_v25  ;;  %v2100_v7 = vld [vmem:[#allocation4 + $0xc8] sm:$0xff]  ;;  %v4970_v43 = vld [vmem:[#allocation28_spill] sm:$0xff] }
 0x2bb   : > { %v1156_v40 = vsub.f32 %v4970_v43, %v4209_v54  ;;  %v2292_v1 = vmul.f32 %v4471_v23, %v2100_v7  ;;  %v2102_v7 = vld [vmem:[#allocation4 + $0xd8] sm:$0xff] }
 0x2bc   : > { %v3385_v18 = vpop.eup %3384  ;;  %2331 = vst.msk [vmem:[#allocation4] sm:$0xff] %vm600_vm2, %v2299_v36 }
 0x2bd   : > { %v1635_v48 = vsel %vm997_vm3, %v3385_v18, 0.0  ;;  %v1734_v32 = vpack.c.bf16 %v3385_v18, %v3385_v18  ;;  %v1218_v36 = vmul.f32 1.442695, %v1156_v40  ;;  %v4669_v54 = vpop.eup %3386  ;;  %v4974_v40 = vld [vmem:[#allocation20_spill] sm:$0xff] }
 0x2be   : > { %1636 = vadd.xlane.f32.xlu0 %v1635_v48  ;;  %v4675_v23 = vpop.permute.xlu0 %2144 }
 0x2bf   : > { %v2005_v60 = vunpack.c.l.b16 %v1734_v32  ;;  %3388 = vpow2.f32 %v1218_v36 }
 0x2c1   : > { %v1802_v46 = vpop.f32.mrf.mxu0  ;;  %v2009_v63 = vpack.c.b16 %v2005_v60, %v2004_v45 }
 0x2c2   : > { %1612 = vadd.xlane.f32.xlu1 %v1611_v57  ;;  %1633 = vadd.xlane.f32.xlu2 %v1632_v31  ;;  %v2300_v58 = vadd.f32 %v2268_v33, %v1802_v46  ;;  %v1216_v33 = vmul.f32 1.442695, %v4972_v6  ;;  %v2085_v57 = vld [vmem:[#allocation4 + $0x50] sm:$0xff] }
 0x2c3   : > { %3148 = vmatmul.msk.bf16.gmra.mxu3 %vm997_vm3, %v2009_v63  ;;  %v2277_v46 = vmul.f32 %v4496_v10, %v2085_v57  ;;  %v4683_v63 = vpop.permute.xlu2 %2179  ;;  %v4977_v57 = vld [vmem:[#allocation24_spill] sm:$0xff] }
 0x2c4   : > { %2332 = vst.msk [vmem:[#allocation4 + $0x8] sm:$0xff] %vm600_vm2, %v2300_v58  ;;  %3390 = vpow2.f32 %v1216_v33  ;;  %v2245_v58 = vpop.permute.xlu1 %2244 }
 0x2c5   : > { %v4680_v31 = vpop.eup %3388  ;;  %v2294_v20 = vmul.f32 %v2245_v58, %v2102_v7  ;;  %v4980_v7 = vld [vmem:[#allocation30_spill] sm:$0xff] }
 0x2c6   : > { %v2055_v38 = vpop.f32.mrf.mxu3 }
 0x2c7   : > { %v2323_v37 = vadd.f32 %v2291_v35, %v2055_v38  ;;  %v1970_v51 = vpop.f32.mrf.mxu2  ;;  %v2101_v35 = vld [vmem:[#allocation4 + $0xd0] sm:$0xff] }
 0x2c8   : > { %v2315_v29 = vadd.f32 %v2283_v26, %v1970_v51  ;;  %v4973_v38 = vld [vmem:[#allocation18_spill] sm:$0xff]  ;;  %v2293_v44 = vmul.f32 %v4494_v17, %v2101_v35  ;;  %v2086_v26 = vld [vmem:[#allocation4 + $0x58] sm:$0xff] }
 0x2c9   : > { %2355 = vst.msk [vmem:[#allocation4 + $0xc0] sm:$0xff] %vm600_vm2, %v2323_v37  ;;  %v1510_v41 = vmul.f32 %v4973_v38, %v1478_v27 }
 0x2ca   : > { %1588 = vadd.xlane.f32.xlu2 %v1587_v53  ;;  %v1805_v52 = vpop.f32.mrf.mxu0  ;;  %2347 = vst.msk [vmem:[#allocation4 + $0x80] sm:$0xff] %vm600_vm2, %v2315_v29  ;;  %v2278_v53 = vmul.f32 %v4508_v34, %v2086_v26  ;;  %v1494_v29 = vld [vmem:[#allocation3 + $0x80] sm:$0xff]  ;;  %v1488_v26 = vld [vmem:[#allocation3 + $0x50] sm:$0xff] }
 0x2cb   : > { %v2301_v30 = vadd.f32 %v2269_v0, %v1805_v52  ;;  %v4689_v0 = vpop.eup %3390  ;;  %v4695_v43 = vpop.permute.xlu2 %2224  ;;  %v1526_v61 = vmul.f32 %v4974_v40, %v1494_v29 }
 0x2cc   : > { %v4697_v17 = vpop.permute.xlu1 %2184 }
 0x2cd   : > { %2333 = vst.msk [vmem:[#allocation4 + $0x10] sm:$0xff] %vm600_vm2, %v2301_v30 }
 0x2ce   : > { %v2057_v25 = vpop.f32.mrf.mxu3 }
 0x2cf   : > { %v2324_v18 = vadd.f32 %v2292_v1, %v2057_v25  ;;  %v1972_v48 = vpop.f32.mrf.mxu2 }
 0x2d0   : > { %v2316_v32 = vadd.f32 %v2284_v22, %v1972_v48  ;;  %v1486_v22 = vld [vmem:[#allocation3 + $0x40] sm:$0xff]  ;;  %v2093_v48 = vld [vmem:[#allocation4 + $0x90] sm:$0xff] }
 0x2d1   : > { %2356 = vst.msk [vmem:[#allocation4 + $0xc8] sm:$0xff] %vm600_vm2, %v2324_v18  ;;  %v1502_v18 = vld [vmem:[#allocation3 + $0xc0] sm:$0xff]  ;;  %v2285_v27 = vmul.f32 %v4492_v50, %v2093_v48  ;;  %v4981_v48 = vld [vmem:[#allocation27_spill] sm:$0xff] }
 0x2d2   : > { %v1807_v45 = vpop.f32.mrf.mxu0  ;;  %2264 = vperm.xlu0 %3262, %v4669_v54   ;;  %2348 = vst.msk [vmem:[#allocation4 + $0x88] sm:$0xff] %vm600_vm2, %v2316_v32  ;;  %v4975_v32 = vld [vmem:[#allocation19_spill] sm:$0xff] }
 0x2d3   : > { %v2302_v60 = vadd.f32 %v2270_v9, %v1807_v45  ;;  %v1503_v9 = vld [vmem:[#allocation3 + $0xc8] sm:$0xff]  ;;  %v1518_v45 = vmul.f32 %v4975_v32, %v1486_v22  ;;  %v1480_v22 = vld [vmem:[#allocation3 + $0x10] sm:$0xff] }
 0x2d4   : > { %v1512_v32 = vmul.f32 %v4981_v48, %v1480_v22  ;;  %v2096_v22 = vld [vmem:[#allocation4 + $0xa8] sm:$0xff]  ;;  %v2087_v48 = vld [vmem:[#allocation4 + $0x60] sm:$0xff] }
 0x2d5   : > { %2334 = vst.msk [vmem:[#allocation4 + $0x18] sm:$0xff] %vm600_vm2, %v2302_v60  ;;  %v4976_v60 = vld [vmem:[#allocation22_spill] sm:$0xff] }
 0x2d6   : > { %v1534_v11 = vmul.f32 %v4976_v60, %v1502_v18  ;;  %v1487_v18 = vld [vmem:[#allocation3 + $0x48] sm:$0xff] }
 0x2db   : > { %v1890_v3 = vpop.f32.mrf.mxu1  ;;  %2259 = vperm.xlu1 %3263, %v4680_v31  }
 0x2dc   : > { %v2309_v21 = vadd.f32 %v2277_v46, %v1890_v3  ;;  %v1535_v46 = vmul.f32 %v4977_v57, %v1503_v9  ;;  %v1497_v9 = vld [vmem:[#allocation3 + $0x98] sm:$0xff] }
 0x2dd   : > { %v1544_v12 = vpop.xlane.xlu0 %1543 }
 0x2de   : > { %2341 = vst.msk [vmem:[#allocation4 + $0x50] sm:$0xff] %vm600_vm2, %v2309_v21  ;;  %v1638_v37 = vadd.f32 %v1544_v12, %v1510_v41  ;;  %v1495_v12 = vld [vmem:[#allocation3 + $0x88] sm:$0xff] }
 0x2e0   : > { %v2060_v10 = vpop.f32.mrf.mxu3  ;;  %1671 = vst.msk [vmem:[#allocation3] sm:$0xff] %vm1670_vm4, %v1638_v37  ;;  %v2094_v37 = vld [vmem:[#allocation4 + $0x98] sm:$0xff] }
 0x2e1   : > { %v2325_v51 = vadd.f32 %v2293_v44, %v2060_v10  ;;  %v1479_v44 = vld [vmem:[#allocation3 + $0x8] sm:$0xff]  ;;  %v4978_v10 = vld [vmem:[#allocation26_spill] sm:$0xff]  ;;  %v2286_v40 = vmul.f32 %v4515_v16, %v2094_v37  ;;  %v4982_v16 = vld [vmem:[#allocation23_spill] sm:$0xff] }
 0x2e2   : > { %2254 = vperm.xlu2 %3261, %v4689_v0   ;;  %v1527_v50 = vmul.f32 %v4978_v10, %v1495_v12  ;;  %v4984_v12 = vld [vmem:[#allocation29_spill] sm:$0xff] }
 0x2e3   : > { %2357 = vst.msk [vmem:[#allocation4 + $0xd0] sm:$0xff] %vm600_vm2, %v2325_v51  ;;  %v1892_v52 = vpop.f32.mrf.mxu1  ;;  %v4979_v51 = vld [vmem:[#allocation21_spill] sm:$0xff] }
 0x2e4   : > { %v2310_v30 = vadd.f32 %v2278_v53, %v1892_v52  ;;  %v1511_v53 = vmul.f32 %v4979_v51, %v1479_v44  ;;  %v4985_v10 = vld [vmem:[#allocation33_spill] sm:$0xff] }
 0x2e5   : > { %v1592_v1 = vpop.xlane.xlu0 %1591 }
 0x2e6   : > { %2342 = vst.msk [vmem:[#allocation4 + $0x58] sm:$0xff] %vm600_vm2, %v2310_v30  ;;  %v1654_v25 = vadd.f32 %v1592_v1, %v1526_v61  ;;  %v1520_v30 = vmul.f32 %v4980_v7, %v1488_v26  ;;  %v2079_v26 = vld [vmem:[#allocation4 + $0x20] sm:$0xff] }
 0x2e8   : > { %v2062_v34 = vpop.f32.mrf.mxu3  ;;  %1687 = vst.msk [vmem:[#allocation3 + $0x80] sm:$0xff] %vm1670_vm4, %v1654_v25 }
 0x2e9   : > { %v2326_v36 = vadd.f32 %v2294_v20, %v2062_v34 }
 0x2eb   : > { %2358 = vst.msk [vmem:[#allocation4 + $0xd8] sm:$0xff] %vm600_vm2, %v2326_v36 }
 0x2ed   : > { %v1568_v6 = vpop.xlane.xlu1 %1567  ;;  %v1616_v33 = vpop.xlane.xlu2 %1615 }
 0x2ee   : > { %v1646_v58 = vadd.f32 %v1568_v6, %v1518_v45  ;;  %v1662_v3 = vadd.f32 %v1616_v33, %v1534_v11  ;;  %v1619_v35 = vpop.xlane.xlu0 %1618  ;;  %v1975_v38 = vpop.f32.mrf.mxu2  ;;  %v1519_v45 = vmul.f32 %v4982_v16, %v1487_v18  ;;  %v1529_v6 = vmul.f32 %v4264_v56, %v1497_v9  ;;  %v4987_v18 = vld [vmem:[#allocation31_spill] sm:$0xff] }
 0x2ef   : > { %v1663_v21 = vadd.f32 %v1619_v35, %v1535_v46  ;;  %v2317_v41 = vadd.f32 %v2285_v27, %v1975_v38  ;;  %v1482_v35 = vld [vmem:[#allocation3 + $0x20] sm:$0xff] }
 0x2f0   : > { %1679 = vst.msk [vmem:[#allocation3 + $0x40] sm:$0xff] %vm1670_vm4, %v1646_v58  ;;  %v1504_v58 = vld [vmem:[#allocation3 + $0xd0] sm:$0xff]  ;;  %v4983_v38 = vld [vmem:[#allocation32_spill] sm:$0xff] }
 0x2f1   : > { %1695 = vst.msk [vmem:[#allocation3 + $0xc0] sm:$0xff] %vm1670_vm4, %v1662_v3  ;;  %v1496_v3 = vld [vmem:[#allocation3 + $0x90] sm:$0xff] }
 0x2f2   : > { %1696 = vst.msk [vmem:[#allocation3 + $0xc8] sm:$0xff] %vm1670_vm4, %v1663_v21  ;;  %v2095_v21 = vld [vmem:[#allocation4 + $0xa0] sm:$0xff]  ;;  %v1528_v44 = vmul.f32 %v4984_v12, %v1496_v3 }
 0x2f3   : > { %2349 = vst.msk [vmem:[#allocation4 + $0x90] sm:$0xff] %vm600_vm2, %v2317_v41  ;;  %v1536_v41 = vmul.f32 %v4983_v38, %v1504_v58 }
 0x2f5   : > { %v1595_v29 = vpop.xlane.xlu1 %1594  ;;  %v1547_v52 = vpop.xlane.xlu2 %1546 }
 0x2f6   : > { %v1655_v61 = vadd.f32 %v1595_v29, %v1527_v50  ;;  %v1639_v1 = vadd.f32 %v1547_v52, %v1511_v53  ;;  %v1574_v20 = vpop.xlane.xlu0 %1573  ;;  %v1977_v34 = vpop.f32.mrf.mxu2  ;;  %v1514_v50 = vmul.f32 %v4985_v10, %v1482_v35  ;;  %v2287_v52 = vmul.f32 %v4546_v55, %v2095_v21  ;;  %v4986_v55 = vld [vmem:[#allocation34_spill] sm:$0xff] }
 0x2f7   : > { %v1648_v25 = vadd.f32 %v1574_v20, %v1520_v30  ;;  %v2318_v36 = vadd.f32 %v2286_v40, %v1977_v34  ;;  %v2271_v30 = vmul.f32 %v4530_v19, %v2079_v26  ;;  %v1489_v20 = vld [vmem:[#allocation3 + $0x58] sm:$0xff] }
 0x2f8   : > { %1688 = vst.msk [vmem:[#allocation3 + $0x88] sm:$0xff] %vm1670_vm4, %v1655_v61  ;;  %v1521_v19 = vmul.f32 %v4986_v55, %v1489_v20  ;;  %v1500_v20 = vld [vmem:[#allocation3 + $0xb0] sm:$0xff] }
 0x2f9   : > { %1672 = vst.msk [vmem:[#allocation3 + $0x8] sm:$0xff] %vm1670_vm4, %v1639_v1 }
 0x2fa   : > { %1681 = vst.msk [vmem:[#allocation3 + $0x50] sm:$0xff] %vm1670_vm4, %v1648_v25  ;;  %v1481_v25 = vld [vmem:[#allocation3 + $0x18] sm:$0xff] }
 0x2fb   : > { %2350 = vst.msk [vmem:[#allocation4 + $0x98] sm:$0xff] %vm600_vm2, %v2318_v36  ;;  %v1506_v36 = vld [vmem:[#allocation3 + $0xe0] sm:$0xff]  ;;  %v1513_v9 = vmul.f32 %v4987_v18, %v1481_v25 }
 0x2fd   : > { %v1550_v60 = vpop.xlane.xlu1 %1549  ;;  %v1571_v11 = vpop.xlane.xlu2 %1570 }
 0x2fe   : > { %v1640_v33 = vadd.f32 %v1550_v60, %v1512_v32  ;;  %v1647_v57 = vadd.f32 %v1571_v11, %v1519_v45  ;;  %v1601_v46 = vpop.xlane.xlu0 %1600  ;;  %v2080_v32 = vld [vmem:[#allocation4 + $0x28] sm:$0xff]  ;;  %v1538_v60 = vmul.f32 %v4364_v5, %v1506_v36  ;;  %v1505_v5 = vld [vmem:[#allocation3 + $0xd8] sm:$0xff] }
 0x2ff   : > { %v1657_v27 = vadd.f32 %v1601_v46, %v1529_v6  ;;  %v2272_v58 = vmul.f32 %v4564_v28, %v2080_v32  ;;  %v1537_v26 = vmul.f32 %v4444_v15, %v1505_v5  ;;  %v1499_v32 = vld [vmem:[#allocation3 + $0xa8] sm:$0xff] }
 0x300   : > { %1673 = vst.msk [vmem:[#allocation3 + $0x10] sm:$0xff] %vm1670_vm4, %v1640_v33  ;;  %v4989_v5 = vld [vmem:[#allocation37_spill] sm:$0xff] }
 0x301   : > { %1680 = vst.msk [vmem:[#allocation3 + $0x48] sm:$0xff] %vm1670_vm4, %v1647_v57  ;;  %v2288_v57 = vmul.f32 %v4602_v2, %v2096_v22  ;;  %v1491_v2 = vld [vmem:[#allocation3 + $0x68] sm:$0xff]  ;;  %v1532_v22 = vmul.f32 %v4390_v4, %v1500_v20 }
 0x302   : > { %1690 = vst.msk [vmem:[#allocation3 + $0x98] sm:$0xff] %vm1670_vm4, %v1657_v27  ;;  %v2279_v27 = vmul.f32 %v4560_v47, %v2087_v48  ;;  %v2103_v47 = vld [vmem:[#allocation4 + $0xe0] sm:$0xff]  ;;  %v1507_v48 = vld [vmem:[#allocation3 + $0xe8] sm:$0xff] }
 0x305   : > { %v1622_v56 = vpop.xlane.xlu1 %1621  ;;  %v1598_v37 = vpop.xlane.xlu2 %1597 }
 0x306   : > { %v1664_v51 = vadd.f32 %v1622_v56, %v1536_v41  ;;  %v1656_v53 = vadd.f32 %v1598_v37, %v1528_v44  ;;  %v1556_v29 = vpop.xlane.xlu0 %1555  ;;  %v1498_v41 = vld [vmem:[#allocation3 + $0xa0] sm:$0xff]  ;;  %v2088_v56 = vld [vmem:[#allocation4 + $0x68] sm:$0xff] }
 0x307   : > { %v1642_v7 = vadd.f32 %v1556_v29, %v1514_v50  ;;  %v1530_v28 = vmul.f32 %v4344_v49, %v1498_v41  ;;  %v1523_v50 = vmul.f32 %v4318_v8, %v1491_v2  ;;  %v2097_v2 = vld [vmem:[#allocation4 + $0xb0] sm:$0xff] }
 0x308   : > { %1697 = vst.msk [vmem:[#allocation3 + $0xd0] sm:$0xff] %vm1670_vm4, %v1664_v51  ;;  %v1980_v40 = vpop.f32.mrf.mxu2  ;;  %v1810_v61 = vpop.f32.mrf.mxu0 }
 0x309   : > { %1689 = vst.msk [vmem:[#allocation3 + $0x90] sm:$0xff] %vm1670_vm4, %v1656_v53  ;;  %v2319_v1 = vadd.f32 %v2287_v52, %v1980_v40  ;;  %v2303_v34 = vadd.f32 %v2271_v30, %v1810_v61  ;;  %v2295_v52 = vmul.f32 %v4647_v39, %v2103_v47  ;;  %v2280_v30 = vmul.f32 %v4582_v24, %v2088_v56  ;;  %v1483_v61 = vld [vmem:[#allocation3 + $0x28] sm:$0xff]  ;;  %v4988_v24 = vld [vmem:[#allocation35_spill] sm:$0xff] }
 0x30a   : > { %1675 = vst.msk [vmem:[#allocation3 + $0x20] sm:$0xff] %vm1670_vm4, %v1642_v7  ;;  %v1515_v39 = vmul.f32 %v4369_v13, %v1483_v61  ;;  %v1539_v13 = vmul.f32 %v4689_v0, %v1507_v48  ;;  %v2082_v47 = vld [vmem:[#allocation4 + $0x38] sm:$0xff] }
 0x30b   : > { %2351 = vst.msk [vmem:[#allocation4 + $0xa0] sm:$0xff] %vm600_vm2, %v2319_v1  ;;  %v1490_v1 = vld [vmem:[#allocation3 + $0x60] sm:$0xff] }
 0x30c   : > { %2335 = vst.msk [vmem:[#allocation4 + $0x20] sm:$0xff] %vm600_vm2, %v2303_v34  ;;  %v1522_v25 = vmul.f32 %v4988_v24, %v1490_v1 }
 0x30d   : > { %v1577_v16 = vpop.xlane.xlu1 %1576  ;;  %v1553_v45 = vpop.xlane.xlu2 %1552 }
 0x30e   : > { %v1649_v11 = vadd.f32 %v1577_v16, %v1521_v19  ;;  %v1641_v6 = vadd.f32 %v1553_v45, %v1513_v9  ;;  %v1628_v33 = vpop.xlane.xlu0 %1627  ;;  %v1485_v16 = vld [vmem:[#allocation3 + $0x38] sm:$0xff]  ;;  %v1531_v45 = vmul.f32 %v4367_v59, %v1499_v32  ;;  %v1492_v59 = vld [vmem:[#allocation3 + $0x70] sm:$0xff] }
 0x30f   : > { %v1666_v46 = vadd.f32 %v1628_v33, %v1538_v60  ;;  %v2081_v60 = vld [vmem:[#allocation4 + $0x30] sm:$0xff] }
 0x310   : > { %1682 = vst.msk [vmem:[#allocation3 + $0x58] sm:$0xff] %vm1670_vm4, %v1649_v11  ;;  %v1982_v3 = vpop.f32.mrf.mxu2  ;;  %v1812_v35 = vpop.f32.mrf.mxu0  ;;  %v2089_v33 = vld [vmem:[#allocation4 + $0x70] sm:$0xff] }
 0x311   : > { %1674 = vst.msk [vmem:[#allocation3 + $0x18] sm:$0xff] %vm1670_vm4, %v1641_v6  ;;  %v1895_v21 = vpop.f32.mrf.mxu1  ;;  %v2320_v38 = vadd.f32 %v2288_v57, %v1982_v3  ;;  %v2304_v12 = vadd.f32 %v2272_v58, %v1812_v35  ;;  %v1517_v6 = vmul.f32 %v4420_v62, %v1485_v16  ;;  %v2273_v3 = vmul.f32 %v4620_v14, %v2081_v60  ;;  %v2104_v16 = vld [vmem:[#allocation4 + $0xe8] sm:$0xff] }
 0x312   : > { %1699 = vst.msk [vmem:[#allocation3 + $0xe0] sm:$0xff] %vm1670_vm4, %v1666_v46  ;;  %v2311_v44 = vadd.f32 %v2279_v27, %v1895_v21  ;;  %v2281_v35 = vmul.f32 %v4683_v63, %v2089_v33  ;;  %v1484_v21 = vld [vmem:[#allocation3 + $0x30] sm:$0xff] }
 0x313   : > { %2352 = vst.msk [vmem:[#allocation4 + $0xa8] sm:$0xff] %vm600_vm2, %v2320_v38 }
 0x314   : > { %2336 = vst.msk [vmem:[#allocation4 + $0x28] sm:$0xff] %vm600_vm2, %v2304_v12  ;;  %v1524_v12 = vmul.f32 %v4989_v5, %v1492_v59 }
 0x315   : > { %2343 = vst.msk [vmem:[#allocation4 + $0x60] sm:$0xff] %vm600_vm2, %v2311_v44  ;;  %v1604_v37 = vpop.xlane.xlu1 %1603  ;;  %v1625_v10 = vpop.xlane.xlu2 %1624  ;;  %v4990_v44 = vld [vmem:[#allocation36_spill] sm:$0xff] }
 0x316   : > { %v1658_v51 = vadd.f32 %v1604_v37, %v1530_v28  ;;  %v1665_v53 = vadd.f32 %v1625_v10, %v1537_v26  ;;  %v1583_v29 = vpop.xlane.xlu0 %1582  ;;  %v1516_v14 = vmul.f32 %v4990_v44, %v1484_v21  ;;  %v2090_v26 = vld [vmem:[#allocation4 + $0x78] sm:$0xff] }
 0x317   : > { %v1651_v7 = vadd.f32 %v1583_v29, %v1523_v50  ;;  %v2065_v49 = vpop.f32.mrf.mxu3  ;;  %v1509_v10 = vld [vmem:[#allocation3 + $0xf8] sm:$0xff]  ;;  %v2289_v50 = vmul.f32 %v4662_v42, %v2097_v2 }
 0x318   : > { %1691 = vst.msk [vmem:[#allocation3 + $0xa0] sm:$0xff] %vm1670_vm4, %v1658_v51  ;;  %v2327_v40 = vadd.f32 %v2295_v52, %v2065_v49  ;;  %v2274_v51 = vmul.f32 %v4675_v23, %v2082_v47  ;;  %v1508_v49 = vld [vmem:[#allocation3 + $0xf0] sm:$0xff]  ;;  %v4991_v23 = vld [vmem:[#allocation39_spill] sm:$0xff] }
 0x319   : > { %1698 = vst.msk [vmem:[#allocation3 + $0xd8] sm:$0xff] %vm1670_vm4, %v1665_v53  ;;  %v1897_v15 = vpop.f32.mrf.mxu1  ;;  %v2282_v53 = vmul.f32 %v4697_v17, %v2090_v26  ;;  %v1540_v17 = vmul.f32 %v4680_v31, %v1508_v49 }
 0x31a   : > { %1684 = vst.msk [vmem:[#allocation3 + $0x68] sm:$0xff] %vm1670_vm4, %v1651_v7  ;;  %v2312_v8 = vadd.f32 %v2280_v30, %v1897_v15  ;;  %v1541_v7 = vmul.f32 %v4669_v54, %v1509_v10  ;;  %v1501_v30 = vld [vmem:[#allocation3 + $0xb8] sm:$0xff] }
 0x31b   : > { %2359 = vst.msk [vmem:[#allocation4 + $0xe0] sm:$0xff] %vm600_vm2, %v2327_v40  ;;  %v1533_v20 = vmul.f32 %v4991_v23, %v1501_v30 }
 0x31c   : > { %2344 = vst.msk [vmem:[#allocation4 + $0x68] sm:$0xff] %vm600_vm2, %v2312_v8 }
 0x31d   : > { %v1559_v34 = vpop.xlane.xlu1 %1558  ;;  %v1580_v36 = vpop.xlane.xlu2 %1579 }
 0x31e   : > { %v1643_v55 = vadd.f32 %v1559_v34, %v1515_v39  ;;  %v1650_v19 = vadd.f32 %v1580_v36, %v1522_v25  ;;  %v1610_v18 = vpop.xlane.xlu0 %1609  ;;  %v2098_v39 = vld [vmem:[#allocation4 + $0xb8] sm:$0xff] }
 0x31f   : > { %v1660_v9 = vadd.f32 %v1610_v18, %v1532_v22  ;;  %v2290_v36 = vmul.f32 %v4695_v43, %v2098_v39  ;;  %v2067_v32 = vpop.f32.mrf.mxu3 }
 0x320   : > { %1676 = vst.msk [vmem:[#allocation3 + $0x28] sm:$0xff] %vm1670_vm4, %v1643_v55  ;;  %v1493_v55 = vld [vmem:[#allocation3 + $0x78] sm:$0xff] }
 0x321   : > { %1683 = vst.msk [vmem:[#allocation3 + $0x60] sm:$0xff] %vm1670_vm4, %v1650_v19  ;;  %v4992_v19 = vld [vmem:[#allocation38_spill] sm:$0xff] }
 0x322   : > { %1693 = vst.msk [vmem:[#allocation3 + $0xb0] sm:$0xff] %vm1670_vm4, %v1660_v9  ;;  %v1525_v18 = vmul.f32 %v4992_v19, %v1493_v55 }
 0x325   : > { %v1631_v11 = vpop.xlane.xlu1 %1630  ;;  %v1607_v4 = vpop.xlane.xlu2 %1606 }
 0x326   : > { %v1667_v57 = vadd.f32 %v1631_v11, %v1539_v13  ;;  %v1659_v46 = vadd.f32 %v1607_v4, %v1531_v45  ;;  %v1565_v27 = vpop.xlane.xlu0 %1564  ;;  %v2106_v11 = vld [vmem:[#allocation4 + $0xf8] sm:$0xff] }
 0x327   : > { %v1645_v58 = vadd.f32 %v1565_v27, %v1517_v6  ;;  %v2105_v6 = vld [vmem:[#allocation4 + $0xf0] sm:$0xff] }
 0x328   : > { %1700 = vst.msk [vmem:[#allocation3 + $0xe8] sm:$0xff] %vm1670_vm4, %v1667_v57  ;;  %v1815_v0 = vpop.f32.mrf.mxu0 }
 0x329   : > { %1692 = vst.msk [vmem:[#allocation3 + $0xa8] sm:$0xff] %vm1670_vm4, %v1659_v46  ;;  %v2305_v38 = vadd.f32 %v2273_v3, %v1815_v0 }
 0x32a   : > { %1678 = vst.msk [vmem:[#allocation3 + $0x38] sm:$0xff] %vm1670_vm4, %v1645_v58  ;;  %v1900_v62 = vpop.f32.mrf.mxu1 }
 0x32b   : > { %v2313_v41 = vadd.f32 %v2281_v35, %v1900_v62  ;;  %2337 = vst.msk [vmem:[#allocation4 + $0x30] sm:$0xff] %vm600_vm2, %v2305_v38 }
 0x32d   : > { %2345 = vst.msk [vmem:[#allocation4 + $0x70] sm:$0xff] %vm600_vm2, %v2313_v41  ;;  %v1586_v63 = vpop.xlane.xlu1 %1585  ;;  %v1562_v28 = vpop.xlane.xlu2 %1561 }
 0x32e   : > { %v1652_v56 = vadd.f32 %v1586_v63, %v1524_v12  ;;  %v1644_v37 = vadd.f32 %v1562_v28, %v1516_v14 }
 0x330   : > { %1685 = vst.msk [vmem:[#allocation3 + $0x70] sm:$0xff] %vm1670_vm4, %v1652_v56  ;;  %v1817_v29 = vpop.f32.mrf.mxu0 }
 0x331   : > { %1677 = vst.msk [vmem:[#allocation3 + $0x30] sm:$0xff] %vm1670_vm4, %v1644_v37  ;;  %v1985_v52 = vpop.f32.mrf.mxu2  ;;  %v2306_v15 = vadd.f32 %v2274_v51, %v1817_v29  ;;  %v1637_v61 = vpop.xlane.xlu0 %1636 }
 0x332   : > { %v2321_v40 = vadd.f32 %v2289_v50, %v1985_v52  ;;  %v1902_v1 = vpop.f32.mrf.mxu1  ;;  %v1669_v8 = vadd.f32 %v1637_v61, %v1541_v7 }
 0x333   : > { %v2314_v42 = vadd.f32 %v2282_v53, %v1902_v1  ;;  %2338 = vst.msk [vmem:[#allocation4 + $0x38] sm:$0xff] %vm600_vm2, %v2306_v15 }
 0x334   : > { %2353 = vst.msk [vmem:[#allocation4 + $0xb0] sm:$0xff] %vm600_vm2, %v2321_v40 }
 0x335   : > { %v1613_v24 = vpop.xlane.xlu1 %1612  ;;  %v1634_v25 = vpop.xlane.xlu2 %1633  ;;  %1702 = vst.msk [vmem:[#allocation3 + $0xf8] sm:$0xff] %vm1670_vm4, %v1669_v8 }
 0x336   : > { %v1661_v54 = vadd.f32 %v1613_v24, %v1533_v20  ;;  %v1668_v34 = vadd.f32 %v1634_v25, %v1540_v17  ;;  %2346 = vst.msk [vmem:[#allocation4 + $0x78] sm:$0xff] %vm600_vm2, %v2314_v42 }
 0x338   : > { %1694 = vst.msk [vmem:[#allocation3 + $0xb8] sm:$0xff] %vm1670_vm4, %v1661_v54 }
 0x339   : > { %1701 = vst.msk [vmem:[#allocation3 + $0xf0] sm:$0xff] %vm1670_vm4, %v1668_v34  ;;  %v1987_v22 = vpop.f32.mrf.mxu2 }
 0x33a   : > { %v2322_v31 = vadd.f32 %v2290_v36, %v1987_v22 }
 0x33c   : > { %2354 = vst.msk [vmem:[#allocation4 + $0xb8] sm:$0xff] %vm600_vm2, %v2322_v31 }
 0x33d   : > { %v1589_v9 = vpop.xlane.xlu2 %1588 }
 0x33e   : > { %v1653_v48 = vadd.f32 %v1589_v9, %v1525_v18 }
 0x340   : > { %1686 = vst.msk [vmem:[#allocation3 + $0x78] sm:$0xff] %vm1670_vm4, %v1653_v48 }
 0x344   : > { %v2265_v4 = vpop.permute.xlu0 %2264 }
 0x345   : > { %v2255_v13 = vpop.permute.xlu2 %2254  ;;  %v2298_v57 = vmul.f32 %v2265_v4, %v2106_v11 }
 0x346   : > { %v2296_v45 = vmul.f32 %v2255_v13, %v2104_v16  ;;  %v2070_v43 = vpop.f32.mrf.mxu3 }
 0x348   : > { %v2328_v60 = vadd.f32 %v2296_v45, %v2067_v32 }
 0x34a   : > { %2360 = vst.msk [vmem:[#allocation4 + $0xe8] sm:$0xff] %vm600_vm2, %v2328_v60 }
 0x34d   : > { %v2260_v33 = vpop.permute.xlu1 %2259 }
 0x34e   : > { %v2297_v46 = vmul.f32 %v2260_v33, %v2105_v6  ;;  %v2072_v27 = vpop.f32.mrf.mxu3  ;;  %2398 = sbr.rel (%p3149_p11) target bundleno = 1061 (0x425), region = 40 }
 0x34f   : > { %v2330_v3 = vadd.f32 %v2298_v57, %v2072_v27 }
 0x350   : > { %v2329_v58 = vadd.f32 %v2297_v46, %v2070_v43 }
 0x351   : > { %2362 = vst.msk [vmem:[#allocation4 + $0xf8] sm:$0xff] %vm600_vm2, %v2330_v3 }
 0x352   : > { %2361 = vst.msk [vmem:[#allocation4 + $0xf0] sm:$0xff] %vm600_vm2, %v2329_v58 }
 0x353   : > { %v2403_v35 = vld [vmem:[#allocation3 + $0x20] sm:$0xff]  ;;  %v2401_v0 = vld [vmem:[#allocation3 + $0x10] sm:$0xff]  ;;  %v3533_v21 = vmov 0   ;;  %v2404_v38 = vld [vmem:[#allocation3 + $0x28] sm:$0xff]  ;;  %vm2719_vm5 = vcmask 60416  }
 0x354   : > { %v2399_v59 = vld [vmem:[#allocation3] sm:$0xff]  ;;  %3394 = vset.pattern.permute.xlu2 %v3533_v21  ;;  %3393 = vset.pattern.permute.xlu1 %v3533_v21  ;;  %3395 = vrcp.f32 %v2403_v35  ;;  %v2402_v62 = vld [vmem:[#allocation3 + $0x18] sm:$0xff]  ;;  %v2400_v41 = vld [vmem:[#allocation3 + $0x8] sm:$0xff] }
 0x355   : > { %3392 = vset.pattern.permute.xlu0 %v3533_v21  ;;  %3397 = vrcp.f32 %v2401_v0  ;;  %v2407_v14 = vld [vmem:[#allocation3 + $0x40] sm:$0xff]  ;;  %v2406_v47 = vld [vmem:[#allocation3 + $0x38] sm:$0xff]  ;;  %v2405_v28 = vld [vmem:[#allocation3 + $0x30] sm:$0xff] }
 0x356   : > { %3399 = vrcp.f32 %v2399_v59  ;;  %v2410_v56 = vld [vmem:[#allocation3 + $0x58] sm:$0xff]  ;;  %v2409_v10 = vld [vmem:[#allocation3 + $0x50] sm:$0xff]  ;;  %v2408_v51 = vld [vmem:[#allocation3 + $0x48] sm:$0xff] }
 0x357   : > { %3401 = vrcp.f32 %v2404_v38  ;;  %v2413_v29 = vld [vmem:[#allocation3 + $0x70] sm:$0xff]  ;;  %v2412_v7 = vld [vmem:[#allocation3 + $0x68] sm:$0xff]  ;;  %v2411_v49 = vld [vmem:[#allocation3 + $0x60] sm:$0xff] }
 0x358   : > { %3403 = vrcp.f32 %v2402_v62  ;;  %v2416_v40 = vld [vmem:[#allocation3 + $0x88] sm:$0xff]  ;;  %v2415_v1 = vld [vmem:[#allocation3 + $0x80] sm:$0xff]  ;;  %v2414_v42 = vld [vmem:[#allocation3 + $0x78] sm:$0xff] }
 0x359   : > { %3405 = vrcp.f32 %v2400_v41  ;;  %v2419_v20 = vld [vmem:[#allocation3 + $0xa0] sm:$0xff]  ;;  %v2418_v39 = vld [vmem:[#allocation3 + $0x98] sm:$0xff]  ;;  %v2417_v25 = vld [vmem:[#allocation3 + $0x90] sm:$0xff] }
 0x35a   : > { %v3396_v5 = vpop.eup %3395  ;;  %3407 = vrcp.f32 %v2407_v14  ;;  %v2422_v34 = vld [vmem:[#allocation3 + $0xb8] sm:$0xff]  ;;  %v2421_v22 = vld [vmem:[#allocation3 + $0xb0] sm:$0xff]  ;;  %v2420_v31 = vld [vmem:[#allocation3 + $0xa8] sm:$0xff] }
 0x35b   : > { %v3398_v12 = vpop.eup %3397  ;;  %2517 = vperm.xlu2 %3394, %v3396_v5   ;;  %3409 = vrcp.f32 %v2406_v47  ;;  %v2425_v18 = vld [vmem:[#allocation3 + $0xd0] sm:$0xff]  ;;  %v2424_v48 = vld [vmem:[#allocation3 + $0xc8] sm:$0xff]  ;;  %v2423_v16 = vld [vmem:[#allocation3 + $0xc0] sm:$0xff] }
 0x35c   : > { %v3400_v44 = vpop.eup %3399  ;;  %2507 = vperm.xlu1 %3393, %v3398_v12   ;;  %3411 = vrcp.f32 %v2405_v28  ;;  %v2428_v45 = vld [vmem:[#allocation3 + $0xe8] sm:$0xff]  ;;  %v2427_v60 = vld [vmem:[#allocation3 + $0xe0] sm:$0xff]  ;;  %v2426_v4 = vld [vmem:[#allocation3 + $0xd8] sm:$0xff] }
 0x35d   : > { %2497 = vperm.xlu0 %3392, %v3400_v44   ;;  %v3402_v2 = vpop.eup %3401  ;;  %3413 = vrcp.f32 %v2410_v56  ;;  %v2430_v57 = vld [vmem:[#allocation3 + $0xf8] sm:$0xff]  ;;  %v2429_v27 = vld [vmem:[#allocation3 + $0xf0] sm:$0xff]  ;;  %v2467_v0 = vld [vmem:[#allocation4 + $0x20] sm:$0xff] }
 0x35e   : > { %v3404_v63 = vpop.eup %3403  ;;  %3415 = vrcp.f32 %v2409_v10  ;;  %v2468_v62 = vld [vmem:[#allocation4 + $0x28] sm:$0xff]  ;;  %v2471_v44 = vld [vmem:[#allocation4 + $0x40] sm:$0xff]  ;;  %v2465_v28 = vld [vmem:[#allocation4 + $0x10] sm:$0xff] }
 0x35f   : > { %v3406_v26 = vpop.eup %3405  ;;  %3417 = vrcp.f32 %v2408_v51  ;;  %v2463_v56 = vld [vmem:[#allocation4] sm:$0xff] }
 0x360   : > { %v3408_v37 = vpop.eup %3407  ;;  %3419 = vrcp.f32 %v2413_v29 }
 0x361   : > { %v3410_v50 = vpop.eup %3409  ;;  %3421 = vrcp.f32 %v2412_v7 }
 0x362   : > { %v3412_v53 = vpop.eup %3411  ;;  %3423 = vrcp.f32 %v2411_v49  ;;  %v2466_v49 = vld [vmem:[#allocation4 + $0x18] sm:$0xff] }
 0x363   : > { %2522 = vperm.xlu2 %3394, %v3402_v2   ;;  %v3414_v52 = vpop.eup %3413  ;;  %3425 = vrcp.f32 %v2416_v40  ;;  %v2464_v40 = vld [vmem:[#allocation4 + $0x8] sm:$0xff] }
 0x364   : > { %2512 = vperm.xlu1 %3393, %v3404_v63   ;;  %v3416_v30 = vpop.eup %3415  ;;  %3427 = vrcp.f32 %v2415_v1  ;;  %v2474_v63 = vld [vmem:[#allocation4 + $0x58] sm:$0xff] }
 0x365   : > { %2502 = vperm.xlu0 %3392, %v3406_v26   ;;  %v3418_v15 = vpop.eup %3417  ;;  %3429 = vrcp.f32 %v2414_v42 }
 0x366   : > { %v3420_v61 = vpop.eup %3419  ;;  %3431 = vrcp.f32 %v2419_v20 }
 0x367   : > { %v3422_v8 = vpop.eup %3421  ;;  %3433 = vrcp.f32 %v2418_v39 }
 0x368   : > { %v3424_v23 = vpop.eup %3423  ;;  %3435 = vrcp.f32 %v2417_v25  ;;  %v2470_v25 = vld [vmem:[#allocation4 + $0x38] sm:$0xff] }
 0x369   : > { %v3426_v17 = vpop.eup %3425  ;;  %3437 = vrcp.f32 %v2422_v34  ;;  %v2469_v34 = vld [vmem:[#allocation4 + $0x30] sm:$0xff] }
 0x36a   : > { %v3428_v24 = vpop.eup %3427  ;;  %3439 = vrcp.f32 %v2421_v22 }
 0x36b   : > { %2537 = vperm.xlu2 %3394, %v3408_v37   ;;  %v3430_v54 = vpop.eup %3429  ;;  %3441 = vrcp.f32 %v2420_v31 }
 0x36c   : > { %2532 = vperm.xlu1 %3393, %v3410_v50   ;;  %v3432_v36 = vpop.eup %3431  ;;  %3443 = vrcp.f32 %v2425_v18 }
 0x36d   : > { %2527 = vperm.xlu0 %3392, %v3412_v53   ;;  %v3434_v55 = vpop.eup %3433  ;;  %3445 = vrcp.f32 %v2424_v48 }
 0x36e   : > { %v3436_v19 = vpop.eup %3435  ;;  %3447 = vrcp.f32 %v2423_v16  ;;  %v2473_v16 = vld [vmem:[#allocation4 + $0x50] sm:$0xff] }
 0x36f   : > { %v3438_v9 = vpop.eup %3437  ;;  %3449 = vrcp.f32 %v2428_v45  ;;  %v2472_v45 = vld [vmem:[#allocation4 + $0x48] sm:$0xff] }
 0x370   : > { %v3440_v32 = vpop.eup %3439  ;;  %3451 = vrcp.f32 %v2427_v60 }
 0x371   : > { %v3442_v13 = vpop.eup %3441  ;;  %3453 = vrcp.f32 %v2426_v4 }
 0x372   : > { %v3444_v43 = vpop.eup %3443  ;;  %3455 = vrcp.f32 %v2430_v57 }
 0x373   : > { %2552 = vperm.xlu2 %3394, %v3414_v52   ;;  %v3446_v11 = vpop.eup %3445  ;;  %3457 = vrcp.f32 %v2429_v27  ;;  %v2486_v27 = vld [vmem:[#allocation4 + $0xb8] sm:$0xff] }
 0x374   : > { %2547 = vperm.xlu1 %3393, %v3416_v30   ;;  %v3448_v6 = vpop.eup %3447  ;;  %v2477_v30 = vld [vmem:[#allocation4 + $0x70] sm:$0xff] }
 0x375   : > { %2542 = vperm.xlu0 %3392, %v3418_v15   ;;  %v3450_v33 = vpop.eup %3449 }
 0x376   : > { %v3452_v46 = vpop.eup %3451 }
 0x377   : > { %v3454_v58 = vpop.eup %3453 }
 0x378   : > { %v3456_v3 = vpop.eup %3455 }
 0x379   : > { %v3458_v35 = vpop.eup %3457 }
 0x37b   : > { %2567 = vperm.xlu2 %3394, %v3420_v61  }
 0x37c   : > { %2562 = vperm.xlu1 %3393, %v3422_v8  }
 0x37d   : > { %2557 = vperm.xlu0 %3392, %v3424_v23  }
 0x383   : > { %2582 = vperm.xlu2 %3394, %v3426_v17  }
 0x384   : > { %2577 = vperm.xlu1 %3393, %v3428_v24   ;;  %v2480_v24 = vld [vmem:[#allocation4 + $0x88] sm:$0xff] }
 0x385   : > { %2572 = vperm.xlu0 %3392, %v3430_v54  }
 0x38b   : > { %2597 = vperm.xlu2 %3394, %v3432_v36  }
 0x38c   : > { %2592 = vperm.xlu1 %3393, %v3434_v55  }
 0x38d   : > { %2587 = vperm.xlu0 %3392, %v3436_v19  }
 0x393   : > { %2612 = vperm.xlu2 %3394, %v3438_v9  }
 0x394   : > { %2607 = vperm.xlu1 %3393, %v3440_v32   ;;  %v2483_v32 = vld [vmem:[#allocation4 + $0xa0] sm:$0xff] }
 0x395   : > { %2602 = vperm.xlu0 %3392, %v3442_v13  }
 0x39b   : > { %2627 = vperm.xlu2 %3394, %v3444_v43  }
 0x39c   : > { %2622 = vperm.xlu1 %3393, %v3446_v11  }
 0x39d   : > { %2617 = vperm.xlu0 %3392, %v3448_v6  }
 0x3a3   : > { %2642 = vperm.xlu2 %3394, %v3450_v33  }
 0x3a4   : > { %2637 = vperm.xlu1 %3393, %v3452_v46  }
 0x3a5   : > { %2632 = vperm.xlu0 %3392, %v3454_v58   ;;  %v2476_v58 = vld [vmem:[#allocation4 + $0x68] sm:$0xff] }
 0x3ac   : > { %2652 = vperm.xlu1 %3393, %v3456_v3  }
 0x3ad   : > { %2647 = vperm.xlu0 %3392, %v3458_v35   ;;  %v2475_v35 = vld [vmem:[#allocation4 + $0x60] sm:$0xff] }
 0x3b5   : > { %v2518_v59 = vpop.permute.xlu2 %2517 }
 0x3b6   : > { %v2659_v21 = vmul.f32 %v2518_v59, %v2467_v0 }
 0x3b8   : > { %v2691_v38 = vpack.c.bf16 %v2659_v21, %v2659_v21 }
 0x3ba   : > { %2724 = vst.msk [vmem:[%s3615_s18 + $0x10] sm:$0xf] %vm2719_vm5, %v2691_v38 }
 0x3bd   : > { %v2523_v41 = vpop.permute.xlu2 %2522 }
 0x3be   : > { %v2660_v5 = vmul.f32 %v2523_v41, %v2468_v62 }
 0x3c0   : > { %v2692_v12 = vpack.c.bf16 %v2660_v5, %v2660_v5 }
 0x3c2   : > { %2725 = vst.msk [vmem:[%s3615_s18 + $0x14] sm:$0xf] %vm2719_vm5, %v2692_v12 }
 0x3c5   : > { %v2538_v14 = vpop.permute.xlu2 %2537 }
 0x3c6   : > { %v2663_v2 = vmul.f32 %v2538_v14, %v2471_v44  ;;  %v2489_v44 = vld [vmem:[#allocation4 + $0xd0] sm:$0xff]  ;;  %v2479_v14 = vld [vmem:[#allocation4 + $0x80] sm:$0xff] }
 0x3c8   : > { %v2695_v47 = vpack.c.bf16 %v2663_v2, %v2663_v2 }
 0x3ca   : > { %2728 = vst.msk [vmem:[%s3615_s18 + $0x20] sm:$0xf] %vm2719_vm5, %v2695_v47  ;;  %v2478_v47 = vld [vmem:[#allocation4 + $0x78] sm:$0xff] }
 0x3cd   : > { %v2553_v26 = vpop.permute.xlu2 %2552 }
 0x3ce   : > { %v2666_v37 = vmul.f32 %v2553_v26, %v2474_v63  ;;  %v2508_v10 = vpop.permute.xlu1 %2507 }
 0x3cf   : > { %v2657_v50 = vmul.f32 %v2508_v10, %v2465_v28  ;;  %v2498_v51 = vpop.permute.xlu0 %2497 }
 0x3d0   : > { %v2698_v53 = vpack.c.bf16 %v2666_v37, %v2666_v37  ;;  %v2655_v29 = vmul.f32 %v2498_v51, %v2463_v56 }
 0x3d1   : > { %v2689_v52 = vpack.c.bf16 %v2657_v50, %v2657_v50 }
 0x3d2   : > { %2731 = vst.msk [vmem:[%s3615_s18 + $0x2c] sm:$0xf] %vm2719_vm5, %v2698_v53  ;;  %v2687_v7 = vpack.c.bf16 %v2655_v29, %v2655_v29  ;;  %v2492_v53 = vld [vmem:[#allocation4 + $0xe8] sm:$0xff]  ;;  %v2482_v29 = vld [vmem:[#allocation4 + $0x98] sm:$0xff] }
 0x3d3   : > { %2722 = vst.msk [vmem:[%s3615_s18 + $0x8] sm:$0xf] %vm2719_vm5, %v2689_v52 }
 0x3d4   : > { %2720 = vst.msk [vmem:[%s3615_s18] sm:$0xf] %vm2719_vm5, %v2687_v7  ;;  %v2481_v7 = vld [vmem:[#allocation4 + $0x90] sm:$0xff] }
 0x3d5   : > { %v2568_v15 = vpop.permute.xlu2 %2567 }
 0x3d6   : > { %v2669_v61 = vmul.f32 %v2568_v15, %v2477_v30  ;;  %v2513_v1 = vpop.permute.xlu1 %2512 }
 0x3d7   : > { %v2658_v8 = vmul.f32 %v2513_v1, %v2466_v49  ;;  %v2503_v42 = vpop.permute.xlu0 %2502 }
 0x3d8   : > { %v2701_v23 = vpack.c.bf16 %v2669_v61, %v2669_v61  ;;  %v2656_v20 = vmul.f32 %v2503_v42, %v2464_v40 }
 0x3d9   : > { %v2690_v17 = vpack.c.bf16 %v2658_v8, %v2658_v8 }
 0x3da   : > { %2734 = vst.msk [vmem:[%s3615_s18 + $0x38] sm:$0xf] %vm2719_vm5, %v2701_v23  ;;  %v2688_v39 = vpack.c.bf16 %v2656_v20, %v2656_v20  ;;  %v2485_v23 = vld [vmem:[#allocation4 + $0xb0] sm:$0xff]  ;;  %v2484_v20 = vld [vmem:[#allocation4 + $0xa8] sm:$0xff] }
 0x3db   : > { %2723 = vst.msk [vmem:[%s3615_s18 + $0xc] sm:$0xf] %vm2719_vm5, %v2690_v17 }
 0x3dc   : > { %2721 = vst.msk [vmem:[%s3615_s18 + $0x4] sm:$0xf] %vm2719_vm5, %v2688_v39 }
 0x3dd   : > { %v2583_v54 = vpop.permute.xlu2 %2582 }
 0x3de   : > { %v2672_v36 = vmul.f32 %v2583_v54, %v2480_v24  ;;  %v2533_v22 = vpop.permute.xlu1 %2532 }
 0x3df   : > { %v2662_v55 = vmul.f32 %v2533_v22, %v2470_v25  ;;  %v2528_v31 = vpop.permute.xlu0 %2527  ;;  %v2487_v22 = vld [vmem:[#allocation4 + $0xc0] sm:$0xff] }
 0x3e0   : > { %v2704_v19 = vpack.c.bf16 %v2672_v36, %v2672_v36  ;;  %v2661_v18 = vmul.f32 %v2528_v31, %v2469_v34  ;;  %v2488_v36 = vld [vmem:[#allocation4 + $0xc8] sm:$0xff] }
 0x3e1   : > { %v2694_v9 = vpack.c.bf16 %v2662_v55, %v2662_v55 }
 0x3e2   : > { %2737 = vst.msk [vmem:[%s3615_s18 + $0x44] sm:$0xf] %vm2719_vm5, %v2704_v19  ;;  %v2693_v48 = vpack.c.bf16 %v2661_v18, %v2661_v18 }
 0x3e3   : > { %2727 = vst.msk [vmem:[%s3615_s18 + $0x1c] sm:$0xf] %vm2719_vm5, %v2694_v9 }
 0x3e4   : > { %2726 = vst.msk [vmem:[%s3615_s18 + $0x18] sm:$0xf] %vm2719_vm5, %v2693_v48 }
 0x3e5   : > { %v2598_v13 = vpop.permute.xlu2 %2597 }
 0x3e6   : > { %v2675_v43 = vmul.f32 %v2598_v13, %v2483_v32  ;;  %v2548_v60 = vpop.permute.xlu1 %2547  ;;  %v2491_v32 = vld [vmem:[#allocation4 + $0xe0] sm:$0xff] }
 0x3e7   : > { %v2665_v11 = vmul.f32 %v2548_v60, %v2473_v16  ;;  %v2543_v4 = vpop.permute.xlu0 %2542  ;;  %v2490_v16 = vld [vmem:[#allocation4 + $0xd8] sm:$0xff] }
 0x3e8   : > { %v2707_v6 = vpack.c.bf16 %v2675_v43, %v2675_v43  ;;  %v2664_v33 = vmul.f32 %v2543_v4, %v2472_v45 }
 0x3e9   : > { %v2697_v57 = vpack.c.bf16 %v2665_v11, %v2665_v11 }
 0x3ea   : > { %2740 = vst.msk [vmem:[%s3615_s18 + $0x50] sm:$0xf] %vm2719_vm5, %v2707_v6  ;;  %v2696_v46 = vpack.c.bf16 %v2664_v33, %v2664_v33  ;;  %v2494_v6 = vld [vmem:[#allocation4 + $0xf8] sm:$0xff]  ;;  %v2493_v33 = vld [vmem:[#allocation4 + $0xf0] sm:$0xff] }
 0x3eb   : > { %2730 = vst.msk [vmem:[%s3615_s18 + $0x28] sm:$0xf] %vm2719_vm5, %v2697_v57 }
 0x3ec   : > { %2729 = vst.msk [vmem:[%s3615_s18 + $0x24] sm:$0xf] %vm2719_vm5, %v2696_v46 }
 0x3ed   : > { %v2613_v3 = vpop.permute.xlu2 %2612 }
 0x3ee   : > { %v2678_v0 = vmul.f32 %v2613_v3, %v2486_v27  ;;  %v2563_v59 = vpop.permute.xlu1 %2562 }
 0x3ef   : > { %v2668_v21 = vmul.f32 %v2563_v59, %v2476_v58  ;;  %v2558_v38 = vpop.permute.xlu0 %2557 }
 0x3f0   : > { %v2710_v62 = vpack.c.bf16 %v2678_v0, %v2678_v0  ;;  %v2667_v41 = vmul.f32 %v2558_v38, %v2475_v35 }
 0x3f1   : > { %v2700_v5 = vpack.c.bf16 %v2668_v21, %v2668_v21 }
 0x3f2   : > { %2743 = vst.msk [vmem:[%s3615_s18 + $0x5c] sm:$0xf] %vm2719_vm5, %v2710_v62  ;;  %v2699_v12 = vpack.c.bf16 %v2667_v41, %v2667_v41 }
 0x3f3   : > { %2733 = vst.msk [vmem:[%s3615_s18 + $0x34] sm:$0xf] %vm2719_vm5, %v2700_v5 }
 0x3f4   : > { %2732 = vst.msk [vmem:[%s3615_s18 + $0x30] sm:$0xf] %vm2719_vm5, %v2699_v12 }
 0x3f5   : > { %v2628_v2 = vpop.permute.xlu2 %2627 }
 0x3f6   : > { %v2681_v63 = vmul.f32 %v2628_v2, %v2489_v44  ;;  %v2578_v28 = vpop.permute.xlu1 %2577 }
 0x3f7   : > { %v2671_v26 = vmul.f32 %v2578_v28, %v2479_v14  ;;  %v2573_v56 = vpop.permute.xlu0 %2572 }
 0x3f8   : > { %v2713_v37 = vpack.c.bf16 %v2681_v63, %v2681_v63  ;;  %v2670_v10 = vmul.f32 %v2573_v56, %v2478_v47 }
 0x3f9   : > { %v2703_v50 = vpack.c.bf16 %v2671_v26, %v2671_v26 }
 0x3fa   : > { %2746 = vst.msk [vmem:[%s3615_s18 + $0x68] sm:$0xf] %vm2719_vm5, %v2713_v37  ;;  %v2702_v51 = vpack.c.bf16 %v2670_v10, %v2670_v10 }
 0x3fb   : > { %2736 = vst.msk [vmem:[%s3615_s18 + $0x40] sm:$0xf] %vm2719_vm5, %v2703_v50 }
 0x3fc   : > { %2735 = vst.msk [vmem:[%s3615_s18 + $0x3c] sm:$0xf] %vm2719_vm5, %v2702_v51 }
 0x3fd   : > { %v2643_v52 = vpop.permute.xlu2 %2642 }
 0x3fe   : > { %v2684_v30 = vmul.f32 %v2643_v52, %v2492_v53  ;;  %v2593_v49 = vpop.permute.xlu1 %2592 }
 0x3ff   : > { %v2674_v15 = vmul.f32 %v2593_v49, %v2482_v29  ;;  %v2588_v40 = vpop.permute.xlu0 %2587 }
 0x400   : > { %v2716_v61 = vpack.c.bf16 %v2684_v30, %v2684_v30  ;;  %v2673_v1 = vmul.f32 %v2588_v40, %v2481_v7 }
 0x401   : > { %v2706_v8 = vpack.c.bf16 %v2674_v15, %v2674_v15 }
 0x402   : > { %2749 = vst.msk [vmem:[%s3615_s18 + $0x74] sm:$0xf] %vm2719_vm5, %v2716_v61  ;;  %v2705_v42 = vpack.c.bf16 %v2673_v1, %v2673_v1 }
 0x403   : > { %2739 = vst.msk [vmem:[%s3615_s18 + $0x4c] sm:$0xf] %vm2719_vm5, %v2706_v8 }
 0x404   : > { %2738 = vst.msk [vmem:[%s3615_s18 + $0x48] sm:$0xf] %vm2719_vm5, %v2705_v42 }
 0x406   : > { %v2608_v17 = vpop.permute.xlu1 %2607 }
 0x407   : > { %v2677_v39 = vmul.f32 %v2608_v17, %v2485_v23  ;;  %v2603_v24 = vpop.permute.xlu0 %2602 }
 0x408   : > { %v2676_v25 = vmul.f32 %v2603_v24, %v2484_v20 }
 0x409   : > { %v2709_v54 = vpack.c.bf16 %v2677_v39, %v2677_v39 }
 0x40a   : > { %v2708_v34 = vpack.c.bf16 %v2676_v25, %v2676_v25 }
 0x40b   : > { %2742 = vst.msk [vmem:[%s3615_s18 + $0x58] sm:$0xf] %vm2719_vm5, %v2709_v54 }
 0x40c   : > { %2741 = vst.msk [vmem:[%s3615_s18 + $0x54] sm:$0xf] %vm2719_vm5, %v2708_v34 }
 0x40e   : > { %v2623_v55 = vpop.permute.xlu1 %2622 }
 0x40f   : > { %v2680_v31 = vmul.f32 %v2623_v55, %v2488_v36  ;;  %v2618_v19 = vpop.permute.xlu0 %2617 }
 0x410   : > { %v2679_v18 = vmul.f32 %v2618_v19, %v2487_v22 }
 0x411   : > { %v2712_v9 = vpack.c.bf16 %v2680_v31, %v2680_v31 }
 0x412   : > { %v2711_v48 = vpack.c.bf16 %v2679_v18, %v2679_v18 }
 0x413   : > { %2745 = vst.msk [vmem:[%s3615_s18 + $0x64] sm:$0xf] %vm2719_vm5, %v2712_v9 }
 0x414   : > { %2744 = vst.msk [vmem:[%s3615_s18 + $0x60] sm:$0xf] %vm2719_vm5, %v2711_v48 }
 0x416   : > { %v2638_v13 = vpop.permute.xlu1 %2637 }
 0x417   : > { %v2683_v45 = vmul.f32 %v2638_v13, %v2491_v32  ;;  %v2633_v43 = vpop.permute.xlu0 %2632 }
 0x418   : > { %v2682_v60 = vmul.f32 %v2633_v43, %v2490_v16 }
 0x419   : > { %v2715_v11 = vpack.c.bf16 %v2683_v45, %v2683_v45 }
 0x41a   : > { %v2714_v4 = vpack.c.bf16 %v2682_v60, %v2682_v60 }
 0x41b   : > { %2748 = vst.msk [vmem:[%s3615_s18 + $0x70] sm:$0xf] %vm2719_vm5, %v2715_v11 }
 0x41c   : > { %2747 = vst.msk [vmem:[%s3615_s18 + $0x6c] sm:$0xf] %vm2719_vm5, %v2714_v4 }
 0x41e   : > { %v2653_v57 = vpop.permute.xlu1 %2652 }
 0x41f   : > { %v2686_v46 = vmul.f32 %v2653_v57, %v2494_v6  ;;  %v2648_v27 = vpop.permute.xlu0 %2647 }
 0x420   : > { %v2685_v58 = vmul.f32 %v2648_v27, %v2493_v33 }
 0x421   : > { %v2718_v3 = vpack.c.bf16 %v2686_v46, %v2686_v46 }
 0x422   : > { %v2717_v35 = vpack.c.bf16 %v2685_v58, %v2685_v58 }
 0x423   : > { %2751 = vst.msk [vmem:[%s3615_s18 + $0x7c] sm:$0xf] %vm2719_vm5, %v2718_v3 }
 0x424   : > { %2750 = vst.msk [vmem:[%s3615_s18 + $0x78] sm:$0xf] %vm2719_vm5, %v2717_v35 }
 0x425 PF: > { %s22_s25 = sadd.s32 1, %s3527_s25   ;;  %s4993_s19 = smov %s3515_s22 }
 0x426   : > { %p19_p12 = scmp.ge.s32.totalorder %s22_s25, 18   ;;  %s4994_s20 = smov %s3519_s23 }
 0x427   : > { %s4995_s21 = smov %s3523_s24  ;;  %s4996_s22 = smov %s5000_s0 }
 0x428   : > { %s4997_s23 = smov %s5004_s26  ;;  %s4998_s24 = smov %s5008_s27 }
 0x429   :  { %21 = sbr.rel (!%p19_p12) target bundleno = 10 (0xa), region = 76 }

// kernel: bilevel_routing_attention_nchw.7
= control target key start
LH: loop header
LB: loop body
LE: loop exit
PB: predicated region body
PF: predicated region fallthrough
CT: control target
= control target key end

     0   :  { %vm391_vm0 = vcmask 261120   ;;  %s1529_s0 = inlined_call_operand.vmem [shape: bf16[512,32], index: 0, kind: input, shape index: {}]   ;;  %s1530_s1 = inlined_call_operand.vmem [shape: bf16[512,32], index: 1, kind: input, shape index: {}]   ;;  %s1531_s2 = inlined_call_operand.vmem [shape: bf16[32,32], index: 2, kind: input, shape index: {}]   ;;  %s1532_s3 = inlined_call_operand.vmem [shape: f32[1,32], index: 3, kind: input, shape index: {}]   ;;  %s1533_s4 = inlined_call_operand.hbm [shape: f32[512,32], index: 4, kind: output, shape index: {}]  }
   0x1   :  { %v780_v0 = vld [vmem:[%s1531_s2 + $0x8] sm:$0xff]  ;;  %v779_v1 = vld [vmem:[%s1531_s2] sm:$0xff] }
   0x2   :  { %v782_v2 = vld [vmem:[%s1529_s0] sm:$0xff]   ;;  %494 = vmatpush.bf16.msra.mxu0 %v780_v0  ;;  %1099 = vmatpush.bf16.msra.mxu1 %v780_v0  ;;  %v1037_v34 = vld [vmem:[%s1529_s0 + $0x8] sm:$0xff]  }
   0x3   :  { %v783_v3 = vunpack.c.l.bf16 %v782_v2  ;;  %v784_v4 = vunpack.c.h.bf16 %v782_v2  ;;  %v910_v5 = vld [vmem:[%s1530_s1] sm:$0xff]   ;;  %1100 = vmatpush.bf16.msra.mxu2 %v780_v0  ;;  %1101 = vmatpush.bf16.msra.mxu3 %v780_v0  ;;  %v1068_v37 = vld [vmem:[%s1530_s1 + $0x8] sm:$0xff]  }
   0x4   :  { %v1044_v6 = vld [vmem:[%s1529_s0 + $0x40] sm:$0xff]   ;;  %v911_v8 = vunpack.c.l.bf16 %v910_v5  ;;  %v912_v9 = vunpack.c.h.bf16 %v910_v5  ;;  %v1045_v39 = vld [vmem:[%s1529_s0 + $0x48] sm:$0xff]  }
   0x5   :  { %v1075_v7 = vld [vmem:[%s1530_s1 + $0x40] sm:$0xff]   ;;  %v815_v10 = vunpack.c.l.bf16 %v1044_v6  ;;  %v816_v11 = vunpack.c.h.bf16 %v1044_v6  ;;  %v1076_v40 = vld [vmem:[%s1530_s1 + $0x48] sm:$0xff]  }
   0x6   :  { %v1052_v12 = vld [vmem:[%s1529_s0 + $0x80] sm:$0xff]   ;;  %v943_v15 = vunpack.c.l.bf16 %v1075_v7  ;;  %v944_v16 = vunpack.c.h.bf16 %v1075_v7  ;;  %v275_v20 = vadd.f32 %v911_v8, %v783_v3  ;;  %v276_v21 = vadd.f32 %v912_v9, %v784_v4  ;;  %495 = vmatpush.bf16.msra.mxu0 %v779_v1  ;;  %1102 = vmatpush.bf16.msra.mxu1 %v779_v1 }
   0x7   :  { %v1083_v13 = vld [vmem:[%s1530_s1 + $0x80] sm:$0xff]   ;;  %v847_v17 = vunpack.c.l.bf16 %v1052_v12  ;;  %v848_v18 = vunpack.c.h.bf16 %v1052_v12  ;;  %1103 = vmatpush.bf16.msra.mxu2 %v779_v1  ;;  %1104 = vmatpush.bf16.msra.mxu3 %v779_v1 }
   0x8   :  { %v1060_v14 = vld [vmem:[%s1529_s0 + $0xc0] sm:$0xff]   ;;  %v975_v22 = vunpack.c.l.bf16 %v1083_v13  ;;  %v976_v23 = vunpack.c.h.bf16 %v1083_v13  ;;  %v291_v24 = vadd.f32 %v943_v15, %v815_v10  ;;  %v292_v25 = vadd.f32 %v944_v16, %v816_v11 }
   0x9   :  { %v1091_v19 = vld [vmem:[%s1530_s1 + $0xc0] sm:$0xff]   ;;  %v879_v26 = vunpack.c.l.bf16 %v1060_v14  ;;  %v880_v27 = vunpack.c.h.bf16 %v1060_v14  ;;  %v339_v28 = vpack.c.bf16 %v276_v21, %v275_v20 }
   0xa   :  { %v307_v29 = vadd.f32 %v975_v22, %v847_v17  ;;  %v308_v30 = vadd.f32 %v976_v23, %v848_v18  ;;  %v1007_v31 = vunpack.c.l.bf16 %v1091_v19  ;;  %v347_v32 = vpack.c.bf16 %v292_v25, %v291_v24 }
   0xb   :  { %v1008_v33 = vunpack.c.h.bf16 %v1091_v19  ;;  %747 = vmatmul.msk.bf16.vlgmr.msra.gmra.mxu0 %vm391_vm0, %v339_v28 }
   0xc   :  { %v355_v35 = vpack.c.bf16 %v308_v30, %v307_v29  ;;  %v323_v36 = vadd.f32 %v1007_v31, %v879_v26  ;;  %755 = vmatmul.msk.bf16.vlgmr.msra.gmra.mxu1 %vm391_vm0, %v347_v32 }
   0xd   :  { %v324_v38 = vadd.f32 %v1008_v33, %v880_v27 }
   0xe   :  { %9 = vsyncpa [#allocation3], 0  ;;  %763 = vmatmul.msk.bf16.vlgmr.msra.gmra.mxu2 %vm391_vm0, %v355_v35  ;;  %v787_v41 = vunpack.c.l.bf16 %v1037_v34  ;;  %v788_v43 = vunpack.c.h.bf16 %v1037_v34  ;;  %v915_v44 = vunpack.c.l.bf16 %v1068_v37  ;;  %v916_v45 = vunpack.c.h.bf16 %v1068_v37  ;;  %v1053_v46 = vld [vmem:[%s1529_s0 + $0x88] sm:$0xff]   ;;  %v1038_v9 = vld [vmem:[%s1529_s0 + $0x10] sm:$0xff]   ;;  %s727_s15 = sshll.u32 %s1533_s4, 4  ;;  %s1136_s16 = smov 128   ;;  %s728_s15 = int_to_ptr.hbm [resolvable:$true] %s727_s15 }
   0xf   :  { %v363_v42 = vpack.c.bf16 %v324_v38, %v323_v36  ;;  %v1084_v47 = vld [vmem:[%s1530_s1 + $0x88] sm:$0xff]   ;;  %v819_v48 = vunpack.c.l.bf16 %v1045_v39  ;;  %v820_v49 = vunpack.c.h.bf16 %v1045_v39  ;;  %v947_v50 = vunpack.c.l.bf16 %v1076_v40  ;;  %v1069_v10 = vld [vmem:[%s1530_s1 + $0x10] sm:$0xff]   ;;  %s1137_s17 = smov 8  }
  0x10   :  { %v948_v51 = vunpack.c.h.bf16 %v1076_v40  ;;  %v851_v52 = vunpack.c.l.bf16 %v1053_v46  ;;  %v852_v53 = vunpack.c.h.bf16 %v1053_v46  ;;  %v979_v54 = vunpack.c.l.bf16 %v1084_v47  ;;  %v1061_v56 = vld [vmem:[%s1529_s0 + $0xc8] sm:$0xff]   ;;  %v1046_v12 = vld [vmem:[%s1529_s0 + $0x50] sm:$0xff]   ;;  %v1070_v46 = vld [vmem:[%s1530_s1 + $0x18] sm:$0xff]  }
  0x11   :  { %771 = vmatmul.msk.bf16.vlgmr.msra.gmra.mxu3 %vm391_vm0, %v363_v42  ;;  %v980_v55 = vunpack.c.h.bf16 %v1084_v47  ;;  %v1092_v57 = vld [vmem:[%s1530_s1 + $0xc8] sm:$0xff]   ;;  %v277_v58 = vadd.f32 %v915_v44, %v787_v41  ;;  %v278_v59 = vadd.f32 %v916_v45, %v788_v43  ;;  %v293_v60 = vadd.f32 %v947_v50, %v819_v48  ;;  %v1077_v13 = vld [vmem:[%s1530_s1 + $0x50] sm:$0xff]   ;;  %v1039_v45 = vld [vmem:[%s1529_s0 + $0x18] sm:$0xff]  }
  0x12   :  { %v294_v61 = vadd.f32 %v948_v51, %v820_v49  ;;  %v883_v62 = vunpack.c.l.bf16 %v1061_v56  ;;  %v884_v63 = vunpack.c.h.bf16 %v1061_v56  ;;  %v1011_v0 = vunpack.c.l.bf16 %v1092_v57  ;;  %v1054_v18 = vld [vmem:[%s1529_s0 + $0x90] sm:$0xff]   ;;  %v1047_v48 = vld [vmem:[%s1529_s0 + $0x58] sm:$0xff]  }
  0x13   :  { %v1012_v1 = vunpack.c.h.bf16 %v1092_v57  ;;  %v309_v2 = vadd.f32 %v979_v54, %v851_v52  ;;  %v310_v3 = vadd.f32 %v980_v55, %v852_v53  ;;  %v340_v4 = vpack.c.bf16 %v278_v59, %v277_v58  ;;  %v1085_v19 = vld [vmem:[%s1530_s1 + $0x90] sm:$0xff]   ;;  %v1078_v49 = vld [vmem:[%s1530_s1 + $0x58] sm:$0xff]  }
  0x14   :  { %v348_v5 = vpack.c.bf16 %v294_v61, %v293_v60  ;;  %v325_v6 = vadd.f32 %v1011_v0, %v883_v62  ;;  %v791_v14 = vunpack.c.l.bf16 %v1038_v9  ;;  %v792_v15 = vunpack.c.h.bf16 %v1038_v9  ;;  %v1062_v28 = vld [vmem:[%s1529_s0 + $0xd0] sm:$0xff]   ;;  %v1055_v54 = vld [vmem:[%s1529_s0 + $0x98] sm:$0xff]  }
  0x15   :  { %v326_v7 = vadd.f32 %v1012_v1, %v884_v63  ;;  %v356_v8 = vpack.c.bf16 %v310_v3, %v309_v2  ;;  %v919_v16 = vunpack.c.l.bf16 %v1069_v10  ;;  %v920_v17 = vunpack.c.h.bf16 %v1069_v10  ;;  %v1093_v29 = vld [vmem:[%s1530_s1 + $0xd0] sm:$0xff]   ;;  %v1086_v55 = vld [vmem:[%s1530_s1 + $0x98] sm:$0xff]  }
  0x16   :  { %v823_v20 = vunpack.c.l.bf16 %v1046_v12  ;;  %v824_v21 = vunpack.c.h.bf16 %v1046_v12  ;;  %v951_v22 = vunpack.c.l.bf16 %v1077_v13  ;;  %v952_v23 = vunpack.c.h.bf16 %v1077_v13  ;;  %v1063_v0 = vld [vmem:[%s1529_s0 + $0xd8] sm:$0xff]  }
  0x17   :  { %v364_v11 = vpack.c.bf16 %v326_v7, %v325_v6  ;;  %v855_v24 = vunpack.c.l.bf16 %v1054_v18  ;;  %v856_v25 = vunpack.c.h.bf16 %v1054_v18  ;;  %v983_v26 = vunpack.c.l.bf16 %v1085_v19  ;;  %v1094_v1 = vld [vmem:[%s1530_s1 + $0xd8] sm:$0xff]   ;;  %v1071_v18 = vld [vmem:[%s1530_s1 + $0x20] sm:$0xff]  }
  0x18   :  { %v984_v27 = vunpack.c.h.bf16 %v1085_v19  ;;  %v279_v30 = vadd.f32 %v919_v16, %v791_v14  ;;  %v280_v31 = vadd.f32 %v920_v17, %v792_v15  ;;  %v295_v32 = vadd.f32 %v951_v22, %v823_v20  ;;  %v1040_v17 = vld [vmem:[%s1529_s0 + $0x20] sm:$0xff]  }
  0x19   :  { %v296_v33 = vadd.f32 %v952_v23, %v824_v21  ;;  %v887_v34 = vunpack.c.l.bf16 %v1062_v28  ;;  %v888_v35 = vunpack.c.h.bf16 %v1062_v28  ;;  %v1015_v36 = vunpack.c.l.bf16 %v1093_v29  ;;  %v1048_v20 = vld [vmem:[%s1529_s0 + $0x60] sm:$0xff]  }
  0x1a   :  { %v1016_v37 = vunpack.c.h.bf16 %v1093_v29  ;;  %v311_v38 = vadd.f32 %v983_v26, %v855_v24  ;;  %v312_v39 = vadd.f32 %v984_v27, %v856_v25  ;;  %v341_v40 = vpack.c.bf16 %v280_v31, %v279_v30  ;;  %v1079_v21 = vld [vmem:[%s1530_s1 + $0x60] sm:$0xff]  }
  0x1b   :  { %748 = vmatmul.msk.bf16.gmra.mxu0 %vm391_vm0, %v340_v4  ;;  %v349_v41 = vpack.c.bf16 %v296_v33, %v295_v32  ;;  %v327_v42 = vadd.f32 %v1015_v36, %v887_v34  ;;  %v795_v50 = vunpack.c.l.bf16 %v1039_v45  ;;  %v796_v51 = vunpack.c.h.bf16 %v1039_v45  ;;  %v1056_v26 = vld [vmem:[%s1529_s0 + $0xa0] sm:$0xff]  }
  0x1c   :  { %756 = vmatmul.msk.bf16.gmra.mxu1 %vm391_vm0, %v348_v5  ;;  %v328_v43 = vadd.f32 %v1016_v37, %v888_v35  ;;  %v357_v44 = vpack.c.bf16 %v312_v39, %v311_v38  ;;  %v923_v52 = vunpack.c.l.bf16 %v1070_v46  ;;  %v924_v53 = vunpack.c.h.bf16 %v1070_v46  ;;  %v1087_v27 = vld [vmem:[%s1530_s1 + $0xa0] sm:$0xff]  }
  0x1d   :  { %v827_v56 = vunpack.c.l.bf16 %v1047_v48  ;;  %v828_v57 = vunpack.c.h.bf16 %v1047_v48  ;;  %v955_v58 = vunpack.c.l.bf16 %v1078_v49  ;;  %v956_v59 = vunpack.c.h.bf16 %v1078_v49  ;;  %v1064_v36 = vld [vmem:[%s1529_s0 + $0xe0] sm:$0xff]  }
  0x1e   :  { %764 = vmatmul.msk.bf16.gmra.mxu2 %vm391_vm0, %v356_v8  ;;  %v365_v47 = vpack.c.bf16 %v328_v43, %v327_v42  ;;  %v859_v60 = vunpack.c.l.bf16 %v1055_v54  ;;  %v860_v61 = vunpack.c.h.bf16 %v1055_v54  ;;  %v987_v62 = vunpack.c.l.bf16 %v1086_v55  ;;  %v1095_v37 = vld [vmem:[%s1530_s1 + $0xe0] sm:$0xff]   ;;  %v1072_v54 = vld [vmem:[%s1530_s1 + $0x28] sm:$0xff]  }
  0x1f   :  { %v988_v63 = vunpack.c.h.bf16 %v1086_v55  ;;  %v281_v2 = vadd.f32 %v923_v52, %v795_v50  ;;  %v282_v3 = vadd.f32 %v924_v53, %v796_v51  ;;  %v297_v4 = vadd.f32 %v955_v58, %v827_v56  ;;  %v1041_v53 = vld [vmem:[%s1529_s0 + $0x28] sm:$0xff]  }
  0x20   :  { %v298_v5 = vadd.f32 %v956_v59, %v828_v57  ;;  %v891_v6 = vunpack.c.l.bf16 %v1063_v0  ;;  %v892_v7 = vunpack.c.h.bf16 %v1063_v0  ;;  %v1019_v8 = vunpack.c.l.bf16 %v1094_v1  ;;  %v1049_v56 = vld [vmem:[%s1529_s0 + $0x68] sm:$0xff]  }
  0x21   :  { %772 = vmatmul.msk.bf16.gmra.mxu3 %vm391_vm0, %v364_v11  ;;  %v1020_v9 = vunpack.c.h.bf16 %v1094_v1  ;;  %v313_v10 = vadd.f32 %v987_v62, %v859_v60  ;;  %v314_v11 = vadd.f32 %v988_v63, %v860_v61  ;;  %v342_v12 = vpack.c.bf16 %v282_v3, %v281_v2  ;;  %v1080_v57 = vld [vmem:[%s1530_s1 + $0x68] sm:$0xff]  }
  0x22   :  { %v350_v13 = vpack.c.bf16 %v298_v5, %v297_v4  ;;  %v329_v14 = vadd.f32 %v1019_v8, %v891_v6  ;;  %v799_v22 = vunpack.c.l.bf16 %v1040_v17  ;;  %v800_v23 = vunpack.c.h.bf16 %v1040_v17  ;;  %v1057_v62 = vld [vmem:[%s1529_s0 + $0xa8] sm:$0xff]  }
  0x23   :  { %v330_v15 = vadd.f32 %v1020_v9, %v892_v7  ;;  %v358_v16 = vpack.c.bf16 %v314_v11, %v313_v10  ;;  %v927_v24 = vunpack.c.l.bf16 %v1071_v18  ;;  %v928_v25 = vunpack.c.h.bf16 %v1071_v18  ;;  %v1088_v63 = vld [vmem:[%s1530_s1 + $0xa8] sm:$0xff]  }
  0x24   :  { %v831_v28 = vunpack.c.l.bf16 %v1048_v20  ;;  %v832_v29 = vunpack.c.h.bf16 %v1048_v20  ;;  %v959_v30 = vunpack.c.l.bf16 %v1079_v21  ;;  %v960_v31 = vunpack.c.h.bf16 %v1079_v21  ;;  %v1065_v8 = vld [vmem:[%s1529_s0 + $0xe8] sm:$0xff]  }
  0x25   :  { %v366_v19 = vpack.c.bf16 %v330_v15, %v329_v14  ;;  %v863_v32 = vunpack.c.l.bf16 %v1056_v26  ;;  %v864_v33 = vunpack.c.h.bf16 %v1056_v26  ;;  %v991_v34 = vunpack.c.l.bf16 %v1087_v27  ;;  %v1096_v9 = vld [vmem:[%s1530_s1 + $0xe8] sm:$0xff]   ;;  %v1073_v26 = vld [vmem:[%s1530_s1 + $0x30] sm:$0xff]  }
  0x26   :  { %v992_v35 = vunpack.c.h.bf16 %v1087_v27  ;;  %v283_v38 = vadd.f32 %v927_v24, %v799_v22  ;;  %v284_v39 = vadd.f32 %v928_v25, %v800_v23  ;;  %v895_v42 = vunpack.c.l.bf16 %v1064_v36  ;;  %v1042_v25 = vld [vmem:[%s1529_s0 + $0x30] sm:$0xff]  }
  0x27   :  { %v896_v43 = vunpack.c.h.bf16 %v1064_v36  ;;  %v1024_v45 = vunpack.c.h.bf16 %v1095_v37  ;;  %v315_v46 = vadd.f32 %v991_v34, %v863_v32  ;;  %v803_v58 = vunpack.c.l.bf16 %v1041_v53  ;;  %v1058_v34 = vld [vmem:[%s1529_s0 + $0xb0] sm:$0xff]  }
  0x28   :  { %v343_v48 = vpack.c.bf16 %v284_v39, %v283_v38  ;;  %v804_v59 = vunpack.c.h.bf16 %v1041_v53  ;;  %v931_v60 = vunpack.c.l.bf16 %v1072_v54  ;;  %v932_v61 = vunpack.c.h.bf16 %v1072_v54 }
  0x29   :  { %v332_v51 = vadd.f32 %v1024_v45, %v896_v43  ;;  %v835_v0 = vunpack.c.l.bf16 %v1049_v56  ;;  %v836_v1 = vunpack.c.h.bf16 %v1049_v56  ;;  %v963_v2 = vunpack.c.l.bf16 %v1080_v57  ;;  %v1097_v45 = vld [vmem:[%s1530_s1 + $0xf0] sm:$0xff]  }
  0x2a   :  { %v964_v3 = vunpack.c.h.bf16 %v1080_v57  ;;  %v867_v4 = vunpack.c.l.bf16 %v1057_v62  ;;  %v868_v5 = vunpack.c.h.bf16 %v1057_v62  ;;  %v995_v6 = vunpack.c.l.bf16 %v1088_v63  ;;  %v1074_v62 = vld [vmem:[%s1530_s1 + $0x38] sm:$0xff]  }
  0x2b   :  { %749 = vmatmul.msk.bf16.gmra.mxu0 %vm391_vm0, %v341_v40  ;;  %v299_v40 = vadd.f32 %v959_v30, %v831_v28  ;;  %v996_v7 = vunpack.c.h.bf16 %v1088_v63  ;;  %v285_v10 = vadd.f32 %v931_v60, %v803_v58  ;;  %v286_v11 = vadd.f32 %v932_v61, %v804_v59  ;;  %v1050_v28 = vld [vmem:[%s1529_s0 + $0x70] sm:$0xff]   ;;  %v1043_v61 = vld [vmem:[%s1529_s0 + $0x38] sm:$0xff]  }
  0x2c   :  { %757 = vmatmul.msk.bf16.gmra.mxu1 %vm391_vm0, %v349_v41  ;;  %v300_v41 = vadd.f32 %v960_v31, %v832_v29  ;;  %v899_v14 = vunpack.c.l.bf16 %v1065_v8  ;;  %v900_v15 = vunpack.c.h.bf16 %v1065_v8  ;;  %v1028_v17 = vunpack.c.h.bf16 %v1096_v9  ;;  %v1081_v29 = vld [vmem:[%s1530_s1 + $0x70] sm:$0xff]  }
  0x2d   :  { %v317_v18 = vadd.f32 %v995_v6, %v867_v4  ;;  %v344_v20 = vpack.c.bf16 %v286_v11, %v285_v10  ;;  %v807_v30 = vunpack.c.l.bf16 %v1042_v25  ;;  %v808_v31 = vunpack.c.h.bf16 %v1042_v25  ;;  %v1059_v6 = vld [vmem:[%s1529_s0 + $0xb8] sm:$0xff]  }
  0x2e   :  { %765 = vmatmul.msk.bf16.gmra.mxu2 %vm391_vm0, %v357_v44  ;;  %v1023_v44 = vunpack.c.l.bf16 %v1095_v37  ;;  %v351_v49 = vpack.c.bf16 %v300_v41, %v299_v40  ;;  %v334_v23 = vadd.f32 %v1028_v17, %v900_v15  ;;  %v935_v32 = vunpack.c.l.bf16 %v1073_v26  ;;  %v1098_v17 = vld [vmem:[%s1530_s1 + $0xf8] sm:$0xff]  }
  0x2f   :  { %v839_v36 = vunpack.c.l.bf16 %v1050_v28  ;;  %v840_v37 = vunpack.c.h.bf16 %v1050_v28  ;;  %v967_v38 = vunpack.c.l.bf16 %v1081_v29  ;;  %v968_v39 = vunpack.c.h.bf16 %v1081_v29 }
  0x30   :  { %v331_v50 = vadd.f32 %v1023_v44, %v895_v42  ;;  %v871_v40 = vunpack.c.l.bf16 %v1058_v34  ;;  %v872_v41 = vunpack.c.h.bf16 %v1058_v34  ;;  %v1066_v44 = vld [vmem:[%s1529_s0 + $0xf0] sm:$0xff]   ;;  %v1032_v53 = vunpack.c.h.bf16 %v1097_v45  ;;  %v1396_v34 = vld [vmem:[%s1532_s3] ss:$0 sm:$0xff]  ;;  %s1135_s3 = smov [#allocation2]  }
  0x31   :  { %773 = vmatmul.msk.bf16.gmra.mxu3 %vm391_vm0, %v365_v47  ;;  %v316_v47 = vadd.f32 %v992_v35, %v864_v33  ;;  %v936_v33 = vunpack.c.h.bf16 %v1073_v26  ;;  %v1089_v35 = vld [vmem:[%s1530_s1 + $0xb0] sm:$0xff]   ;;  %v939_v4 = vunpack.c.l.bf16 %v1074_v62  ;;  %v1036_v25 = vunpack.c.h.bf16 %v1098_v17  ;;  %s725_s12 = sshll.u32 %s1135_s3, 4  ;;  %s726_s12 = int_to_ptr.vmem [resolvable:$true] %s725_s12 }
  0x32   :  { %v367_v55 = vpack.c.bf16 %v332_v51, %v331_v50  ;;  %v999_v42 = vunpack.c.l.bf16 %v1089_v35  ;;  %v1000_v43 = vunpack.c.h.bf16 %v1089_v35  ;;  %v903_v50 = vunpack.c.l.bf16 %v1066_v44 }
  0x33   :  { %v359_v52 = vpack.c.bf16 %v316_v47, %v315_v46  ;;  %v287_v46 = vadd.f32 %v935_v32, %v807_v30  ;;  %v288_v47 = vadd.f32 %v936_v33, %v808_v31  ;;  %v904_v51 = vunpack.c.h.bf16 %v1066_v44 }
  0x34   :  { %v319_v54 = vadd.f32 %v999_v42, %v871_v40 }
  0x35   :  { %v345_v56 = vpack.c.bf16 %v288_v47, %v287_v46  ;;  %v336_v59 = vadd.f32 %v1032_v53, %v904_v51 }
  0x3b   :  { %750 = vmatmul.msk.bf16.gmra.mxu0 %vm391_vm0, %v342_v12  ;;  %v301_v12 = vadd.f32 %v963_v2, %v835_v0  ;;  %v1051_v0 = vld [vmem:[%s1529_s0 + $0x78] sm:$0xff]   ;;  %v811_v2 = vunpack.c.l.bf16 %v1043_v61 }
  0x3c   :  { %758 = vmatmul.msk.bf16.gmra.mxu1 %vm391_vm0, %v350_v13  ;;  %v302_v13 = vadd.f32 %v964_v3, %v836_v1  ;;  %v1082_v1 = vld [vmem:[%s1530_s1 + $0x78] sm:$0xff]   ;;  %v812_v3 = vunpack.c.h.bf16 %v1043_v61  ;;  %v843_v8 = vunpack.c.l.bf16 %v1051_v0 }
  0x3d   :  { %v971_v10 = vunpack.c.l.bf16 %v1082_v1  ;;  %v972_v11 = vunpack.c.h.bf16 %v1082_v1 }
  0x3e   :  { %766 = vmatmul.msk.bf16.gmra.mxu2 %vm391_vm0, %v358_v16  ;;  %v1027_v16 = vunpack.c.l.bf16 %v1096_v9  ;;  %v352_v21 = vpack.c.bf16 %v302_v13, %v301_v12  ;;  %v844_v9 = vunpack.c.h.bf16 %v1051_v0  ;;  %v875_v12 = vunpack.c.l.bf16 %v1059_v6 }
  0x3f   :  { %v876_v13 = vunpack.c.h.bf16 %v1059_v6 }
  0x40   :  { %v333_v22 = vadd.f32 %v1027_v16, %v899_v14  ;;  %v1067_v16 = vld [vmem:[%s1529_s0 + $0xf8] sm:$0xff]  }
  0x41   :  { %774 = vmatmul.msk.bf16.gmra.mxu3 %vm391_vm0, %v366_v19  ;;  %v318_v19 = vadd.f32 %v996_v7, %v868_v5  ;;  %v940_v5 = vunpack.c.h.bf16 %v1074_v62  ;;  %v1090_v7 = vld [vmem:[%s1530_s1 + $0xb8] sm:$0xff]  }
  0x42   :  { %v368_v27 = vpack.c.bf16 %v334_v23, %v333_v22  ;;  %v1003_v14 = vunpack.c.l.bf16 %v1090_v7  ;;  %v1004_v15 = vunpack.c.h.bf16 %v1090_v7  ;;  %v907_v22 = vunpack.c.l.bf16 %v1067_v16 }
  0x43   :  { %v360_v24 = vpack.c.bf16 %v318_v19, %v317_v18  ;;  %v289_v18 = vadd.f32 %v939_v4, %v811_v2  ;;  %v290_v19 = vadd.f32 %v940_v5, %v812_v3  ;;  %v908_v23 = vunpack.c.h.bf16 %v1067_v16 }
  0x44   :  { %v321_v26 = vadd.f32 %v1003_v14, %v875_v12 }
  0x45   :  { %v346_v28 = vpack.c.bf16 %v290_v19, %v289_v18  ;;  %v338_v31 = vadd.f32 %v1036_v25, %v908_v23 }
  0x4b   :  { %751 = vmatmul.msk.bf16.gmra.mxu0 %vm391_vm0, %v343_v48  ;;  %v303_v48 = vadd.f32 %v967_v38, %v839_v36 }
  0x4c   :  { %759 = vmatmul.msk.bf16.gmra.mxu1 %vm391_vm0, %v351_v49  ;;  %v304_v49 = vadd.f32 %v968_v39, %v840_v37 }
  0x4e   :  { %767 = vmatmul.msk.bf16.gmra.mxu2 %vm391_vm0, %v359_v52  ;;  %v1031_v52 = vunpack.c.l.bf16 %v1097_v45  ;;  %v353_v57 = vpack.c.bf16 %v304_v49, %v303_v48 }
  0x50   :  { %v335_v58 = vadd.f32 %v1031_v52, %v903_v50 }
  0x51   :  { %775 = vmatmul.msk.bf16.gmra.mxu3 %vm391_vm0, %v367_v55  ;;  %v320_v55 = vadd.f32 %v1000_v43, %v872_v41 }
  0x52   :  { %v369_v63 = vpack.c.bf16 %v336_v59, %v335_v58 }
  0x53   :  { %v361_v60 = vpack.c.bf16 %v320_v55, %v319_v54 }
  0x5b   :  { %752 = vmatmul.msk.bf16.gmra.mxu0 %vm391_vm0, %v344_v20  ;;  %v305_v20 = vadd.f32 %v971_v10, %v843_v8 }
  0x5c   :  { %760 = vmatmul.msk.bf16.gmra.mxu1 %vm391_vm0, %v352_v21  ;;  %v306_v21 = vadd.f32 %v972_v11, %v844_v9 }
  0x5e   :  { %768 = vmatmul.msk.bf16.gmra.mxu2 %vm391_vm0, %v360_v24  ;;  %v1035_v24 = vunpack.c.l.bf16 %v1098_v17  ;;  %v354_v29 = vpack.c.bf16 %v306_v21, %v305_v20 }
  0x60   :  { %v337_v30 = vadd.f32 %v1035_v24, %v907_v22 }
  0x61   :  { %776 = vmatmul.msk.bf16.gmra.mxu3 %vm391_vm0, %v368_v27  ;;  %v322_v27 = vadd.f32 %v1004_v15, %v876_v13 }
  0x62   :  { %v370_v33 = vpack.c.bf16 %v338_v31, %v337_v30 }
  0x63   :  { %v362_v32 = vpack.c.bf16 %v322_v27, %v321_v26 }
  0x6b   :  { %753 = vmatmul.msk.bf16.gmra.mxu0 %vm391_vm0, %v345_v56 }
  0x6c   :  { %761 = vmatmul.msk.bf16.gmra.mxu1 %vm391_vm0, %v353_v57 }
  0x6e   :  { %769 = vmatmul.msk.bf16.gmra.mxu2 %vm391_vm0, %v361_v60 }
  0x71   :  { %777 = vmatmul.msk.bf16.gmra.mxu3 %vm391_vm0, %v369_v63 }
  0x7b   :  { %754 = vmatmul.msk.bf16.gmra.mxu0 %vm391_vm0, %v346_v28 }
  0x7c   :  { %762 = vmatmul.msk.bf16.gmra.mxu1 %vm391_vm0, %v354_v29 }
  0x7e   :  { %770 = vmatmul.msk.bf16.gmra.mxu2 %vm391_vm0, %v362_v32 }
  0x81   :  { %778 = vmatmul.msk.bf16.gmra.mxu3 %vm391_vm0, %v370_v33 }
  0x88   :  { %v497_v35 = vpop.f32.mrf.mxu0 }
  0x89   :  { %v537_v36 = vpop.f32.mrf.mxu1  ;;  %v498_v37 = vadd.f32 %v1396_v34, %v497_v35 }
  0x8a   :  { %v538_v38 = vadd.f32 %v1396_v34, %v537_v36 }
  0x8b   :  { %657 = vst.msk [vmem:[#allocation2] sm:$0xff] %vm391_vm0, %v498_v37 }
  0x8c   :  { %673 = vst.msk [vmem:[#allocation2 + $0x80] sm:$0xff] %vm391_vm0, %v538_v38 }
  0x90   :  { %v499_v41 = vpop.f32.mrf.mxu0 }
  0x91   :  { %v577_v39 = vpop.f32.mrf.mxu2  ;;  %v539_v42 = vpop.f32.mrf.mxu1  ;;  %v500_v43 = vadd.f32 %v1396_v34, %v499_v41 }
  0x92   :  { %v578_v40 = vadd.f32 %v1396_v34, %v577_v39  ;;  %v540_v44 = vadd.f32 %v1396_v34, %v539_v42 }
  0x93   :  { %658 = vst.msk [vmem:[#allocation2 + $0x8] sm:$0xff] %vm391_vm0, %v500_v43 }
  0x94   :  { %689 = vst.msk [vmem:[#allocation2 + $0x100] sm:$0xff] %vm391_vm0, %v578_v40  ;;  %v617_v45 = vpop.f32.mrf.mxu3 }
  0x95   :  { %v618_v46 = vadd.f32 %v1396_v34, %v617_v45  ;;  %674 = vst.msk [vmem:[#allocation2 + $0x88] sm:$0xff] %vm391_vm0, %v540_v44 }
  0x97   :  { %705 = vst.msk [vmem:[#allocation2 + $0x180] sm:$0xff] %vm391_vm0, %v618_v46 }
  0x98   :  { %v502_v49 = vpop.f32.mrf.mxu0 }
  0x99   :  { %v579_v47 = vpop.f32.mrf.mxu2  ;;  %v542_v50 = vpop.f32.mrf.mxu1  ;;  %v503_v51 = vadd.f32 %v1396_v34, %v502_v49 }
  0x9a   :  { %v580_v48 = vadd.f32 %v1396_v34, %v579_v47  ;;  %v543_v52 = vadd.f32 %v1396_v34, %v542_v50 }
  0x9b   :  { %659 = vst.msk [vmem:[#allocation2 + $0x10] sm:$0xff] %vm391_vm0, %v503_v51 }
  0x9c   :  { %690 = vst.msk [vmem:[#allocation2 + $0x108] sm:$0xff] %vm391_vm0, %v580_v48  ;;  %v619_v53 = vpop.f32.mrf.mxu3 }
  0x9d   :  { %v620_v54 = vadd.f32 %v1396_v34, %v619_v53  ;;  %675 = vst.msk [vmem:[#allocation2 + $0x90] sm:$0xff] %vm391_vm0, %v543_v52 }
  0x9f   :  { %706 = vst.msk [vmem:[#allocation2 + $0x188] sm:$0xff] %vm391_vm0, %v620_v54 }
  0xa0   :  { %v504_v57 = vpop.f32.mrf.mxu0 }
  0xa1   :  { %v582_v55 = vpop.f32.mrf.mxu2  ;;  %v544_v58 = vpop.f32.mrf.mxu1  ;;  %v505_v59 = vadd.f32 %v1396_v34, %v504_v57 }
  0xa2   :  { %v583_v56 = vadd.f32 %v1396_v34, %v582_v55  ;;  %v545_v60 = vadd.f32 %v1396_v34, %v544_v58 }
  0xa3   :  { %660 = vst.msk [vmem:[#allocation2 + $0x18] sm:$0xff] %vm391_vm0, %v505_v59 }
  0xa4   :  { %691 = vst.msk [vmem:[#allocation2 + $0x110] sm:$0xff] %vm391_vm0, %v583_v56  ;;  %v622_v61 = vpop.f32.mrf.mxu3 }
  0xa5   :  { %v623_v62 = vadd.f32 %v1396_v34, %v622_v61  ;;  %676 = vst.msk [vmem:[#allocation2 + $0x98] sm:$0xff] %vm391_vm0, %v545_v60 }
  0xa7   :  { %707 = vst.msk [vmem:[#allocation2 + $0x190] sm:$0xff] %vm391_vm0, %v623_v62 }
  0xa8   :  { %v507_v1 = vpop.f32.mrf.mxu0 }
  0xa9   :  { %v584_v63 = vpop.f32.mrf.mxu2  ;;  %v547_v2 = vpop.f32.mrf.mxu1  ;;  %v508_v3 = vadd.f32 %v1396_v34, %v507_v1 }
  0xaa   :  { %v585_v0 = vadd.f32 %v1396_v34, %v584_v63  ;;  %v548_v4 = vadd.f32 %v1396_v34, %v547_v2 }
  0xab   :  { %661 = vst.msk [vmem:[#allocation2 + $0x20] sm:$0xff] %vm391_vm0, %v508_v3 }
  0xac   :  { %692 = vst.msk [vmem:[#allocation2 + $0x118] sm:$0xff] %vm391_vm0, %v585_v0  ;;  %v624_v5 = vpop.f32.mrf.mxu3 }
  0xad   :  { %v625_v6 = vadd.f32 %v1396_v34, %v624_v5  ;;  %677 = vst.msk [vmem:[#allocation2 + $0xa0] sm:$0xff] %vm391_vm0, %v548_v4 }
  0xaf   :  { %708 = vst.msk [vmem:[#allocation2 + $0x198] sm:$0xff] %vm391_vm0, %v625_v6 }
  0xb0   :  { %v509_v9 = vpop.f32.mrf.mxu0 }
  0xb1   :  { %v587_v7 = vpop.f32.mrf.mxu2  ;;  %v549_v10 = vpop.f32.mrf.mxu1  ;;  %v510_v11 = vadd.f32 %v1396_v34, %v509_v9 }
  0xb2   :  { %v588_v8 = vadd.f32 %v1396_v34, %v587_v7  ;;  %v550_v12 = vadd.f32 %v1396_v34, %v549_v10 }
  0xb3   :  { %662 = vst.msk [vmem:[#allocation2 + $0x28] sm:$0xff] %vm391_vm0, %v510_v11 }
  0xb4   :  { %693 = vst.msk [vmem:[#allocation2 + $0x120] sm:$0xff] %vm391_vm0, %v588_v8  ;;  %v627_v13 = vpop.f32.mrf.mxu3 }
  0xb5   :  { %v628_v14 = vadd.f32 %v1396_v34, %v627_v13  ;;  %678 = vst.msk [vmem:[#allocation2 + $0xa8] sm:$0xff] %vm391_vm0, %v550_v12 }
  0xb7   :  { %709 = vst.msk [vmem:[#allocation2 + $0x1a0] sm:$0xff] %vm391_vm0, %v628_v14 }
  0xb8   :  { %v512_v17 = vpop.f32.mrf.mxu0 }
  0xb9   :  { %v589_v15 = vpop.f32.mrf.mxu2  ;;  %v552_v18 = vpop.f32.mrf.mxu1  ;;  %v513_v19 = vadd.f32 %v1396_v34, %v512_v17 }
  0xba   :  { %v590_v16 = vadd.f32 %v1396_v34, %v589_v15  ;;  %v553_v20 = vadd.f32 %v1396_v34, %v552_v18 }
  0xbb   :  { %663 = vst.msk [vmem:[#allocation2 + $0x30] sm:$0xff] %vm391_vm0, %v513_v19 }
  0xbc   :  { %694 = vst.msk [vmem:[#allocation2 + $0x128] sm:$0xff] %vm391_vm0, %v590_v16  ;;  %v629_v21 = vpop.f32.mrf.mxu3 }
  0xbd   :  { %v630_v22 = vadd.f32 %v1396_v34, %v629_v21  ;;  %679 = vst.msk [vmem:[#allocation2 + $0xb0] sm:$0xff] %vm391_vm0, %v553_v20 }
  0xbf   :  { %710 = vst.msk [vmem:[#allocation2 + $0x1a8] sm:$0xff] %vm391_vm0, %v630_v22 }
  0xc0   :  { %v514_v25 = vpop.f32.mrf.mxu0 }
  0xc1   :  { %v592_v23 = vpop.f32.mrf.mxu2  ;;  %v554_v26 = vpop.f32.mrf.mxu1  ;;  %v515_v27 = vadd.f32 %v1396_v34, %v514_v25 }
  0xc2   :  { %v593_v24 = vadd.f32 %v1396_v34, %v592_v23  ;;  %v555_v28 = vadd.f32 %v1396_v34, %v554_v26 }
  0xc3   :  { %664 = vst.msk [vmem:[#allocation2 + $0x38] sm:$0xff] %vm391_vm0, %v515_v27 }
  0xc4   :  { %695 = vst.msk [vmem:[#allocation2 + $0x130] sm:$0xff] %vm391_vm0, %v593_v24  ;;  %v632_v29 = vpop.f32.mrf.mxu3 }
  0xc5   :  { %v633_v30 = vadd.f32 %v1396_v34, %v632_v29  ;;  %680 = vst.msk [vmem:[#allocation2 + $0xb8] sm:$0xff] %vm391_vm0, %v555_v28 }
  0xc7   :  { %711 = vst.msk [vmem:[#allocation2 + $0x1b0] sm:$0xff] %vm391_vm0, %v633_v30 }
  0xc8   :  { %v517_v33 = vpop.f32.mrf.mxu0 }
  0xc9   :  { %v594_v31 = vpop.f32.mrf.mxu2  ;;  %v557_v35 = vpop.f32.mrf.mxu1  ;;  %v518_v36 = vadd.f32 %v1396_v34, %v517_v33 }
  0xca   :  { %v595_v32 = vadd.f32 %v1396_v34, %v594_v31  ;;  %v558_v37 = vadd.f32 %v1396_v34, %v557_v35 }
  0xcb   :  { %665 = vst.msk [vmem:[#allocation2 + $0x40] sm:$0xff] %vm391_vm0, %v518_v36 }
  0xcc   :  { %696 = vst.msk [vmem:[#allocation2 + $0x138] sm:$0xff] %vm391_vm0, %v595_v32  ;;  %v634_v38 = vpop.f32.mrf.mxu3 }
  0xcd   :  { %v635_v39 = vadd.f32 %v1396_v34, %v634_v38  ;;  %681 = vst.msk [vmem:[#allocation2 + $0xc0] sm:$0xff] %vm391_vm0, %v558_v37 }
  0xcf   :  { %712 = vst.msk [vmem:[#allocation2 + $0x1b8] sm:$0xff] %vm391_vm0, %v635_v39 }
  0xd0   :  { %v519_v42 = vpop.f32.mrf.mxu0 }
  0xd1   :  { %v597_v40 = vpop.f32.mrf.mxu2  ;;  %v559_v43 = vpop.f32.mrf.mxu1  ;;  %v520_v44 = vadd.f32 %v1396_v34, %v519_v42 }
  0xd2   :  { %v598_v41 = vadd.f32 %v1396_v34, %v597_v40  ;;  %v560_v45 = vadd.f32 %v1396_v34, %v559_v43 }
  0xd3   :  { %666 = vst.msk [vmem:[#allocation2 + $0x48] sm:$0xff] %vm391_vm0, %v520_v44 }
  0xd4   :  { %697 = vst.msk [vmem:[#allocation2 + $0x140] sm:$0xff] %vm391_vm0, %v598_v41  ;;  %v637_v46 = vpop.f32.mrf.mxu3 }
  0xd5   :  { %v638_v47 = vadd.f32 %v1396_v34, %v637_v46  ;;  %682 = vst.msk [vmem:[#allocation2 + $0xc8] sm:$0xff] %vm391_vm0, %v560_v45 }
  0xd7   :  { %713 = vst.msk [vmem:[#allocation2 + $0x1c0] sm:$0xff] %vm391_vm0, %v638_v47 }
  0xd8   :  { %v522_v50 = vpop.f32.mrf.mxu0 }
  0xd9   :  { %v599_v48 = vpop.f32.mrf.mxu2  ;;  %v562_v51 = vpop.f32.mrf.mxu1  ;;  %v523_v52 = vadd.f32 %v1396_v34, %v522_v50 }
  0xda   :  { %v600_v49 = vadd.f32 %v1396_v34, %v599_v48  ;;  %v563_v53 = vadd.f32 %v1396_v34, %v562_v51 }
  0xdb   :  { %667 = vst.msk [vmem:[#allocation2 + $0x50] sm:$0xff] %vm391_vm0, %v523_v52 }
  0xdc   :  { %698 = vst.msk [vmem:[#allocation2 + $0x148] sm:$0xff] %vm391_vm0, %v600_v49  ;;  %v639_v54 = vpop.f32.mrf.mxu3 }
  0xdd   :  { %v640_v55 = vadd.f32 %v1396_v34, %v639_v54  ;;  %683 = vst.msk [vmem:[#allocation2 + $0xd0] sm:$0xff] %vm391_vm0, %v563_v53 }
  0xdf   :  { %714 = vst.msk [vmem:[#allocation2 + $0x1c8] sm:$0xff] %vm391_vm0, %v640_v55 }
  0xe0   :  { %v524_v58 = vpop.f32.mrf.mxu0 }
  0xe1   :  { %v602_v56 = vpop.f32.mrf.mxu2  ;;  %v564_v59 = vpop.f32.mrf.mxu1  ;;  %v525_v60 = vadd.f32 %v1396_v34, %v524_v58 }
  0xe2   :  { %v603_v57 = vadd.f32 %v1396_v34, %v602_v56  ;;  %v565_v61 = vadd.f32 %v1396_v34, %v564_v59 }
  0xe3   :  { %668 = vst.msk [vmem:[#allocation2 + $0x58] sm:$0xff] %vm391_vm0, %v525_v60 }
  0xe4   :  { %699 = vst.msk [vmem:[#allocation2 + $0x150] sm:$0xff] %vm391_vm0, %v603_v57  ;;  %v642_v62 = vpop.f32.mrf.mxu3 }
  0xe5   :  { %v643_v63 = vadd.f32 %v1396_v34, %v642_v62  ;;  %684 = vst.msk [vmem:[#allocation2 + $0xd8] sm:$0xff] %vm391_vm0, %v565_v61 }
  0xe7   :  { %715 = vst.msk [vmem:[#allocation2 + $0x1d0] sm:$0xff] %vm391_vm0, %v643_v63 }
  0xe8   :  { %v527_v2 = vpop.f32.mrf.mxu0 }
  0xe9   :  { %v604_v0 = vpop.f32.mrf.mxu2  ;;  %v567_v3 = vpop.f32.mrf.mxu1  ;;  %v528_v4 = vadd.f32 %v1396_v34, %v527_v2 }
  0xea   :  { %v605_v1 = vadd.f32 %v1396_v34, %v604_v0  ;;  %v568_v5 = vadd.f32 %v1396_v34, %v567_v3 }
  0xeb   :  { %669 = vst.msk [vmem:[#allocation2 + $0x60] sm:$0xff] %vm391_vm0, %v528_v4 }
  0xec   :  { %700 = vst.msk [vmem:[#allocation2 + $0x158] sm:$0xff] %vm391_vm0, %v605_v1  ;;  %v644_v6 = vpop.f32.mrf.mxu3 }
  0xed   :  { %v645_v7 = vadd.f32 %v1396_v34, %v644_v6  ;;  %685 = vst.msk [vmem:[#allocation2 + $0xe0] sm:$0xff] %vm391_vm0, %v568_v5 }
  0xef   :  { %716 = vst.msk [vmem:[#allocation2 + $0x1d8] sm:$0xff] %vm391_vm0, %v645_v7 }
  0xf0   :  { %v529_v10 = vpop.f32.mrf.mxu0 }
  0xf1   :  { %v607_v8 = vpop.f32.mrf.mxu2  ;;  %v569_v11 = vpop.f32.mrf.mxu1  ;;  %v530_v12 = vadd.f32 %v1396_v34, %v529_v10 }
  0xf2   :  { %v608_v9 = vadd.f32 %v1396_v34, %v607_v8  ;;  %v570_v13 = vadd.f32 %v1396_v34, %v569_v11 }
  0xf3   :  { %670 = vst.msk [vmem:[#allocation2 + $0x68] sm:$0xff] %vm391_vm0, %v530_v12 }
  0xf4   :  { %701 = vst.msk [vmem:[#allocation2 + $0x160] sm:$0xff] %vm391_vm0, %v608_v9  ;;  %v647_v14 = vpop.f32.mrf.mxu3 }
  0xf5   :  { %v648_v15 = vadd.f32 %v1396_v34, %v647_v14  ;;  %686 = vst.msk [vmem:[#allocation2 + $0xe8] sm:$0xff] %vm391_vm0, %v570_v13 }
  0xf7   :  { %717 = vst.msk [vmem:[#allocation2 + $0x1e0] sm:$0xff] %vm391_vm0, %v648_v15 }
  0xf8   :  { %v532_v18 = vpop.f32.mrf.mxu0 }
  0xf9   :  { %v609_v16 = vpop.f32.mrf.mxu2  ;;  %v572_v19 = vpop.f32.mrf.mxu1  ;;  %v533_v20 = vadd.f32 %v1396_v34, %v532_v18 }
  0xfa   :  { %v610_v17 = vadd.f32 %v1396_v34, %v609_v16  ;;  %v573_v21 = vadd.f32 %v1396_v34, %v572_v19 }
  0xfb   :  { %671 = vst.msk [vmem:[#allocation2 + $0x70] sm:$0xff] %vm391_vm0, %v533_v20 }
  0xfc   :  { %702 = vst.msk [vmem:[#allocation2 + $0x168] sm:$0xff] %vm391_vm0, %v610_v17  ;;  %v649_v22 = vpop.f32.mrf.mxu3 }
  0xfd   :  { %v650_v23 = vadd.f32 %v1396_v34, %v649_v22  ;;  %687 = vst.msk [vmem:[#allocation2 + $0xf0] sm:$0xff] %vm391_vm0, %v573_v21 }
  0xff   :  { %718 = vst.msk [vmem:[#allocation2 + $0x1e8] sm:$0xff] %vm391_vm0, %v650_v23 }
 0x100   :  { %v534_v26 = vpop.f32.mrf.mxu0 }
 0x101   :  { %v612_v24 = vpop.f32.mrf.mxu2  ;;  %v574_v27 = vpop.f32.mrf.mxu1  ;;  %v535_v28 = vadd.f32 %v1396_v34, %v534_v26 }
 0x102   :  { %v613_v25 = vadd.f32 %v1396_v34, %v612_v24  ;;  %v575_v29 = vadd.f32 %v1396_v34, %v574_v27 }
 0x103   :  { %672 = vst.msk [vmem:[#allocation2 + $0x78] sm:$0xff] %vm391_vm0, %v535_v28 }
 0x104   :  { %703 = vst.msk [vmem:[#allocation2 + $0x170] sm:$0xff] %vm391_vm0, %v613_v25  ;;  %v652_v30 = vpop.f32.mrf.mxu3 }
 0x105   :  { %v653_v31 = vadd.f32 %v1396_v34, %v652_v30  ;;  %688 = vst.msk [vmem:[#allocation2 + $0xf8] sm:$0xff] %vm391_vm0, %v575_v29 }
 0x107   :  { %719 = vst.msk [vmem:[#allocation2 + $0x1f0] sm:$0xff] %vm391_vm0, %v653_v31 }
 0x109   :  { %v614_v32 = vpop.f32.mrf.mxu2 }
 0x10a   :  { %v615_v33 = vadd.f32 %v1396_v34, %v614_v32 }
 0x10c   :  { %704 = vst.msk [vmem:[#allocation2 + $0x178] sm:$0xff] %vm391_vm0, %v615_v33  ;;  %v654_v35 = vpop.f32.mrf.mxu3 }
 0x10d   :  { %v655_v36 = vadd.f32 %v1396_v34, %v654_v35 }
 0x10f   :  { %720 = vst.msk [vmem:[#allocation2 + $0x1f8] sm:$0xff] %vm391_vm0, %v655_v36 }
 0x110   :  { %733 = dma.vmem_to_hbm [thread:$0]  %s726_s12, 8192, %s728_s15, [#allocation3], %s1136_s16, %s1136_s16, %s1137_s17  }
 0x111   :  { %1133 = dma.done.wait [#allocation3], 8192  }
 0x112   :  { %1134 = vsyncadd [#allocation3], 4294959104 }
 0x113   :  { %738 = vsyncpa [#allocation3], 1 }

// kernel: bilevel_routing_attention_nchw.6
= control target key start
LH: loop header
LB: loop body
LE: loop exit
PB: predicated region body
PF: predicated region fallthrough
CT: control target
= control target key end

     0   :  { %s2666_s12 = smov 0   ;;  %s4227_s0 = inlined_call_operand.vmem [shape: bf16[2,18,18,32], index: 0, kind: input, shape index: {}]   ;;  %s4228_s1 = inlined_call_operand.vmem [shape: f32[3,3,32], index: 1, kind: input, shape index: {}]   ;;  %s4229_s2 = inlined_call_operand.vmem [shape: f32[1,32], index: 2, kind: input, shape index: {}]   ;;  %s4230_s3 = inlined_call_operand.vmem [shape: bf16[2,16,16,32], index: 3, kind: output, shape index: {}]  }
   0x1 LB: > { %s2335_s13 = sadd.s32 4294967295, %s2644_s12   ;;  %p2339_p0 = scmp.ge.s32.totalorder %s2644_s12, 1  ;;  %s2644_s12 = sphi %s2666_s12, %s13_s12  }
   0x2   : > { %p137_p1 = scmp.lt.s32.totalorder %s2644_s12, 3 }
   0x4   : > { %p138_p2 = pnand %p2339_p0, %p137_p1 }
   0x5   : > { %p161_p3 = scmp.lt.s32.totalorder (!%p138_p2), %s2335_s13, 1 }
   0x6   : > { %141 = sbr.rel (%p138_p2) target bundleno = 368 (0x170), region = 32 }
   0xb   : > { %s4232_s13 = smov (!%p161_p3, %s2335_s13), 1  ;;  %v2680_v0 = vld [vmem:[%s4228_s1] ss:$0 sm:$0xff]  ;;  %v2685_v1 = vld [vmem:[%s4228_s1 + $0x1] ss:$0 sm:$0xff]  ;;  %vm399_vm0 = vcmask 1046528  }
   0xc   : > { %s2599_s14 = smul.u32 216, %s4232_s13  ;;  %v2695_v2 = vld [vmem:[%s4228_s1 + $0x2] ss:$0 sm:$0xff]  ;;  %v2700_v3 = vld [vmem:[%s4228_s1 + $0x5] ss:$0 sm:$0xff]  ;;  %vm674_vm1 = vcmask 1045504  }
   0xd   : > { %v2709_v12 = vld [vmem:[%s4228_s1 + $0x6] ss:$0 sm:$0xff]  ;;  %v2722_v20 = vld [vmem:[%s4228_s1 + $0x4] ss:$0 sm:$0xff]  ;;  %v2729_v22 = vld [vmem:[%s4228_s1 + $0x9] ss:$0 sm:$0xff] }
   0xe   : > { %s2690_s21 = scalar_lea.vmem %s4227_s0, %s2599_s14  ;;  %v2740_v27 = vld [vmem:[%s4228_s1 + $0x8] ss:$0 sm:$0xff]  ;;  %v2747_v32 = vld [vmem:[%s4228_s1 + $0xa] ss:$0 sm:$0xff]  ;;  %vm2247_vm2 = vcmask 257024   ;;  %s2479_s11 = sshll.u32 %s4232_s13, 7 }
   0xf   : > { %v2481_v4 = vld [vmem:[%s2690_s21] sm:$0xff]   ;;  %v2343_v6 = vld [vmem:[%s2690_s21 + $0xc] sm:$0xff]   ;;  %v2591_v13 = vld [vmem:[%s2690_s21 + $0x18] sm:$0xff]   ;;  %s2831_s15 = scalar_lea.vmem %s4230_s3, %s2479_s11 }
  0x10   : > { %v544_v5 = vld [vmem:[%s2690_s21] sm:$0xe]  ;;  %v2482_v7 = vunpack.c.l.bf16 %v2481_v4  ;;  %v2483_v8 = vunpack.c.h.bf16 %v2481_v4  ;;  %v854_v10 = vunpack.c.l.bf16 %v2343_v6  ;;  %v2393_v11 = vld [vmem:[%s2690_s21 + $0xc] sm:$0xe]  ;;  %v855_v14 = vunpack.c.h.bf16 %v2343_v6  ;;  %v2460_v37 = vld [vmem:[%s2690_s21 + $0x18] sm:$0xe] }
  0x11   : > { %v561_v9 = vunpack.c.l.bf16 %v544_v5  ;;  %v1242_v15 = vunpack.c.l.bf16 %v2393_v11  ;;  %v2712_v16 = vunpack.c.l.bf16 %v2591_v13  ;;  %v2724_v21 = vunpack.c.h.bf16 %v2591_v13  ;;  %v269_v42 = vld [vmem:[%s2690_s21 + $0x8] sm:$0x1]  ;;  %v2376_v51 = vld [vmem:[%s2690_s21 + $0x14] sm:$0x1]  ;;  %v2443_v56 = vld [vmem:[%s2690_s21 + $0x20] sm:$0x1] }
  0x12   : > { %v303_v17 = vmul.f32 %v2685_v1, %v2482_v7  ;;  %v2716_v18 = vmul.f32 %v2685_v1, %v2483_v8  ;;  %v237_v23 = vmul.f32 %v2680_v0, %v2482_v7  ;;  %v579_v24 = vmul.f32 %v2695_v2, %v2483_v8 }
  0x13   : > { %v578_v19 = vmul.f32 %v2695_v2, %v561_v9  ;;  %v985_v25 = vmul.f32 %v2700_v3, %v854_v10  ;;  %v2735_v26 = vmul.f32 %v2700_v3, %v855_v14  ;;  %v1259_v31 = vmul.f32 %v2709_v12, %v1242_v15 }
  0x14   : > { %v400_v28 = vrot.slane %v303_v17, 1  ;;  %v401_v29 = vrot.slane %v2716_v18, 1  ;;  %v676_v33 = vrot.slane %v579_v24, 2  ;;  %v1260_v36 = vmul.f32 %v2709_v12, %v855_v14 }
  0x15   : > { %v675_v30 = vrot.slane %v578_v19, 2  ;;  %v1081_v34 = vrot.slane %v985_v25, 1  ;;  %v1082_v35 = vrot.slane %v2735_v26, 1  ;;  %v887_v39 = vmul.f32 %v2722_v20, %v854_v10 }
  0x16   : > { %v402_v38 = vsel %vm399_vm0, %v400_v28, %v401_v29  ;;  %v1355_v40 = vrot.slane %v1259_v31, 2  ;;  %v1665_v41 = vmul.f32 %v2729_v22, %v2712_v16  ;;  %v1356_v45 = vrot.slane %v1260_v36, 2 }
  0x17   : > { %v512_v43 = vadd.f32 %v402_v38, %v237_v23  ;;  %v677_v44 = vsel %vm674_vm1, %v675_v30, %v676_v33  ;;  %v1567_v46 = vmul.f32 %v2740_v27, %v2712_v16  ;;  %v1666_v47 = vmul.f32 %v2729_v22, %v2724_v21  ;;  %v173_v23 = vld [vmem:[%s2690_s21 + $0xc] sm:$0xff]  }
  0x18   : > { %v1761_v48 = vrot.slane %v1665_v41, 1  ;;  %v1922_v49 = vunpack.c.l.bf16 %v2460_v37  ;;  %v2764_v50 = vmul.f32 %v2747_v32, %v2724_v21  ;;  %v1083_v53 = vsel %vm399_vm0, %v1081_v34, %v1082_v35 }
  0x19   : > { %v787_v52 = vadd.f32 %v677_v44, %v512_v43  ;;  %v1357_v54 = vsel %vm674_vm1, %v1355_v40, %v1356_v45  ;;  %v286_v55 = vunpack.c.l.bf16 %v269_v42  ;;  %v1762_v57 = vrot.slane %v1666_v47, 1  ;;  %v545_v40 = vld [vmem:[%s2690_s21 + $0xc] sm:$0xe]  ;;  %v2798_v44 = vld [vmem:[%s4229_s2] ss:$0 sm:$0xff] }
  0x1a   : > { %v1939_v58 = vmul.f32 %v2747_v32, %v1922_v49  ;;  %v2036_v59 = vrot.slane %v2764_v50, 2  ;;  %v238_v60 = vmul.f32 %v2680_v0, %v2483_v8  ;;  %v968_v4 = vunpack.c.l.bf16 %v2376_v51 }
  0x1b   : > { %v919_v61 = vadd.f32 %v887_v39, %v787_v52  ;;  %v305_v62 = vmul.f32 %v2685_v1, %v286_v55  ;;  %v580_v63 = vmul.f32 %v2695_v2, %v286_v55  ;;  %v1763_v5 = vsel %vm399_vm0, %v1761_v48, %v1762_v57  ;;  %v2394_v52 = vld [vmem:[%s2690_s21 + $0x18] sm:$0xe] }
  0x1c   : > { %v2035_v6 = vrot.slane %v1939_v58, 2  ;;  %v888_v7 = vmul.f32 %v2722_v20, %v855_v14  ;;  %v1648_v9 = vunpack.c.l.bf16 %v2443_v56  ;;  %v987_v15 = vmul.f32 %v2700_v3, %v968_v4 }
  0x1d   : > { %v1193_v10 = vadd.f32 %v1083_v53, %v919_v61  ;;  %v403_v11 = vrot.slane %v305_v62, 1  ;;  %v678_v13 = vrot.slane %v580_v63, 2  ;;  %v1261_v8 = vmul.f32 %v2709_v12, %v968_v4  ;;  %v2412_v62 = vld [vmem:[%s2690_s21 + $0x24] sm:$0xff]  }
  0x1e   : > { %v1568_v17 = vmul.f32 %v2740_v27, %v2724_v21  ;;  %v1667_v18 = vmul.f32 %v2729_v22, %v1648_v9  ;;  %v1941_v19 = vmul.f32 %v2747_v32, %v1648_v9  ;;  %v1084_v26 = vrot.slane %v987_v15, 1 }
  0x1f   : > { %v1467_v24 = vadd.f32 %v1357_v54, %v1193_v10  ;;  %v404_v14 = vsel %vm399_vm0, %v401_v29, %v403_v11  ;;  %v679_v25 = vsel %vm674_vm1, %v676_v33, %v678_v13  ;;  %v2037_v28 = vsel %vm674_vm1, %v2035_v6, %v2036_v59 }
  0x20   : > { %v513_v30 = vadd.f32 %v404_v14, %v238_v60  ;;  %v1358_v31 = vrot.slane %v1261_v8, 2  ;;  %v1764_v34 = vrot.slane %v1667_v18, 1  ;;  %v2038_v37 = vrot.slane %v1941_v19, 2  ;;  %v2461_v19 = vld [vmem:[%s2690_s21 + $0x24] sm:$0xe] }
  0x21   : > { %v1599_v36 = vadd.f32 %v1567_v46, %v1467_v24  ;;  %v206_v38 = vunpack.c.l.bf16 %v173_v23  ;;  %v2789_v39 = vunpack.c.h.bf16 %v173_v23  ;;  %v1085_v33 = vsel %vm399_vm0, %v1082_v35, %v1084_v26 }
  0x22   : > { %v788_v29 = vadd.f32 %v679_v25, %v513_v30  ;;  %v1359_v41 = vsel %vm674_vm1, %v1356_v45, %v1358_v31  ;;  %v1765_v42 = vsel %vm399_vm0, %v1762_v57, %v1764_v34  ;;  %v562_v49 = vunpack.c.l.bf16 %v545_v40 }
  0x23   : > { %v1873_v43 = vadd.f32 %v1763_v5, %v1599_v36  ;;  %v239_v46 = vmul.f32 %v2680_v0, %v206_v38  ;;  %v306_v47 = vmul.f32 %v2685_v1, %v206_v38  ;;  %v2804_v48 = vmul.f32 %v2685_v1, %v2789_v39  ;;  %v270_v36 = vld [vmem:[%s2690_s21 + $0x14] sm:$0x1] }
  0x24   : > { %v920_v35 = vadd.f32 %v888_v7, %v788_v29  ;;  %v2808_v45 = vmul.f32 %v2695_v2, %v2789_v39  ;;  %v889_v51 = vmul.f32 %v2722_v20, %v2712_v16  ;;  %v988_v56 = vmul.f32 %v2700_v3, %v2712_v16 }
  0x25   : > { %v2147_v53 = vadd.f32 %v2037_v28, %v1873_v43  ;;  %v405_v54 = vrot.slane %v306_v47, 1  ;;  %v406_v55 = vrot.slane %v2804_v48, 1  ;;  %v581_v58 = vmul.f32 %v2695_v2, %v562_v49 }
  0x26   : > { %v1194_v57 = vadd.f32 %v1085_v33, %v920_v35  ;;  %v681_v60 = vrot.slane %v2808_v45, 2  ;;  %v2821_v61 = vmul.f32 %v2700_v3, %v2724_v21  ;;  %v1086_v5 = vrot.slane %v988_v56, 1  ;;  %v2377_v33 = vld [vmem:[%s2690_s21 + $0x20] sm:$0x1] }
  0x27   : > { %v2183_v63 = vadd.f32 %v2798_v44, %v2147_v53  ;;  %v407_v4 = vsel %vm399_vm0, %v405_v54, %v406_v55  ;;  %v1243_v6 = vunpack.c.l.bf16 %v2394_v52  ;;  %v680_v10 = vrot.slane %v581_v58, 2 }
  0x28   : > { %v1468_v7 = vadd.f32 %v1359_v41, %v1194_v57  ;;  %v514_v9 = vadd.f32 %v407_v4, %v239_v46  ;;  %v1087_v11 = vrot.slane %v2821_v61, 1  ;;  %v2837_v8 = vmul.f32 %v2709_v12, %v2724_v21  ;;  %v2444_v57 = vld [vmem:[%s2690_s21 + $0x2c] sm:$0x1] }
  0x29   : > { %v2215_v13 = vpack.c.bf16 %v2183_v63, %v2183_v63  ;;  %v1262_v15 = vmul.f32 %v2709_v12, %v1243_v6  ;;  %v1536_v18 = vunpack.c.l.bf16 %v2412_v62  ;;  %v2039_v24 = vsel %vm674_vm1, %v2036_v59, %v2038_v37 }
  0x2a   : > { %v1600_v23 = vadd.f32 %v1568_v17, %v1468_v7  ;;  %v682_v14 = vsel %vm674_vm1, %v680_v10, %v681_v60  ;;  %v1537_v25 = vunpack.c.h.bf16 %v2412_v62  ;;  %v1088_v28 = vsel %vm399_vm0, %v1086_v5, %v1087_v11 }
  0x2b   : > { %2248 = vst.msk [vmem:[%s2831_s15] sm:$0xf] %vm2247_vm2, %v2215_v13  ;;  %v789_v26 = vadd.f32 %v682_v14, %v514_v9  ;;  %v1360_v30 = vrot.slane %v1262_v15, 2  ;;  %v1361_v31 = vrot.slane %v2837_v8, 2  ;;  %v1668_v17 = vmul.f32 %v2729_v22, %v1536_v18 }
  0x2c   : > { %v1874_v34 = vadd.f32 %v1765_v42, %v1600_v23  ;;  %v2852_v50 = vmul.f32 %v2729_v22, %v1537_v25  ;;  %v1923_v59 = vunpack.c.l.bf16 %v2461_v19  ;;  %v1569_v40 = vmul.f32 %v2740_v27, %v1536_v18 }
  0x2d   : > { %v921_v37 = vadd.f32 %v889_v51, %v789_v26  ;;  %v1362_v38 = vsel %vm674_vm1, %v1360_v30, %v1361_v31  ;;  %v2858_v29 = vmul.f32 %v2747_v32, %v1537_v25  ;;  %v1766_v43 = vrot.slane %v1668_v17, 1  ;;  %v546_v26 = vld [vmem:[%s2690_s21 + $0x18] sm:$0xe] }
  0x2e   : > { %v2148_v41 = vadd.f32 %v2039_v24, %v1874_v34  ;;  %v1767_v42 = vrot.slane %v2852_v50, 1  ;;  %v1942_v46 = vmul.f32 %v2747_v32, %v1923_v59  ;;  %v240_v49 = vmul.f32 %v2680_v0, %v2789_v39  ;;  %v2347_v50 = vld [vmem:[%s2690_s21 + $0x24] sm:$0xff]  }
  0x2f   : > { %v1195_v47 = vadd.f32 %v1088_v28, %v921_v37  ;;  %v2041_v35 = vrot.slane %v2858_v29, 2  ;;  %v287_v51 = vunpack.c.l.bf16 %v270_v36  ;;  %v890_v54 = vmul.f32 %v2722_v20, %v2724_v21 }
  0x30   : > { %v2184_v52 = vadd.f32 %v2798_v44, %v2148_v41  ;;  %v2040_v53 = vrot.slane %v1942_v46, 2  ;;  %v969_v56 = vunpack.c.l.bf16 %v2377_v33  ;;  %v1768_v61 = vsel %vm399_vm0, %v1766_v43, %v1767_v42 }
  0x31   : > { %v1469_v58 = vadd.f32 %v1362_v38, %v1195_v47  ;;  %v308_v62 = vmul.f32 %v2685_v1, %v287_v51  ;;  %v583_v63 = vmul.f32 %v2695_v2, %v287_v51  ;;  %v1570_v6 = vmul.f32 %v2740_v27, %v1537_v25 }
  0x32   : > { %v2216_v4 = vpack.c.bf16 %v2184_v52, %v2184_v52  ;;  %v990_v39 = vmul.f32 %v2700_v3, %v969_v56  ;;  %v1264_v5 = vmul.f32 %v2709_v12, %v969_v56  ;;  %v1649_v13 = vunpack.c.l.bf16 %v2444_v57 }
  0x33   : > { %v1601_v7 = vadd.f32 %v1569_v40, %v1469_v58  ;;  %v408_v9 = vrot.slane %v308_v62, 1  ;;  %v683_v10 = vrot.slane %v583_v63, 2  ;;  %v2042_v15 = vsel %vm674_vm1, %v2040_v53, %v2041_v35 }
  0x34   : > { %2249 = vst.msk [vmem:[%s2831_s15 + $0x4] sm:$0xf] %vm2247_vm2, %v2216_v4  ;;  %v1089_v8 = vrot.slane %v990_v39, 1  ;;  %v1363_v18 = vrot.slane %v1264_v5, 2  ;;  %v309_v19 = vmul.f32 %v2685_v1, %v2712_v16  ;;  %v1670_v25 = vmul.f32 %v2729_v22, %v1649_v13 }
  0x35   : > { %v1875_v23 = vadd.f32 %v1768_v61, %v1601_v7  ;;  %v409_v24 = vsel %vm399_vm0, %v406_v55, %v408_v9  ;;  %v684_v14 = vsel %vm674_vm1, %v681_v60, %v683_v10  ;;  %v1944_v34 = vmul.f32 %v2747_v32, %v1649_v13  ;;  %v2462_v10 = vld [vmem:[%s2690_s21 + $0x30] sm:$0xe] }
  0x36   : > { %v515_v28 = vadd.f32 %v409_v24, %v240_v49  ;;  %v1090_v30 = vsel %vm399_vm0, %v1087_v11, %v1089_v8  ;;  %v241_v17 = vmul.f32 %v2680_v0, %v2712_v16  ;;  %v1769_v48 = vrot.slane %v1670_v25, 1  ;;  %v2592_v49 = vld [vmem:[%s2690_s21 + $0x30] sm:$0xff]  }
  0x37   : > { %v2149_v59 = vadd.f32 %v2042_v15, %v1875_v23  ;;  %v2898_v45 = vmul.f32 %v2685_v1, %v2724_v21  ;;  %v410_v55 = vrot.slane %v309_v19, 1  ;;  %v1364_v36 = vsel %vm674_vm1, %v1361_v31, %v1363_v18  ;;  %v2395_v31 = vld [vmem:[%s2690_s21 + $0x24] sm:$0xe] }
  0x38   : > { %v790_v60 = vadd.f32 %v684_v14, %v515_v28  ;;  %v563_v37 = vunpack.c.l.bf16 %v546_v26  ;;  %v2903_v11 = vmul.f32 %v2695_v2, %v2724_v21  ;;  %v2043_v38 = vrot.slane %v1944_v34, 2  ;;  %v271_v34 = vld [vmem:[%s2690_s21 + $0x20] sm:$0x1] }
  0x39   : > { %v2185_v16 = vadd.f32 %v2798_v44, %v2149_v59  ;;  %v411_v40 = vrot.slane %v2898_v45, 1  ;;  %v858_v33 = vunpack.c.l.bf16 %v2347_v50  ;;  %v1770_v43 = vsel %vm399_vm0, %v1767_v42, %v1769_v48 }
  0x3a   : > { %v922_v41 = vadd.f32 %v890_v54, %v790_v60  ;;  %v584_v46 = vmul.f32 %v2695_v2, %v563_v37  ;;  %v686_v47 = vrot.slane %v2903_v11, 2  ;;  %v859_v53 = vunpack.c.h.bf16 %v2347_v50 }
  0x3b   : > { %v2217_v51 = vpack.c.bf16 %v2185_v16, %v2185_v16  ;;  %v412_v52 = vsel %vm399_vm0, %v410_v55, %v411_v40  ;;  %v891_v56 = vmul.f32 %v2722_v20, %v858_v33  ;;  %v991_v42 = vmul.f32 %v2700_v3, %v858_v33 }
  0x3c   : > { %v1196_v57 = vadd.f32 %v1090_v30, %v922_v41  ;;  %v516_v58 = vadd.f32 %v412_v52, %v241_v17  ;;  %v685_v54 = vrot.slane %v584_v46, 2  ;;  %v2920_v61 = vmul.f32 %v2700_v3, %v859_v53 }
  0x3d   : > { %2250 = vst.msk [vmem:[%s2831_s15 + $0x8] sm:$0xf] %vm2247_vm2, %v2217_v51  ;;  %v1244_v62 = vunpack.c.l.bf16 %v2395_v31  ;;  %v2923_v63 = vmul.f32 %v2709_v12, %v859_v53  ;;  %v2925_v4 = vunpack.c.l.bf16 %v2592_v49  ;;  %v1091_v7 = vrot.slane %v991_v42, 1  ;;  %v2445_v31 = vld [vmem:[%s2690_s21 + $0x38] sm:$0x1] }
  0x3e   : > { %v1470_v39 = vadd.f32 %v1364_v36, %v1196_v57  ;;  %v687_v5 = vsel %vm674_vm1, %v685_v54, %v686_v47  ;;  %v2930_v9 = vunpack.c.h.bf16 %v2592_v49  ;;  %v1092_v15 = vrot.slane %v2920_v61, 1  ;;  %v177_v57 = vld [vmem:[%s2690_s21 + $0x24] sm:$0xff]  }
  0x3f   : > { %v791_v13 = vadd.f32 %v687_v5, %v516_v58  ;;  %v1265_v8 = vmul.f32 %v2709_v12, %v1244_v62  ;;  %v1366_v18 = vrot.slane %v2923_v63, 2  ;;  %v2044_v23 = vsel %vm674_vm1, %v2041_v35, %v2043_v38  ;;  %v2378_v35 = vld [vmem:[%s2690_s21 + $0x2c] sm:$0x1] }
  0x40   : > { %v1602_v19 = vadd.f32 %v1570_v6, %v1470_v39  ;;  %v1671_v24 = vmul.f32 %v2729_v22, %v2925_v4  ;;  %v1672_v14 = vmul.f32 %v2729_v22, %v2930_v9  ;;  %v1093_v26 = vsel %vm399_vm0, %v1091_v7, %v1092_v15 }
  0x41   : > { %v923_v25 = vadd.f32 %v891_v56, %v791_v13  ;;  %v1365_v28 = vrot.slane %v1265_v8, 2  ;;  %v1924_v30 = vunpack.c.l.bf16 %v2462_v10  ;;  %v2947_v29 = vmul.f32 %v2747_v32, %v2930_v9 }
  0x42   : > { %v1876_v17 = vadd.f32 %v1770_v43, %v1602_v19  ;;  %v1771_v50 = vrot.slane %v1671_v24, 1  ;;  %v1772_v6 = vrot.slane %v1672_v14, 1  ;;  %v1571_v55 = vmul.f32 %v2740_v27, %v2925_v4  ;;  %v547_v24 = vld [vmem:[%s2690_s21 + $0x24] sm:$0xe] }
  0x43   : > { %v1197_v59 = vadd.f32 %v1093_v26, %v923_v25  ;;  %v1367_v48 = vsel %vm674_vm1, %v1365_v28, %v1366_v18  ;;  %v1945_v60 = vmul.f32 %v2747_v32, %v1924_v30  ;;  %v2046_v37 = vrot.slane %v2947_v29, 2 }
  0x44   : > { %v2150_v36 = vadd.f32 %v2044_v23, %v1876_v17  ;;  %v242_v16 = vmul.f32 %v2680_v0, %v2724_v21  ;;  %v288_v38 = vunpack.c.l.bf16 %v271_v34  ;;  %v1773_v41 = vsel %vm399_vm0, %v1771_v50, %v1772_v6 }
  0x45   : > { %v1471_v33 = vadd.f32 %v1367_v48, %v1197_v59  ;;  %v2045_v43 = vrot.slane %v1945_v60, 2  ;;  %v970_v46 = vunpack.c.l.bf16 %v2378_v35  ;;  %v892_v56 = vmul.f32 %v2722_v20, %v859_v53  ;;  %v2396_v48 = vld [vmem:[%s2690_s21 + $0x30] sm:$0xe] }
  0x46   : > { %v2186_v49 = vadd.f32 %v2798_v44, %v2150_v36  ;;  %v311_v51 = vmul.f32 %v2685_v1, %v288_v38  ;;  %v586_v52 = vmul.f32 %v2695_v2, %v288_v38  ;;  %v1650_v39 = vunpack.c.l.bf16 %v2445_v31  ;;  %v2416_v38 = vld [vmem:[%s2690_s21 + $0x3c] sm:$0xff]  }
  0x47   : > { %v1603_v58 = vadd.f32 %v1571_v55, %v1471_v33  ;;  %v2047_v21 = vsel %vm674_vm1, %v2045_v43, %v2046_v37  ;;  %v993_v54 = vmul.f32 %v2700_v3, %v970_v46  ;;  %v1267_v42 = vmul.f32 %v2709_v12, %v970_v46 }
  0x48   : > { %v2218_v61 = vpack.c.bf16 %v2186_v49, %v2186_v49  ;;  %v413_v62 = vrot.slane %v311_v51, 1  ;;  %v688_v63 = vrot.slane %v586_v52, 2  ;;  %v210_v13 = vunpack.c.l.bf16 %v177_v57 }
  0x49   : > { %v1877_v5 = vadd.f32 %v1773_v41, %v1603_v58  ;;  %v1094_v7 = vrot.slane %v993_v54, 1  ;;  %v1368_v10 = vrot.slane %v1267_v42, 2  ;;  %v1673_v19 = vmul.f32 %v2729_v22, %v1650_v39 }
  0x4a   : > { %2251 = vst.msk [vmem:[%s2831_s15 + $0xc] sm:$0xf] %vm2247_vm2, %v2218_v61  ;;  %v414_v53 = vsel %vm399_vm0, %v411_v40, %v413_v62  ;;  %v689_v8 = vsel %vm674_vm1, %v686_v47, %v688_v63  ;;  %v1947_v23 = vmul.f32 %v2747_v32, %v1650_v39  ;;  %v1572_v28 = vmul.f32 %v2740_v27, %v2930_v9  ;;  %v2463_v62 = vld [vmem:[%s2690_s21 + $0x3c] sm:$0xe] }
  0x4b   : > { %v2151_v14 = vadd.f32 %v2047_v21, %v1877_v5  ;;  %v517_v25 = vadd.f32 %v414_v53, %v242_v16  ;;  %v1095_v26 = vsel %vm399_vm0, %v1092_v15, %v1094_v7  ;;  %v1369_v45 = vsel %vm674_vm1, %v1366_v18, %v1368_v10 }
  0x4c   : > { %v1774_v40 = vrot.slane %v1673_v19, 1  ;;  %v2048_v11 = vrot.slane %v1947_v23, 2  ;;  %v211_v30 = vunpack.c.h.bf16 %v177_v57  ;;  %v312_v17 = vmul.f32 %v2685_v1, %v210_v13 }
  0x4d   : > { %v2187_v47 = vadd.f32 %v2798_v44, %v2151_v14  ;;  %v792_v34 = vadd.f32 %v689_v8, %v517_v25  ;;  %v564_v50 = vunpack.c.l.bf16 %v547_v24  ;;  %v243_v15 = vmul.f32 %v2680_v0, %v210_v13 }
  0x4e   : > { %v1775_v35 = vsel %vm399_vm0, %v1772_v6, %v1774_v40  ;;  %v2989_v59 = vmul.f32 %v2685_v1, %v211_v30  ;;  %v2992_v18 = vmul.f32 %v2695_v2, %v211_v30  ;;  %v415_v36 = vrot.slane %v312_v17, 1 }
  0x4f   : > { %v2219_v55 = vpack.c.bf16 %v2187_v47, %v2187_v47  ;;  %v924_v60 = vadd.f32 %v892_v56, %v792_v34  ;;  %v587_v16 = vmul.f32 %v2695_v2, %v564_v50  ;;  %v893_v6 = vmul.f32 %v2722_v20, %v2925_v4 }
  0x50   : > { %v416_v33 = vrot.slane %v2989_v59, 1  ;;  %v691_v41 = vrot.slane %v2992_v18, 2  ;;  %v994_v43 = vmul.f32 %v2700_v3, %v2925_v4  ;;  %v3007_v49 = vmul.f32 %v2700_v3, %v2930_v9 }
  0x51   : > { %2252 = vst.msk [vmem:[%s2831_s15 + $0x10] sm:$0xf] %vm2247_vm2, %v2219_v55  ;;  %v1198_v46 = vadd.f32 %v1095_v26, %v924_v60  ;;  %v690_v31 = vrot.slane %v587_v16, 2  ;;  %v1245_v51 = vunpack.c.l.bf16 %v2396_v48  ;;  %v3014_v57 = vmul.f32 %v2709_v12, %v2930_v9  ;;  %v2446_v55 = vld [vmem:[%s2690_s21 + $0x44] sm:$0x1] }
  0x52   : > { %v417_v52 = vsel %vm399_vm0, %v415_v36, %v416_v33  ;;  %v1096_v56 = vrot.slane %v994_v43, 1  ;;  %v1540_v58 = vunpack.c.l.bf16 %v2416_v38  ;;  %v1097_v61 = vrot.slane %v3007_v49, 1 }
  0x53   : > { %v1472_v21 = vadd.f32 %v1369_v45, %v1198_v46  ;;  %v518_v54 = vadd.f32 %v417_v52, %v243_v15  ;;  %v692_v42 = vsel %vm674_vm1, %v690_v31, %v691_v41  ;;  %v2049_v63 = vsel %vm674_vm1, %v2046_v37, %v2048_v11  ;;  %v272_v37 = vld [vmem:[%s2690_s21 + $0x2c] sm:$0x1] }
  0x54   : > { %v1268_v39 = vmul.f32 %v2709_v12, %v1245_v51  ;;  %v1371_v5 = vrot.slane %v3014_v57, 2  ;;  %v1541_v7 = vunpack.c.h.bf16 %v2416_v38  ;;  %v1098_v53 = vsel %vm399_vm0, %v1096_v56, %v1097_v61 }
  0x55   : > { %v1604_v10 = vadd.f32 %v1572_v28, %v1472_v21  ;;  %v793_v13 = vadd.f32 %v692_v42, %v518_v54  ;;  %v1674_v8 = vmul.f32 %v2729_v22, %v1540_v58  ;;  %v1925_v24 = vunpack.c.l.bf16 %v2463_v62  ;;  %v2379_v28 = vld [vmem:[%s2690_s21 + $0x38] sm:$0x1] }
  0x56   : > { %v1370_v19 = vrot.slane %v1268_v39, 2  ;;  %v1675_v23 = vmul.f32 %v2729_v22, %v1541_v7  ;;  %v3030_v29 = vmul.f32 %v2747_v32, %v1541_v7  ;;  %v1573_v26 = vmul.f32 %v2740_v27, %v1540_v58 }
  0x57   : > { %v1878_v14 = vadd.f32 %v1775_v35, %v1604_v10  ;;  %v925_v25 = vadd.f32 %v893_v6, %v793_v13  ;;  %v1776_v45 = vrot.slane %v1674_v8, 1  ;;  %v1948_v47 = vmul.f32 %v2747_v32, %v1925_v24 }
  0x58   : > { %v1372_v40 = vsel %vm674_vm1, %v1370_v19, %v1371_v5  ;;  %v1777_v11 = vrot.slane %v1675_v23, 1  ;;  %v2051_v34 = vrot.slane %v3030_v29, 2  ;;  %v244_v15 = vmul.f32 %v2680_v0, %v211_v30 }
  0x59   : > { %v2152_v17 = vadd.f32 %v2049_v63, %v1878_v14  ;;  %v1199_v50 = vadd.f32 %v1098_v53, %v925_v25  ;;  %v289_v48 = vunpack.c.l.bf16 %v272_v37  ;;  %v2050_v60 = vrot.slane %v1948_v47, 2  ;;  %v548_v53 = vld [vmem:[%s2690_s21 + $0x30] sm:$0xe] }
  0x5a   : > { %v1778_v35 = vsel %vm399_vm0, %v1776_v45, %v1777_v11  ;;  %v894_v36 = vmul.f32 %v2722_v20, %v2930_v9  ;;  %v971_v16 = vunpack.c.l.bf16 %v2379_v28  ;;  %v1651_v51 = vunpack.c.l.bf16 %v2446_v55 }
  0x5b   : > { %v2188_v38 = vadd.f32 %v2798_v44, %v2152_v17  ;;  %v1473_v6 = vadd.f32 %v1372_v40, %v1199_v50  ;;  %v314_v43 = vmul.f32 %v2685_v1, %v289_v48  ;;  %v589_v46 = vmul.f32 %v2695_v2, %v289_v48 }
  0x5c   : > { %v2052_v30 = vsel %vm674_vm1, %v2050_v60, %v2051_v34  ;;  %v996_v31 = vmul.f32 %v2700_v3, %v971_v16  ;;  %v1270_v49 = vmul.f32 %v2709_v12, %v971_v16  ;;  %v1676_v42 = vmul.f32 %v2729_v22, %v1651_v51  ;;  %v2593_v60 = vld [vmem:[%s2690_s21 + $0x48] sm:$0xff]  }
  0x5d   : > { %v2220_v52 = vpack.c.bf16 %v2188_v38, %v2188_v38  ;;  %v1605_v56 = vadd.f32 %v1573_v26, %v1473_v6  ;;  %v418_v57 = vrot.slane %v314_v43, 1  ;;  %v693_v58 = vrot.slane %v589_v46, 2  ;;  %v2397_v26 = vld [vmem:[%s2690_s21 + $0x3c] sm:$0xe] }
  0x5e   : > { %v1099_v21 = vrot.slane %v996_v31, 1  ;;  %v1373_v54 = vrot.slane %v1270_v49, 2  ;;  %v1950_v62 = vmul.f32 %v2747_v32, %v1651_v51  ;;  %v1574_v13 = vmul.f32 %v2740_v27, %v1541_v7 }
  0x5f   : > { %2253 = vst.msk [vmem:[%s2831_s15 + $0x14] sm:$0xf] %vm2247_vm2, %v2220_v52  ;;  %v1879_v63 = vadd.f32 %v1778_v35, %v1605_v56  ;;  %v419_v39 = vsel %vm399_vm0, %v416_v33, %v418_v57  ;;  %v694_v10 = vsel %vm674_vm1, %v691_v41, %v693_v58  ;;  %v1779_v23 = vrot.slane %v1676_v42, 1  ;;  %v2351_v41 = vld [vmem:[%s2690_s21 + $0x3c] sm:$0xff]   ;;  %v2464_v56 = vld [vmem:[%s2690_s21 + $0x48] sm:$0xe] }
  0x60   : > { %v519_v8 = vadd.f32 %v419_v39, %v244_v15  ;;  %v1100_v19 = vsel %vm399_vm0, %v1097_v61, %v1099_v21  ;;  %v245_v24 = vmul.f32 %v2680_v0, %v2925_v4  ;;  %v1374_v59 = vsel %vm674_vm1, %v1371_v5, %v1373_v54 }
  0x61   : > { %v2153_v37 = vadd.f32 %v2052_v30, %v1879_v63  ;;  %v315_v33 = vmul.f32 %v2685_v1, %v2925_v4  ;;  %v3071_v18 = vmul.f32 %v2685_v1, %v2930_v9  ;;  %v2053_v14 = vrot.slane %v1950_v62, 2 }
  0x62   : > { %v794_v7 = vadd.f32 %v694_v10, %v519_v8  ;;  %v565_v25 = vunpack.c.l.bf16 %v548_v53  ;;  %v3076_v61 = vmul.f32 %v2695_v2, %v2930_v9  ;;  %v1780_v5 = vsel %vm399_vm0, %v1777_v11, %v1779_v23  ;;  %v273_v23 = vld [vmem:[%s2690_s21 + $0x38] sm:$0x1] }
  0x63   : > { %v2189_v45 = vadd.f32 %v2798_v44, %v2153_v37  ;;  %v420_v4 = vrot.slane %v315_v33, 1  ;;  %v421_v28 = vrot.slane %v3071_v18, 1  ;;  %v862_v50 = vunpack.c.l.bf16 %v2351_v41  ;;  %v2380_v37 = vld [vmem:[%s2690_s21 + $0x44] sm:$0x1] }
  0x64   : > { %v926_v40 = vadd.f32 %v894_v36, %v794_v7  ;;  %v590_v47 = vmul.f32 %v2695_v2, %v565_v25  ;;  %v696_v17 = vrot.slane %v3076_v61, 2  ;;  %v863_v55 = vunpack.c.h.bf16 %v2351_v41 }
  0x65   : > { %v2221_v15 = vpack.c.bf16 %v2189_v45, %v2189_v45  ;;  %v422_v48 = vsel %vm399_vm0, %v420_v4, %v421_v28  ;;  %v1246_v35 = vunpack.c.l.bf16 %v2397_v26  ;;  %v895_v6 = vmul.f32 %v2722_v20, %v862_v50 }
  0x66   : > { %v1200_v11 = vadd.f32 %v1100_v19, %v926_v40  ;;  %v520_v16 = vadd.f32 %v422_v48, %v245_v24  ;;  %v695_v38 = vrot.slane %v590_v47, 2  ;;  %v997_v36 = vmul.f32 %v2700_v3, %v862_v50  ;;  %v2447_v50 = vld [vmem:[%s2690_s21 + $0x50] sm:$0x1] }
  0x67   : > { %2254 = vst.msk [vmem:[%s2831_s15 + $0x18] sm:$0xf] %vm2247_vm2, %v2221_v15  ;;  %v3093_v43 = vmul.f32 %v2700_v3, %v863_v55  ;;  %v1271_v46 = vmul.f32 %v2709_v12, %v1246_v35  ;;  %v3097_v30 = vmul.f32 %v2709_v12, %v863_v55  ;;  %v3102_v51 = vunpack.c.l.bf16 %v2593_v60 }
  0x68   : > { %v1474_v31 = vadd.f32 %v1374_v59, %v1200_v11  ;;  %v697_v49 = vsel %vm674_vm1, %v695_v38, %v696_v17  ;;  %v3104_v52 = vunpack.c.h.bf16 %v2593_v60  ;;  %v1101_v58 = vrot.slane %v997_v36, 1  ;;  %v181_v11 = vld [vmem:[%s2690_s21 + $0x3c] sm:$0xff]  }
  0x69   : > { %v795_v57 = vadd.f32 %v697_v49, %v520_v16  ;;  %v1102_v21 = vrot.slane %v3093_v43, 1  ;;  %v1375_v54 = vrot.slane %v1271_v46, 2  ;;  %v2054_v62 = vsel %vm674_vm1, %v2051_v34, %v2053_v14 }
  0x6a   : > { %v1606_v42 = vadd.f32 %v1574_v13, %v1474_v31  ;;  %v1376_v63 = vrot.slane %v3097_v30, 2  ;;  %v1677_v39 = vmul.f32 %v2729_v22, %v3102_v51  ;;  %v1678_v8 = vmul.f32 %v2729_v22, %v3104_v52 }
  0x6b   : > { %v927_v10 = vadd.f32 %v895_v6, %v795_v57  ;;  %v1103_v53 = vsel %vm399_vm0, %v1101_v58, %v1102_v21  ;;  %v1926_v19 = vunpack.c.l.bf16 %v2464_v56  ;;  %v3121_v34 = vmul.f32 %v2747_v32, %v3104_v52 }
  0x6c   : > { %v1880_v24 = vadd.f32 %v1780_v5, %v1606_v42  ;;  %v1377_v13 = vsel %vm674_vm1, %v1375_v54, %v1376_v63  ;;  %v1781_v29 = vrot.slane %v1677_v39, 1  ;;  %v1575_v33 = vmul.f32 %v2740_v27, %v3102_v51 }
  0x6d   : > { %v1201_v59 = vadd.f32 %v1103_v53, %v927_v10  ;;  %v1782_v41 = vrot.slane %v1678_v8, 1  ;;  %v1951_v7 = vmul.f32 %v2747_v32, %v1926_v19  ;;  %v2056_v25 = vrot.slane %v3121_v34, 2 }
  0x6e   : > { %v2154_v14 = vadd.f32 %v2054_v62, %v1880_v24  ;;  %v246_v26 = vmul.f32 %v2680_v0, %v2930_v9  ;;  %v290_v45 = vunpack.c.l.bf16 %v273_v23  ;;  %v896_v40 = vmul.f32 %v2722_v20, %v863_v55  ;;  %v549_v62 = vld [vmem:[%s2690_s21 + $0x3c] sm:$0xe] }
  0x6f   : > { %v1475_v5 = vadd.f32 %v1377_v13, %v1201_v59  ;;  %v2055_v4 = vrot.slane %v1951_v7, 2  ;;  %v972_v47 = vunpack.c.l.bf16 %v2380_v37  ;;  %v1783_v48 = vsel %vm399_vm0, %v1781_v29, %v1782_v41  ;;  %v2398_v59 = vld [vmem:[%s2690_s21 + $0x48] sm:$0xe] }
  0x70   : > { %v2190_v15 = vadd.f32 %v2798_v44, %v2154_v14  ;;  %v317_v35 = vmul.f32 %v2685_v1, %v290_v45  ;;  %v592_v60 = vmul.f32 %v2695_v2, %v290_v45  ;;  %v1652_v46 = vunpack.c.l.bf16 %v2447_v50  ;;  %v2420_v45 = vld [vmem:[%s2690_s21 + $0x54] sm:$0xff]  }
  0x71   : > { %v1607_v16 = vadd.f32 %v1575_v33, %v1475_v5  ;;  %v2057_v9 = vsel %vm674_vm1, %v2055_v4, %v2056_v25  ;;  %v999_v55 = vmul.f32 %v2700_v3, %v972_v47  ;;  %v1273_v38 = vmul.f32 %v2709_v12, %v972_v47 }
  0x72   : > { %v2222_v6 = vpack.c.bf16 %v2190_v15, %v2190_v15  ;;  %v423_v36 = vrot.slane %v317_v35, 1  ;;  %v698_v43 = vrot.slane %v592_v60, 2  ;;  %v214_v56 = vunpack.c.l.bf16 %v181_v11 }
  0x73   : > { %v1881_v30 = vadd.f32 %v1783_v48, %v1607_v16  ;;  %v1104_v31 = vrot.slane %v999_v55, 1  ;;  %v1378_v49 = vrot.slane %v1273_v38, 2  ;;  %v1679_v54 = vmul.f32 %v2729_v22, %v1652_v46  ;;  %v2465_v16 = vld [vmem:[%s2690_s21 + $0x54] sm:$0xe] }
  0x74   : > { %2255 = vst.msk [vmem:[%s2831_s15 + $0x1c] sm:$0xf] %vm2247_vm2, %v2222_v6  ;;  %v424_v57 = vsel %vm399_vm0, %v421_v28, %v423_v36  ;;  %v699_v58 = vsel %vm674_vm1, %v696_v17, %v698_v43  ;;  %v1953_v42 = vmul.f32 %v2747_v32, %v1652_v46  ;;  %v1576_v8 = vmul.f32 %v2740_v27, %v3104_v52 }
  0x75   : > { %v2155_v39 = vadd.f32 %v2057_v9, %v1881_v30  ;;  %v521_v10 = vadd.f32 %v424_v57, %v246_v26  ;;  %v1105_v53 = vsel %vm399_vm0, %v1102_v21, %v1104_v31  ;;  %v1379_v18 = vsel %vm674_vm1, %v1376_v63, %v1378_v49 }
  0x76   : > { %v1784_v28 = vrot.slane %v1679_v54, 1  ;;  %v2058_v61 = vrot.slane %v1953_v42, 2  ;;  %v215_v19 = vunpack.c.h.bf16 %v181_v11  ;;  %v318_v24 = vmul.f32 %v2685_v1, %v214_v56  ;;  %v2381_v42 = vld [vmem:[%s2690_s21 + $0x50] sm:$0x1] }
  0x77   : > { %v2191_v17 = vadd.f32 %v2798_v44, %v2155_v39  ;;  %v796_v23 = vadd.f32 %v699_v58, %v521_v10  ;;  %v566_v13 = vunpack.c.l.bf16 %v549_v62  ;;  %v247_v21 = vmul.f32 %v2680_v0, %v214_v56 }
  0x78   : > { %v1785_v29 = vsel %vm399_vm0, %v1782_v41, %v1784_v28  ;;  %v3162_v37 = vmul.f32 %v2685_v1, %v215_v19  ;;  %v3165_v63 = vmul.f32 %v2695_v2, %v215_v19  ;;  %v425_v14 = vrot.slane %v318_v24, 1 }
  0x79   : > { %v2223_v33 = vpack.c.bf16 %v2191_v17, %v2191_v17  ;;  %v928_v7 = vadd.f32 %v896_v40, %v796_v23  ;;  %v593_v26 = vmul.f32 %v2695_v2, %v566_v13  ;;  %v897_v0 = vmul.f32 %v2722_v20, %v3102_v51 }
  0x7a   : > { %v426_v5 = vrot.slane %v3162_v37, 1  ;;  %v701_v4 = vrot.slane %v3165_v63, 2  ;;  %v1000_v1 = vmul.f32 %v2700_v3, %v3102_v51  ;;  %v3180_v40 = vmul.f32 %v2700_v3, %v3104_v52 }
  0x7b   : > { %2256 = vst.msk [vmem:[%s2831_s15 + $0x20] sm:$0xf] %vm2247_vm2, %v2223_v33  ;;  %v1202_v41 = vadd.f32 %v1105_v53, %v928_v7  ;;  %v700_v47 = vrot.slane %v593_v26, 2  ;;  %v1247_v2 = vunpack.c.l.bf16 %v2398_v59  ;;  %v3187_v20 = vmul.f32 %v2709_v12, %v3104_v52  ;;  %v3243_v33 = vld [vmem:[%s4228_s1 + $0x2] ss:$0 sm:$0xff] }
  0x7c   : > { %v427_v50 = vsel %vm399_vm0, %v425_v14, %v426_v5  ;;  %v1106_v15 = vrot.slane %v1000_v1, 1  ;;  %v1544_v48 = vunpack.c.l.bf16 %v2420_v45  ;;  %v1107_v3 = vrot.slane %v3180_v40, 1  ;;  %v3252_v26 = vld [vmem:[%s4228_s1 + $0x5] ss:$0 sm:$0xff] }
  0x7d   : > { %v1476_v35 = vadd.f32 %v1379_v18, %v1202_v41  ;;  %v522_v60 = vadd.f32 %v427_v50, %v247_v21  ;;  %v702_v11 = vsel %vm674_vm1, %v700_v47, %v701_v4  ;;  %v2059_v9 = vsel %vm674_vm1, %v2056_v25, %v2058_v61  ;;  %v3221_v18 = vld [vmem:[%s4228_s1] ss:$0 sm:$0xff]  ;;  %v2448_v61 = vld [vmem:[%s2690_s21 + $0x5c] sm:$0x1] }
  0x7e   : > { %v1274_v55 = vmul.f32 %v2709_v12, %v1247_v2  ;;  %v1381_v38 = vrot.slane %v3187_v20, 2  ;;  %v1545_v6 = vunpack.c.h.bf16 %v2420_v45  ;;  %v1108_v46 = vsel %vm399_vm0, %v1106_v15, %v1107_v3  ;;  %v274_v12 = vld [vmem:[%s2690_s21 + $0x44] sm:$0x1] }
  0x7f   : > { %v1608_v36 = vadd.f32 %v1576_v8, %v1476_v35  ;;  %v797_v43 = vadd.f32 %v702_v11, %v522_v60  ;;  %v1680_v30 = vmul.f32 %v2729_v22, %v1544_v48  ;;  %v1927_v34 = vunpack.c.l.bf16 %v2465_v16  ;;  %v3264_v60 = vld [vmem:[%s4228_s1 + $0x9] ss:$0 sm:$0xff]  ;;  %v3270_v16 = vld [vmem:[%s4228_s1 + $0xa] ss:$0 sm:$0xff] }
  0x80   : > { %v1380_v31 = vrot.slane %v1274_v55, 2  ;;  %v3204_v49 = vmul.f32 %v2729_v22, %v1545_v6  ;;  %v3207_v25 = vmul.f32 %v2747_v32, %v1545_v6  ;;  %v1577_v58 = vmul.f32 %v2740_v27, %v1544_v48 }
  0x81   : > { %v1882_v56 = vadd.f32 %v1785_v29, %v1608_v36  ;;  %v929_v57 = vadd.f32 %v897_v0, %v797_v43  ;;  %v1786_v54 = vrot.slane %v1680_v30, 1  ;;  %v1954_v22 = vmul.f32 %v2747_v32, %v1927_v34  ;;  %v3229_v32 = vld [vmem:[%s4228_s1 + $0x4] ss:$0 sm:$0xff]  ;;  %v3258_v0 = vld [vmem:[%s4228_s1 + $0x6] ss:$0 sm:$0xff] }
  0x82   : > { %v1382_v62 = vsel %vm674_vm1, %v1380_v31, %v1381_v38  ;;  %v1787_v39 = vrot.slane %v3204_v49, 1  ;;  %v2061_v10 = vrot.slane %v3207_v25, 2  ;;  %v248_v27 = vmul.f32 %v3221_v18, %v215_v19  ;;  %v3237_v19 = vld [vmem:[%s4228_s1 + $0x1] ss:$0 sm:$0xff]  ;;  %v550_v31 = vld [vmem:[%s2690_s21 + $0x48] sm:$0xe] }
  0x83   : > { %v2156_v53 = vadd.f32 %v2059_v9, %v1882_v56  ;;  %v1203_v8 = vadd.f32 %v1108_v46, %v929_v57  ;;  %v291_v28 = vunpack.c.l.bf16 %v274_v12  ;;  %v2060_v23 = vrot.slane %v1954_v22, 2  ;;  %v3284_v46 = vld [vmem:[%s4228_s1 + $0x8] ss:$0 sm:$0xff]  ;;  %v2355_v56 = vld [vmem:[%s2690_s21 + $0x54] sm:$0xff]  }
  0x84   : > { %v1788_v17 = vsel %vm399_vm0, %v1786_v54, %v1787_v39  ;;  %v898_v24 = vmul.f32 %v3229_v32, %v3104_v52  ;;  %v973_v13 = vunpack.c.l.bf16 %v2381_v42  ;;  %v1653_v41 = vunpack.c.l.bf16 %v2448_v61  ;;  %v2399_v54 = vld [vmem:[%s2690_s21 + $0x54] sm:$0xe] }
  0x85   : > { %v2192_v29 = vadd.f32 %v2798_v44, %v2156_v53  ;;  %v1477_v21 = vadd.f32 %v1382_v62, %v1203_v8  ;;  %v320_v59 = vmul.f32 %v3237_v19, %v291_v28  ;;  %v595_v7 = vmul.f32 %v3243_v33, %v291_v28 }
  0x86   : > { %v2062_v14 = vsel %vm674_vm1, %v2060_v23, %v2061_v10  ;;  %v1002_v45 = vmul.f32 %v3252_v26, %v973_v13  ;;  %v1276_v1 = vmul.f32 %v3258_v0, %v973_v13  ;;  %v1682_v11 = vmul.f32 %v3264_v60, %v1653_v41 }
  0x87   : > { %v2224_v47 = vpack.c.bf16 %v2192_v29, %v2192_v29  ;;  %v1609_v2 = vadd.f32 %v1577_v58, %v1477_v21  ;;  %v428_v50 = vrot.slane %v320_v59, 1  ;;  %v703_v15 = vrot.slane %v595_v7, 2 }
  0x88   : > { %v1109_v48 = vrot.slane %v1002_v45, 1  ;;  %v1383_v35 = vrot.slane %v1276_v1, 2  ;;  %v1956_v9 = vmul.f32 %v3270_v16, %v1653_v41  ;;  %v1578_v30 = vmul.f32 %v3284_v46, %v1545_v6 }
  0x89   : > { %2257 = vst.msk [vmem:[%s2831_s15 + $0x24] sm:$0xf] %vm2247_vm2, %v2224_v47  ;;  %v1883_v55 = vadd.f32 %v1788_v17, %v1609_v2  ;;  %v429_v36 = vsel %vm399_vm0, %v426_v5, %v428_v50  ;;  %v704_v43 = vsel %vm674_vm1, %v701_v4, %v703_v15  ;;  %v1789_v34 = vrot.slane %v1682_v11, 1  ;;  %v2594_v17 = vld [vmem:[%s2690_s21 + $0x60] sm:$0xff]  }
  0x8a   : > { %v523_v49 = vadd.f32 %v429_v36, %v248_v27  ;;  %v1110_v37 = vsel %vm399_vm0, %v1107_v3, %v1109_v48  ;;  %v249_v63 = vmul.f32 %v3221_v18, %v3102_v51  ;;  %v1384_v4 = vsel %vm674_vm1, %v1381_v38, %v1383_v35  ;;  %v2466_v47 = vld [vmem:[%s2690_s21 + $0x60] sm:$0xe] }
  0x8b   : > { %v2157_v5 = vadd.f32 %v2062_v14, %v1883_v55  ;;  %v321_v12 = vmul.f32 %v3237_v19, %v3102_v51  ;;  %v3300_v6 = vmul.f32 %v3237_v19, %v3104_v52  ;;  %v2063_v57 = vrot.slane %v1956_v9, 2 }
  0x8c   : > { %v798_v40 = vadd.f32 %v704_v43, %v523_v49  ;;  %v567_v3 = vunpack.c.l.bf16 %v550_v31  ;;  %v3305_v58 = vmul.f32 %v3243_v33, %v3104_v52  ;;  %v1790_v38 = vsel %vm399_vm0, %v1787_v39, %v1789_v34 }
  0x8d   : > { %v2193_v20 = vadd.f32 %v2798_v44, %v2157_v5  ;;  %v430_v51 = vrot.slane %v321_v12, 1  ;;  %v431_v42 = vrot.slane %v3300_v6, 1  ;;  %v866_v8 = vunpack.c.l.bf16 %v2355_v56 }
  0x8e   : > { %v930_v62 = vadd.f32 %v898_v24, %v798_v40  ;;  %v596_v22 = vmul.f32 %v3243_v33, %v567_v3  ;;  %v706_v53 = vrot.slane %v3305_v58, 2  ;;  %v867_v61 = vunpack.c.h.bf16 %v2355_v56 }
  0x8f   : > { %v2225_v27 = vpack.c.bf16 %v2193_v20, %v2193_v20  ;;  %v432_v28 = vsel %vm399_vm0, %v430_v51, %v431_v42  ;;  %v1248_v44 = vunpack.c.l.bf16 %v2399_v54  ;;  %v899_v29 = vmul.f32 %v3229_v32, %v866_v8 }
  0x90   : > { %v1204_v39 = vadd.f32 %v1110_v37, %v930_v62  ;;  %v524_v23 = vadd.f32 %v432_v28, %v249_v63  ;;  %v705_v13 = vrot.slane %v596_v22, 2  ;;  %v1003_v24 = vmul.f32 %v3252_v26, %v866_v8  ;;  %v275_v37 = vld [vmem:[%s2690_s21 + $0x50] sm:$0x1]  ;;  %v2382_v63 = vld [vmem:[%s2690_s21 + $0x5c] sm:$0x1] }
  0x91   : > { %2258 = vst.msk [vmem:[%s2831_s15 + $0x28] sm:$0xf] %vm2247_vm2, %v2225_v27  ;;  %v3322_v21 = vmul.f32 %v3252_v26, %v867_v61  ;;  %v1277_v59 = vmul.f32 %v3258_v0, %v1248_v44  ;;  %v3326_v7 = vmul.f32 %v3258_v0, %v867_v61  ;;  %v3331_v1 = vunpack.c.l.bf16 %v2594_v17  ;;  %v2449_v22 = vld [vmem:[%s2690_s21 + $0x68] sm:$0x1]  ;;  %v3364_v8 = vld [vmem:[%s4229_s2] ss:$0 sm:$0xff] }
  0x92   : > { %v1478_v14 = vadd.f32 %v1384_v4, %v1204_v39  ;;  %v707_v45 = vsel %vm674_vm1, %v705_v13, %v706_v53  ;;  %v3333_v41 = vunpack.c.h.bf16 %v2594_v17  ;;  %v1111_v50 = vrot.slane %v1003_v24, 1  ;;  %v185_v17 = vld [vmem:[%s2690_s21 + $0x54] sm:$0xff]  }
  0x93   : > { %v799_v2 = vadd.f32 %v707_v45, %v524_v23  ;;  %v1112_v15 = vrot.slane %v3322_v21, 1  ;;  %v1385_v48 = vrot.slane %v1277_v59, 2  ;;  %v2064_v11 = vsel %vm674_vm1, %v2061_v10, %v2063_v57 }
  0x94   : > { %v1610_v35 = vadd.f32 %v1578_v30, %v1478_v14  ;;  %v1386_v9 = vrot.slane %v3326_v7, 2  ;;  %v1683_v55 = vmul.f32 %v3264_v60, %v3331_v1  ;;  %v1684_v31 = vmul.f32 %v3264_v60, %v3333_v41 }
  0x95   : > { %v931_v36 = vadd.f32 %v899_v29, %v799_v2  ;;  %v1113_v43 = vsel %vm399_vm0, %v1111_v50, %v1112_v15  ;;  %v1928_v49 = vunpack.c.l.bf16 %v2466_v47  ;;  %v3350_v10 = vmul.f32 %v3270_v16, %v3333_v41 }
  0x96   : > { %v1884_v34 = vadd.f32 %v1790_v38, %v1610_v35  ;;  %v1387_v30 = vsel %vm674_vm1, %v1385_v48, %v1386_v9  ;;  %v1791_v25 = vrot.slane %v1683_v55, 1  ;;  %v1579_v4 = vmul.f32 %v3284_v46, %v3331_v1 }
  0x97   : > { %v1205_v5 = vadd.f32 %v1113_v43, %v931_v36  ;;  %v1792_v12 = vrot.slane %v1684_v31, 1  ;;  %v1957_v56 = vmul.f32 %v3270_v16, %v1928_v49  ;;  %v2066_v57 = vrot.slane %v3350_v10, 2 }
  0x98   : > { %v2158_v40 = vadd.f32 %v2064_v11, %v1884_v34  ;;  %v250_v3 = vmul.f32 %v3221_v18, %v3104_v52  ;;  %v292_v54 = vunpack.c.l.bf16 %v275_v37  ;;  %v900_v51 = vmul.f32 %v3229_v32, %v867_v61  ;;  %v551_v11 = vld [vmem:[%s2690_s21 + $0x54] sm:$0xe] }
  0x99   : > { %v1479_v20 = vadd.f32 %v1387_v30, %v1205_v5  ;;  %v2065_v38 = vrot.slane %v1957_v56, 2  ;;  %v974_v62 = vunpack.c.l.bf16 %v2382_v63  ;;  %v1793_v28 = vsel %vm399_vm0, %v1791_v25, %v1792_v12  ;;  %v2400_v5 = vld [vmem:[%s2690_s21 + $0x60] sm:$0xe] }
  0x9a   : > { %v2194_v27 = vadd.f32 %v3364_v8, %v2158_v40  ;;  %v323_v44 = vmul.f32 %v3237_v19, %v292_v54  ;;  %v598_v52 = vmul.f32 %v3243_v33, %v292_v54  ;;  %v1654_v59 = vunpack.c.l.bf16 %v2449_v22  ;;  %v2424_v54 = vld [vmem:[%s2690_s21 + $0x6c] sm:$0xff]  }
  0x9b   : > { %v1611_v39 = vadd.f32 %v1579_v4, %v1479_v20  ;;  %v2067_v61 = vsel %vm674_vm1, %v2065_v38, %v2066_v57  ;;  %v1005_v23 = vmul.f32 %v3252_v26, %v974_v62  ;;  %v1279_v13 = vmul.f32 %v3258_v0, %v974_v62 }
  0x9c   : > { %v2226_v29 = vpack.c.bf16 %v2194_v27, %v2194_v27  ;;  %v433_v24 = vrot.slane %v323_v44, 1  ;;  %v708_v21 = vrot.slane %v598_v52, 2  ;;  %v218_v47 = vunpack.c.l.bf16 %v185_v17 }
  0x9d   : > { %v1885_v7 = vadd.f32 %v1793_v28, %v1611_v39  ;;  %v1114_v14 = vrot.slane %v1005_v23, 1  ;;  %v1388_v45 = vrot.slane %v1279_v13, 2  ;;  %v1685_v48 = vmul.f32 %v3264_v60, %v1654_v59 }
  0x9e   : > { %2259 = vst.msk [vmem:[%s2831_s15 + $0x2c] sm:$0xf] %vm2247_vm2, %v2226_v29  ;;  %v434_v2 = vsel %vm399_vm0, %v431_v42, %v433_v24  ;;  %v709_v50 = vsel %vm674_vm1, %v706_v53, %v708_v21  ;;  %v1959_v35 = vmul.f32 %v3270_v16, %v1654_v59  ;;  %v1580_v31 = vmul.f32 %v3284_v46, %v3333_v41  ;;  %v2467_v24 = vld [vmem:[%s2690_s21 + $0x6c] sm:$0xe] }
  0x9f   : > { %v2159_v55 = vadd.f32 %v2067_v61, %v1885_v7  ;;  %v525_v36 = vadd.f32 %v434_v2, %v250_v3  ;;  %v1115_v43 = vsel %vm399_vm0, %v1112_v15, %v1114_v14  ;;  %v1389_v6 = vsel %vm674_vm1, %v1386_v9, %v1388_v45 }
  0xa0   : > { %v1794_v42 = vrot.slane %v1685_v48, 1  ;;  %v2068_v58 = vrot.slane %v1959_v35, 2  ;;  %v219_v49 = vunpack.c.h.bf16 %v185_v17  ;;  %v324_v34 = vmul.f32 %v3237_v19, %v218_v47 }
  0xa1   : > { %v2195_v53 = vadd.f32 %v3364_v8, %v2159_v55  ;;  %v800_v37 = vadd.f32 %v709_v50, %v525_v36  ;;  %v568_v30 = vunpack.c.l.bf16 %v551_v11  ;;  %v251_v15 = vmul.f32 %v3221_v18, %v218_v47 }
  0xa2   : > { %v1795_v25 = vsel %vm399_vm0, %v1792_v12, %v1794_v42  ;;  %v3396_v63 = vmul.f32 %v3237_v19, %v219_v49  ;;  %v3399_v9 = vmul.f32 %v3243_v33, %v219_v49  ;;  %v435_v40 = vrot.slane %v324_v34, 1 }
  0xa3   : > { %v2227_v4 = vpack.c.bf16 %v2195_v53, %v2195_v53  ;;  %v932_v56 = vadd.f32 %v900_v51, %v800_v37  ;;  %v599_v3 = vmul.f32 %v3243_v33, %v568_v30  ;;  %v901_v12 = vmul.f32 %v3229_v32, %v3331_v1 }
  0xa4   : > { %v436_v20 = vrot.slane %v3396_v63, 1  ;;  %v711_v38 = vrot.slane %v3399_v9, 2  ;;  %v1006_v62 = vmul.f32 %v3252_v26, %v3331_v1  ;;  %v3414_v51 = vmul.f32 %v3252_v26, %v3333_v41 }
  0xa5   : > { %2260 = vst.msk [vmem:[%s2831_s15 + $0x30] sm:$0xf] %vm2247_vm2, %v2227_v4  ;;  %v1206_v22 = vadd.f32 %v1115_v43, %v932_v56  ;;  %v710_v27 = vrot.slane %v599_v3, 2  ;;  %v1249_v28 = vunpack.c.l.bf16 %v2400_v5  ;;  %v3421_v17 = vmul.f32 %v3258_v0, %v3333_v41  ;;  %v2450_v4 = vld [vmem:[%s2690_s21 + $0x74] sm:$0x1] }
  0xa6   : > { %v437_v44 = vsel %vm399_vm0, %v435_v40, %v436_v20  ;;  %v1116_v52 = vrot.slane %v1006_v62, 1  ;;  %v1548_v39 = vunpack.c.l.bf16 %v2424_v54  ;;  %v1117_v29 = vrot.slane %v3414_v51, 1 }
  0xa7   : > { %v1480_v61 = vadd.f32 %v1389_v6, %v1206_v22  ;;  %v526_v23 = vadd.f32 %v437_v44, %v251_v15  ;;  %v712_v13 = vsel %vm674_vm1, %v710_v27, %v711_v38  ;;  %v2069_v21 = vsel %vm674_vm1, %v2066_v57, %v2068_v58  ;;  %v276_v57 = vld [vmem:[%s2690_s21 + $0x5c] sm:$0x1] }
  0xa8   : > { %v1280_v59 = vmul.f32 %v3258_v0, %v1249_v28  ;;  %v1391_v7 = vrot.slane %v3421_v17, 2  ;;  %v1549_v14 = vunpack.c.h.bf16 %v2424_v54  ;;  %v1118_v2 = vsel %vm399_vm0, %v1116_v52, %v1117_v29 }
  0xa9   : > { %v1612_v45 = vadd.f32 %v1580_v31, %v1480_v61  ;;  %v801_v47 = vadd.f32 %v712_v13, %v526_v23  ;;  %v1686_v50 = vmul.f32 %v3264_v60, %v1548_v39  ;;  %v1929_v11 = vunpack.c.l.bf16 %v2467_v24  ;;  %v2383_v31 = vld [vmem:[%s2690_s21 + $0x68] sm:$0x1] }
  0xaa   : > { %v1390_v48 = vrot.slane %v1280_v59, 2  ;;  %v1687_v35 = vmul.f32 %v3264_v60, %v1549_v14  ;;  %v3437_v10 = vmul.f32 %v3270_v16, %v1549_v14  ;;  %v1581_v43 = vmul.f32 %v3284_v46, %v1548_v39 }
  0xab   : > { %v1886_v55 = vadd.f32 %v1795_v25, %v1612_v45  ;;  %v933_v36 = vadd.f32 %v901_v12, %v801_v47  ;;  %v1796_v6 = vrot.slane %v1686_v50, 1  ;;  %v1960_v53 = vmul.f32 %v3270_v16, %v1929_v11 }
  0xac   : > { %v1392_v42 = vsel %vm674_vm1, %v1390_v48, %v1391_v7  ;;  %v1797_v58 = vrot.slane %v1687_v35, 1  ;;  %v2071_v37 = vrot.slane %v3437_v10, 2  ;;  %v252_v15 = vmul.f32 %v3221_v18, %v219_v49 }
  0xad   : > { %v2160_v34 = vadd.f32 %v2069_v21, %v1886_v55  ;;  %v1207_v30 = vadd.f32 %v1118_v2, %v933_v36  ;;  %v293_v5 = vunpack.c.l.bf16 %v276_v57  ;;  %v2070_v56 = vrot.slane %v1960_v53, 2  ;;  %v552_v2 = vld [vmem:[%s2690_s21 + $0x60] sm:$0xe] }
  0xae   : > { %v1798_v25 = vsel %vm399_vm0, %v1796_v6, %v1797_v58  ;;  %v902_v40 = vmul.f32 %v3229_v32, %v3333_v41  ;;  %v975_v3 = vunpack.c.l.bf16 %v2383_v31  ;;  %v1655_v28 = vunpack.c.l.bf16 %v2450_v4 }
  0xaf   : > { %v2196_v54 = vadd.f32 %v3364_v8, %v2160_v34  ;;  %v1481_v12 = vadd.f32 %v1392_v42, %v1207_v30  ;;  %v326_v62 = vmul.f32 %v3237_v19, %v293_v5  ;;  %v601_v22 = vmul.f32 %v3243_v33, %v293_v5 }
  0xb0   : > { %v2072_v49 = vsel %vm674_vm1, %v2070_v56, %v2071_v37  ;;  %v1008_v27 = vmul.f32 %v3252_v26, %v975_v3  ;;  %v1282_v51 = vmul.f32 %v3258_v0, %v975_v3  ;;  %v1688_v13 = vmul.f32 %v3264_v60, %v1655_v28  ;;  %v2595_v56 = vld [vmem:[%s2690_s21 + $0x78] sm:$0xff]  }
  0xb1   : > { %v2228_v44 = vpack.c.bf16 %v2196_v54, %v2196_v54  ;;  %v1613_v52 = vadd.f32 %v1581_v43, %v1481_v12  ;;  %v438_v17 = vrot.slane %v326_v62, 1  ;;  %v713_v39 = vrot.slane %v601_v22, 2  ;;  %v2401_v43 = vld [vmem:[%s2690_s21 + $0x6c] sm:$0xe] }
  0xb2   : > { %v1119_v61 = vrot.slane %v1008_v27, 1  ;;  %v1393_v23 = vrot.slane %v1282_v51, 2  ;;  %v1962_v24 = vmul.f32 %v3270_v16, %v1655_v28  ;;  %v1582_v47 = vmul.f32 %v3284_v46, %v1549_v14 }
  0xb3   : > { %2261 = vst.msk [vmem:[%s2831_s15 + $0x34] sm:$0xf] %vm2247_vm2, %v2228_v44  ;;  %v1887_v21 = vadd.f32 %v1798_v25, %v1613_v52  ;;  %v439_v59 = vsel %vm399_vm0, %v436_v20, %v438_v17  ;;  %v714_v45 = vsel %vm674_vm1, %v711_v38, %v713_v39  ;;  %v1799_v35 = vrot.slane %v1688_v13, 1  ;;  %v2359_v38 = vld [vmem:[%s2690_s21 + $0x6c] sm:$0xff]   ;;  %v2468_v52 = vld [vmem:[%s2690_s21 + $0x78] sm:$0xe] }
  0xb4   : > { %v527_v50 = vadd.f32 %v439_v59, %v252_v15  ;;  %v1120_v48 = vsel %vm399_vm0, %v1117_v29, %v1119_v61  ;;  %v253_v11 = vmul.f32 %v3221_v18, %v3331_v1  ;;  %v1394_v63 = vsel %vm674_vm1, %v1391_v7, %v1393_v23 }
  0xb5   : > { %v2161_v57 = vadd.f32 %v2072_v49, %v1887_v21  ;;  %v327_v20 = vmul.f32 %v3237_v19, %v3331_v1  ;;  %v3478_v9 = vmul.f32 %v3237_v19, %v3333_v41  ;;  %v2073_v55 = vrot.slane %v1962_v24, 2 }
  0xb6   : > { %v802_v14 = vadd.f32 %v714_v45, %v527_v50  ;;  %v569_v36 = vunpack.c.l.bf16 %v552_v2  ;;  %v3483_v29 = vmul.f32 %v3243_v33, %v3333_v41  ;;  %v1800_v7 = vsel %vm399_vm0, %v1797_v58, %v1799_v35  ;;  %v277_v35 = vld [vmem:[%s2690_s21 + $0x68] sm:$0x1] }
  0xb7   : > { %v2197_v6 = vadd.f32 %v3364_v8, %v2161_v57  ;;  %v440_v1 = vrot.slane %v327_v20, 1  ;;  %v441_v31 = vrot.slane %v3478_v9, 1  ;;  %v870_v30 = vunpack.c.l.bf16 %v2359_v38  ;;  %v2384_v57 = vld [vmem:[%s2690_s21 + $0x74] sm:$0x1] }
  0xb8   : > { %v934_v42 = vadd.f32 %v902_v40, %v802_v14  ;;  %v602_v53 = vmul.f32 %v3243_v33, %v569_v36  ;;  %v716_v34 = vrot.slane %v3483_v29, 2  ;;  %v871_v4 = vunpack.c.h.bf16 %v2359_v38 }
  0xb9   : > { %v2229_v15 = vpack.c.bf16 %v2197_v6, %v2197_v6  ;;  %v442_v5 = vsel %vm399_vm0, %v440_v1, %v441_v31  ;;  %v1250_v25 = vunpack.c.l.bf16 %v2401_v43  ;;  %v903_v12 = vmul.f32 %v3229_v32, %v870_v30 }
  0xba   : > { %v1208_v58 = vadd.f32 %v1120_v48, %v934_v42  ;;  %v528_v3 = vadd.f32 %v442_v5, %v253_v11  ;;  %v715_v54 = vrot.slane %v602_v53, 2  ;;  %v1009_v40 = vmul.f32 %v3252_v26, %v870_v30  ;;  %v2451_v30 = vld [vmem:[%s2690_s21 + $0x80] sm:$0x1] }
  0xbb   : > { %2262 = vst.msk [vmem:[%s2831_s15 + $0x38] sm:$0xf] %vm2247_vm2, %v2229_v15  ;;  %v3500_v62 = vmul.f32 %v3252_v26, %v871_v4  ;;  %v1283_v22 = vmul.f32 %v3258_v0, %v1250_v25  ;;  %v3504_v49 = vmul.f32 %v3258_v0, %v871_v4  ;;  %v3509_v28 = vunpack.c.l.bf16 %v2595_v56 }
  0xbc   : > { %v1482_v27 = vadd.f32 %v1394_v63, %v1208_v58  ;;  %v717_v51 = vsel %vm674_vm1, %v715_v54, %v716_v34  ;;  %v3511_v44 = vunpack.c.h.bf16 %v2595_v56  ;;  %v1121_v39 = vrot.slane %v1009_v40, 1  ;;  %v189_v58 = vld [vmem:[%s2690_s21 + $0x6c] sm:$0xff]  }
  0xbd   : > { %v803_v17 = vadd.f32 %v717_v51, %v528_v3  ;;  %v1122_v61 = vrot.slane %v3500_v62, 1  ;;  %v1395_v23 = vrot.slane %v1283_v22, 2  ;;  %v2074_v24 = vsel %vm674_vm1, %v2071_v37, %v2073_v55 }
  0xbe   : > { %v1614_v13 = vadd.f32 %v1582_v47, %v1482_v27  ;;  %v1396_v21 = vrot.slane %v3504_v49, 2  ;;  %v1689_v59 = vmul.f32 %v3264_v60, %v3509_v28  ;;  %v1690_v50 = vmul.f32 %v3264_v60, %v3511_v44 }
  0xbf   : > { %v935_v45 = vadd.f32 %v903_v12, %v803_v17  ;;  %v1123_v2 = vsel %vm399_vm0, %v1121_v39, %v1122_v61  ;;  %v1930_v48 = vunpack.c.l.bf16 %v2468_v52  ;;  %v3528_v37 = vmul.f32 %v3270_v16, %v3511_v44 }
  0xc0   : > { %v1888_v11 = vadd.f32 %v1800_v7, %v1614_v13  ;;  %v1397_v47 = vsel %vm674_vm1, %v1395_v23, %v1396_v21  ;;  %v1801_v10 = vrot.slane %v1689_v59, 1  ;;  %v1583_v20 = vmul.f32 %v3284_v46, %v3509_v28 }
  0xc1   : > { %v1209_v63 = vadd.f32 %v1123_v2, %v935_v45  ;;  %v1802_v38 = vrot.slane %v1690_v50, 1  ;;  %v1963_v14 = vmul.f32 %v3270_v16, %v1930_v48  ;;  %v2076_v36 = vrot.slane %v3528_v37, 2 }
  0xc2   : > { %v2162_v55 = vadd.f32 %v2074_v24, %v1888_v11  ;;  %v254_v43 = vmul.f32 %v3221_v18, %v3333_v41  ;;  %v294_v6 = vunpack.c.l.bf16 %v277_v35  ;;  %v904_v42 = vmul.f32 %v3229_v32, %v871_v4  ;;  %v553_v24 = vld [vmem:[%s2690_s21 + $0x6c] sm:$0xe] }
  0xc3   : > { %v1483_v7 = vadd.f32 %v1397_v47, %v1209_v63  ;;  %v2075_v1 = vrot.slane %v1963_v14, 2  ;;  %v976_v53 = vunpack.c.l.bf16 %v2384_v57  ;;  %v1803_v5 = vsel %vm399_vm0, %v1801_v10, %v1802_v38  ;;  %v2402_v63 = vld [vmem:[%s2690_s21 + $0x78] sm:$0xe] }
  0xc4   : > { %v2198_v15 = vadd.f32 %v3364_v8, %v2162_v55  ;;  %v329_v25 = vmul.f32 %v3237_v19, %v294_v6  ;;  %v604_v56 = vmul.f32 %v3243_v33, %v294_v6  ;;  %v1656_v22 = vunpack.c.l.bf16 %v2451_v30  ;;  %v2428_v6 = vld [vmem:[%s2690_s21 + $0x84] sm:$0xff]  }
  0xc5   : > { %v1615_v3 = vadd.f32 %v1583_v20, %v1483_v7  ;;  %v2077_v41 = vsel %vm674_vm1, %v2075_v1, %v2076_v36  ;;  %v1011_v4 = vmul.f32 %v3252_v26, %v976_v53  ;;  %v1285_v54 = vmul.f32 %v3258_v0, %v976_v53 }
  0xc6   : > { %v2230_v12 = vpack.c.bf16 %v2198_v15, %v2198_v15  ;;  %v443_v40 = vrot.slane %v329_v25, 1  ;;  %v718_v62 = vrot.slane %v604_v56, 2  ;;  %v222_v52 = vunpack.c.l.bf16 %v189_v58 }
  0xc7   : > { %v1889_v49 = vadd.f32 %v1803_v5, %v1615_v3  ;;  %v1124_v27 = vrot.slane %v1011_v4, 1  ;;  %v1398_v51 = vrot.slane %v1285_v54, 2  ;;  %v1691_v23 = vmul.f32 %v3264_v60, %v1656_v22 }
  0xc8   : > { %2263 = vst.msk [vmem:[%s2831_s15 + $0x3c] sm:$0xf] %vm2247_vm2, %v2230_v12  ;;  %v444_v17 = vsel %vm399_vm0, %v441_v31, %v443_v40  ;;  %v719_v39 = vsel %vm674_vm1, %v716_v34, %v718_v62  ;;  %v1965_v13 = vmul.f32 %v3270_v16, %v1656_v22  ;;  %v1584_v50 = vmul.f32 %v3284_v46, %v3511_v44  ;;  %v2469_v40 = vld [vmem:[%s2690_s21 + $0x84] sm:$0xe] }
  0xc9   : > { %v2163_v59 = vadd.f32 %v2077_v41, %v1889_v49  ;;  %v529_v45 = vadd.f32 %v444_v17, %v254_v43  ;;  %v1125_v2 = vsel %vm399_vm0, %v1122_v61, %v1124_v27  ;;  %v1399_v9 = vsel %vm674_vm1, %v1396_v21, %v1398_v51 }
  0xca   : > { %v1804_v31 = vrot.slane %v1691_v23, 1  ;;  %v2078_v29 = vrot.slane %v1965_v13, 2  ;;  %v223_v48 = vunpack.c.h.bf16 %v189_v58  ;;  %v330_v11 = vmul.f32 %v3237_v19, %v222_v52 }
  0xcb   : > { %v2199_v34 = vadd.f32 %v3364_v8, %v2163_v59  ;;  %v804_v35 = vadd.f32 %v719_v39, %v529_v45  ;;  %v570_v47 = vunpack.c.l.bf16 %v553_v24  ;;  %v255_v61 = vmul.f32 %v3221_v18, %v222_v52 }
  0xcc   : > { %v1805_v10 = vsel %vm399_vm0, %v1802_v38, %v1804_v31  ;;  %v3569_v57 = vmul.f32 %v3237_v19, %v223_v48  ;;  %v3572_v21 = vmul.f32 %v3243_v33, %v223_v48  ;;  %v445_v55 = vrot.slane %v330_v11, 1 }
  0xcd   : > { %v2231_v20 = vpack.c.bf16 %v2199_v34, %v2199_v34  ;;  %v936_v14 = vadd.f32 %v904_v42, %v804_v35  ;;  %v605_v43 = vmul.f32 %v3243_v33, %v570_v47  ;;  %v905_v38 = vmul.f32 %v3229_v32, %v3509_v28 }
  0xce   : > { %v446_v7 = vrot.slane %v3569_v57, 1  ;;  %v721_v1 = vrot.slane %v3572_v21, 2  ;;  %v1012_v53 = vmul.f32 %v3252_v26, %v3509_v28  ;;  %v3587_v42 = vmul.f32 %v3252_v26, %v3511_v44 }
  0xcf   : > { %2264 = vst.msk [vmem:[%s2831_s15 + $0x40] sm:$0xf] %vm2247_vm2, %v2231_v20  ;;  %v1210_v30 = vadd.f32 %v1125_v2, %v936_v14  ;;  %v720_v15 = vrot.slane %v605_v43, 2  ;;  %v1251_v5 = vunpack.c.l.bf16 %v2402_v63  ;;  %v3594_v58 = vmul.f32 %v3258_v0, %v3511_v44  ;;  %v2452_v20 = vld [vmem:[%s2690_s21 + $0x8c] sm:$0x1] }
  0xd0   : > { %v447_v25 = vsel %vm399_vm0, %v445_v55, %v446_v7  ;;  %v1126_v56 = vrot.slane %v1012_v53, 1  ;;  %v1552_v3 = vunpack.c.l.bf16 %v2428_v6  ;;  %v1127_v12 = vrot.slane %v3587_v42, 1 }
  0xd1   : > { %v1484_v41 = vadd.f32 %v1399_v9, %v1210_v30  ;;  %v530_v4 = vadd.f32 %v447_v25, %v255_v61  ;;  %v722_v54 = vsel %vm674_vm1, %v720_v15, %v721_v1  ;;  %v2079_v62 = vsel %vm674_vm1, %v2076_v36, %v2078_v29  ;;  %v278_v36 = vld [vmem:[%s2690_s21 + $0x74] sm:$0x1] }
  0xd2   : > { %v1286_v22 = vmul.f32 %v3258_v0, %v1251_v5  ;;  %v1401_v49 = vrot.slane %v3594_v58, 2  ;;  %v1553_v27 = vunpack.c.h.bf16 %v2428_v6  ;;  %v1128_v17 = vsel %vm399_vm0, %v1126_v56, %v1127_v12 }
  0xd3   : > { %v1616_v51 = vadd.f32 %v1584_v50, %v1484_v41  ;;  %v805_v52 = vadd.f32 %v722_v54, %v530_v4  ;;  %v1692_v39 = vmul.f32 %v3264_v60, %v1552_v3  ;;  %v1931_v24 = vunpack.c.l.bf16 %v2469_v40  ;;  %v2385_v50 = vld [vmem:[%s2690_s21 + $0x80] sm:$0x1] }
  0xd4   : > { %v1400_v23 = vrot.slane %v1286_v22, 2  ;;  %v1693_v13 = vmul.f32 %v3264_v60, %v1553_v27  ;;  %v3610_v37 = vmul.f32 %v3270_v16, %v1553_v27  ;;  %v1585_v2 = vmul.f32 %v3284_v46, %v1552_v3 }
  0xd5   : > { %v1890_v59 = vadd.f32 %v1805_v10, %v1616_v51  ;;  %v937_v45 = vadd.f32 %v905_v38, %v805_v52  ;;  %v1806_v9 = vrot.slane %v1692_v39, 1  ;;  %v1966_v34 = vmul.f32 %v3270_v16, %v1931_v24 }
  0xd6   : > { %v1402_v31 = vsel %vm674_vm1, %v1400_v23, %v1401_v49  ;;  %v1807_v29 = vrot.slane %v1693_v13, 1  ;;  %v2081_v35 = vrot.slane %v3610_v37, 2  ;;  %v256_v61 = vmul.f32 %v3221_v18, %v223_v48 }
  0xd7   : > { %v2164_v11 = vadd.f32 %v2079_v62, %v1890_v59  ;;  %v1211_v47 = vadd.f32 %v1128_v17, %v937_v45  ;;  %v295_v63 = vunpack.c.l.bf16 %v278_v36  ;;  %v2080_v14 = vrot.slane %v1966_v34, 2  ;;  %v554_v17 = vld [vmem:[%s2690_s21 + $0x78] sm:$0xe] }
  0xd8   : > { %v1808_v10 = vsel %vm399_vm0, %v1806_v9, %v1807_v29  ;;  %v906_v55 = vmul.f32 %v3229_v32, %v3511_v44  ;;  %v977_v43 = vunpack.c.l.bf16 %v2385_v50  ;;  %v1657_v5 = vunpack.c.l.bf16 %v2452_v20 }
  0xd9   : > { %v2200_v6 = vadd.f32 %v3364_v8, %v2164_v11  ;;  %v1485_v38 = vadd.f32 %v1402_v31, %v1211_v47  ;;  %v332_v53 = vmul.f32 %v3237_v19, %v295_v63  ;;  %v607_v30 = vmul.f32 %v3243_v33, %v295_v63 }
  0xda   : > { %v2082_v48 = vsel %vm674_vm1, %v2080_v14, %v2081_v35  ;;  %v1014_v15 = vmul.f32 %v3252_v26, %v977_v43  ;;  %v1288_v42 = vmul.f32 %v3258_v0, %v977_v43  ;;  %v1694_v54 = vmul.f32 %v3264_v60, %v1657_v5  ;;  %v2596_v14 = vld [vmem:[%s2690_s21 + $0x90] sm:$0xff]  }
  0xdb   : > { %v2232_v25 = vpack.c.bf16 %v2200_v6, %v2200_v6  ;;  %v1617_v56 = vadd.f32 %v1585_v2, %v1485_v38  ;;  %v448_v58 = vrot.slane %v332_v53, 1  ;;  %v723_v3 = vrot.slane %v607_v30, 2  ;;  %v2403_v2 = vld [vmem:[%s2690_s21 + $0x84] sm:$0xe] }
  0xdc   : > { %v1129_v41 = vrot.slane %v1014_v15, 1  ;;  %v1403_v4 = vrot.slane %v1288_v42, 2  ;;  %v1968_v40 = vmul.f32 %v3270_v16, %v1657_v5  ;;  %v1586_v52 = vmul.f32 %v3284_v46, %v1553_v27 }
  0xdd   : > { %2265 = vst.msk [vmem:[%s2831_s15 + $0x44] sm:$0xf] %vm2247_vm2, %v2232_v25  ;;  %v1891_v62 = vadd.f32 %v1808_v10, %v1617_v56  ;;  %v449_v22 = vsel %vm399_vm0, %v446_v7, %v448_v58  ;;  %v724_v51 = vsel %vm674_vm1, %v721_v1, %v723_v3  ;;  %v1809_v13 = vrot.slane %v1694_v54, 1  ;;  %v2363_v1 = vld [vmem:[%s2690_s21 + $0x84] sm:$0xff]   ;;  %v2470_v56 = vld [vmem:[%s2690_s21 + $0x90] sm:$0xe] }
  0xde   : > { %v531_v39 = vadd.f32 %v449_v22, %v256_v61  ;;  %v1130_v23 = vsel %vm399_vm0, %v1127_v12, %v1129_v41  ;;  %v257_v24 = vmul.f32 %v3221_v18, %v3509_v28  ;;  %v1404_v57 = vsel %vm674_vm1, %v1401_v49, %v1403_v4 }
  0xdf   : > { %v2165_v36 = vadd.f32 %v2082_v48, %v1891_v62  ;;  %v333_v7 = vmul.f32 %v3237_v19, %v3509_v28  ;;  %v3651_v21 = vmul.f32 %v3237_v19, %v3511_v44  ;;  %v2083_v59 = vrot.slane %v1968_v40, 2 }
  0xe0   : > { %v806_v27 = vadd.f32 %v724_v51, %v531_v39  ;;  %v571_v45 = vunpack.c.l.bf16 %v554_v17  ;;  %v3656_v12 = vmul.f32 %v3243_v33, %v3511_v44  ;;  %v1810_v49 = vsel %vm399_vm0, %v1807_v29, %v1809_v13  ;;  %v279_v13 = vld [vmem:[%s2690_s21 + $0x80] sm:$0x1] }
  0xe1   : > { %v2201_v9 = vadd.f32 %v3364_v8, %v2165_v36  ;;  %v450_v28 = vrot.slane %v333_v7, 1  ;;  %v451_v50 = vrot.slane %v3651_v21, 1  ;;  %v874_v47 = vunpack.c.l.bf16 %v2363_v1  ;;  %v2386_v36 = vld [vmem:[%s2690_s21 + $0x8c] sm:$0x1] }
  0xe2   : > { %v938_v31 = vadd.f32 %v906_v55, %v806_v27  ;;  %v608_v34 = vmul.f32 %v3243_v33, %v571_v45  ;;  %v726_v11 = vrot.slane %v3656_v12, 2  ;;  %v875_v20 = vunpack.c.h.bf16 %v2363_v1 }
  0xe3   : > { %v2233_v61 = vpack.c.bf16 %v2201_v9, %v2201_v9  ;;  %v452_v63 = vsel %vm399_vm0, %v450_v28, %v451_v50  ;;  %v1252_v10 = vunpack.c.l.bf16 %v2403_v2  ;;  %v907_v38 = vmul.f32 %v3229_v32, %v874_v47 }
  0xe4   : > { %v1212_v29 = vadd.f32 %v1130_v23, %v938_v31  ;;  %v532_v43 = vadd.f32 %v452_v63, %v257_v24  ;;  %v725_v6 = vrot.slane %v608_v34, 2  ;;  %v1015_v55 = vmul.f32 %v3252_v26, %v874_v47  ;;  %v2453_v47 = vld [vmem:[%s2690_s21 + $0x98] sm:$0x1] }
  0xe5   : > { %2266 = vst.msk [vmem:[%s2831_s15 + $0x48] sm:$0xf] %vm2247_vm2, %v2233_v61  ;;  %v3673_v53 = vmul.f32 %v3252_v26, %v875_v20  ;;  %v1289_v30 = vmul.f32 %v3258_v0, %v1252_v10  ;;  %v3677_v48 = vmul.f32 %v3258_v0, %v875_v20  ;;  %v3682_v5 = vunpack.c.l.bf16 %v2596_v14 }
  0xe6   : > { %v1486_v15 = vadd.f32 %v1404_v57, %v1212_v29  ;;  %v727_v42 = vsel %vm674_vm1, %v725_v6, %v726_v11  ;;  %v3684_v25 = vunpack.c.h.bf16 %v2596_v14  ;;  %v1131_v3 = vrot.slane %v1015_v55, 1  ;;  %v193_v29 = vld [vmem:[%s2690_s21 + $0x84] sm:$0xff]  }
  0xe7   : > { %v807_v58 = vadd.f32 %v727_v42, %v532_v43  ;;  %v1132_v41 = vrot.slane %v3673_v53, 1  ;;  %v1405_v4 = vrot.slane %v1289_v30, 2  ;;  %v2084_v40 = vsel %vm674_vm1, %v2081_v35, %v2083_v59 }
  0xe8   : > { %v1618_v54 = vadd.f32 %v1586_v52, %v1486_v15  ;;  %v1406_v62 = vrot.slane %v3677_v48, 2  ;;  %v1695_v22 = vmul.f32 %v3264_v60, %v3682_v5  ;;  %v1696_v39 = vmul.f32 %v3264_v60, %v3684_v25 }
  0xe9   : > { %v939_v51 = vadd.f32 %v907_v38, %v807_v58  ;;  %v1133_v17 = vsel %vm399_vm0, %v1131_v3, %v1132_v41  ;;  %v1932_v23 = vunpack.c.l.bf16 %v2470_v56  ;;  %v3701_v35 = vmul.f32 %v3270_v16, %v3684_v25  ;;  %v555_v58 = vld [vmem:[%s2690_s21 + $0x84] sm:$0xe] }
  0xea   : > { %v1892_v24 = vadd.f32 %v1810_v49, %v1618_v54  ;;  %v1407_v52 = vsel %vm674_vm1, %v1405_v4, %v1406_v62  ;;  %v1811_v37 = vrot.slane %v1695_v22, 1  ;;  %v1587_v7 = vmul.f32 %v3284_v46, %v3682_v5 }
  0xeb   : > { %v1213_v57 = vadd.f32 %v1133_v17, %v939_v51  ;;  %v1812_v1 = vrot.slane %v1696_v39, 1  ;;  %v1969_v27 = vmul.f32 %v3270_v16, %v1932_v23  ;;  %v2086_v45 = vrot.slane %v3701_v35, 2  ;;  %v2404_v23 = vld [vmem:[%s2690_s21 + $0x90] sm:$0xe] }
  0xec   : > { %v2166_v59 = vadd.f32 %v2084_v40, %v1892_v24  ;;  %v258_v2 = vmul.f32 %v3221_v18, %v3511_v44  ;;  %v296_v9 = vunpack.c.l.bf16 %v279_v13  ;;  %v908_v31 = vmul.f32 %v3229_v32, %v875_v20 }
  0xed   : > { %v1487_v49 = vadd.f32 %v1407_v52, %v1213_v57  ;;  %v2085_v28 = vrot.slane %v1969_v27, 2  ;;  %v978_v34 = vunpack.c.l.bf16 %v2386_v36  ;;  %v1813_v63 = vsel %vm399_vm0, %v1811_v37, %v1812_v1  ;;  %v2432_v36 = vld [vmem:[%s2690_s21 + $0x9c] sm:$0xff]   ;;  %v3771_v27 = vld [vmem:[%s4228_s1 + $0x5] ss:$0 sm:$0xff] }
  0xee   : > { %v2202_v61 = vadd.f32 %v3364_v8, %v2166_v59  ;;  %v335_v10 = vmul.f32 %v3237_v19, %v296_v9  ;;  %v610_v14 = vmul.f32 %v3243_v33, %v296_v9  ;;  %v1658_v55 = vunpack.c.l.bf16 %v2453_v47 }
  0xef   : > { %v1619_v43 = vadd.f32 %v1587_v7, %v1487_v49  ;;  %v2087_v18 = vsel %vm674_vm1, %v2085_v28, %v2086_v45  ;;  %v1017_v32 = vmul.f32 %v3252_v26, %v978_v34  ;;  %v1291_v44 = vmul.f32 %v3258_v0, %v978_v34  ;;  %v3787_v34 = vld [vmem:[%s4228_s1 + $0x6] ss:$0 sm:$0xff] }
  0xf0   : > { %v2234_v20 = vpack.c.bf16 %v2202_v61, %v2202_v61  ;;  %v453_v6 = vrot.slane %v335_v10, 1  ;;  %v728_v38 = vrot.slane %v610_v14, 2  ;;  %v226_v15 = vunpack.c.l.bf16 %v193_v29 }
  0xf1   : > { %v1893_v53 = vadd.f32 %v1813_v63, %v1619_v43  ;;  %v1134_v30 = vrot.slane %v1017_v32, 1  ;;  %v1408_v48 = vrot.slane %v1291_v44, 2  ;;  %v1697_v0 = vmul.f32 %v3264_v60, %v1658_v55  ;;  %v2471_v43 = vld [vmem:[%s2690_s21 + $0x9c] sm:$0xe] }
  0xf2   : > { %2267 = vst.msk [vmem:[%s2831_s15 + $0x4c] sm:$0xf] %vm2247_vm2, %v2234_v20  ;;  %v454_v42 = vsel %vm399_vm0, %v451_v50, %v453_v6  ;;  %v729_v26 = vsel %vm674_vm1, %v726_v11, %v728_v38  ;;  %v1971_v56 = vmul.f32 %v3270_v16, %v1658_v55  ;;  %v1588_v40 = vmul.f32 %v3284_v46, %v3684_v25 }
  0xf3   : > { %v2167_v3 = vadd.f32 %v2087_v18, %v1893_v53  ;;  %v533_v4 = vadd.f32 %v454_v42, %v258_v2  ;;  %v1135_v54 = vsel %vm399_vm0, %v1132_v41, %v1134_v30  ;;  %v1409_v21 = vsel %vm674_vm1, %v1406_v62, %v1408_v48  ;;  %v3745_v41 = vld [vmem:[%s4228_s1] ss:$0 sm:$0xff]  ;;  %v3807_v53 = vld [vmem:[%s4228_s1 + $0x9] ss:$0 sm:$0xff] }
  0xf4   : > { %v1814_v50 = vrot.slane %v1697_v0, 1  ;;  %v2088_v22 = vrot.slane %v1971_v56, 2  ;;  %v3737_v12 = vunpack.c.h.bf16 %v193_v29  ;;  %v336_v16 = vmul.f32 %v3237_v19, %v226_v15 }
  0xf5   : > { %v2203_v60 = vadd.f32 %v3364_v8, %v2167_v3  ;;  %v808_v11 = vadd.f32 %v729_v26, %v533_v4  ;;  %v572_v51 = vunpack.c.l.bf16 %v555_v58  ;;  %v259_v46 = vmul.f32 %v3745_v41, %v226_v15  ;;  %v3816_v15 = vld [vmem:[%s4228_s1 + $0xa] ss:$0 sm:$0xff]  ;;  %v280_v26 = vld [vmem:[%s2690_s21 + $0x8c] sm:$0x1]  ;;  %v3825_v58 = vld [vmem:[%s4228_s1 + $0x8] ss:$0 sm:$0xff] }
  0xf6   : > { %v1815_v17 = vsel %vm399_vm0, %v1812_v1, %v1814_v50  ;;  %v3750_v62 = vmul.f32 %v3237_v19, %v3737_v12  ;;  %v3754_v39 = vmul.f32 %v3243_v33, %v3737_v12  ;;  %v455_v52 = vrot.slane %v336_v16, 1  ;;  %v3764_v19 = vld [vmem:[%s4228_s1 + $0x4] ss:$0 sm:$0xff] }
  0xf7   : > { %v2235_v13 = vpack.c.bf16 %v2203_v60, %v2203_v60  ;;  %v940_v24 = vadd.f32 %v908_v31, %v808_v11  ;;  %v611_v37 = vmul.f32 %v3243_v33, %v572_v51  ;;  %v909_v1 = vmul.f32 %v3764_v19, %v3682_v5 }
  0xf8   : > { %v456_v57 = vrot.slane %v3750_v62, 1  ;;  %v731_v7 = vrot.slane %v3754_v39, 2  ;;  %v1018_v33 = vmul.f32 %v3771_v27, %v3682_v5  ;;  %v3779_v9 = vmul.f32 %v3771_v27, %v3684_v25 }
  0xf9   : > { %2268 = vst.msk [vmem:[%s2831_s15 + $0x50] sm:$0xf] %vm2247_vm2, %v2235_v13  ;;  %v1214_v59 = vadd.f32 %v1135_v54, %v940_v24  ;;  %v730_v2 = vrot.slane %v611_v37, 2  ;;  %v1253_v49 = vunpack.c.l.bf16 %v2404_v23  ;;  %v3791_v47 = vmul.f32 %v3787_v34, %v3684_v25  ;;  %v2387_v54 = vld [vmem:[%s2690_s21 + $0x98] sm:$0x1] }
  0xfa   : > { %v457_v28 = vsel %vm399_vm0, %v455_v52, %v456_v57  ;;  %v1136_v31 = vrot.slane %v1018_v33, 1  ;;  %v1556_v61 = vunpack.c.l.bf16 %v2432_v36  ;;  %v1137_v29 = vrot.slane %v3779_v9, 1 }
  0xfb   : > { %v1488_v63 = vadd.f32 %v1409_v21, %v1214_v59  ;;  %v534_v10 = vadd.f32 %v457_v28, %v259_v46  ;;  %v732_v14 = vsel %vm674_vm1, %v730_v2, %v731_v7  ;;  %v2089_v18 = vsel %vm674_vm1, %v2086_v45, %v2088_v22 }
  0xfc   : > { %v1292_v32 = vmul.f32 %v3787_v34, %v1253_v49  ;;  %v1411_v44 = vrot.slane %v3791_v47, 2  ;;  %v1557_v20 = vunpack.c.h.bf16 %v2432_v36  ;;  %v1138_v55 = vsel %vm399_vm0, %v1136_v31, %v1137_v29  ;;  %v3843_v36 = vld [vmem:[%s4228_s1 + $0x1] ss:$0 sm:$0xff] }
  0xfd   : > { %v1620_v6 = vadd.f32 %v1588_v40, %v1488_v63  ;;  %v809_v38 = vadd.f32 %v732_v14, %v534_v10  ;;  %v1698_v30 = vmul.f32 %v3807_v53, %v1556_v61  ;;  %v1933_v48 = vunpack.c.l.bf16 %v2471_v43 }
  0xfe   : > { %v1410_v35 = vrot.slane %v1292_v32, 2  ;;  %v3811_v45 = vmul.f32 %v3807_v53, %v1557_v20  ;;  %v3819_v42 = vmul.f32 %v3816_v15, %v1557_v20  ;;  %v1589_v3 = vmul.f32 %v3825_v58, %v1556_v61 }
  0xff   : > { %v1894_v0 = vadd.f32 %v1815_v17, %v1620_v6  ;;  %v941_v56 = vadd.f32 %v909_v1, %v809_v38  ;;  %v1816_v4 = vrot.slane %v1698_v30, 1  ;;  %v1972_v50 = vmul.f32 %v3816_v15, %v1933_v48  ;;  %v2454_v17 = vld [vmem:[%s2690_s21 + $0xa4] sm:$0x1]  ;;  %v3849_v1 = vld [vmem:[%s4228_s1 + $0x2] ss:$0 sm:$0xff] }
 0x100   : > { %v1412_v40 = vsel %vm674_vm1, %v1410_v35, %v1411_v44  ;;  %v1817_v21 = vrot.slane %v3811_v45, 1  ;;  %v2091_v22 = vrot.slane %v3819_v42, 2  ;;  %v260_v16 = vmul.f32 %v3745_v41, %v3737_v12 }
 0x101   : > { %v2168_v60 = vadd.f32 %v2089_v18, %v1894_v0  ;;  %v1215_v11 = vadd.f32 %v1138_v55, %v941_v56  ;;  %v297_v51 = vunpack.c.l.bf16 %v280_v26  ;;  %v2090_v23 = vrot.slane %v1972_v50, 2  ;;  %v556_v55 = vld [vmem:[%s2690_s21 + $0x90] sm:$0xe] }
 0x102   : > { %v1818_v46 = vsel %vm399_vm0, %v1816_v4, %v1817_v21  ;;  %v910_v13 = vmul.f32 %v3764_v19, %v3684_v25  ;;  %v979_v24 = vunpack.c.l.bf16 %v2387_v54  ;;  %v1659_v49 = vunpack.c.l.bf16 %v2454_v17 }
 0x103   : > { %v2204_v52 = vadd.f32 %v3364_v8, %v2168_v60  ;;  %v1489_v37 = vadd.f32 %v1412_v40, %v1215_v11  ;;  %v338_v12 = vmul.f32 %v3843_v36, %v297_v51  ;;  %v613_v33 = vmul.f32 %v3849_v1, %v297_v51 }
 0x104   : > { %v2092_v59 = vsel %vm674_vm1, %v2090_v23, %v2091_v22  ;;  %v1020_v2 = vmul.f32 %v3771_v27, %v979_v24  ;;  %v1294_v9 = vmul.f32 %v3787_v34, %v979_v24  ;;  %v1700_v14 = vmul.f32 %v3807_v53, %v1659_v49 }
 0x105   : > { %v2236_v28 = vpack.c.bf16 %v2204_v52, %v2204_v52  ;;  %v1621_v31 = vadd.f32 %v1589_v3, %v1489_v37  ;;  %v458_v47 = vrot.slane %v338_v12, 1  ;;  %v733_v61 = vrot.slane %v613_v33, 2  ;;  %v2405_v3 = vld [vmem:[%s2690_s21 + $0x9c] sm:$0xe] }
 0x106   : > { %v1139_v63 = vrot.slane %v1020_v2, 1  ;;  %v1413_v10 = vrot.slane %v1294_v9, 2  ;;  %v1974_v43 = vmul.f32 %v3816_v15, %v1659_v49  ;;  %v1590_v38 = vmul.f32 %v3825_v58, %v1557_v20 }
 0x107   : > { %2269 = vst.msk [vmem:[%s2831_s15 + $0x54] sm:$0xf] %vm2247_vm2, %v2236_v28  ;;  %v1895_v18 = vadd.f32 %v1818_v46, %v1621_v31  ;;  %v459_v32 = vsel %vm399_vm0, %v456_v57, %v458_v47  ;;  %v734_v6 = vsel %vm674_vm1, %v731_v7, %v733_v61  ;;  %v1819_v45 = vrot.slane %v1700_v14, 1  ;;  %v2367_v7 = vld [vmem:[%s2690_s21 + $0x9c] sm:$0xff]   ;;  %v2597_v46 = vld [vmem:[%s2690_s21 + $0xa8] sm:$0xff]  }
 0x108   : > { %v535_v30 = vadd.f32 %v459_v32, %v260_v16  ;;  %v1140_v35 = vsel %vm399_vm0, %v1137_v29, %v1139_v63  ;;  %v261_v48 = vmul.f32 %v3745_v41, %v3682_v5  ;;  %v1414_v62 = vsel %vm674_vm1, %v1411_v44, %v1413_v10  ;;  %v2472_v28 = vld [vmem:[%s2690_s21 + $0xa8] sm:$0xe] }
 0x109   : > { %v2169_v26 = vadd.f32 %v2092_v59, %v1895_v18  ;;  %v339_v57 = vmul.f32 %v3843_v36, %v3682_v5  ;;  %v3877_v39 = vmul.f32 %v3843_v36, %v3684_v25  ;;  %v2093_v0 = vrot.slane %v1974_v43, 2 }
 0x10a   : > { %v810_v20 = vadd.f32 %v734_v6, %v535_v30  ;;  %v573_v56 = vunpack.c.l.bf16 %v556_v55  ;;  %v3882_v29 = vmul.f32 %v3849_v1, %v3684_v25  ;;  %v1820_v44 = vsel %vm399_vm0, %v1817_v21, %v1819_v45 }
 0x10b   : > { %v2205_v4 = vadd.f32 %v3364_v8, %v2169_v26  ;;  %v460_v5 = vrot.slane %v339_v57, 1  ;;  %v461_v54 = vrot.slane %v3877_v39, 1  ;;  %v878_v11 = vunpack.c.l.bf16 %v2367_v7 }
 0x10c   : > { %v942_v40 = vadd.f32 %v910_v13, %v810_v20  ;;  %v614_v50 = vmul.f32 %v3849_v1, %v573_v56  ;;  %v736_v60 = vrot.slane %v3882_v29, 2  ;;  %v879_v17 = vunpack.c.h.bf16 %v2367_v7 }
 0x10d   : > { %v2237_v16 = vpack.c.bf16 %v2205_v4, %v2205_v4  ;;  %v462_v51 = vsel %vm399_vm0, %v460_v5, %v461_v54  ;;  %v1254_v8 = vunpack.c.l.bf16 %v2405_v3  ;;  %v911_v52 = vmul.f32 %v3764_v19, %v878_v11 }
 0x10e   : > { %v1216_v21 = vadd.f32 %v1140_v35, %v942_v40  ;;  %v536_v23 = vadd.f32 %v462_v51, %v261_v48  ;;  %v735_v24 = vrot.slane %v614_v50, 2  ;;  %v1021_v13 = vmul.f32 %v3771_v27, %v878_v11  ;;  %v281_v35 = vld [vmem:[%s2690_s21 + $0x98] sm:$0x1]  ;;  %v2388_v48 = vld [vmem:[%s2690_s21 + $0xa4] sm:$0x1] }
 0x10f   : > { %2270 = vst.msk [vmem:[%s2831_s15 + $0x58] sm:$0xf] %vm2247_vm2, %v2237_v16  ;;  %v3899_v37 = vmul.f32 %v3771_v27, %v879_v17  ;;  %v1295_v12 = vmul.f32 %v3787_v34, %v1254_v8  ;;  %v3903_v33 = vmul.f32 %v3787_v34, %v879_v17  ;;  %v3908_v9 = vunpack.c.l.bf16 %v2597_v46  ;;  %v2455_v50 = vld [vmem:[%s2690_s21 + $0xb0] sm:$0x1]  ;;  %v3941_v11 = vld [vmem:[%s4229_s2] ss:$0 sm:$0xff] }
 0x110   : > { %v1490_v59 = vadd.f32 %v1414_v62, %v1216_v21  ;;  %v737_v2 = vsel %vm674_vm1, %v735_v24, %v736_v60  ;;  %v3910_v49 = vunpack.c.h.bf16 %v2597_v46  ;;  %v1141_v47 = vrot.slane %v1021_v13, 1  ;;  %v197_v46 = vld [vmem:[%s2690_s21 + $0x9c] sm:$0xff]  }
 0x111   : > { %v811_v31 = vadd.f32 %v737_v2, %v536_v23  ;;  %v1142_v61 = vrot.slane %v3899_v37, 1  ;;  %v1415_v63 = vrot.slane %v1295_v12, 2  ;;  %v2094_v14 = vsel %vm674_vm1, %v2091_v22, %v2093_v0 }
 0x112   : > { %v1622_v10 = vadd.f32 %v1590_v38, %v1490_v59  ;;  %v1416_v43 = vrot.slane %v3903_v33, 2  ;;  %v1701_v18 = vmul.f32 %v3807_v53, %v3908_v9  ;;  %v1702_v55 = vmul.f32 %v3807_v53, %v3910_v49 }
 0x113   : > { %v943_v32 = vadd.f32 %v911_v52, %v811_v31  ;;  %v1143_v6 = vsel %vm399_vm0, %v1141_v47, %v1142_v61  ;;  %v1934_v30 = vunpack.c.l.bf16 %v2472_v28  ;;  %v3927_v22 = vmul.f32 %v3816_v15, %v3910_v49 }
 0x114   : > { %v1896_v45 = vadd.f32 %v1820_v44, %v1622_v10  ;;  %v1417_v38 = vsel %vm674_vm1, %v1415_v63, %v1416_v43  ;;  %v1821_v42 = vrot.slane %v1701_v18, 1  ;;  %v1591_v62 = vmul.f32 %v3825_v58, %v3908_v9 }
 0x115   : > { %v1217_v26 = vadd.f32 %v1143_v6, %v943_v32  ;;  %v1822_v57 = vrot.slane %v1702_v55, 1  ;;  %v1975_v7 = vmul.f32 %v3816_v15, %v1934_v30  ;;  %v2096_v0 = vrot.slane %v3927_v22, 2 }
 0x116   : > { %v2170_v20 = vadd.f32 %v2094_v14, %v1896_v45  ;;  %v262_v56 = vmul.f32 %v3745_v41, %v3684_v25  ;;  %v298_v3 = vunpack.c.l.bf16 %v281_v35  ;;  %v912_v5 = vmul.f32 %v3764_v19, %v879_v17  ;;  %v557_v14 = vld [vmem:[%s2690_s21 + $0x9c] sm:$0xe] }
 0x117   : > { %v1491_v4 = vadd.f32 %v1417_v38, %v1217_v26  ;;  %v2095_v44 = vrot.slane %v1975_v7, 2  ;;  %v980_v40 = vunpack.c.l.bf16 %v2388_v48  ;;  %v1823_v51 = vsel %vm399_vm0, %v1821_v42, %v1822_v57  ;;  %v2406_v26 = vld [vmem:[%s2690_s21 + $0xa8] sm:$0xe] }
 0x118   : > { %v2206_v16 = vadd.f32 %v3941_v11, %v2170_v20  ;;  %v341_v8 = vmul.f32 %v3843_v36, %v298_v3  ;;  %v616_v25 = vmul.f32 %v3849_v1, %v298_v3  ;;  %v1660_v12 = vunpack.c.l.bf16 %v2455_v50  ;;  %v2436_v3 = vld [vmem:[%s2690_s21 + $0xb4] sm:$0xff]  }
 0x119   : > { %v1623_v21 = vadd.f32 %v1591_v62, %v1491_v4  ;;  %v2097_v17 = vsel %vm674_vm1, %v2095_v44, %v2096_v0  ;;  %v1023_v23 = vmul.f32 %v3771_v27, %v980_v40  ;;  %v1297_v24 = vmul.f32 %v3787_v34, %v980_v40 }
 0x11a   : > { %v2238_v52 = vpack.c.bf16 %v2206_v16, %v2206_v16  ;;  %v463_v13 = vrot.slane %v341_v8, 1  ;;  %v738_v37 = vrot.slane %v616_v25, 2  ;;  %v230_v28 = vunpack.c.l.bf16 %v197_v46 }
 0x11b   : > { %v1897_v33 = vadd.f32 %v1823_v51, %v1623_v21  ;;  %v1144_v59 = vrot.slane %v1023_v23, 1  ;;  %v1418_v2 = vrot.slane %v1297_v24, 2  ;;  %v1703_v63 = vmul.f32 %v3807_v53, %v1660_v12 }
 0x11c   : > { %2271 = vst.msk [vmem:[%s2831_s15 + $0x5c] sm:$0xf] %vm2247_vm2, %v2238_v52  ;;  %v464_v31 = vsel %vm399_vm0, %v461_v54, %v463_v13  ;;  %v739_v47 = vsel %vm674_vm1, %v736_v60, %v738_v37  ;;  %v1977_v10 = vmul.f32 %v3816_v15, %v1660_v12  ;;  %v1592_v55 = vmul.f32 %v3825_v58, %v3910_v49  ;;  %v2473_v13 = vld [vmem:[%s2690_s21 + $0xb4] sm:$0xe] }
 0x11d   : > { %v2171_v18 = vadd.f32 %v2097_v17, %v1897_v33  ;;  %v537_v32 = vadd.f32 %v464_v31, %v262_v56  ;;  %v1145_v6 = vsel %vm399_vm0, %v1142_v61, %v1144_v59  ;;  %v1419_v39 = vsel %vm674_vm1, %v1416_v43, %v1418_v2 }
 0x11e   : > { %v1824_v54 = vrot.slane %v1703_v63, 1  ;;  %v2098_v29 = vrot.slane %v1977_v10, 2  ;;  %v231_v30 = vunpack.c.h.bf16 %v197_v46  ;;  %v342_v45 = vmul.f32 %v3843_v36, %v230_v28 }
 0x11f   : > { %v2207_v60 = vadd.f32 %v3941_v11, %v2171_v18  ;;  %v812_v35 = vadd.f32 %v739_v47, %v537_v32  ;;  %v574_v38 = vunpack.c.l.bf16 %v557_v14  ;;  %v263_v61 = vmul.f32 %v3745_v41, %v230_v28 }
 0x120   : > { %v1825_v42 = vsel %vm399_vm0, %v1822_v57, %v1824_v54  ;;  %v3973_v48 = vmul.f32 %v3843_v36, %v231_v30  ;;  %v3976_v43 = vmul.f32 %v3849_v1, %v231_v30  ;;  %v465_v20 = vrot.slane %v342_v45, 1 }
 0x121   : > { %v2239_v62 = vpack.c.bf16 %v2207_v60, %v2207_v60  ;;  %v944_v7 = vadd.f32 %v912_v5, %v812_v35  ;;  %v617_v56 = vmul.f32 %v3849_v1, %v574_v38  ;;  %v913_v57 = vmul.f32 %v3764_v19, %v3908_v9 }
 0x122   : > { %v466_v4 = vrot.slane %v3973_v48, 1  ;;  %v741_v44 = vrot.slane %v3976_v43, 2  ;;  %v1024_v40 = vmul.f32 %v3771_v27, %v3908_v9  ;;  %v3991_v5 = vmul.f32 %v3771_v27, %v3910_v49 }
 0x123   : > { %2272 = vst.msk [vmem:[%s2831_s15 + $0x60] sm:$0xf] %vm2247_vm2, %v2239_v62  ;;  %v1218_v50 = vadd.f32 %v1145_v6, %v944_v7  ;;  %v740_v16 = vrot.slane %v617_v56, 2  ;;  %v1255_v51 = vunpack.c.l.bf16 %v2406_v26  ;;  %v3998_v46 = vmul.f32 %v3787_v34, %v3910_v49  ;;  %v2456_v62 = vld [vmem:[%s2690_s21 + $0xbc] sm:$0x1] }
 0x124   : > { %v467_v8 = vsel %vm399_vm0, %v465_v20, %v466_v4  ;;  %v1146_v25 = vrot.slane %v1024_v40, 1  ;;  %v1560_v21 = vunpack.c.l.bf16 %v2436_v3  ;;  %v1147_v52 = vrot.slane %v3991_v5, 1 }
 0x125   : > { %v1492_v17 = vadd.f32 %v1419_v39, %v1218_v50  ;;  %v538_v23 = vadd.f32 %v467_v8, %v263_v61  ;;  %v742_v24 = vsel %vm674_vm1, %v740_v16, %v741_v44  ;;  %v2099_v37 = vsel %vm674_vm1, %v2096_v0, %v2098_v29  ;;  %v282_v0 = vld [vmem:[%s2690_s21 + $0xa4] sm:$0x1] }
 0x126   : > { %v1298_v12 = vmul.f32 %v3787_v34, %v1255_v51  ;;  %v1421_v33 = vrot.slane %v3998_v46, 2  ;;  %v1561_v59 = vunpack.c.h.bf16 %v2436_v3  ;;  %v1148_v31 = vsel %vm399_vm0, %v1146_v25, %v1147_v52 }
 0x127   : > { %v1624_v2 = vadd.f32 %v1592_v55, %v1492_v17  ;;  %v813_v28 = vadd.f32 %v742_v24, %v538_v23  ;;  %v1704_v47 = vmul.f32 %v3807_v53, %v1560_v21  ;;  %v1935_v14 = vunpack.c.l.bf16 %v2473_v13  ;;  %v2389_v55 = vld [vmem:[%s2690_s21 + $0xb0] sm:$0x1] }
 0x128   : > { %v1420_v63 = vrot.slane %v1298_v12, 2  ;;  %v1705_v10 = vmul.f32 %v3807_v53, %v1561_v59  ;;  %v4014_v22 = vmul.f32 %v3816_v15, %v1561_v59  ;;  %v1593_v6 = vmul.f32 %v3825_v58, %v1560_v21 }
 0x129   : > { %v1898_v18 = vadd.f32 %v1825_v42, %v1624_v2  ;;  %v945_v32 = vadd.f32 %v913_v57, %v813_v28  ;;  %v1826_v39 = vrot.slane %v1704_v47, 1  ;;  %v1978_v60 = vmul.f32 %v3816_v15, %v1935_v14 }
 0x12a   : > { %v1422_v54 = vsel %vm674_vm1, %v1420_v63, %v1421_v33  ;;  %v1827_v29 = vrot.slane %v1705_v10, 1  ;;  %v2101_v35 = vrot.slane %v4014_v22, 2  ;;  %v264_v61 = vmul.f32 %v3745_v41, %v231_v30 }
 0x12b   : > { %v2172_v45 = vadd.f32 %v2099_v37, %v1898_v18  ;;  %v1219_v38 = vadd.f32 %v1148_v31, %v945_v32  ;;  %v299_v26 = vunpack.c.l.bf16 %v282_v0  ;;  %v2100_v7 = vrot.slane %v1978_v60, 2  ;;  %v558_v31 = vld [vmem:[%s2690_s21 + $0xa8] sm:$0xe] }
 0x12c   : > { %v1828_v42 = vsel %vm399_vm0, %v1826_v39, %v1827_v29  ;;  %v914_v20 = vmul.f32 %v3764_v19, %v3910_v49  ;;  %v981_v56 = vunpack.c.l.bf16 %v2389_v55  ;;  %v1661_v51 = vunpack.c.l.bf16 %v2456_v62 }
 0x12d   : > { %v2208_v3 = vadd.f32 %v3941_v11, %v2172_v45  ;;  %v1493_v57 = vadd.f32 %v1422_v54, %v1219_v38  ;;  %v344_v40 = vmul.f32 %v3843_v36, %v299_v26  ;;  %v619_v50 = vmul.f32 %v3849_v1, %v299_v26 }
 0x12e   : > { %v2102_v30 = vsel %vm674_vm1, %v2100_v7, %v2101_v35  ;;  %v1026_v16 = vmul.f32 %v3771_v27, %v981_v56  ;;  %v1300_v5 = vmul.f32 %v3787_v34, %v981_v56  ;;  %v1706_v24 = vmul.f32 %v3807_v53, %v1661_v51  ;;  %v2598_v7 = vld [vmem:[%s2690_s21 + $0xc0] sm:$0xff]  }
 0x12f   : > { %v2240_v8 = vpack.c.bf16 %v2208_v3, %v2208_v3  ;;  %v1625_v25 = vadd.f32 %v1593_v6, %v1493_v57  ;;  %v468_v46 = vrot.slane %v344_v40, 1  ;;  %v743_v21 = vrot.slane %v619_v50, 2  ;;  %v2407_v6 = vld [vmem:[%s2690_s21 + $0xb4] sm:$0xe] }
 0x130   : > { %v1149_v17 = vrot.slane %v1026_v16, 1  ;;  %v1423_v23 = vrot.slane %v1300_v5, 2  ;;  %v1980_v13 = vmul.f32 %v3816_v15, %v1661_v51  ;;  %v1594_v28 = vmul.f32 %v3825_v58, %v1561_v59 }
 0x131   : > { %2273 = vst.msk [vmem:[%s2831_s15 + $0x64] sm:$0xf] %vm2247_vm2, %v2240_v8  ;;  %v1899_v37 = vadd.f32 %v1828_v42, %v1625_v25  ;;  %v469_v12 = vsel %vm399_vm0, %v466_v4, %v468_v46  ;;  %v744_v2 = vsel %vm674_vm1, %v741_v44, %v743_v21  ;;  %v1829_v10 = vrot.slane %v1706_v24, 1  ;;  %v2371_v44 = vld [vmem:[%s2690_s21 + $0xb4] sm:$0xff]   ;;  %v2474_v25 = vld [vmem:[%s2690_s21 + $0xc0] sm:$0xe] }
 0x132   : > { %v539_v47 = vadd.f32 %v469_v12, %v264_v61  ;;  %v1150_v63 = vsel %vm399_vm0, %v1147_v52, %v1149_v17  ;;  %v265_v14 = vmul.f32 %v3745_v41, %v3908_v9  ;;  %v1424_v48 = vsel %vm674_vm1, %v1421_v33, %v1423_v23 }
 0x133   : > { %v2173_v0 = vadd.f32 %v2102_v30, %v1899_v37  ;;  %v345_v4 = vmul.f32 %v3843_v36, %v3908_v9  ;;  %v4055_v43 = vmul.f32 %v3843_v36, %v3910_v49  ;;  %v2103_v18 = vrot.slane %v1980_v13, 2 }
 0x134   : > { %v814_v59 = vadd.f32 %v744_v2, %v539_v47  ;;  %v575_v32 = vunpack.c.l.bf16 %v558_v31  ;;  %v4060_v52 = vmul.f32 %v3849_v1, %v3910_v49  ;;  %v1830_v33 = vsel %vm399_vm0, %v1827_v29, %v1829_v10  ;;  %v283_v10 = vld [vmem:[%s2690_s21 + $0xb0] sm:$0x1] }
 0x135   : > { %v2209_v39 = vadd.f32 %v3941_v11, %v2173_v0  ;;  %v470_v9 = vrot.slane %v345_v4, 1  ;;  %v471_v55 = vrot.slane %v4055_v43, 1  ;;  %v882_v38 = vunpack.c.l.bf16 %v2371_v44  ;;  %v2390_v0 = vld [vmem:[%s2690_s21 + $0xbc] sm:$0x1] }
 0x136   : > { %v946_v54 = vadd.f32 %v914_v20, %v814_v59  ;;  %v620_v60 = vmul.f32 %v3849_v1, %v575_v32  ;;  %v746_v45 = vrot.slane %v4060_v52, 2  ;;  %v883_v62 = vunpack.c.h.bf16 %v2371_v44 }
 0x137   : > { %v2241_v61 = vpack.c.bf16 %v2209_v39, %v2209_v39  ;;  %v472_v26 = vsel %vm399_vm0, %v470_v9, %v471_v55  ;;  %v1256_v42 = vunpack.c.l.bf16 %v2407_v6  ;;  %v915_v57 = vmul.f32 %v3764_v19, %v882_v38 }
 0x138   : > { %v1220_v29 = vadd.f32 %v1150_v63, %v946_v54  ;;  %v540_v56 = vadd.f32 %v472_v26, %v265_v14  ;;  %v745_v3 = vrot.slane %v620_v60, 2  ;;  %v1027_v20 = vmul.f32 %v3771_v27, %v882_v38  ;;  %v2457_v38 = vld [vmem:[%s2690_s21 + $0xc8] sm:$0x1] }
 0x139   : > { %2274 = vst.msk [vmem:[%s2831_s15 + $0x68] sm:$0xf] %vm2247_vm2, %v2241_v61  ;;  %v4077_v40 = vmul.f32 %v3771_v27, %v883_v62  ;;  %v1301_v50 = vmul.f32 %v3787_v34, %v1256_v42  ;;  %v4081_v30 = vmul.f32 %v3787_v34, %v883_v62  ;;  %v4086_v51 = vunpack.c.l.bf16 %v2598_v7 }
 0x13a   : > { %v1494_v16 = vadd.f32 %v1424_v48, %v1220_v29  ;;  %v747_v5 = vsel %vm674_vm1, %v745_v3, %v746_v45  ;;  %v4088_v8 = vunpack.c.h.bf16 %v2598_v7  ;;  %v1151_v21 = vrot.slane %v1027_v20, 1  ;;  %v201_v29 = vld [vmem:[%s2690_s21 + $0xb4] sm:$0xff]  }
 0x13b   : > { %v815_v46 = vadd.f32 %v747_v5, %v540_v56  ;;  %v1152_v17 = vrot.slane %v4077_v40, 1  ;;  %v1425_v23 = vrot.slane %v1301_v50, 2  ;;  %v2104_v13 = vsel %vm674_vm1, %v2101_v35, %v2103_v18 }
 0x13c   : > { %v1626_v24 = vadd.f32 %v1594_v28, %v1494_v16  ;;  %v1426_v37 = vrot.slane %v4081_v30, 2  ;;  %v1707_v12 = vmul.f32 %v3807_v53, %v4086_v51  ;;  %v1708_v47 = vmul.f32 %v3807_v53, %v4088_v8 }
 0x13d   : > { %v947_v2 = vadd.f32 %v915_v57, %v815_v46  ;;  %v1153_v31 = vsel %vm399_vm0, %v1151_v21, %v1152_v17  ;;  %v1936_v63 = vunpack.c.l.bf16 %v2474_v25  ;;  %v4105_v35 = vmul.f32 %v3816_v15, %v4088_v8 }
 0x13e   : > { %v1900_v14 = vadd.f32 %v1830_v33, %v1626_v24  ;;  %v1427_v28 = vsel %vm674_vm1, %v1425_v23, %v1426_v37  ;;  %v1831_v22 = vrot.slane %v1707_v12, 1  ;;  %v1595_v4 = vmul.f32 %v3825_v58, %v4086_v51 }
 0x13f   : > { %v1221_v48 = vadd.f32 %v1153_v31, %v947_v2  ;;  %v1832_v44 = vrot.slane %v1708_v47, 1  ;;  %v1981_v59 = vmul.f32 %v3816_v15, %v1936_v63  ;;  %v2106_v32 = vrot.slane %v4105_v35, 2 }
 0x140   : > { %v2174_v18 = vadd.f32 %v2104_v13, %v1900_v14  ;;  %v266_v6 = vmul.f32 %v3745_v41, %v3910_v49  ;;  %v300_v39 = vunpack.c.l.bf16 %v283_v10  ;;  %v916_v54 = vmul.f32 %v3764_v19, %v883_v62  ;;  %v559_v13 = vld [vmem:[%s2690_s21 + $0xb4] sm:$0xe] }
 0x141   : > { %v1495_v33 = vadd.f32 %v1427_v28, %v1221_v48  ;;  %v2105_v9 = vrot.slane %v1981_v59, 2  ;;  %v982_v60 = vunpack.c.l.bf16 %v2390_v0  ;;  %v1833_v26 = vsel %vm399_vm0, %v1831_v22, %v1832_v44  ;;  %v2408_v48 = vld [vmem:[%s2690_s21 + $0xc0] sm:$0xe] }
 0x142   : > { %v2210_v61 = vadd.f32 %v3941_v11, %v2174_v18  ;;  %v347_v42 = vmul.f32 %v3843_v36, %v300_v39  ;;  %v622_v7 = vmul.f32 %v3849_v1, %v300_v39  ;;  %v1662_v50 = vunpack.c.l.bf16 %v2457_v38  ;;  %v2440_v39 = vld [vmem:[%s2690_s21 + $0xcc] sm:$0xff]  }
 0x143   : > { %v1627_v56 = vadd.f32 %v1595_v4, %v1495_v33  ;;  %v2107_v49 = vsel %vm674_vm1, %v2105_v9, %v2106_v32  ;;  %v1029_v62 = vmul.f32 %v3771_v27, %v982_v60  ;;  %v1303_v3 = vmul.f32 %v3787_v34, %v982_v60 }
 0x144   : > { %v2242_v57 = vpack.c.bf16 %v2210_v61, %v2210_v61  ;;  %v473_v20 = vrot.slane %v347_v42, 1  ;;  %v748_v40 = vrot.slane %v622_v7, 2  ;;  %v234_v25 = vunpack.c.l.bf16 %v201_v29 }
 0x145   : > { %v1901_v30 = vadd.f32 %v1833_v26, %v1627_v56  ;;  %v1154_v16 = vrot.slane %v1029_v62, 1  ;;  %v1428_v5 = vrot.slane %v1303_v3, 2  ;;  %v1709_v23 = vmul.f32 %v3807_v53, %v1662_v50 }
 0x146   : > { %2275 = vst.msk [vmem:[%s2831_s15 + $0x6c] sm:$0xf] %vm2247_vm2, %v2242_v57  ;;  %v474_v46 = vsel %vm399_vm0, %v471_v55, %v473_v20  ;;  %v749_v21 = vsel %vm674_vm1, %v746_v45, %v748_v40  ;;  %v1983_v24 = vmul.f32 %v3816_v15, %v1662_v50  ;;  %v1596_v47 = vmul.f32 %v3825_v58, %v4088_v8  ;;  %v2475_v57 = vld [vmem:[%s2690_s21 + $0xcc] sm:$0xe] }
 0x147   : > { %v2175_v12 = vadd.f32 %v2107_v49, %v1901_v30  ;;  %v541_v2 = vadd.f32 %v474_v46, %v266_v6  ;;  %v1155_v31 = vsel %vm399_vm0, %v1152_v17, %v1154_v16  ;;  %v1429_v43 = vsel %vm674_vm1, %v1426_v37, %v1428_v5 }
 0x148   : > { %v1834_v55 = vrot.slane %v1709_v23, 1  ;;  %v2108_v52 = vrot.slane %v1983_v24, 2  ;;  %v235_v63 = vunpack.c.h.bf16 %v201_v29  ;;  %v348_v14 = vmul.f32 %v3843_v36, %v234_v25 }
 0x149   : > { %v2211_v45 = vadd.f32 %v3941_v11, %v2175_v12  ;;  %v816_v10 = vadd.f32 %v749_v21, %v541_v2  ;;  %v576_v28 = vunpack.c.l.bf16 %v559_v13  ;;  %v267_v17 = vmul.f32 %v3745_v41, %v234_v25  ;;  %v284_v13 = vld [vmem:[%s2690_s21 + $0xbc] sm:$0x1]  ;;  %v2391_v2 = vld [vmem:[%s2690_s21 + $0xc8] sm:$0x1] }
 0x14a   : > { %v1835_v22 = vsel %vm399_vm0, %v1832_v44, %v1834_v55  ;;  %v4146_v0 = vmul.f32 %v3843_v36, %v235_v63  ;;  %v4149_v37 = vmul.f32 %v3849_v1, %v235_v63  ;;  %v475_v18 = vrot.slane %v348_v14, 1 }
 0x14b   : > { %v2243_v4 = vpack.c.bf16 %v2211_v45, %v2211_v45  ;;  %v948_v59 = vadd.f32 %v916_v54, %v816_v10  ;;  %v623_v6 = vmul.f32 %v3849_v1, %v576_v28  ;;  %v917_v44 = vmul.f32 %v3764_v19, %v4086_v51  ;;  %v2458_v28 = vld [vmem:[%s2690_s21 + $0xd4] sm:$0x1] }
 0x14c   : > { %v476_v33 = vrot.slane %v4146_v0, 1  ;;  %v751_v9 = vrot.slane %v4149_v37, 2  ;;  %v1030_v60 = vmul.f32 %v3771_v27, %v4086_v51  ;;  %v4164_v54 = vmul.f32 %v3771_v27, %v4088_v8 }
 0x14d   : > { %2276 = vst.msk [vmem:[%s2831_s15 + $0x70] sm:$0xf] %vm2247_vm2, %v2243_v4  ;;  %v1222_v38 = vadd.f32 %v1155_v31, %v948_v59  ;;  %v750_v61 = vrot.slane %v623_v6, 2  ;;  %v1257_v26 = vunpack.c.l.bf16 %v2408_v48  ;;  %v4171_v29 = vmul.f32 %v3787_v34, %v4088_v8 }
 0x14e   : > { %v477_v42 = vsel %vm399_vm0, %v475_v18, %v476_v33  ;;  %v1156_v7 = vrot.slane %v1030_v60, 1  ;;  %v1564_v56 = vunpack.c.l.bf16 %v2440_v39  ;;  %v1157_v3 = vrot.slane %v4164_v54, 1 }
 0x14f   : > { %v1496_v51 = vadd.f32 %v1429_v43, %v1222_v38  ;;  %v542_v49 = vadd.f32 %v477_v42, %v267_v17  ;;  %v752_v62 = vsel %vm674_vm1, %v750_v61, %v751_v9  ;;  %v2109_v20 = vsel %vm674_vm1, %v2106_v32, %v2108_v52 }
 0x150   : > { %v1304_v40 = vmul.f32 %v3787_v34, %v1257_v26  ;;  %v1431_v50 = vrot.slane %v4171_v29, 2  ;;  %v1565_v30 = vunpack.c.h.bf16 %v2440_v39  ;;  %v1158_v25 = vsel %vm399_vm0, %v1156_v7, %v1157_v3 }
 0x151   : > { %v1628_v16 = vadd.f32 %v1596_v47, %v1496_v51  ;;  %v817_v5 = vadd.f32 %v752_v62, %v542_v49  ;;  %v1710_v46 = vmul.f32 %v3807_v53, %v1564_v56  ;;  %v1937_v24 = vunpack.c.l.bf16 %v2475_v57 }
 0x152   : > { %v1430_v21 = vrot.slane %v1304_v40, 2  ;;  %v1711_v23 = vmul.f32 %v3807_v53, %v1565_v30  ;;  %v1985_v35 = vmul.f32 %v3816_v15, %v1565_v30  ;;  %v1597_v10 = vmul.f32 %v3825_v58, %v1564_v56 }
 0x153   : > { %v1902_v32 = vadd.f32 %v1835_v22, %v1628_v16  ;;  %v949_v12 = vadd.f32 %v917_v44, %v817_v5  ;;  %v1836_v43 = vrot.slane %v1710_v46, 1  ;;  %v1984_v55 = vmul.f32 %v3816_v15, %v1937_v24 }
 0x154   : > { %v1432_v31 = vsel %vm674_vm1, %v1430_v21, %v1431_v50  ;;  %v1837_v47 = vrot.slane %v1711_v23, 1  ;;  %v301_v14 = vunpack.c.l.bf16 %v284_v13  ;;  %v2111_v48 = vrot.slane %v1985_v35, 2 }
 0x155   : > { %v2176_v52 = vadd.f32 %v2109_v20, %v1902_v32  ;;  %v1223_v45 = vadd.f32 %v1158_v25, %v949_v12  ;;  %v2110_v17 = vrot.slane %v1984_v55, 2  ;;  %v268_v4 = vmul.f32 %v3745_v41, %v235_v63 }
 0x156   : > { %v983_v22 = vunpack.c.l.bf16 %v2391_v2  ;;  %v350_v6 = vmul.f32 %v3843_v36, %v301_v14  ;;  %v625_v39 = vmul.f32 %v3849_v1, %v301_v14  ;;  %v1838_v44 = vsel %vm399_vm0, %v1836_v43, %v1837_v47 }
 0x157   : > { %v2212_v59 = vadd.f32 %v3941_v11, %v2176_v52  ;;  %v1497_v18 = vadd.f32 %v1432_v31, %v1223_v45  ;;  %v1663_v61 = vunpack.c.l.bf16 %v2458_v28  ;;  %v2112_v41 = vsel %vm674_vm1, %v2110_v17, %v2111_v48 }
 0x158   : > { %v1032_v60 = vmul.f32 %v3771_v27, %v983_v22  ;;  %v1306_v38 = vmul.f32 %v3787_v34, %v983_v22  ;;  %v478_v42 = vrot.slane %v350_v6, 1  ;;  %v753_v7 = vrot.slane %v625_v39, 2 }
 0x159   : > { %v2244_v54 = vpack.c.bf16 %v2212_v59, %v2212_v59  ;;  %v1629_v26 = vadd.f32 %v1597_v10, %v1497_v18  ;;  %v918_v29 = vmul.f32 %v3764_v19, %v4088_v8  ;;  %v1712_v49 = vmul.f32 %v3807_v53, %v1663_v61 }
 0x15a   : > { %v479_v36 = vsel %vm399_vm0, %v476_v33, %v478_v42  ;;  %v754_v27 = vsel %vm674_vm1, %v751_v9, %v753_v7  ;;  %v1159_v1 = vrot.slane %v1032_v60, 1  ;;  %v1433_v51 = vrot.slane %v1306_v38, 2 }
 0x15b   : > { %2277 = vst.msk [vmem:[%s2831_s15 + $0x74] sm:$0xf] %vm2247_vm2, %v2244_v54  ;;  %v1903_v63 = vadd.f32 %v1838_v44, %v1629_v26  ;;  %v543_v34 = vadd.f32 %v479_v36, %v268_v4  ;;  %v1986_v33 = vmul.f32 %v3816_v15, %v1663_v61  ;;  %v1839_v40 = vrot.slane %v1712_v49, 1 }
 0x15c   : > { %v1160_v0 = vsel %vm399_vm0, %v1157_v3, %v1159_v1  ;;  %v1434_v20 = vsel %vm674_vm1, %v1431_v50, %v1433_v51  ;;  %v1598_v19 = vmul.f32 %v3825_v58, %v1565_v30 }
 0x15d   : > { %v2177_v56 = vadd.f32 %v2112_v41, %v1903_v63  ;;  %v818_v62 = vadd.f32 %v754_v27, %v543_v34  ;;  %v2113_v8 = vrot.slane %v1986_v33, 2  ;;  %v1840_v5 = vsel %vm399_vm0, %v1837_v47, %v1839_v40 }
 0x15f   : > { %v2213_v57 = vadd.f32 %v3941_v11, %v2177_v56  ;;  %v950_v37 = vadd.f32 %v918_v29, %v818_v62  ;;  %v2114_v3 = vsel %vm674_vm1, %v2111_v48, %v2113_v8 }
 0x161   : > { %v2245_v9 = vpack.c.bf16 %v2213_v57, %v2213_v57  ;;  %v1224_v16 = vadd.f32 %v1160_v0, %v950_v37 }
 0x163   : > { %2278 = vst.msk [vmem:[%s2831_s15 + $0x78] sm:$0xf] %vm2247_vm2, %v2245_v9  ;;  %v1498_v53 = vadd.f32 %v1434_v20, %v1224_v16 }
 0x165   : > { %v1630_v25 = vadd.f32 %v1598_v19, %v1498_v53 }
 0x167   : > { %v1904_v46 = vadd.f32 %v1840_v5, %v1630_v25 }
 0x169   : > { %v2178_v15 = vadd.f32 %v2114_v3, %v1904_v46 }
 0x16b   : > { %v2214_v21 = vadd.f32 %v3941_v11, %v2178_v15 }
 0x16d   : > { %v2246_v23 = vpack.c.bf16 %v2214_v21, %v2214_v21 }
 0x16f   : > { %2279 = vst.msk [vmem:[%s2831_s15 + $0x7c] sm:$0xf] %vm2247_vm2, %v2246_v23 }
 0x170 PF: > { %s13_s12 = sadd.s32 1, %s2644_s12  }
 0x171   : > { %p10_p4 = scmp.ge.s32.totalorder %s13_s12, 4  }
 0x173   :  { %12 = sbr.rel (!%p10_p4) target bundleno = 1 (0x1), region = 66 }

</bundles_post_ra>
